<compile_context>
chip_gen: v7x
topology: tpu7x:2x2x1
jax: 0.10.0
libtpu: 0.0.40
codegen_flags: <defaults>
</compile_context>

<pallas_src>
import functools

import jax
import jax.numpy as jnp
from jax.experimental import pallas as pl
from jax.experimental.pallas import tpu as pltpu

CHANNEL = 64
INPUT_CHANNEL = 3
BN_EPS = 1e-5

MAX_TM = 1024   # M-tile target for large layers
MAX_TK = 1536   # K-tile upper bound; actual tk always divides padded K


def _round_up(x, m):
    return ((x + m - 1) // m) * m


# Generation detection.
try:
    _IS_V5_TPU = "v5" in jax.devices()[0].device_kind.lower()
except Exception:  # pragma: no cover - defensive
    _IS_V5_TPU = False


def _vmem_limit_bytes():
    cap = 128 * 1024 * 1024
    try:
        cap = int(pltpu.get_tpu_info().vmem_capacity_bytes)
    except Exception:  # pragma: no cover - defensive
        pass
    if cap <= 64 * 1024 * 1024:
        # v7x-class part: 64 MiB per TensorCore -> leave headroom.
        return 48 * 1024 * 1024
    # v5e / v6e (128 MiB): allow large tiles / deep buffering.
    return min(100 * 1024 * 1024, (cap * 3) // 4)


_VMEM_LIMIT_BYTES = _vmem_limit_bytes()


# ---------------------------------------------------------------------------
# Pallas kernel: K-tiled (patches @ W) with f32 accumulator, fused
# scale/shift (bias + BN) and activation epilogue.
# Grid = (M-tiles, K-tiles); the full (lane-dense) Cout lives in one block.
# ---------------------------------------------------------------------------
def _conv_mm_kernel(a_ref, w_ref, scale_ref, shift_ref, o_ref, acc_ref, *, act):
    k = pl.program_id(1)
    contrib = jnp.dot(
        a_ref[...], w_ref[...], preferred_element_type=jnp.float32
    )

    @pl.when(k == 0)
    def _():
        acc_ref[...] = contrib          # assignment: no zero-fill + add

    @pl.when(k > 0)
    def _():
        acc_ref[...] += contrib

    @pl.when(k == pl.num_programs(1) - 1)
    def _():
        acc = acc_ref[...] * scale_ref[...] + shift_ref[...]
        if act == "leaky":
            acc = jnp.where(acc >= 0.0, acc, 0.2 * acc)
        elif act == "sigmoid":
            acc = pl.reciprocal(1.0 + jnp.exp(-acc), approx=True)
        o_ref[...] = acc.astype(o_ref.dtype)


def _pick_tm(m):
    if m >= 2 * MAX_TM:
        return MAX_TM
    if m >= MAX_TM:
        return MAX_TM // 2   # keep >= 2 M-tiles so both v7x TensorCores get work
    return _round_up(m, 8)


def _pick_tk(k_pad):
    """Largest multiple of 128 <= min(k_pad, MAX_TK) that divides k_pad."""
    cap = min(k_pad, MAX_TK)
    tk = cap - (cap % 128)
    while tk > 128 and k_pad % tk != 0:
        tk -= 128
    return max(tk, 128)


def _input_specs(tm, tk, c_pad):
    a_map = lambda i, kk: (i, kk)
    w_map = lambda i, kk: (kk, 0)
    if _IS_V5_TPU:
        # Deeper input buffering hides per-K-step DMA latency on v5e.
        try:
            return (
                pl.BlockSpec((tm, tk), a_map, pipeline_mode=pl.Buffered(3)),
                pl.BlockSpec((tk, c_pad), w_map, pipeline_mode=pl.Buffered(3)),
            )
        except Exception:  # pragma: no cover - older API fallback
            pass
    return pl.BlockSpec((tm, tk), a_map), pl.BlockSpec((tk, c_pad), w_map)


def conv_matmul(patches, w_pad, scale, shift, *, act, cout, out_dtype):
    """patches: (M, K) bf16; w_pad: (K_pad, C_pad) bf16; scale/shift: (1, C_pad) f32."""
    m, k = patches.shape
    k_pad, c_pad = w_pad.shape
    tm = _pick_tm(m)
    tk = _pick_tk(k_pad)
    m_pad = _round_up(m, tm)

    # Only pad when misaligned (K padding must be zeros for correctness).
    if (m_pad, k_pad) != (m, k):
        patches = jnp.pad(patches, ((0, m_pad - m), (0, k_pad - k)))

    grid = (m_pad // tm, k_pad // tk)
    a_spec, w_spec = _input_specs(tm, tk, c_pad)
    kernel = functools.partial(_conv_mm_kernel, act=act)

    out = pl.pallas_call(
        kernel,
        out_shape=jax.ShapeDtypeStruct((m_pad, c_pad), out_dtype),
        grid_spec=pltpu.PrefetchScalarGridSpec(
            num_scalar_prefetch=0,
            grid=grid,
            in_specs=[
                a_spec,                                           # patch tile
                w_spec,                                           # weight K-slab (full Cout)
                pl.BlockSpec((1, c_pad), lambda i, kk: (0, 0)),   # fused scale
                pl.BlockSpec((1, c_pad), lambda i, kk: (0, 0)),   # fused shift
            ],
            out_specs=pl.BlockSpec((tm, c_pad), lambda i, kk: (i, 0)),
            scratch_shapes=[pltpu.VMEM((tm, c_pad), jnp.float32)],
        ),
        compiler_params=pltpu.CompilerParams(
            dimension_semantics=("parallel", "arbitrary"),
            vmem_limit_bytes=_VMEM_LIMIT_BYTES,
        ),
    )(patches, w_pad, scale, shift)
    return out[:m, :cout]


# ---------------------------------------------------------------------------
# Glue: im2col (NHWC, bf16), layer driver.
# ---------------------------------------------------------------------------
def im2col_nhwc(x, kh, kw, stride, pad):
    """x: (N, H, W, C) -> (N*OH*OW, KH*KW*C), patch order (KH, KW, C)."""
    x = jnp.pad(x, ((0, 0), (pad, pad), (pad, pad), (0, 0)))
    n, h, w, c = x.shape
    oh = (h - kh) // stride + 1
    ow = (w - kw) // stride + 1
    cols = []
    for i in range(kh):
        for j in range(kw):
            cols.append(x[:, i:i + stride * oh:stride, j:j + stride * ow:stride, :])
    patches = jnp.concatenate(cols, axis=-1)          # (N, OH, OW, KH*KW*C)
    return patches.reshape(n * oh * ow, kh * kw * c), (n, oh, ow)


def conv_layer(x_nhwc, layer):
    patches, (n, oh, ow) = im2col_nhwc(
        x_nhwc, layer["kh"], layer["kw"], layer["stride"], layer["pad"]
    )
    out = conv_matmul(
        patches, layer["w"], layer["scale"], layer["shift"],
        act=layer["act"], cout=layer["cout"], out_dtype=layer["out_dtype"],
    )
    return out.reshape(n, oh, ow, layer["cout"])


# ---------------------------------------------------------------------------
# Parameter construction (deterministic, synthetic) and one-time pre-packing.
# ---------------------------------------------------------------------------
def make_params(key):
    cfgs = [
        # (cin,             cout,        k, stride, pad, act,       bn)
        (INPUT_CHANNEL * 2, CHANNEL,     4, 2, 1, "leaky",   False),  # conv1
        (CHANNEL,           CHANNEL * 2, 4, 2, 1, "leaky",   True),   # conv2 (ConvBlock)
        (CHANNEL * 2,       CHANNEL * 4, 4, 2, 1, "leaky",   True),   # conv3
        (CHANNEL * 4,       CHANNEL * 8, 3, 1, 1, "leaky",   True),   # conv4
        (CHANNEL * 8,       CHANNEL * 8, 3, 1, 1, "leaky",   True),   # conv5
        (CHANNEL * 8,       1,           3, 1, 1, "sigmoid", False),  # conv6
    ]
    params = []
    for cin, cout, k, stride, pad, act, bn in cfgs:
        key, wk, bk = jax.random.split(key, 3)
        w = jax.random.normal(wk, (cout, cin, k, k), dtype=jnp.float32) * 0.05
        b = jax.random.normal(bk, (cout,), dtype=jnp.float32) * 0.05
        params.append(dict(w=w, b=b, stride=stride, pad=pad, act=act, bn=bn))
    return params


def pack_params(params):
    """One-time transpose/pad/bf16-cast of weights and bias+BN folding."""
    packed = []
    n_layers = len(params)
    for idx, p in enumerate(params):
        w, b = p["w"], p["b"]
        cout, cin, kh, kw = w.shape
        k = kh * kw * cin
        k_pad = _round_up(k, 128)
        c_pad = _round_up(cout, 128)
        # (Cout, Cin, KH, KW) -> (KH, KW, Cin, Cout) -> (K, Cout): matches patch order.
        w_mat = jnp.transpose(w, (2, 3, 1, 0)).reshape(k, cout)
        w_mat = jnp.pad(
            w_mat, ((0, k_pad - k), (0, c_pad - cout))
        ).astype(jnp.bfloat16)
        if p["bn"]:
            # Eval-mode BN with default stats: gamma=1, beta=0, mean=0, var=1.
            # With a trained checkpoint, fold the real per-channel running
            # stats / affine params here instead.
            bn_scale = 1.0 / jnp.sqrt(jnp.float32(1.0 + BN_EPS))
            scale = jnp.full((cout,), bn_scale, dtype=jnp.float32)
            shift = b.astype(jnp.float32) * bn_scale
        else:
            scale = jnp.ones((cout,), dtype=jnp.float32)
            shift = b.astype(jnp.float32)
        scale = jnp.pad(scale.reshape(1, cout), ((0, 0), (0, c_pad - cout)))
        shift = jnp.pad(shift.reshape(1, cout), ((0, 0), (0, c_pad - cout)))
        is_last = idx == n_layers - 1
        packed.append(dict(
            w=w_mat, scale=scale, shift=shift,
            kh=kh, kw=kw, stride=p["stride"], pad=p["pad"], act=p["act"],
            cout=cout,
            out_dtype=jnp.float32 if is_last else jnp.bfloat16,
        ))
    return packed


def discriminator_forward(x_nchw, y_nchw, packed):
    xy = jnp.concatenate([x_nchw, y_nchw], axis=1)             # (N, 2*Cin, H, W)
    h = jnp.transpose(xy, (0, 2, 3, 1)).astype(jnp.bfloat16)   # NCHW -> NHWC, bf16 path
    for layer in packed:
        h = conv_layer(h, layer)
    return jnp.transpose(h, (0, 3, 1, 2))                      # NHWC -> NCHW (f32 final)


# Pure-JAX reference (f32, lax conv) for correctness checking.
def _reference_forward(x, y, params):
    h = jnp.concatenate([x, y], axis=1)
    for p in params:
        h = jax.lax.conv_general_dilated(
            h, p["w"], window_strides=(p["stride"], p["stride"]),
            padding=[(p["pad"], p["pad"]), (p["pad"], p["pad"])],
            dimension_numbers=("NCHW", "OIHW", "NCHW"))
        h = h + p["b"].reshape(1, -1, 1, 1)
        if p["bn"]:
            h = h / jnp.sqrt(1.0 + BN_EPS)
        if p["act"] == "leaky":
            h = jnp.where(h >= 0.0, h, 0.2 * h)
        elif p["act"] == "sigmoid":
            h = jax.nn.sigmoid(h)
    return h


if __name__ == "__main__":
    key = jax.random.PRNGKey(0)
    kx, ky, kp = jax.random.split(key, 3)
    # Small shapes: batch=2, 3 channels per image, 16x16 spatial.
    # NOTE: at this toy resolution the run is launch/glue-bound; realistic
    # benchmarking should use ~256x256 inputs (where M/K are tile-aligned).
    x = jax.random.normal(kx, (2, INPUT_CHANNEL, 16, 16), dtype=jnp.float32)
    y = jax.random.normal(ky, (2, INPUT_CHANNEL, 16, 16), dtype=jnp.float32)
    params = make_params(kp)
    packed = pack_params(params)   # one-time weight pre-pack (outside jit)

    fwd = jax.jit(functools.partial(discriminator_forward, packed=packed))
    out = jax.block_until_ready(fwd(x, y))
    assert out.shape == (2, 1, 2, 2), out.shape
    assert bool(jnp.all(jnp.isfinite(out)))

    ref = jax.block_until_ready(_reference_forward(x, y, params))
    max_err = float(jnp.max(jnp.abs(out - ref)))
    # bf16 activation path with f32 accumulation + approx-reciprocal sigmoid.
    assert max_err < 6e-2, f"max abs err vs reference: {max_err}"
    print("KERNEL_OK")
</pallas_src>

<mosaic_0001>
module attributes {stable_mosaic.version = 11 : i64} {
  func.func @_conv_mm_kernel(%arg0: i32, %arg1: i32, %arg2: memref<128x128xbf16, #tpu.memory_space<vmem>>, %arg3: memref<128x128xbf16, #tpu.memory_space<vmem>>, %arg4: memref<1x128xf32, #tpu.memory_space<vmem>>, %arg5: memref<1x128xf32, #tpu.memory_space<vmem>>, %arg6: memref<128x128xbf16, #tpu.memory_space<vmem>>, %arg7: memref<128x128xf32, #tpu.memory_space<vmem>>) attributes {dimension_semantics = [#tpu.dimension_semantics<parallel>, #tpu.dimension_semantics<arbitrary>], iteration_bounds = array<i64: 1, 1>, scalar_prefetch = 0 : i64, scratch_operands = 1 : i64, tpu.core_type = #tpu.core_type<tc>, window_params = [{transform_indices = @transform_0, window_bounds = array<i64: 128, 128>}, {transform_indices = @transform_1, window_bounds = array<i64: 128, 128>}, {pipeline_mode = #tpu.pipeline_mode<synchronous>, transform_indices = @transform_2, window_bounds = array<i64: 1, 128>}, {pipeline_mode = #tpu.pipeline_mode<synchronous>, transform_indices = @transform_3, window_bounds = array<i64: 1, 128>}, {transform_indices = @transform_4, window_bounds = array<i64: 128, 128>}]} {
    %c0 = arith.constant 0 : index
    %c0_0 = arith.constant 0 : index
    %0 = vector.load %arg2[%c0, %c0_0] : memref<128x128xbf16, #tpu.memory_space<vmem>>, vector<128x128xbf16>
    %c0_1 = arith.constant 0 : index
    %c0_2 = arith.constant 0 : index
    %1 = vector.load %arg3[%c0_1, %c0_2] : memref<128x128xbf16, #tpu.memory_space<vmem>>, vector<128x128xbf16>
    %cst = arith.constant dense<0.000000e+00> : vector<128x128xf32>
    %2 = tpu.matmul %0, %1, %cst {dimension_numbers = #tpu.dot_dimension_numbers<[1], [0], [0], [1], [0, 0, 1, 1], [], []>} : vector<128x128xbf16>, vector<128x128xbf16>, vector<128x128xf32> -> vector<128x128xf32>
    %c0_i32 = arith.constant 0 : i32
    %3 = arith.cmpi eq, %arg1, %c0_i32 : i32
    %4 = arith.extui %3 : i1 to i32
    %c0_i32_3 = arith.constant 0 : i32
    %5 = arith.cmpi ne, %4, %c0_i32_3 : i32
    scf.if %5 {
      %c0_8 = arith.constant 0 : index
      %c0_9 = arith.constant 0 : index
      %12 = vector.load %arg7[%c0_8, %c0_9] : memref<128x128xf32, #tpu.memory_space<vmem>>, vector<128x128xf32>
      tpu.vector_store %arg7[%c0_8, %c0_9], %2 {strides = array<i32>} : memref<128x128xf32, #tpu.memory_space<vmem>>, vector<128x128xf32>,
    } else {
    }
    %c0_i32_4 = arith.constant 0 : i32
    %6 = arith.cmpi sgt, %arg1, %c0_i32_4 : i32
    %7 = arith.extui %6 : i1 to i32
    %c0_i32_5 = arith.constant 0 : i32
    %8 = arith.cmpi ne, %7, %c0_i32_5 : i32
    scf.if %8 {
      %c0_8 = arith.constant 0 : index
      %c0_9 = arith.constant 0 : index
      %12 = vector.load %arg7[%c0_8, %c0_9] : memref<128x128xf32, #tpu.memory_space<vmem>>, vector<128x128xf32>
      %13 = arith.addf %12, %2 : vector<128x128xf32>
      %c0_10 = arith.constant 0 : index
      %c0_11 = arith.constant 0 : index
      %14 = vector.load %arg7[%c0_10, %c0_11] : memref<128x128xf32, #tpu.memory_space<vmem>>, vector<128x128xf32>
      tpu.vector_store %arg7[%c0_10, %c0_11], %13 {strides = array<i32>} : memref<128x128xf32, #tpu.memory_space<vmem>>, vector<128x128xf32>,
    } else {
    }
    %c0_i32_6 = arith.constant 0 : i32
    %9 = arith.cmpi eq, %arg1, %c0_i32_6 : i32
    %10 = arith.extui %9 : i1 to i32
    %c0_i32_7 = arith.constant 0 : i32
    %11 = arith.cmpi ne, %10, %c0_i32_7 : i32
    scf.if %11 {
      %c0_8 = arith.constant 0 : index
      %c0_9 = arith.constant 0 : index
      %12 = vector.load %arg7[%c0_8, %c0_9] : memref<128x128xf32, #tpu.memory_space<vmem>>, vector<128x128xf32>
      %c0_10 = arith.constant 0 : index
      %c0_11 = arith.constant 0 : index
      %13 = vector.load %arg4[%c0_10, %c0_11] : memref<1x128xf32, #tpu.memory_space<vmem>>, vector<1x128xf32>
      %14 = vector.broadcast %13 : vector<1x128xf32> to vector<128x128xf32>
      %15 = arith.mulf %12, %14 : vector<128x128xf32>
      %c0_12 = arith.constant 0 : index
      %c0_13 = arith.constant 0 : index
      %16 = vector.load %arg5[%c0_12, %c0_13] : memref<1x128xf32, #tpu.memory_space<vmem>>, vector<1x128xf32>
      %17 = vector.broadcast %16 : vector<1x128xf32> to vector<128x128xf32>
      %18 = arith.addf %15, %17 : vector<128x128xf32>
      %cst_14 = arith.constant 0.000000e+00 : f32
      %19 = vector.broadcast %cst_14 : f32 to vector<128x128xf32>
      %20 = arith.cmpf oge, %18, %19 : vector<128x128xf32>
      %cst_15 = arith.constant 2.000000e-01 : f32
      %21 = vector.broadcast %cst_15 : f32 to vector<128x128xf32>
      %22 = arith.mulf %21, %18 : vector<128x128xf32>
      %23 = arith.select %20, %18, %22 : vector<128x128xi1>, vector<128x128xf32>
      %24 = arith.truncf %23 : vector<128x128xf32> to vector<128x128xbf16>
      %c0_16 = arith.constant 0 : index
      %c0_17 = arith.constant 0 : index
      %25 = vector.load %arg6[%c0_16, %c0_17] : memref<128x128xbf16, #tpu.memory_space<vmem>>, vector<128x128xbf16>
      tpu.vector_store %arg6[%c0_16, %c0_17], %24 {strides = array<i32>} : memref<128x128xbf16, #tpu.memory_space<vmem>>, vector<128x128xbf16>,
    } else {
    }
    return
  }
  func.func @transform_0(%arg0: i32, %arg1: i32) -> (i32, i32) {
    %c0_i32 = arith.constant 0 : i32
    return %arg0, %arg1 : i32, i32
  }
  func.func @transform_1(%arg0: i32, %arg1: i32) -> (i32, i32) {
    %c0_i32 = arith.constant 0 : i32
    %c0_i32_0 = arith.constant 0 : i32
    return %arg1, %c0_i32 : i32, i32
  }
  func.func @transform_2(%arg0: i32, %arg1: i32) -> (i32, i32) {
    %c0_i32 = arith.constant 0 : i32
    %c0_i32_0 = arith.constant 0 : i32
    %c0_i32_1 = arith.constant 0 : i32
    return %c0_i32, %c0_i32_0 : i32, i32
  }
  func.func @transform_3(%arg0: i32, %arg1: i32) -> (i32, i32) {
    %c0_i32 = arith.constant 0 : i32
    %c0_i32_0 = arith.constant 0 : i32
    %c0_i32_1 = arith.constant 0 : i32
    return %c0_i32, %c0_i32_0 : i32, i32
  }
  func.func @transform_4(%arg0: i32, %arg1: i32) -> (i32, i32) {
    %c0_i32 = arith.constant 0 : i32
    %c0_i32_0 = arith.constant 0 : i32
    return %arg0, %c0_i32 : i32, i32
  }
}

module attributes {stable_mosaic.version = 11 : i64} {
  func.func @_conv_mm_kernel(%arg0: i32, %arg1: i32, %arg2: memref<32x1024xbf16, #tpu.memory_space<vmem>>, %arg3: memref<1024x128xbf16, #tpu.memory_space<vmem>>, %arg4: memref<1x128xf32, #tpu.memory_space<vmem>>, %arg5: memref<1x128xf32, #tpu.memory_space<vmem>>, %arg6: memref<32x128xbf16, #tpu.memory_space<vmem>>, %arg7: memref<32x128xf32, #tpu.memory_space<vmem>>) attributes {dimension_semantics = [#tpu.dimension_semantics<parallel>, #tpu.dimension_semantics<arbitrary>], iteration_bounds = array<i64: 1, 1>, scalar_prefetch = 0 : i64, scratch_operands = 1 : i64, tpu.core_type = #tpu.core_type<tc>, window_params = [{transform_indices = @transform_0, window_bounds = array<i64: 32, 1024>}, {transform_indices = @transform_1, window_bounds = array<i64: 1024, 128>}, {pipeline_mode = #tpu.pipeline_mode<synchronous>, transform_indices = @transform_2, window_bounds = array<i64: 1, 128>}, {pipeline_mode = #tpu.pipeline_mode<synchronous>, transform_indices = @transform_3, window_bounds = array<i64: 1, 128>}, {transform_indices = @transform_4, window_bounds = array<i64: 32, 128>}]} {
    %c0 = arith.constant 0 : index
    %c0_0 = arith.constant 0 : index
    %0 = vector.load %arg2[%c0, %c0_0] : memref<32x1024xbf16, #tpu.memory_space<vmem>>, vector<32x1024xbf16>
    %c0_1 = arith.constant 0 : index
    %c0_2 = arith.constant 0 : index
    %1 = vector.load %arg3[%c0_1, %c0_2] : memref<1024x128xbf16, #tpu.memory_space<vmem>>, vector<1024x128xbf16>
    %cst = arith.constant dense<0.000000e+00> : vector<32x128xf32>
    %2 = tpu.matmul %0, %1, %cst {dimension_numbers = #tpu.dot_dimension_numbers<[1], [0], [0], [1], [0, 0, 1, 1], [], []>} : vector<32x1024xbf16>, vector<1024x128xbf16>, vector<32x128xf32> -> vector<32x128xf32>
    %c0_i32 = arith.constant 0 : i32
    %3 = arith.cmpi eq, %arg1, %c0_i32 : i32
    %4 = arith.extui %3 : i1 to i32
    %c0_i32_3 = arith.constant 0 : i32
    %5 = arith.cmpi ne, %4, %c0_i32_3 : i32
    scf.if %5 {
      %c0_8 = arith.constant 0 : index
      %c0_9 = arith.constant 0 : index
      %12 = vector.load %arg7[%c0_8, %c0_9] : memref<32x128xf32, #tpu.memory_space<vmem>>, vector<32x128xf32>
      tpu.vector_store %arg7[%c0_8, %c0_9], %2 {strides = array<i32>} : memref<32x128xf32, #tpu.memory_space<vmem>>, vector<32x128xf32>,
    } else {
    }
    %c0_i32_4 = arith.constant 0 : i32
    %6 = arith.cmpi sgt, %arg1, %c0_i32_4 : i32
    %7 = arith.extui %6 : i1 to i32
    %c0_i32_5 = arith.constant 0 : i32
    %8 = arith.cmpi ne, %7, %c0_i32_5 : i32
    scf.if %8 {
      %c0_8 = arith.constant 0 : index
      %c0_9 = arith.constant 0 : index
      %12 = vector.load %arg7[%c0_8, %c0_9] : memref<32x128xf32, #tpu.memory_space<vmem>>, vector<32x128xf32>
      %13 = arith.addf %12, %2 : vector<32x128xf32>
      %c0_10 = arith.constant 0 : index
      %c0_11 = arith.constant 0 : index
      %14 = vector.load %arg7[%c0_10, %c0_11] : memref<32x128xf32, #tpu.memory_space<vmem>>, vector<32x128xf32>
      tpu.vector_store %arg7[%c0_10, %c0_11], %13 {strides = array<i32>} : memref<32x128xf32, #tpu.memory_space<vmem>>, vector<32x128xf32>,
    } else {
    }
    %c0_i32_6 = arith.constant 0 : i32
    %9 = arith.cmpi eq, %arg1, %c0_i32_6 : i32
    %10 = arith.extui %9 : i1 to i32
    %c0_i32_7 = arith.constant 0 : i32
    %11 = arith.cmpi ne, %10, %c0_i32_7 : i32
    scf.if %11 {
      %c0_8 = arith.constant 0 : index
      %c0_9 = arith.constant 0 : index
      %12 = vector.load %arg7[%c0_8, %c0_9] : memref<32x128xf32, #tpu.memory_space<vmem>>, vector<32x128xf32>
      %c0_10 = arith.constant 0 : index
      %c0_11 = arith.constant 0 : index
      %13 = vector.load %arg4[%c0_10, %c0_11] : memref<1x128xf32, #tpu.memory_space<vmem>>, vector<1x128xf32>
      %14 = vector.broadcast %13 : vector<1x128xf32> to vector<32x128xf32>
      %15 = arith.mulf %12, %14 : vector<32x128xf32>
      %c0_12 = arith.constant 0 : index
      %c0_13 = arith.constant 0 : index
      %16 = vector.load %arg5[%c0_12, %c0_13] : memref<1x128xf32, #tpu.memory_space<vmem>>, vector<1x128xf32>
      %17 = vector.broadcast %16 : vector<1x128xf32> to vector<32x128xf32>
      %18 = arith.addf %15, %17 : vector<32x128xf32>
      %cst_14 = arith.constant 0.000000e+00 : f32
      %19 = vector.broadcast %cst_14 : f32 to vector<32x128xf32>
      %20 = arith.cmpf oge, %18, %19 : vector<32x128xf32>
      %cst_15 = arith.constant 2.000000e-01 : f32
      %21 = vector.broadcast %cst_15 : f32 to vector<32x128xf32>
      %22 = arith.mulf %21, %18 : vector<32x128xf32>
      %23 = arith.select %20, %18, %22 : vector<32x128xi1>, vector<32x128xf32>
      %24 = arith.truncf %23 : vector<32x128xf32> to vector<32x128xbf16>
      %c0_16 = arith.constant 0 : index
      %c0_17 = arith.constant 0 : index
      %25 = vector.load %arg6[%c0_16, %c0_17] : memref<32x128xbf16, #tpu.memory_space<vmem>>, vector<32x128xbf16>
      tpu.vector_store %arg6[%c0_16, %c0_17], %24 {strides = array<i32>} : memref<32x128xbf16, #tpu.memory_space<vmem>>, vector<32x128xbf16>,
    } else {
    }
    return
  }
  func.func @transform_0(%arg0: i32, %arg1: i32) -> (i32, i32) {
    %c0_i32 = arith.constant 0 : i32
    return %arg0, %arg1 : i32, i32
  }
  func.func @transform_1(%arg0: i32, %arg1: i32) -> (i32, i32) {
    %c0_i32 = arith.constant 0 : i32
    %c0_i32_0 = arith.constant 0 : i32
    return %arg1, %c0_i32 : i32, i32
  }
  func.func @transform_2(%arg0: i32, %arg1: i32) -> (i32, i32) {
    %c0_i32 = arith.constant 0 : i32
    %c0_i32_0 = arith.constant 0 : i32
    %c0_i32_1 = arith.constant 0 : i32
    return %c0_i32, %c0_i32_0 : i32, i32
  }
  func.func @transform_3(%arg0: i32, %arg1: i32) -> (i32, i32) {
    %c0_i32 = arith.constant 0 : i32
    %c0_i32_0 = arith.constant 0 : i32
    %c0_i32_1 = arith.constant 0 : i32
    return %c0_i32, %c0_i32_0 : i32, i32
  }
  func.func @transform_4(%arg0: i32, %arg1: i32) -> (i32, i32) {
    %c0_i32 = arith.constant 0 : i32
    %c0_i32_0 = arith.constant 0 : i32
    return %arg0, %c0_i32 : i32, i32
  }
}

module attributes {stable_mosaic.version = 11 : i64} {
  func.func @_conv_mm_kernel(%arg0: i32, %arg1: i32, %arg2: memref<8x1024xbf16, #tpu.memory_space<vmem>>, %arg3: memref<1024x256xbf16, #tpu.memory_space<vmem>>, %arg4: memref<1x256xf32, #tpu.memory_space<vmem>>, %arg5: memref<1x256xf32, #tpu.memory_space<vmem>>, %arg6: memref<8x256xbf16, #tpu.memory_space<vmem>>, %arg7: memref<8x256xf32, #tpu.memory_space<vmem>>) attributes {dimension_semantics = [#tpu.dimension_semantics<parallel>, #tpu.dimension_semantics<arbitrary>], iteration_bounds = array<i64: 1, 2>, scalar_prefetch = 0 : i64, scratch_operands = 1 : i64, tpu.core_type = #tpu.core_type<tc>, window_params = [{transform_indices = @transform_0, window_bounds = array<i64: 8, 1024>}, {transform_indices = @transform_1, window_bounds = array<i64: 1024, 256>}, {pipeline_mode = #tpu.pipeline_mode<synchronous>, transform_indices = @transform_2, window_bounds = array<i64: 1, 256>}, {pipeline_mode = #tpu.pipeline_mode<synchronous>, transform_indices = @transform_3, window_bounds = array<i64: 1, 256>}, {transform_indices = @transform_4, window_bounds = array<i64: 8, 256>}]} {
    %c0 = arith.constant 0 : index
    %c0_0 = arith.constant 0 : index
    %0 = vector.load %arg2[%c0, %c0_0] : memref<8x1024xbf16, #tpu.memory_space<vmem>>, vector<8x1024xbf16>
    %c0_1 = arith.constant 0 : index
    %c0_2 = arith.constant 0 : index
    %1 = vector.load %arg3[%c0_1, %c0_2] : memref<1024x256xbf16, #tpu.memory_space<vmem>>, vector<1024x256xbf16>
    %cst = arith.constant dense<0.000000e+00> : vector<8x256xf32>
    %2 = tpu.matmul %0, %1, %cst {dimension_numbers = #tpu.dot_dimension_numbers<[1], [0], [0], [1], [0, 0, 1, 1], [], []>} : vector<8x1024xbf16>, vector<1024x256xbf16>, vector<8x256xf32> -> vector<8x256xf32>
    %c0_i32 = arith.constant 0 : i32
    %3 = arith.cmpi eq, %arg1, %c0_i32 : i32
    %4 = arith.extui %3 : i1 to i32
    %c0_i32_3 = arith.constant 0 : i32
    %5 = arith.cmpi ne, %4, %c0_i32_3 : i32
    scf.if %5 {
      %c0_7 = arith.constant 0 : index
      %c0_8 = arith.constant 0 : index
      %12 = vector.load %arg7[%c0_7, %c0_8] : memref<8x256xf32, #tpu.memory_space<vmem>>, vector<8x256xf32>
      tpu.vector_store %arg7[%c0_7, %c0_8], %2 {strides = array<i32>} : memref<8x256xf32, #tpu.memory_space<vmem>>, vector<8x256xf32>,
    } else {
    }
    %c0_i32_4 = arith.constant 0 : i32
    %6 = arith.cmpi sgt, %arg1, %c0_i32_4 : i32
    %7 = arith.extui %6 : i1 to i32
    %c0_i32_5 = arith.constant 0 : i32
    %8 = arith.cmpi ne, %7, %c0_i32_5 : i32
    scf.if %8 {
      %c0_7 = arith.constant 0 : index
      %c0_8 = arith.constant 0 : index
      %12 = vector.load %arg7[%c0_7, %c0_8] : memref<8x256xf32, #tpu.memory_space<vmem>>, vector<8x256xf32>
      %13 = arith.addf %12, %2 : vector<8x256xf32>
      %c0_9 = arith.constant 0 : index
      %c0_10 = arith.constant 0 : index
      %14 = vector.load %arg7[%c0_9, %c0_10] : memref<8x256xf32, #tpu.memory_space<vmem>>, vector<8x256xf32>
      tpu.vector_store %arg7[%c0_9, %c0_10], %13 {strides = array<i32>} : memref<8x256xf32, #tpu.memory_space<vmem>>, vector<8x256xf32>,
    } else {
    }
    %c1_i32 = arith.constant 1 : i32
    %9 = arith.cmpi eq, %arg1, %c1_i32 : i32
    %10 = arith.extui %9 : i1 to i32
    %c0_i32_6 = arith.constant 0 : i32
    %11 = arith.cmpi ne, %10, %c0_i32_6 : i32
    scf.if %11 {
      %c0_7 = arith.constant 0 : index
      %c0_8 = arith.constant 0 : index
      %12 = vector.load %arg7[%c0_7, %c0_8] : memref<8x256xf32, #tpu.memory_space<vmem>>, vector<8x256xf32>
      %c0_9 = arith.constant 0 : index
      %c0_10 = arith.constant 0 : index
      %13 = vector.load %arg4[%c0_9, %c0_10] : memref<1x256xf32, #tpu.memory_space<vmem>>, vector<1x256xf32>
      %14 = vector.broadcast %13 : vector<1x256xf32> to vector<8x256xf32>
      %15 = arith.mulf %12, %14 : vector<8x256xf32>
      %c0_11 = arith.constant 0 : index
      %c0_12 = arith.constant 0 : index
      %16 = vector.load %arg5[%c0_11, %c0_12] : memref<1x256xf32, #tpu.memory_space<vmem>>, vector<1x256xf32>
      %17 = vector.broadcast %16 : vector<1x256xf32> to vector<8x256xf32>
      %18 = arith.addf %15, %17 : vector<8x256xf32>
      %cst_13 = arith.constant 0.000000e+00 : f32
      %19 = vector.broadcast %cst_13 : f32 to vector<8x256xf32>
      %20 = arith.cmpf oge, %18, %19 : vector<8x256xf32>
      %cst_14 = arith.constant 2.000000e-01 : f32
      %21 = vector.broadcast %cst_14 : f32 to vector<8x256xf32>
      %22 = arith.mulf %21, %18 : vector<8x256xf32>
      %23 = arith.select %20, %18, %22 : vector<8x256xi1>, vector<8x256xf32>
      %24 = arith.truncf %23 : vector<8x256xf32> to vector<8x256xbf16>
      %c0_15 = arith.constant 0 : index
      %c0_16 = arith.constant 0 : index
      %25 = vector.load %arg6[%c0_15, %c0_16] : memref<8x256xbf16, #tpu.memory_space<vmem>>, vector<8x256xbf16>
      tpu.vector_store %arg6[%c0_15, %c0_16], %24 {strides = array<i32>} : memref<8x256xbf16, #tpu.memory_space<vmem>>, vector<8x256xbf16>,
    } else {
    }
    return
  }
  func.func @transform_0(%arg0: i32, %arg1: i32) -> (i32, i32) {
    %c0_i32 = arith.constant 0 : i32
    return %arg0, %arg1 : i32, i32
  }
  func.func @transform_1(%arg0: i32, %arg1: i32) -> (i32, i32) {
    %c0_i32 = arith.constant 0 : i32
    %c0_i32_0 = arith.constant 0 : i32
    return %arg1, %c0_i32 : i32, i32
  }
  func.func @transform_2(%arg0: i32, %arg1: i32) -> (i32, i32) {
    %c0_i32 = arith.constant 0 : i32
    %c0_i32_0 = arith.constant 0 : i32
    %c0_i32_1 = arith.constant 0 : i32
    return %c0_i32, %c0_i32_0 : i32, i32
  }
  func.func @transform_3(%arg0: i32, %arg1: i32) -> (i32, i32) {
    %c0_i32 = arith.constant 0 : i32
    %c0_i32_0 = arith.constant 0 : i32
    %c0_i32_1 = arith.constant 0 : i32
    return %c0_i32, %c0_i32_0 : i32, i32
  }
  func.func @transform_4(%arg0: i32, %arg1: i32) -> (i32, i32) {
    %c0_i32 = arith.constant 0 : i32
    %c0_i32_0 = arith.constant 0 : i32
    return %arg0, %c0_i32 : i32, i32
  }
}

module attributes {stable_mosaic.version = 11 : i64} {
  func.func @_conv_mm_kernel(%arg0: i32, %arg1: i32, %arg2: memref<8x1152xbf16, #tpu.memory_space<vmem>>, %arg3: memref<1152x512xbf16, #tpu.memory_space<vmem>>, %arg4: memref<1x512xf32, #tpu.memory_space<vmem>>, %arg5: memref<1x512xf32, #tpu.memory_space<vmem>>, %arg6: memref<8x512xbf16, #tpu.memory_space<vmem>>, %arg7: memref<8x512xf32, #tpu.memory_space<vmem>>) attributes {dimension_semantics = [#tpu.dimension_semantics<parallel>, #tpu.dimension_semantics<arbitrary>], iteration_bounds = array<i64: 1, 2>, scalar_prefetch = 0 : i64, scratch_operands = 1 : i64, tpu.core_type = #tpu.core_type<tc>, window_params = [{transform_indices = @transform_0, window_bounds = array<i64: 8, 1152>}, {transform_indices = @transform_1, window_bounds = array<i64: 1152, 512>}, {pipeline_mode = #tpu.pipeline_mode<synchronous>, transform_indices = @transform_2, window_bounds = array<i64: 1, 512>}, {pipeline_mode = #tpu.pipeline_mode<synchronous>, transform_indices = @transform_3, window_bounds = array<i64: 1, 512>}, {transform_indices = @transform_4, window_bounds = array<i64: 8, 512>}]} {
    %c0 = arith.constant 0 : index
    %c0_0 = arith.constant 0 : index
    %0 = vector.load %arg2[%c0, %c0_0] : memref<8x1152xbf16, #tpu.memory_space<vmem>>, vector<8x1152xbf16>
    %c0_1 = arith.constant 0 : index
    %c0_2 = arith.constant 0 : index
    %1 = vector.load %arg3[%c0_1, %c0_2] : memref<1152x512xbf16, #tpu.memory_space<vmem>>, vector<1152x512xbf16>
    %cst = arith.constant dense<0.000000e+00> : vector<8x512xf32>
    %2 = tpu.matmul %0, %1, %cst {dimension_numbers = #tpu.dot_dimension_numbers<[1], [0], [0], [1], [0, 0, 1, 1], [], []>} : vector<8x1152xbf16>, vector<1152x512xbf16>, vector<8x512xf32> -> vector<8x512xf32>
    %c0_i32 = arith.constant 0 : i32
    %3 = arith.cmpi eq, %arg1, %c0_i32 : i32
    %4 = arith.extui %3 : i1 to i32
    %c0_i32_3 = arith.constant 0 : i32
    %5 = arith.cmpi ne, %4, %c0_i32_3 : i32
    scf.if %5 {
      %c0_7 = arith.constant 0 : index
      %c0_8 = arith.constant 0 : index
      %12 = vector.load %arg7[%c0_7, %c0_8] : memref<8x512xf32, #tpu.memory_space<vmem>>, vector<8x512xf32>
      tpu.vector_store %arg7[%c0_7, %c0_8], %2 {strides = array<i32>} : memref<8x512xf32, #tpu.memory_space<vmem>>, vector<8x512xf32>,
    } else {
    }
    %c0_i32_4 = arith.constant 0 : i32
    %6 = arith.cmpi sgt, %arg1, %c0_i32_4 : i32
    %7 = arith.extui %6 : i1 to i32
    %c0_i32_5 = arith.constant 0 : i32
    %8 = arith.cmpi ne, %7, %c0_i32_5 : i32
    scf.if %8 {
      %c0_7 = arith.constant 0 : index
      %c0_8 = arith.constant 0 : index
      %12 = vector.load %arg7[%c0_7, %c0_8] : memref<8x512xf32, #tpu.memory_space<vmem>>, vector<8x512xf32>
      %13 = arith.addf %12, %2 : vector<8x512xf32>
      %c0_9 = arith.constant 0 : index
      %c0_10 = arith.constant 0 : index
      %14 = vector.load %arg7[%c0_9, %c0_10] : memref<8x512xf32, #tpu.memory_space<vmem>>, vector<8x512xf32>
      tpu.vector_store %arg7[%c0_9, %c0_10], %13 {strides = array<i32>} : memref<8x512xf32, #tpu.memory_space<vmem>>, vector<8x512xf32>,
    } else {
    }
    %c1_i32 = arith.constant 1 : i32
    %9 = arith.cmpi eq, %arg1, %c1_i32 : i32
    %10 = arith.extui %9 : i1 to i32
    %c0_i32_6 = arith.constant 0 : i32
    %11 = arith.cmpi ne, %10, %c0_i32_6 : i32
    scf.if %11 {
      %c0_7 = arith.constant 0 : index
      %c0_8 = arith.constant 0 : index
      %12 = vector.load %arg7[%c0_7, %c0_8] : memref<8x512xf32, #tpu.memory_space<vmem>>, vector<8x512xf32>
      %c0_9 = arith.constant 0 : index
      %c0_10 = arith.constant 0 : index
      %13 = vector.load %arg4[%c0_9, %c0_10] : memref<1x512xf32, #tpu.memory_space<vmem>>, vector<1x512xf32>
      %14 = vector.broadcast %13 : vector<1x512xf32> to vector<8x512xf32>
      %15 = arith.mulf %12, %14 : vector<8x512xf32>
      %c0_11 = arith.constant 0 : index
      %c0_12 = arith.constant 0 : index
      %16 = vector.load %arg5[%c0_11, %c0_12] : memref<1x512xf32, #tpu.memory_space<vmem>>, vector<1x512xf32>
      %17 = vector.broadcast %16 : vector<1x512xf32> to vector<8x512xf32>
      %18 = arith.addf %15, %17 : vector<8x512xf32>
      %cst_13 = arith.constant 0.000000e+00 : f32
      %19 = vector.broadcast %cst_13 : f32 to vector<8x512xf32>
      %20 = arith.cmpf oge, %18, %19 : vector<8x512xf32>
      %cst_14 = arith.constant 2.000000e-01 : f32
      %21 = vector.broadcast %cst_14 : f32 to vector<8x512xf32>
      %22 = arith.mulf %21, %18 : vector<8x512xf32>
      %23 = arith.select %20, %18, %22 : vector<8x512xi1>, vector<8x512xf32>
      %24 = arith.truncf %23 : vector<8x512xf32> to vector<8x512xbf16>
      %c0_15 = arith.constant 0 : index
      %c0_16 = arith.constant 0 : index
      %25 = vector.load %arg6[%c0_15, %c0_16] : memref<8x512xbf16, #tpu.memory_space<vmem>>, vector<8x512xbf16>
      tpu.vector_store %arg6[%c0_15, %c0_16], %24 {strides = array<i32>} : memref<8x512xbf16, #tpu.memory_space<vmem>>, vector<8x512xbf16>,
    } else {
    }
    return
  }
  func.func @transform_0(%arg0: i32, %arg1: i32) -> (i32, i32) {
    %c0_i32 = arith.constant 0 : i32
    return %arg0, %arg1 : i32, i32
  }
  func.func @transform_1(%arg0: i32, %arg1: i32) -> (i32, i32) {
    %c0_i32 = arith.constant 0 : i32
    %c0_i32_0 = arith.constant 0 : i32
    return %arg1, %c0_i32 : i32, i32
  }
  func.func @transform_2(%arg0: i32, %arg1: i32) -> (i32, i32) {
    %c0_i32 = arith.constant 0 : i32
    %c0_i32_0 = arith.constant 0 : i32
    %c0_i32_1 = arith.constant 0 : i32
    return %c0_i32, %c0_i32_0 : i32, i32
  }
  func.func @transform_3(%arg0: i32, %arg1: i32) -> (i32, i32) {
    %c0_i32 = arith.constant 0 : i32
    %c0_i32_0 = arith.constant 0 : i32
    %c0_i32_1 = arith.constant 0 : i32
    return %c0_i32, %c0_i32_0 : i32, i32
  }
  func.func @transform_4(%arg0: i32, %arg1: i32) -> (i32, i32) {
    %c0_i32 = arith.constant 0 : i32
    %c0_i32_0 = arith.constant 0 : i32
    return %arg0, %c0_i32 : i32, i32
  }
}

module attributes {stable_mosaic.version = 11 : i64} {
  func.func @_conv_mm_kernel(%arg0: i32, %arg1: i32, %arg2: memref<8x1536xbf16, #tpu.memory_space<vmem>>, %arg3: memref<1536x512xbf16, #tpu.memory_space<vmem>>, %arg4: memref<1x512xf32, #tpu.memory_space<vmem>>, %arg5: memref<1x512xf32, #tpu.memory_space<vmem>>, %arg6: memref<8x512xbf16, #tpu.memory_space<vmem>>, %arg7: memref<8x512xf32, #tpu.memory_space<vmem>>) attributes {dimension_semantics = [#tpu.dimension_semantics<parallel>, #tpu.dimension_semantics<arbitrary>], iteration_bounds = array<i64: 1, 3>, scalar_prefetch = 0 : i64, scratch_operands = 1 : i64, tpu.core_type = #tpu.core_type<tc>, window_params = [{transform_indices = @transform_0, window_bounds = array<i64: 8, 1536>}, {transform_indices = @transform_1, window_bounds = array<i64: 1536, 512>}, {pipeline_mode = #tpu.pipeline_mode<synchronous>, transform_indices = @transform_2, window_bounds = array<i64: 1, 512>}, {pipeline_mode = #tpu.pipeline_mode<synchronous>, transform_indices = @transform_3, window_bounds = array<i64: 1, 512>}, {transform_indices = @transform_4, window_bounds = array<i64: 8, 512>}]} {
    %c0 = arith.constant 0 : index
    %c0_0 = arith.constant 0 : index
    %0 = vector.load %arg2[%c0, %c0_0] : memref<8x1536xbf16, #tpu.memory_space<vmem>>, vector<8x1536xbf16>
    %c0_1 = arith.constant 0 : index
    %c0_2 = arith.constant 0 : index
    %1 = vector.load %arg3[%c0_1, %c0_2] : memref<1536x512xbf16, #tpu.memory_space<vmem>>, vector<1536x512xbf16>
    %cst = arith.constant dense<0.000000e+00> : vector<8x512xf32>
    %2 = tpu.matmul %0, %1, %cst {dimension_numbers = #tpu.dot_dimension_numbers<[1], [0], [0], [1], [0, 0, 1, 1], [], []>} : vector<8x1536xbf16>, vector<1536x512xbf16>, vector<8x512xf32> -> vector<8x512xf32>
    %c0_i32 = arith.constant 0 : i32
    %3 = arith.cmpi eq, %arg1, %c0_i32 : i32
    %4 = arith.extui %3 : i1 to i32
    %c0_i32_3 = arith.constant 0 : i32
    %5 = arith.cmpi ne, %4, %c0_i32_3 : i32
    scf.if %5 {
      %c0_7 = arith.constant 0 : index
      %c0_8 = arith.constant 0 : index
      %12 = vector.load %arg7[%c0_7, %c0_8] : memref<8x512xf32, #tpu.memory_space<vmem>>, vector<8x512xf32>
      tpu.vector_store %arg7[%c0_7, %c0_8], %2 {strides = array<i32>} : memref<8x512xf32, #tpu.memory_space<vmem>>, vector<8x512xf32>,
    } else {
    }
    %c0_i32_4 = arith.constant 0 : i32
    %6 = arith.cmpi sgt, %arg1, %c0_i32_4 : i32
    %7 = arith.extui %6 : i1 to i32
    %c0_i32_5 = arith.constant 0 : i32
    %8 = arith.cmpi ne, %7, %c0_i32_5 : i32
    scf.if %8 {
      %c0_7 = arith.constant 0 : index
      %c0_8 = arith.constant 0 : index
      %12 = vector.load %arg7[%c0_7, %c0_8] : memref<8x512xf32, #tpu.memory_space<vmem>>, vector<8x512xf32>
      %13 = arith.addf %12, %2 : vector<8x512xf32>
      %c0_9 = arith.constant 0 : index
      %c0_10 = arith.constant 0 : index
      %14 = vector.load %arg7[%c0_9, %c0_10] : memref<8x512xf32, #tpu.memory_space<vmem>>, vector<8x512xf32>
      tpu.vector_store %arg7[%c0_9, %c0_10], %13 {strides = array<i32>} : memref<8x512xf32, #tpu.memory_space<vmem>>, vector<8x512xf32>,
    } else {
    }
    %c2_i32 = arith.constant 2 : i32
    %9 = arith.cmpi eq, %arg1, %c2_i32 : i32
    %10 = arith.extui %9 : i1 to i32
    %c0_i32_6 = arith.constant 0 : i32
    %11 = arith.cmpi ne, %10, %c0_i32_6 : i32
    scf.if %11 {
      %c0_7 = arith.constant 0 : index
      %c0_8 = arith.constant 0 : index
      %12 = vector.load %arg7[%c0_7, %c0_8] : memref<8x512xf32, #tpu.memory_space<vmem>>, vector<8x512xf32>
      %c0_9 = arith.constant 0 : index
      %c0_10 = arith.constant 0 : index
      %13 = vector.load %arg4[%c0_9, %c0_10] : memref<1x512xf32, #tpu.memory_space<vmem>>, vector<1x512xf32>
      %14 = vector.broadcast %13 : vector<1x512xf32> to vector<8x512xf32>
      %15 = arith.mulf %12, %14 : vector<8x512xf32>
      %c0_11 = arith.constant 0 : index
      %c0_12 = arith.constant 0 : index
      %16 = vector.load %arg5[%c0_11, %c0_12] : memref<1x512xf32, #tpu.memory_space<vmem>>, vector<1x512xf32>
      %17 = vector.broadcast %16 : vector<1x512xf32> to vector<8x512xf32>
      %18 = arith.addf %15, %17 : vector<8x512xf32>
      %cst_13 = arith.constant 0.000000e+00 : f32
      %19 = vector.broadcast %cst_13 : f32 to vector<8x512xf32>
      %20 = arith.cmpf oge, %18, %19 : vector<8x512xf32>
      %cst_14 = arith.constant 2.000000e-01 : f32
      %21 = vector.broadcast %cst_14 : f32 to vector<8x512xf32>
      %22 = arith.mulf %21, %18 : vector<8x512xf32>
      %23 = arith.select %20, %18, %22 : vector<8x512xi1>, vector<8x512xf32>
      %24 = arith.truncf %23 : vector<8x512xf32> to vector<8x512xbf16>
      %c0_15 = arith.constant 0 : index
      %c0_16 = arith.constant 0 : index
      %25 = vector.load %arg6[%c0_15, %c0_16] : memref<8x512xbf16, #tpu.memory_space<vmem>>, vector<8x512xbf16>
      tpu.vector_store %arg6[%c0_15, %c0_16], %24 {strides = array<i32>} : memref<8x512xbf16, #tpu.memory_space<vmem>>, vector<8x512xbf16>,
    } else {
    }
    return
  }
  func.func @transform_0(%arg0: i32, %arg1: i32) -> (i32, i32) {
    %c0_i32 = arith.constant 0 : i32
    return %arg0, %arg1 : i32, i32
  }
  func.func @transform_1(%arg0: i32, %arg1: i32) -> (i32, i32) {
    %c0_i32 = arith.constant 0 : i32
    %c0_i32_0 = arith.constant 0 : i32
    return %arg1, %c0_i32 : i32, i32
  }
  func.func @transform_2(%arg0: i32, %arg1: i32) -> (i32, i32) {
    %c0_i32 = arith.constant 0 : i32
    %c0_i32_0 = arith.constant 0 : i32
    %c0_i32_1 = arith.constant 0 : i32
    return %c0_i32, %c0_i32_0 : i32, i32
  }
  func.func @transform_3(%arg0: i32, %arg1: i32) -> (i32, i32) {
    %c0_i32 = arith.constant 0 : i32
    %c0_i32_0 = arith.constant 0 : i32
    %c0_i32_1 = arith.constant 0 : i32
    return %c0_i32, %c0_i32_0 : i32, i32
  }
  func.func @transform_4(%arg0: i32, %arg1: i32) -> (i32, i32) {
    %c0_i32 = arith.constant 0 : i32
    %c0_i32_0 = arith.constant 0 : i32
    return %arg0, %c0_i32 : i32, i32
  }
}

module attributes {stable_mosaic.version = 11 : i64} {
  func.func @_conv_mm_kernel(%arg0: i32, %arg1: i32, %arg2: memref<8x1536xbf16, #tpu.memory_space<vmem>>, %arg3: memref<1536x128xbf16, #tpu.memory_space<vmem>>, %arg4: memref<1x128xf32, #tpu.memory_space<vmem>>, %arg5: memref<1x128xf32, #tpu.memory_space<vmem>>, %arg6: memref<8x128xf32, #tpu.memory_space<vmem>>, %arg7: memref<8x128xf32, #tpu.memory_space<vmem>>) attributes {dimension_semantics = [#tpu.dimension_semantics<parallel>, #tpu.dimension_semantics<arbitrary>], iteration_bounds = array<i64: 1, 3>, scalar_prefetch = 0 : i64, scratch_operands = 1 : i64, tpu.core_type = #tpu.core_type<tc>, window_params = [{transform_indices = @transform_0, window_bounds = array<i64: 8, 1536>}, {transform_indices = @transform_1, window_bounds = array<i64: 1536, 128>}, {pipeline_mode = #tpu.pipeline_mode<synchronous>, transform_indices = @transform_2, window_bounds = array<i64: 1, 128>}, {pipeline_mode = #tpu.pipeline_mode<synchronous>, transform_indices = @transform_3, window_bounds = array<i64: 1, 128>}, {transform_indices = @transform_4, window_bounds = array<i64: 8, 128>}]} {
    %c0 = arith.constant 0 : index
    %c0_0 = arith.constant 0 : index
    %0 = vector.load %arg2[%c0, %c0_0] : memref<8x1536xbf16, #tpu.memory_space<vmem>>, vector<8x1536xbf16>
    %c0_1 = arith.constant 0 : index
    %c0_2 = arith.constant 0 : index
    %1 = vector.load %arg3[%c0_1, %c0_2] : memref<1536x128xbf16, #tpu.memory_space<vmem>>, vector<1536x128xbf16>
    %cst = arith.constant dense<0.000000e+00> : vector<8x128xf32>
    %2 = tpu.matmul %0, %1, %cst {dimension_numbers = #tpu.dot_dimension_numbers<[1], [0], [0], [1], [0, 0, 1, 1], [], []>} : vector<8x1536xbf16>, vector<1536x128xbf16>, vector<8x128xf32> -> vector<8x128xf32>
    %c0_i32 = arith.constant 0 : i32
    %3 = arith.cmpi eq, %arg1, %c0_i32 : i32
    %4 = arith.extui %3 : i1 to i32
    %c0_i32_3 = arith.constant 0 : i32
    %5 = arith.cmpi ne, %4, %c0_i32_3 : i32
    scf.if %5 {
      %c0_7 = arith.constant 0 : index
      %c0_8 = arith.constant 0 : index
      %12 = vector.load %arg7[%c0_7, %c0_8] : memref<8x128xf32, #tpu.memory_space<vmem>>, vector<8x128xf32>
      tpu.vector_store %arg7[%c0_7, %c0_8], %2 {strides = array<i32>} : memref<8x128xf32, #tpu.memory_space<vmem>>, vector<8x128xf32>,
    } else {
    }
    %c0_i32_4 = arith.constant 0 : i32
    %6 = arith.cmpi sgt, %arg1, %c0_i32_4 : i32
    %7 = arith.extui %6 : i1 to i32
    %c0_i32_5 = arith.constant 0 : i32
    %8 = arith.cmpi ne, %7, %c0_i32_5 : i32
    scf.if %8 {
      %c0_7 = arith.constant 0 : index
      %c0_8 = arith.constant 0 : index
      %12 = vector.load %arg7[%c0_7, %c0_8] : memref<8x128xf32, #tpu.memory_space<vmem>>, vector<8x128xf32>
      %13 = arith.addf %12, %2 : vector<8x128xf32>
      %c0_9 = arith.constant 0 : index
      %c0_10 = arith.constant 0 : index
      %14 = vector.load %arg7[%c0_9, %c0_10] : memref<8x128xf32, #tpu.memory_space<vmem>>, vector<8x128xf32>
      tpu.vector_store %arg7[%c0_9, %c0_10], %13 {strides = array<i32>} : memref<8x128xf32, #tpu.memory_space<vmem>>, vector<8x128xf32>,
    } else {
    }
    %c2_i32 = arith.constant 2 : i32
    %9 = arith.cmpi eq, %arg1, %c2_i32 : i32
    %10 = arith.extui %9 : i1 to i32
    %c0_i32_6 = arith.constant 0 : i32
    %11 = arith.cmpi ne, %10, %c0_i32_6 : i32
    scf.if %11 {
      %c0_7 = arith.constant 0 : index
      %c0_8 = arith.constant 0 : index
      %12 = vector.load %arg7[%c0_7, %c0_8] : memref<8x128xf32, #tpu.memory_space<vmem>>, vector<8x128xf32>
      %c0_9 = arith.constant 0 : index
      %c0_10 = arith.constant 0 : index
      %13 = vector.load %arg4[%c0_9, %c0_10] : memref<1x128xf32, #tpu.memory_space<vmem>>, vector<1x128xf32>
      %14 = vector.broadcast %13 : vector<1x128xf32> to vector<8x128xf32>
      %15 = arith.mulf %12, %14 : vector<8x128xf32>
      %c0_11 = arith.constant 0 : index
      %c0_12 = arith.constant 0 : index
      %16 = vector.load %arg5[%c0_11, %c0_12] : memref<1x128xf32, #tpu.memory_space<vmem>>, vector<1x128xf32>
      %17 = vector.broadcast %16 : vector<1x128xf32> to vector<8x128xf32>
      %18 = arith.addf %15, %17 : vector<8x128xf32>
      %cst_13 = arith.constant 0.000000e+00 : f32
      %19 = vector.broadcast %cst_13 : f32 to vector<8x128xf32>
      %20 = arith.subf %19, %18 : vector<8x128xf32>
      %21 = math.exp %20 : vector<8x128xf32>
      %cst_14 = arith.constant 1.000000e+00 : f32
      %22 = vector.broadcast %cst_14 : f32 to vector<8x128xf32>
      %23 = arith.addf %22, %21 : vector<8x128xf32>
      %24 = tpu.reciprocal %23 {approx = true} : vector<8x128xf32> -> vector<8x128xf32>
      %c0_15 = arith.constant 0 : index
      %c0_16 = arith.constant 0 : index
      %25 = vector.load %arg6[%c0_15, %c0_16] : memref<8x128xf32, #tpu.memory_space<vmem>>, vector<8x128xf32>
      tpu.vector_store %arg6[%c0_15, %c0_16], %24 {strides = array<i32>} : memref<8x128xf32, #tpu.memory_space<vmem>>, vector<8x128xf32>,
    } else {
    }
    return
  }
  func.func @transform_0(%arg0: i32, %arg1: i32) -> (i32, i32) {
    %c0_i32 = arith.constant 0 : i32
    return %arg0, %arg1 : i32, i32
  }
  func.func @transform_1(%arg0: i32, %arg1: i32) -> (i32, i32) {
    %c0_i32 = arith.constant 0 : i32
    %c0_i32_0 = arith.constant 0 : i32
    return %arg1, %c0_i32 : i32, i32
  }
  func.func @transform_2(%arg0: i32, %arg1: i32) -> (i32, i32) {
    %c0_i32 = arith.constant 0 : i32
    %c0_i32_0 = arith.constant 0 : i32
    %c0_i32_1 = arith.constant 0 : i32
    return %c0_i32, %c0_i32_0 : i32, i32
  }
  func.func @transform_3(%arg0: i32, %arg1: i32) -> (i32, i32) {
    %c0_i32 = arith.constant 0 : i32
    %c0_i32_0 = arith.constant 0 : i32
    %c0_i32_1 = arith.constant 0 : i32
    return %c0_i32, %c0_i32_0 : i32, i32
  }
  func.func @transform_4(%arg0: i32, %arg1: i32) -> (i32, i32) {
    %c0_i32 = arith.constant 0 : i32
    %c0_i32_0 = arith.constant 0 : i32
    return %arg0, %c0_i32 : i32, i32
  }
}

</mosaic_0001>

<bundles_post_ra>
// kernel: discriminator_forward.6
= control target key start
LH: loop header
LB: loop body
LE: loop exit
PB: predicated region body
PF: predicated region fallthrough
CT: control target
= control target key end

     0   :  { %9 = vsyncpa [#allocation4], 0  ;;  %s1027_s0 = inlined_call_operand.hbm [shape: bf16[128,128], index: 0, kind: input, shape index: {}]   ;;  %s1028_s1 = inlined_call_operand.hbm [shape: bf16[128,128], index: 1, kind: input, shape index: {}]   ;;  %s1029_s2 = inlined_call_operand.hbm [shape: f32[1,128], index: 2, kind: input, shape index: {}]   ;;  %s1030_s3 = inlined_call_operand.hbm [shape: f32[1,128], index: 3, kind: input, shape index: {}]   ;;  %s1031_s4 = inlined_call_operand.hbm [shape: bf16[128,128], index: 4, kind: output, shape index: {}]  }
   0x1   :  { %10 = vsyncpa [#allocation7], 0 }
   0x2   :  { %11 = vsyncpa [#allocation10], 0 }
   0x3   :  { %12 = vsyncpa [#allocation5], 0  ;;  %s881_s15 = smov [#allocation6]   ;;  %s882_s17 = smov [#allocation3]  }
   0x4   :  { %s30_s16 = sshll.u32 %s881_s15, 4  ;;  %s18_s18 = sshll.u32 %s882_s17, 4  ;;  %s31_s16 = int_to_ptr.vmem [resolvable:$true] %s30_s16  ;;  %s913_s18 = int_to_ptr.vmem [resolvable:$true] %s18_s18 }
   0x5   :  { %s763_s21 = scalar_lea.hbm %s1028_s1, 1024 }
   0x6   :  { %p764_p0 = scmp.ne.s32.totalorder %s1028_s1, %s763_s21  ;;  %p767_p1 = scmp.lt.u32.totalorder %s763_s21, %s1028_s1 }
   0x8   :  { %p769_p2 = pnand %p767_p1, %p764_p0 }
   0xa   :  { %772 = shalt.err (!%p769_p2)
}
   0xb   :  { %s773_s26 = scalar_lea.vmem %s31_s16, 1024  ;;  %p778_p4 = scmp.lt.s32.totalorder %s31_s16, %s31_s16 }
   0xc   :  { %p774_p3 = scmp.ne.s32.totalorder %s31_s16, %s773_s26  ;;  %p779_p5 = scmp.lt.s32.totalorder %s773_s26, %s773_s26 }
   0xe   :  { %p780_p6 = por %p779_p5, %p778_p4 }
  0x10   :  { %p781_p7 = pnand %p780_p6, %p774_p3 }
  0x12   :  { %784 = shalt.err (!%p781_p7)
}
  0x13   :  { %s883_s27 = smov 64   ;;  %s884_s28 = smov 4  }
  0x14   :  { %36 = dma.hbm_to_vmem [thread:$0]  %s1028_s1, 1024, %s31_s16, [#allocation7], %s883_s27, %s883_s27, %s884_s28  }
  0x15   :  { %s785_s7 = scalar_lea.hbm %s1027_s0, 1024 }
  0x16   :  { %p786_p8 = scmp.ne.s32.totalorder %s1027_s0, %s785_s7  ;;  %p789_p9 = scmp.lt.u32.totalorder %s785_s7, %s1027_s0 }
  0x18   :  { %p791_p10 = pnand %p789_p9, %p786_p8 }
  0x1a   :  { %794 = shalt.err (!%p791_p10)
}
  0x1b   :  { %s795_s12 = scalar_lea.vmem %s913_s18, 1024  ;;  %p800_p12 = scmp.lt.s32.totalorder %s913_s18, %s913_s18 }
  0x1c   :  { %p796_p11 = scmp.ne.s32.totalorder %s913_s18, %s795_s12  ;;  %p801_p13 = scmp.lt.s32.totalorder %s795_s12, %s795_s12 }
  0x1e   :  { %p802_p0 = por %p801_p13, %p800_p12 }
  0x20   :  { %p803_p1 = pnand %p802_p0, %p796_p11 }
  0x22   :  { %806 = shalt.err (!%p803_p1)
}
  0x23   :  { %24 = dma.hbm_to_vmem [thread:$0]  %s1027_s0, 1024, %s913_s18, [#allocation4], %s883_s27, %s883_s27, %s884_s28  }
  0x24   :  { %s885_s14 = smov [#allocation8]   ;;  %s886_s16 = smov [#allocation9]  }
  0x25   :  { %s43_s15 = sshll.u32 %s885_s14, 4  ;;  %s53_s17 = sshll.u32 %s886_s16, 4  ;;  %s44_s15 = int_to_ptr.vmem [resolvable:$true] %s43_s15  ;;  %s54_s17 = int_to_ptr.vmem [resolvable:$true] %s53_s17 }
  0x26   :  { %s807_s21 = scalar_lea.hbm %s1029_s2, 16 }
  0x27   :  { %p808_p2 = scmp.ne.s32.totalorder %s1029_s2, %s807_s21  ;;  %p811_p3 = scmp.lt.u32.totalorder %s807_s21, %s1029_s2 }
  0x29   :  { %p813_p4 = pnand %p811_p3, %p808_p2 }
  0x2b   :  { %816 = shalt.err (!%p813_p4)
}
  0x2c   :  { %s817_s0 = scalar_lea.vmem %s44_s15, 16  ;;  %s821_s18 = scalar_lea.vmem %s44_s15, 32 }
  0x2d   :  { %p818_p5 = scmp.ne.s32.totalorder %s44_s15, %s817_s0  ;;  %p822_p6 = scmp.lt.s32.totalorder %s44_s15, %s44_s15 }
  0x2e   :  { %p823_p7 = scmp.lt.s32.totalorder %s821_s18, %s817_s0 }
  0x30   :  { %p824_p8 = por %p823_p7, %p822_p6 }
  0x32   :  { %p825_p9 = pnand %p824_p8, %p818_p5 }
  0x34   :  { %828 = shalt.err (!%p825_p9)
}
  0x35   :  { %46 = dma.hbm_to_vmem [thread:$0]  %s1029_s2, 16, %s44_s15, [#allocation7]  }
  0x36   :  { %s829_s6 = scalar_lea.hbm %s1030_s3, 16 }
  0x37   :  { %p830_p10 = scmp.ne.s32.totalorder %s1030_s3, %s829_s6  ;;  %p833_p11 = scmp.lt.u32.totalorder %s829_s6, %s1030_s3 }
  0x39   :  { %p835_p12 = pnand %p833_p11, %p830_p10 }
  0x3b   :  { %838 = shalt.err (!%p835_p12)
}
  0x3c   :  { %s839_s11 = scalar_lea.vmem %s54_s17, 16  ;;  %s843_s12 = scalar_lea.vmem %s54_s17, 32 }
  0x3d   :  { %p840_p13 = scmp.ne.s32.totalorder %s54_s17, %s839_s11  ;;  %p844_p0 = scmp.lt.s32.totalorder %s54_s17, %s54_s17 }
  0x3e   :  { %p845_p1 = scmp.lt.s32.totalorder %s843_s12, %s839_s11 }
  0x40   :  { %p846_p2 = por %p845_p1, %p844_p0 }
  0x42   :  { %p847_p3 = pnand %p846_p2, %p840_p13 }
  0x44   :  { %850 = shalt.err (!%p847_p3)
}
  0x45   :  { %56 = dma.hbm_to_vmem [thread:$0]  %s1030_s3, 16, %s54_s17, [#allocation10]  }
  0x46   :  { %873 = dma.done.wait [#allocation4], 1024  }
  0x47   :  { %874 = vsyncadd [#allocation4], 4294966272 }
  0x48   :  { %875 = dma.done.wait [#allocation7], 1040  }
  0x49   :  { %876 = vsyncadd [#allocation7], 4294966256 }
  0x4a   :  { %877 = dma.done.wait [#allocation10], 16  }
  0x4b   :  { %878 = vsyncadd [#allocation10], 4294967280  ;;  %v747_v0 = vld [vmem:[#allocation6] sm:$0xff]   ;;  %v748_v1 = vld [vmem:[#allocation6 + $0x8] sm:$0xff]   ;;  %s887_s3 = smov [#allocation11]  }
  0x4c   :  { %692 = vmatprep.subr.bf16.mxu0 %v747_v0  ;;  %724 = vmatprep.subr.bf16.mxu1 %v747_v0  ;;  %v749_v2 = vld [vmem:[#allocation6 + $0x10] sm:$0xff]   ;;  %v750_v3 = vld [vmem:[#allocation6 + $0x18] sm:$0xff]   ;;  %v755_v4 = vld [vmem:[#allocation3] sm:$0xff]   ;;  %s565_s13 = sshll.u32 %s887_s3, 4  ;;  %s566_s13 = int_to_ptr.vmem [resolvable:$true] %s565_s13 }
  0x4d   :  { %693 = vmatpush3.bf16.msra.mxu0 %v747_v0  ;;  %732 = vmatpush3.bf16.msra.mxu1 %v747_v0  ;;  %v756_v5 = vld [vmem:[#allocation3 + $0x20] sm:$0xff]   ;;  %v752_v7 = vld [vmem:[#allocation6 + $0x28] sm:$0xff]   ;;  %v753_v8 = vld [vmem:[#allocation6 + $0x30] sm:$0xff]   ;;  %s851_s14 = scalar_lea.vmem %s566_s13, 1024  ;;  %p856_p5 = scmp.lt.s32.totalorder %s566_s13, %s566_s13 }
  0x4e   :  { %694 = vmatprep.subr.bf16.mxu0 %v748_v1  ;;  %725 = vmatprep.subr.bf16.mxu1 %v748_v1  ;;  %v751_v6 = vld [vmem:[#allocation6 + $0x20] sm:$0xff]   ;;  %v754_v9 = vld [vmem:[#allocation6 + $0x38] sm:$0xff]   ;;  %v757_v10 = vld [vmem:[#allocation3 + $0x8] sm:$0xff]   ;;  %p852_p4 = scmp.ne.s32.totalorder %s566_s13, %s851_s14  ;;  %p857_p6 = scmp.lt.s32.totalorder %s851_s14, %s851_s14 }
  0x4f   :  { %708 = vmatprep.mubr.bf16.mxu0 %v755_v4  ;;  %716 = vmatprep.mubr.bf16.mxu1 %v756_v5  ;;  %v758_v11 = vld [vmem:[#allocation3 + $0x28] sm:$0xff]   ;;  %v759_v12 = vld [vmem:[#allocation3 + $0x10] sm:$0xff]   ;;  %v761_v14 = vld [vmem:[#allocation3 + $0x18] sm:$0xff]  }
  0x50   :  { %v760_v13 = vld [vmem:[#allocation3 + $0x30] sm:$0xff]   ;;  %v762_v15 = vld [vmem:[#allocation3 + $0x38] sm:$0xff]   ;;  %v974_v16 = vld [vmem:[#allocation8] ss:$0 sm:$0xff]  ;;  %p858_p7 = por %p857_p6, %p856_p5 }
  0x51   :  { %695 = vmatpush3.bf16.msra.mxu0 %v748_v1  ;;  %733 = vmatpush3.bf16.msra.mxu1 %v748_v1  ;;  %v976_v18 = vld [vmem:[#allocation9] ss:$0 sm:$0xff] }
  0x52   :  { %696 = vmatprep.subr.bf16.mxu0 %v749_v2  ;;  %726 = vmatprep.subr.bf16.mxu1 %v749_v2  ;;  %p859_p8 = pnand %p858_p7, %p852_p4 }
  0x55   :  { %697 = vmatpush3.bf16.msra.mxu0 %v749_v2  ;;  %734 = vmatpush3.bf16.msra.mxu1 %v749_v2 }
  0x56   :  { %698 = vmatprep.subr.bf16.mxu0 %v750_v3  ;;  %727 = vmatprep.subr.bf16.mxu1 %v750_v3 }
  0x59   :  { %699 = vmatpush3.bf16.msra.mxu0 %v750_v3  ;;  %735 = vmatpush3.bf16.msra.mxu1 %v750_v3 }
  0x5a   :  { %700 = vmatprep.subr.bf16.mxu0 %v751_v6  ;;  %728 = vmatprep.subr.bf16.mxu1 %v751_v6 }
  0x5d   :  { %701 = vmatpush3.bf16.msra.mxu0 %v751_v6  ;;  %736 = vmatpush3.bf16.msra.mxu1 %v751_v6 }
  0x5e   :  { %702 = vmatprep.subr.bf16.mxu0 %v752_v7  ;;  %729 = vmatprep.subr.bf16.mxu1 %v752_v7 }
  0x61   :  { %703 = vmatpush3.bf16.msra.mxu0 %v752_v7  ;;  %737 = vmatpush3.bf16.msra.mxu1 %v752_v7 }
  0x62   :  { %704 = vmatprep.subr.bf16.mxu0 %v753_v8  ;;  %730 = vmatprep.subr.bf16.mxu1 %v753_v8 }
  0x65   :  { %705 = vmatpush3.bf16.msra.mxu0 %v753_v8  ;;  %738 = vmatpush3.bf16.msra.mxu1 %v753_v8 }
  0x66   :  { %706 = vmatprep.subr.bf16.mxu0 %v754_v9  ;;  %731 = vmatprep.subr.bf16.mxu1 %v754_v9 }
  0x69   :  { %707 = vmatpush3.bf16.msra.mxu0 %v754_v9  ;;  %739 = vmatpush3.bf16.msra.mxu1 %v754_v9 }
  0x6c   :  { %709 = vmatmul.mubr.bf16.vlgmr.msra.gmra.mrb[0].mxu0 %v757_v10  ;;  %717 = vmatmul.mubr.bf16.vlgmr.msra.gmra.mrb[0].mxu1 %v758_v11 }
  0x6d   :  { %712 = vmatprep.mubr.bf16.mxu0 %v759_v12  ;;  %720 = vmatprep.mubr.bf16.mxu1 %v760_v13 }
  0x74   :  { %713 = vmatmul.mubr.bf16.gmra.mrb[4].mxu0 %v761_v14  ;;  %721 = vmatmul.mubr.bf16.gmra.mrb[4].mxu1 %v762_v15 }
 0x13f   :  { %v710_v17 = vpop.f32.mrb[0].mxu0  ;;  %v718_v19 = vpop.f32.mrb[0].mxu1 }
 0x140   :  { %v395_v20 = vmul.f32 %v710_v17, %v974_v16  ;;  %v403_v21 = vmul.f32 %v718_v19, %v974_v16  ;;  %v232_v22 = vpop.f32.mrb[1].mxu0  ;;  %v264_v23 = vpop.f32.mrb[1].mxu1 }
 0x141   :  { %v393_v24 = vmul.f32 %v974_v16, %v232_v22  ;;  %v401_v25 = vmul.f32 %v974_v16, %v264_v23  ;;  %v711_v26 = vpop.f32.mrb[2].mxu0  ;;  %v719_v27 = vpop.f32.mrb[2].mxu1 }
 0x142   :  { %v418_v28 = vadd.f32 %v976_v18, %v395_v20  ;;  %v426_v29 = vadd.f32 %v976_v18, %v403_v21  ;;  %v396_v30 = vmul.f32 %v711_v26, %v974_v16  ;;  %v404_v31 = vmul.f32 %v719_v27, %v974_v16  ;;  %v235_v32 = vpop.f32.mrb[3].mxu0  ;;  %v267_v33 = vpop.f32.mrb[3].mxu1 }
 0x143   :  { %v416_v34 = vadd.f32 %v976_v18, %v393_v24  ;;  %v424_v35 = vadd.f32 %v976_v18, %v401_v25  ;;  %v394_v36 = vmul.f32 %v974_v16, %v235_v32  ;;  %v402_v37 = vmul.f32 %v974_v16, %v267_v33 }
 0x144   :  { %vm434_vm0 = vcmp.ge.f32.partialorder %v418_v28, 0.0  ;;  %v450_v38 = vmul.f32 0.2, %v418_v28  ;;  %vm442_vm1 = vcmp.ge.f32.partialorder %v426_v29, 0.0  ;;  %v458_v39 = vmul.f32 0.2, %v426_v29 }
 0x145   :  { %vm432_vm2 = vcmp.ge.f32.partialorder %v416_v34, 0.0  ;;  %v448_v40 = vmul.f32 0.2, %v416_v34  ;;  %vm440_vm3 = vcmp.ge.f32.partialorder %v424_v35, 0.0  ;;  %v456_v41 = vmul.f32 0.2, %v424_v35 }
 0x146   :  { %v466_v42 = vsel %vm434_vm0, %v418_v28, %v450_v38  ;;  %v474_v43 = vsel %vm442_vm1, %v426_v29, %v458_v39  ;;  %v419_v44 = vadd.f32 %v976_v18, %v396_v30  ;;  %v427_v45 = vadd.f32 %v976_v18, %v404_v31 }
 0x147   :  { %v464_v46 = vsel %vm432_vm2, %v416_v34, %v448_v40  ;;  %v472_v47 = vsel %vm440_vm3, %v424_v35, %v456_v41  ;;  %v417_v48 = vadd.f32 %v976_v18, %v394_v36  ;;  %v425_v49 = vadd.f32 %v976_v18, %v402_v37  ;;  %v714_v50 = vpop.f32.mrb[4].mxu0  ;;  %v722_v51 = vpop.f32.mrb[4].mxu1 }
 0x148   :  { %vm435_vm4 = vcmp.ge.f32.partialorder %v419_v44, 0.0  ;;  %v451_v52 = vmul.f32 0.2, %v419_v44  ;;  %vm443_vm5 = vcmp.ge.f32.partialorder %v427_v45, 0.0  ;;  %v459_v53 = vmul.f32 0.2, %v427_v45 }
 0x149   :  { %vm433_vm6 = vcmp.ge.f32.partialorder %v417_v48, 0.0  ;;  %v449_v54 = vmul.f32 0.2, %v417_v48  ;;  %vm441_vm7 = vcmp.ge.f32.partialorder %v425_v49, 0.0  ;;  %v457_v55 = vmul.f32 0.2, %v425_v49 }
 0x14a   :  { %v467_v56 = vsel %vm435_vm4, %v419_v44, %v451_v52  ;;  %v475_v57 = vsel %vm443_vm5, %v427_v45, %v459_v53  ;;  %v399_v58 = vmul.f32 %v714_v50, %v974_v16  ;;  %v407_v59 = vmul.f32 %v722_v51, %v974_v16  ;;  %v248_v60 = vpop.f32.mrb[5].mxu0  ;;  %v280_v61 = vpop.f32.mrb[5].mxu1 }
 0x14b   :  { %v637_v62 = vpack.c.bf16 %v467_v56, %v466_v42  ;;  %v657_v63 = vpack.c.bf16 %v475_v57, %v474_v43  ;;  %v465_v0 = vsel %vm433_vm6, %v417_v48, %v449_v54  ;;  %v473_v1 = vsel %vm441_vm7, %v425_v49, %v457_v55  ;;  %v715_v2 = vpop.f32.mrb[6].mxu0  ;;  %v723_v3 = vpop.f32.mrb[6].mxu1 }
 0x14c   :  { %v632_v4 = vpack.c.bf16 %v465_v0, %v464_v46  ;;  %v652_v5 = vpack.c.bf16 %v473_v1, %v472_v47  ;;  %v422_v6 = vadd.f32 %v976_v18, %v399_v58  ;;  %v430_v7 = vadd.f32 %v976_v18, %v407_v59  ;;  %v251_v8 = vpop.f32.mrb[7].mxu0  ;;  %v283_v9 = vpop.f32.mrb[7].mxu1 }
 0x14d   :  { %669 = vst [vmem:[#allocation11 + $0x8] sm:$0xff] %v637_v62   ;;  %673 = vst [vmem:[#allocation11 + $0x28] sm:$0xff] %v657_v63   ;;  %v397_v10 = vmul.f32 %v974_v16, %v248_v60  ;;  %v405_v11 = vmul.f32 %v974_v16, %v280_v61  ;;  %v400_v12 = vmul.f32 %v715_v2, %v974_v16 }
 0x14e   :  { %v408_v13 = vmul.f32 %v723_v3, %v974_v16  ;;  %633 = vst [vmem:[#allocation11] sm:$0xff] %v632_v4   ;;  %672 = vst [vmem:[#allocation11 + $0x20] sm:$0xff] %v652_v5   ;;  %vm438_vm8 = vcmp.ge.f32.partialorder %v422_v6, 0.0  ;;  %v454_v14 = vmul.f32 0.2, %v422_v6  ;;  %vm446_vm9 = vcmp.ge.f32.partialorder %v430_v7, 0.0 }
 0x14f   :  { %v462_v15 = vmul.f32 0.2, %v430_v7  ;;  %v420_v17 = vadd.f32 %v976_v18, %v397_v10  ;;  %v423_v19 = vadd.f32 %v976_v18, %v400_v12  ;;  %v428_v21 = vadd.f32 %v976_v18, %v405_v11 }
 0x150   :  { %v431_v20 = vadd.f32 %v976_v18, %v408_v13  ;;  %v398_v22 = vmul.f32 %v974_v16, %v251_v8  ;;  %v406_v23 = vmul.f32 %v974_v16, %v283_v9  ;;  %v470_v24 = vsel %vm438_vm8, %v422_v6, %v454_v14 }
 0x151   :  { %v478_v25 = vsel %vm446_vm9, %v430_v7, %v462_v15  ;;  %vm439_vm10 = vcmp.ge.f32.partialorder %v423_v19, 0.0  ;;  %v455_v26 = vmul.f32 0.2, %v423_v19  ;;  %vm436_vm12 = vcmp.ge.f32.partialorder %v420_v17, 0.0 }
 0x152   :  { %vm447_vm11 = vcmp.ge.f32.partialorder %v431_v20, 0.0  ;;  %v463_v27 = vmul.f32 0.2, %v431_v20  ;;  %v452_v28 = vmul.f32 0.2, %v420_v17  ;;  %v421_v29 = vadd.f32 %v976_v18, %v398_v22 }
 0x153   :  { %v429_v30 = vadd.f32 %v976_v18, %v406_v23  ;;  %vm444_vm13 = vcmp.ge.f32.partialorder %v428_v21, 0.0  ;;  %v460_v31 = vmul.f32 0.2, %v428_v21  ;;  %v471_v32 = vsel %vm439_vm10, %v423_v19, %v455_v26 }
 0x154   :  { %v479_v33 = vsel %vm447_vm11, %v431_v20, %v463_v27  ;;  %v647_v34 = vpack.c.bf16 %v471_v32, %v470_v24  ;;  %vm437_vm14 = vcmp.ge.f32.partialorder %v421_v29, 0.0  ;;  %v453_v16 = vmul.f32 0.2, %v421_v29 }
 0x155   :  { %v667_v35 = vpack.c.bf16 %v479_v33, %v478_v25  ;;  %vm445_vm15 = vcmp.ge.f32.partialorder %v429_v30, 0.0  ;;  %v461_v36 = vmul.f32 0.2, %v429_v30  ;;  %v468_v37 = vsel %vm436_vm12, %v420_v17, %v452_v28 }
 0x156   :  { %671 = vst [vmem:[#allocation11 + $0x18] sm:$0xff] %v647_v34   ;;  %v469_v38 = vsel %vm437_vm14, %v421_v29, %v453_v16  ;;  %v476_v39 = vsel %vm444_vm13, %v428_v21, %v460_v31 }
 0x157   :  { %675 = vst [vmem:[#allocation11 + $0x38] sm:$0xff] %v667_v35   ;;  %v642_v18 = vpack.c.bf16 %v469_v38, %v468_v37  ;;  %v477_v40 = vsel %vm445_vm15, %v429_v30, %v461_v36 }
 0x158   :  { %v662_v41 = vpack.c.bf16 %v477_v40, %v476_v39 }
 0x159   :  { %670 = vst [vmem:[#allocation11 + $0x10] sm:$0xff] %v642_v18  }
 0x15a   :  { %674 = vst [vmem:[#allocation11 + $0x30] sm:$0xff] %v662_v41  }
 0x15b   :  { %862 = shalt.err (!%p859_p8)
}
 0x15c   :  { %s863_s17 = scalar_lea.hbm %s1031_s4, 1024 }
 0x15d   :  { %p864_p9 = scmp.ne.s32.totalorder %s1031_s4, %s863_s17  ;;  %p867_p10 = scmp.lt.u32.totalorder %s863_s17, %s1031_s4 }
 0x15f   :  { %p869_p11 = pnand %p867_p10, %p864_p9 }
 0x161   :  { %872 = shalt.err (!%p869_p11)
}
 0x162   :  { %571 = dma.vmem_to_hbm [thread:$0]  %s566_s13, 1024, %s1031_s4, [#allocation5], %s883_s27, %s883_s27, %s884_s28  }
 0x163   :  { %879 = dma.done.wait [#allocation5], 1024  }
 0x164   :  { %880 = vsyncadd [#allocation5], 4294966272 }
 0x165   :  { %575 = vsyncpa [#allocation4], 1 }
 0x166   :  { %576 = vsyncpa [#allocation7], 1 }
 0x167   :  { %577 = vsyncpa [#allocation10], 1 }
 0x168   :  { %578 = vsyncpa [#allocation5], 1 }

// kernel: discriminator_forward.7
= control target key start
LH: loop header
LB: loop body
LE: loop exit
PB: predicated region body
PF: predicated region fallthrough
CT: control target
= control target key end

     0   :  { %9 = vsyncpa [#allocation4], 0  ;;  %s1482_s0 = inlined_call_operand.hbm [shape: bf16[32,1024], index: 0, kind: input, shape index: {}]   ;;  %s1483_s1 = inlined_call_operand.hbm [shape: bf16[1024,128], index: 1, kind: input, shape index: {}]   ;;  %s1484_s2 = inlined_call_operand.hbm [shape: f32[1,128], index: 2, kind: input, shape index: {}]   ;;  %s1485_s3 = inlined_call_operand.hbm [shape: f32[1,128], index: 3, kind: input, shape index: {}]   ;;  %s1486_s4 = inlined_call_operand.hbm [shape: bf16[32,128], index: 4, kind: output, shape index: {}]  }
   0x1   :  { %10 = vsyncpa [#allocation7], 0 }
   0x2   :  { %11 = vsyncpa [#allocation10], 0 }
   0x3   :  { %12 = vsyncpa [#allocation5], 0  ;;  %s1382_s15 = smov [#allocation6]   ;;  %s1264_s19 = scalar_lea.hbm %s1483_s1, 8192 }
   0x4   :  { %s30_s16 = sshll.u32 %s1382_s15, 4  ;;  %p1265_p0 = scmp.ne.s32.totalorder %s1483_s1, %s1264_s19  ;;  %s31_s16 = int_to_ptr.vmem [resolvable:$true] %s30_s16 }
   0x5   :  { %p1268_p1 = scmp.lt.u32.totalorder %s1264_s19, %s1483_s1 }
   0x7   :  { %p1270_p2 = pnand %p1268_p1, %p1265_p0 }
   0x9   :  { %1273 = shalt.err (!%p1270_p2)
}
   0xa   :  { %s1274_s24 = scalar_lea.vmem %s31_s16, 8192  ;;  %p1279_p4 = scmp.lt.s32.totalorder %s31_s16, %s31_s16 }
   0xb   :  { %p1275_p3 = scmp.ne.s32.totalorder %s31_s16, %s1274_s24  ;;  %p1280_p5 = scmp.lt.s32.totalorder %s1274_s24, %s1274_s24 }
   0xd   :  { %p1281_p6 = por %p1280_p5, %p1279_p4 }
   0xf   :  { %p1282_p7 = pnand %p1281_p6, %p1275_p3 }
  0x11   :  { %1285 = shalt.err (!%p1282_p7)
}
  0x12   :  { %s1383_s25 = smov 64   ;;  %s1384_s26 = smov 4  }
  0x13   :  { %36 = dma.hbm_to_vmem [thread:$0]  %s1483_s1, 8192, %s31_s16, [#allocation7], %s1383_s25, %s1383_s25, %s1384_s26  }
  0x14   :  { %s1385_s29 = smov [#allocation3]   ;;  %s1286_s7 = scalar_lea.hbm %s1482_s0, 2048 }
  0x15   :  { %s18_s30 = sshll.u32 %s1385_s29, 4  ;;  %p1287_p8 = scmp.ne.s32.totalorder %s1482_s0, %s1286_s7  ;;  %s19_s30 = int_to_ptr.vmem [resolvable:$true] %s18_s30 }
  0x16   :  { %p1290_p9 = scmp.lt.u32.totalorder %s1286_s7, %s1482_s0 }
  0x18   :  { %p1292_p10 = pnand %p1290_p9, %p1287_p8 }
  0x1a   :  { %1295 = shalt.err (!%p1292_p10)
}
  0x1b   :  { %s1296_s12 = scalar_lea.vmem %s19_s30, 2048  ;;  %p1301_p12 = scmp.lt.s32.totalorder %s19_s30, %s19_s30 }
  0x1c   :  { %p1297_p11 = scmp.ne.s32.totalorder %s19_s30, %s1296_s12  ;;  %p1302_p13 = scmp.lt.s32.totalorder %s1296_s12, %s1296_s12 }
  0x1e   :  { %p1303_p0 = por %p1302_p13, %p1301_p12 }
  0x20   :  { %p1304_p1 = pnand %p1303_p0, %p1297_p11 }
  0x22   :  { %1307 = shalt.err (!%p1304_p1)
}
  0x23   :  { %s1386_s1 = smov 512   ;;  %s1387_s13 = smov 32  }
  0x24   :  { %24 = dma.hbm_to_vmem [thread:$0]  %s1482_s0, 2048, %s19_s30, [#allocation4], %s1386_s1, %s1386_s1, %s1387_s13  }
  0x25   :  { %s1388_s16 = smov [#allocation8]   ;;  %s1389_s18 = smov [#allocation9]  }
  0x26   :  { %s43_s17 = sshll.u32 %s1388_s16, 4  ;;  %s53_s19 = sshll.u32 %s1389_s18, 4  ;;  %s44_s17 = int_to_ptr.vmem [resolvable:$true] %s43_s17  ;;  %s54_s19 = int_to_ptr.vmem [resolvable:$true] %s53_s19 }
  0x27   :  { %s1308_s22 = scalar_lea.hbm %s1484_s2, 16 }
  0x28   :  { %p1309_p2 = scmp.ne.s32.totalorder %s1484_s2, %s1308_s22  ;;  %p1312_p3 = scmp.lt.u32.totalorder %s1308_s22, %s1484_s2 }
  0x2a   :  { %p1314_p4 = pnand %p1312_p3, %p1309_p2 }
  0x2c   :  { %1317 = shalt.err (!%p1314_p4)
}
  0x2d   :  { %s1318_s0 = scalar_lea.vmem %s44_s17, 16  ;;  %s1322_s29 = scalar_lea.vmem %s44_s17, 32 }
  0x2e   :  { %p1319_p5 = scmp.ne.s32.totalorder %s44_s17, %s1318_s0  ;;  %p1323_p6 = scmp.lt.s32.totalorder %s44_s17, %s44_s17 }
  0x2f   :  { %p1324_p7 = scmp.lt.s32.totalorder %s1322_s29, %s1318_s0 }
  0x31   :  { %p1325_p8 = por %p1324_p7, %p1323_p6 }
  0x33   :  { %p1326_p9 = pnand %p1325_p8, %p1319_p5 }
  0x35   :  { %1329 = shalt.err (!%p1326_p9)
}
  0x36   :  { %46 = dma.hbm_to_vmem [thread:$0]  %s1484_s2, 16, %s44_s17, [#allocation7]  }
  0x37   :  { %s1330_s8 = scalar_lea.hbm %s1485_s3, 16 }
  0x38   :  { %p1331_p10 = scmp.ne.s32.totalorder %s1485_s3, %s1330_s8  ;;  %p1334_p11 = scmp.lt.u32.totalorder %s1330_s8, %s1485_s3 }
  0x3a   :  { %p1336_p12 = pnand %p1334_p11, %p1331_p10 }
  0x3c   :  { %1339 = shalt.err (!%p1336_p12)
}
  0x3d   :  { %s1340_s1 = scalar_lea.vmem %s54_s19, 16  ;;  %s1344_s13 = scalar_lea.vmem %s54_s19, 32 }
  0x3e   :  { %p1341_p13 = scmp.ne.s32.totalorder %s54_s19, %s1340_s1  ;;  %p1345_p0 = scmp.lt.s32.totalorder %s54_s19, %s54_s19 }
  0x3f   :  { %p1346_p1 = scmp.lt.s32.totalorder %s1344_s13, %s1340_s1 }
  0x41   :  { %p1347_p2 = por %p1346_p1, %p1345_p0 }
  0x43   :  { %p1348_p3 = pnand %p1347_p2, %p1341_p13 }
  0x45   :  { %1351 = shalt.err (!%p1348_p3)
}
  0x46   :  { %56 = dma.hbm_to_vmem [thread:$0]  %s1485_s3, 16, %s54_s19, [#allocation10]  }
  0x47   :  { %1374 = dma.done.wait [#allocation4], 2048  }
  0x48   :  { %1375 = vsyncadd [#allocation4], 4294965248 }
  0x49   :  { %1376 = dma.done.wait [#allocation7], 8208  }
  0x4a   :  { %1377 = vsyncadd [#allocation7], 4294959088 }
  0x4b   :  { %1378 = dma.done.wait [#allocation10], 16  }
  0x4c   :  { %1379 = vsyncadd [#allocation10], 4294967280  ;;  %v1200_v0 = vld [vmem:[#allocation6 + $0x40] sm:$0xff]   ;;  %v1204_v4 = vld [vmem:[#allocation6 + $0x48] sm:$0xff]   ;;  %s1390_s3 = smov [#allocation11]  }
  0x4d   :  { %v1201_v1 = vld [vmem:[#allocation6 + $0xc0] sm:$0xff]   ;;  %1079 = vmatprep.subr.bf16.mxu0 %v1200_v0  ;;  %v1205_v5 = vld [vmem:[#allocation6 + $0xc8] sm:$0xff]   ;;  %v1208_v8 = vld [vmem:[#allocation6 + $0x50] sm:$0xff]   ;;  %s964_s15 = sshll.u32 %s1390_s3, 4  ;;  %s965_s15 = int_to_ptr.vmem [resolvable:$true] %s964_s15 }
  0x4e   :  { %v1202_v2 = vld [vmem:[#allocation6] sm:$0xff]   ;;  %1107 = vmatprep.subr.bf16.mxu1 %v1201_v1  ;;  %v1206_v6 = vld [vmem:[#allocation6 + $0x8] sm:$0xff]   ;;  %v1209_v9 = vld [vmem:[#allocation6 + $0xd0] sm:$0xff]   ;;  %s1352_s16 = scalar_lea.vmem %s965_s15, 256  ;;  %p1357_p5 = scmp.lt.s32.totalorder %s965_s15, %s965_s15 }
  0x4f   :  { %v1203_v3 = vld [vmem:[#allocation6 + $0x80] sm:$0xff]   ;;  %1080 = vmatpush3.bf16.msra.mxu0 %v1202_v2  ;;  %v1207_v7 = vld [vmem:[#allocation6 + $0x88] sm:$0xff]   ;;  %v1210_v10 = vld [vmem:[#allocation6 + $0x10] sm:$0xff]   ;;  %p1353_p4 = scmp.ne.s32.totalorder %s965_s15, %s1352_s16  ;;  %p1358_p6 = scmp.lt.s32.totalorder %s1352_s16, %s1352_s16 }
  0x50   :  { %1108 = vmatpush3.bf16.msra.mxu1 %v1203_v3  ;;  %1081 = vmatprep.subr.bf16.mxu0 %v1204_v4  ;;  %v1211_v11 = vld [vmem:[#allocation6 + $0x90] sm:$0xff]   ;;  %v1212_v12 = vld [vmem:[#allocation6 + $0x58] sm:$0xff]   ;;  %v1216_v16 = vld [vmem:[#allocation6 + $0x60] sm:$0xff]  }
  0x51   :  { %1109 = vmatprep.subr.bf16.mxu1 %v1205_v5  ;;  %v1213_v13 = vld [vmem:[#allocation6 + $0xd8] sm:$0xff]   ;;  %v1217_v17 = vld [vmem:[#allocation6 + $0xe0] sm:$0xff]   ;;  %v1220_v20 = vld [vmem:[#allocation6 + $0x68] sm:$0xff]   ;;  %p1359_p7 = por %p1358_p6, %p1357_p5 }
  0x52   :  { %v1214_v14 = vld [vmem:[#allocation6 + $0x18] sm:$0xff]   ;;  %v1218_v18 = vld [vmem:[#allocation6 + $0x20] sm:$0xff]   ;;  %v1221_v21 = vld [vmem:[#allocation6 + $0xe8] sm:$0xff]  }
  0x53   :  { %1082 = vmatpush3.bf16.msra.mxu0 %v1206_v6  ;;  %v1215_v15 = vld [vmem:[#allocation6 + $0x98] sm:$0xff]   ;;  %v1219_v19 = vld [vmem:[#allocation6 + $0xa0] sm:$0xff]   ;;  %v1222_v22 = vld [vmem:[#allocation6 + $0x28] sm:$0xff]   ;;  %p1360_p8 = pnand %p1359_p7, %p1353_p4 }
  0x54   :  { %1110 = vmatpush3.bf16.msra.mxu1 %v1207_v7  ;;  %1083 = vmatprep.subr.bf16.mxu0 %v1208_v8  ;;  %v1223_v23 = vld [vmem:[#allocation6 + $0xa8] sm:$0xff]   ;;  %v1224_v24 = vld [vmem:[#allocation6 + $0x70] sm:$0xff]   ;;  %v1228_v28 = vld [vmem:[#allocation6 + $0x78] sm:$0xff]  }
  0x55   :  { %1111 = vmatprep.subr.bf16.mxu1 %v1209_v9  ;;  %v1225_v25 = vld [vmem:[#allocation6 + $0xf0] sm:$0xff]   ;;  %v1229_v29 = vld [vmem:[#allocation6 + $0xf8] sm:$0xff]   ;;  %v70_v32 = vld [vmem:[#allocation3] sm:$0xff] }
  0x56   :  { %v1226_v26 = vld [vmem:[#allocation6 + $0x30] sm:$0xff]   ;;  %v1230_v30 = vld [vmem:[#allocation6 + $0x38] sm:$0xff]   ;;  %v74_v33 = vld [vmem:[#allocation3 + $0x20] sm:$0xff] }
  0x57   :  { %1084 = vmatpush3.bf16.msra.mxu0 %v1210_v10  ;;  %v1227_v27 = vld [vmem:[#allocation6 + $0xb0] sm:$0xff]   ;;  %v1231_v31 = vld [vmem:[#allocation6 + $0xb8] sm:$0xff]   ;;  %v71_v34 = vld [vmem:[#allocation3 + $0x8] sm:$0xff]  ;;  %v978_v35 = vcombine.low %v70_v32, %v74_v33  ;;  %v979_v36 = vcombine.high %v70_v32, %v74_v33 }
  0x58   :  { %1112 = vmatpush3.bf16.msra.mxu1 %v1211_v11  ;;  %1085 = vmatprep.subr.bf16.mxu0 %v1212_v12  ;;  %v75_v37 = vld [vmem:[#allocation3 + $0x28] sm:$0xff]  ;;  %v1232_v40 = vld [vmem:[#allocation6 + $0x140] sm:$0xff]   ;;  %v1240_v48 = vld [vmem:[#allocation6 + $0x150] sm:$0xff]  }
  0x59   :  { %1113 = vmatprep.subr.bf16.mxu1 %v1213_v13  ;;  %v980_v38 = vcombine.low %v71_v34, %v75_v37  ;;  %v981_v39 = vcombine.high %v71_v34, %v75_v37  ;;  %710 = vmatprep.mubr.bf16.mxu0 %v979_v36  ;;  %v1233_v41 = vld [vmem:[#allocation6 + $0x1c0] sm:$0xff]   ;;  %v1236_v44 = vld [vmem:[#allocation6 + $0x148] sm:$0xff]   ;;  %v1241_v49 = vld [vmem:[#allocation6 + $0x1d0] sm:$0xff]  }
  0x5a   :  { %v1234_v42 = vld [vmem:[#allocation6 + $0x100] sm:$0xff]   ;;  %v1237_v45 = vld [vmem:[#allocation6 + $0x1c8] sm:$0xff]   ;;  %v1242_v50 = vld [vmem:[#allocation6 + $0x110] sm:$0xff]  }
  0x5b   :  { %1086 = vmatpush3.bf16.msra.mxu0 %v1214_v14  ;;  %759 = vmatprep.mubr.bf16.mxu1 %v981_v39  ;;  %v1235_v43 = vld [vmem:[#allocation6 + $0x180] sm:$0xff]   ;;  %v1238_v46 = vld [vmem:[#allocation6 + $0x108] sm:$0xff]   ;;  %v1243_v51 = vld [vmem:[#allocation6 + $0x190] sm:$0xff]  }
  0x5c   :  { %1114 = vmatpush3.bf16.msra.mxu1 %v1215_v15  ;;  %1087 = vmatprep.subr.bf16.mxu0 %v1216_v16  ;;  %v1239_v47 = vld [vmem:[#allocation6 + $0x188] sm:$0xff]   ;;  %v1244_v52 = vld [vmem:[#allocation6 + $0x158] sm:$0xff]   ;;  %v1248_v56 = vld [vmem:[#allocation6 + $0x160] sm:$0xff]  }
  0x5d   :  { %1115 = vmatprep.subr.bf16.mxu1 %v1217_v17  ;;  %v1245_v53 = vld [vmem:[#allocation6 + $0x1d8] sm:$0xff]   ;;  %v1249_v57 = vld [vmem:[#allocation6 + $0x1e0] sm:$0xff]   ;;  %v79_v63 = vld [vmem:[#allocation3 + $0x48] sm:$0xff] }
  0x5e   :  { %v1246_v54 = vld [vmem:[#allocation6 + $0x118] sm:$0xff]   ;;  %v1250_v58 = vld [vmem:[#allocation6 + $0x120] sm:$0xff]   ;;  %v83_v0 = vld [vmem:[#allocation3 + $0x68] sm:$0xff] }
  0x5f   :  { %1088 = vmatpush3.bf16.msra.mxu0 %v1218_v18  ;;  %v1247_v55 = vld [vmem:[#allocation6 + $0x198] sm:$0xff]   ;;  %v1251_v59 = vld [vmem:[#allocation6 + $0x1a0] sm:$0xff]   ;;  %v989_v2 = vcombine.high %v79_v63, %v83_v0  ;;  %v1252_v3 = vld [vmem:[#allocation6 + $0x168] sm:$0xff]   ;;  %v988_v4 = vcombine.low %v79_v63, %v83_v0 }
  0x60   :  { %1116 = vmatpush3.bf16.msra.mxu1 %v1219_v19  ;;  %1089 = vmatprep.subr.bf16.mxu0 %v1220_v20  ;;  %v78_v60 = vld [vmem:[#allocation3 + $0x40] sm:$0xff]  ;;  %v1253_v5 = vld [vmem:[#allocation6 + $0x1e8] sm:$0xff]   ;;  %v1256_v8 = vld [vmem:[#allocation6 + $0x170] sm:$0xff]  }
  0x61   :  { %1117 = vmatprep.subr.bf16.mxu1 %v1221_v21  ;;  %v82_v61 = vld [vmem:[#allocation3 + $0x60] sm:$0xff]  ;;  %v1254_v6 = vld [vmem:[#allocation6 + $0x128] sm:$0xff]   ;;  %v1257_v9 = vld [vmem:[#allocation6 + $0x1f0] sm:$0xff]  }
  0x62   :  { %v987_v62 = vcombine.high %v78_v60, %v82_v61  ;;  %v986_v1 = vcombine.low %v78_v60, %v82_v61  ;;  %v1255_v7 = vld [vmem:[#allocation6 + $0x1a8] sm:$0xff]   ;;  %v1258_v10 = vld [vmem:[#allocation6 + $0x130] sm:$0xff]   ;;  %v1260_v12 = vld [vmem:[#allocation6 + $0x178] sm:$0xff]  }
  0x63   :  { %1090 = vmatpush3.bf16.msra.mxu0 %v1222_v22  ;;  %v1259_v11 = vld [vmem:[#allocation6 + $0x1b0] sm:$0xff]   ;;  %v1261_v13 = vld [vmem:[#allocation6 + $0x1f8] sm:$0xff]  }
  0x64   :  { %1118 = vmatpush3.bf16.msra.mxu1 %v1223_v23  ;;  %1091 = vmatprep.subr.bf16.mxu0 %v1224_v24  ;;  %v1262_v14 = vld [vmem:[#allocation6 + $0x138] sm:$0xff]   ;;  %v72_v16 = vld [vmem:[#allocation3 + $0x10] sm:$0xff] }
  0x65   :  { %1119 = vmatprep.subr.bf16.mxu1 %v1225_v25  ;;  %v1263_v15 = vld [vmem:[#allocation6 + $0x1b8] sm:$0xff]   ;;  %v76_v17 = vld [vmem:[#allocation3 + $0x30] sm:$0xff] }
  0x66   :  { %v73_v18 = vld [vmem:[#allocation3 + $0x18] sm:$0xff]  ;;  %v982_v20 = vcombine.low %v72_v16, %v76_v17  ;;  %v983_v21 = vcombine.high %v72_v16, %v76_v17  ;;  %v80_v24 = vld [vmem:[#allocation3 + $0x50] sm:$0xff] }
  0x67   :  { %1092 = vmatpush3.bf16.msra.mxu0 %v1226_v26  ;;  %v77_v19 = vld [vmem:[#allocation3 + $0x38] sm:$0xff]  ;;  %v84_v25 = vld [vmem:[#allocation3 + $0x70] sm:$0xff] }
  0x68   :  { %1120 = vmatpush3.bf16.msra.mxu1 %v1227_v27  ;;  %1093 = vmatprep.subr.bf16.mxu0 %v1228_v28  ;;  %v984_v22 = vcombine.low %v73_v18, %v77_v19  ;;  %v985_v23 = vcombine.high %v73_v18, %v77_v19  ;;  %v81_v26 = vld [vmem:[#allocation3 + $0x58] sm:$0xff]  ;;  %v991_v27 = vcombine.high %v80_v24, %v84_v25 }
  0x69   :  { %1121 = vmatprep.subr.bf16.mxu1 %v1229_v29  ;;  %v85_v28 = vld [vmem:[#allocation3 + $0x78] sm:$0xff] }
  0x6a   :  { %v993_v29 = vcombine.high %v81_v26, %v85_v28 }
  0x6b   :  { %1094 = vmatpush3.bf16.msra.mxu0 %v1230_v30  ;;  %v990_v30 = vcombine.low %v80_v24, %v84_v25 }
  0x6c   :  { %1122 = vmatpush3.bf16.msra.mxu1 %v1231_v31  ;;  %1135 = vmatprep.subr.bf16.mxu0 %v1232_v40  ;;  %v992_v31 = vcombine.low %v81_v26, %v85_v28 }
  0x6d   :  { %1163 = vmatprep.subr.bf16.mxu1 %v1233_v41 }
  0x6e   :  { %711 = vmatmul.mubr.bf16.vlgmr.msra.gmra.mrb[0].mxu0 %v978_v35 }
  0x6f   :  { %760 = vmatmul.mubr.bf16.vlgmr.msra.gmra.mrb[0].mxu1 %v980_v38  ;;  %1136 = vmatpush3.bf16.msra.mxu0 %v1234_v42 }
  0x70   :  { %1164 = vmatpush3.bf16.msra.mxu1 %v1235_v43  ;;  %1137 = vmatprep.subr.bf16.mxu0 %v1236_v44 }
  0x71   :  { %1165 = vmatprep.subr.bf16.mxu1 %v1237_v45  ;;  %718 = vmatprep.mubr.bf16.mxu0 %v987_v62 }
  0x72   :  { %767 = vmatprep.mubr.bf16.mxu1 %v989_v2 }
  0x73   :  { %1138 = vmatpush3.bf16.msra.mxu0 %v1238_v46 }
  0x74   :  { %1166 = vmatpush3.bf16.msra.mxu1 %v1239_v47  ;;  %1139 = vmatprep.subr.bf16.mxu0 %v1240_v48 }
  0x75   :  { %1167 = vmatprep.subr.bf16.mxu1 %v1241_v49 }
  0x76   :  { %719 = vmatmul.mubr.bf16.gmra.mrb[4].mxu0 %v986_v1 }
  0x77   :  { %1140 = vmatpush3.bf16.msra.mxu0 %v1242_v50  ;;  %768 = vmatmul.mubr.bf16.gmra.mrb[4].mxu1 %v988_v4 }
  0x78   :  { %1168 = vmatpush3.bf16.msra.mxu1 %v1243_v51  ;;  %1141 = vmatprep.subr.bf16.mxu0 %v1244_v52 }
  0x79   :  { %1169 = vmatprep.subr.bf16.mxu1 %v1245_v53  ;;  %808 = vmatprep.mubr.bf16.mxu0 %v983_v21 }
  0x7a   :  { %857 = vmatprep.mubr.bf16.mxu1 %v985_v23 }
  0x7b   :  { %1142 = vmatpush3.bf16.msra.mxu0 %v1246_v54 }
  0x7c   :  { %1170 = vmatpush3.bf16.msra.mxu1 %v1247_v55  ;;  %1143 = vmatprep.subr.bf16.mxu0 %v1248_v56 }
  0x7d   :  { %1171 = vmatprep.subr.bf16.mxu1 %v1249_v57 }
  0x7f   :  { %1144 = vmatpush3.bf16.msra.mxu0 %v1250_v58 }
  0x80   :  { %1172 = vmatpush3.bf16.msra.mxu1 %v1251_v59  ;;  %1145 = vmatprep.subr.bf16.mxu0 %v1252_v3 }
  0x81   :  { %1173 = vmatprep.subr.bf16.mxu1 %v1253_v5 }
  0x83   :  { %1146 = vmatpush3.bf16.msra.mxu0 %v1254_v6 }
  0x84   :  { %1174 = vmatpush3.bf16.msra.mxu1 %v1255_v7  ;;  %1147 = vmatprep.subr.bf16.mxu0 %v1256_v8 }
  0x85   :  { %1175 = vmatprep.subr.bf16.mxu1 %v1257_v9  ;;  %v1058_v9 = vld [vmem:[#allocation8] ss:$0 sm:$0xff] }
  0x87   :  { %1148 = vmatpush3.bf16.msra.mxu0 %v1258_v10 }
  0x88   :  { %1176 = vmatpush3.bf16.msra.mxu1 %v1259_v11  ;;  %1149 = vmatprep.subr.bf16.mxu0 %v1260_v12  ;;  %v1059_v12 = vld [vmem:[#allocation9] ss:$0 sm:$0xff] }
  0x89   :  { %1177 = vmatprep.subr.bf16.mxu1 %v1261_v13 }
  0x8b   :  { %1150 = vmatpush3.bf16.msra.mxu0 %v1262_v14 }
  0x8c   :  { %1178 = vmatpush3.bf16.msra.mxu1 %v1263_v15 }
  0x8e   :  { %809 = vmatmul.mubr.bf16.vlgmr.msra.gmra.mrb[8].mxu0 %v982_v20 }
  0x8f   :  { %858 = vmatmul.mubr.bf16.vlgmr.msra.gmra.mrb[8].mxu1 %v984_v22  ;;  %816 = vmatprep.mubr.bf16.mxu0 %v991_v27 }
  0x90   :  { %865 = vmatprep.mubr.bf16.mxu1 %v993_v29 }
  0x96   :  { %817 = vmatmul.mubr.bf16.gmra.mrb[12].mxu0 %v990_v30 }
  0x97   :  { %866 = vmatmul.mubr.bf16.gmra.mrb[12].mxu1 %v992_v31 }
 0x141   :  { %v1095_v32 = vpop.f32.mrb[0].mxu0 }
 0x142   :  { %v1123_v33 = vpop.f32.mrb[0].mxu1  ;;  %v1096_v34 = vpop.f32.mrb[1].mxu0 }
 0x143   :  { %v1097_v35 = vadd.f32 %v1096_v34, %v1095_v32  ;;  %v1124_v36 = vpop.f32.mrb[1].mxu1  ;;  %v1098_v37 = vpop.f32.mrb[2].mxu0 }
 0x144   :  { %v1125_v38 = vadd.f32 %v1124_v36, %v1123_v33  ;;  %v1126_v39 = vpop.f32.mrb[2].mxu1  ;;  %v1099_v40 = vpop.f32.mrb[3].mxu0 }
 0x145   :  { %v1100_v41 = vadd.f32 %v1099_v40, %v1098_v37  ;;  %v1127_v42 = vpop.f32.mrb[3].mxu1 }
 0x146   :  { %v762_v43 = vadd.f32 %v1125_v38, %v1097_v35  ;;  %v1128_v44 = vadd.f32 %v1127_v42, %v1126_v39 }
 0x148   :  { %v765_v45 = vadd.f32 %v1128_v44, %v1100_v41 }
 0x149   :  { %v1101_v46 = vpop.f32.mrb[4].mxu0 }
 0x14a   :  { %v1129_v47 = vpop.f32.mrb[4].mxu1  ;;  %v1102_v48 = vpop.f32.mrb[5].mxu0 }
 0x14b   :  { %v1103_v49 = vadd.f32 %v1102_v48, %v1101_v46  ;;  %v1130_v50 = vpop.f32.mrb[5].mxu1  ;;  %v1104_v51 = vpop.f32.mrb[6].mxu0 }
 0x14c   :  { %v1131_v52 = vadd.f32 %v1130_v50, %v1129_v47  ;;  %v1132_v53 = vpop.f32.mrb[6].mxu1  ;;  %v1105_v54 = vpop.f32.mrb[7].mxu0 }
 0x14d   :  { %v1106_v55 = vadd.f32 %v1105_v54, %v1104_v51  ;;  %v1133_v56 = vpop.f32.mrb[7].mxu1 }
 0x14e   :  { %v770_v57 = vadd.f32 %v1131_v52, %v1103_v49  ;;  %v1134_v58 = vadd.f32 %v1133_v56, %v1132_v53 }
 0x150   :  { %v773_v59 = vadd.f32 %v1134_v58, %v1106_v55 }
 0x161   :  { %v1151_v60 = vpop.f32.mrb[8].mxu0 }
 0x162   :  { %v1179_v61 = vpop.f32.mrb[8].mxu1  ;;  %v1152_v62 = vpop.f32.mrb[9].mxu0 }
 0x163   :  { %v1180_v63 = vpop.f32.mrb[9].mxu1  ;;  %v1153_v0 = vadd.f32 %v1152_v62, %v1151_v60  ;;  %v1154_v2 = vpop.f32.mrb[10].mxu0 }
 0x164   :  { %v1181_v1 = vadd.f32 %v1180_v63, %v1179_v61  ;;  %v1182_v3 = vpop.f32.mrb[10].mxu1  ;;  %v1155_v4 = vpop.f32.mrb[11].mxu0 }
 0x165   :  { %v1183_v5 = vpop.f32.mrb[11].mxu1  ;;  %v811_v6 = vadd.f32 %v1153_v0, %v762_v43  ;;  %v1156_v7 = vadd.f32 %v1155_v4, %v1154_v2 }
 0x166   :  { %v1184_v8 = vadd.f32 %v1183_v5, %v1182_v3 }
 0x167   :  { %v860_v10 = vadd.f32 %v1181_v1, %v811_v6  ;;  %v814_v11 = vadd.f32 %v1156_v7, %v765_v45 }
 0x169   :  { %v912_v13 = vmul.f32 %v1058_v9, %v860_v10  ;;  %v863_v14 = vadd.f32 %v1184_v8, %v814_v11  ;;  %v1157_v15 = vpop.f32.mrb[12].mxu0 }
 0x16a   :  { %v1185_v16 = vpop.f32.mrb[12].mxu1  ;;  %v1158_v17 = vpop.f32.mrb[13].mxu0 }
 0x16b   :  { %v1186_v18 = vpop.f32.mrb[13].mxu1  ;;  %v923_v19 = vadd.f32 %v1059_v12, %v912_v13  ;;  %v913_v20 = vmul.f32 %v1058_v9, %v863_v14  ;;  %v1159_v21 = vadd.f32 %v1158_v17, %v1157_v15  ;;  %v1160_v23 = vpop.f32.mrb[14].mxu0 }
 0x16c   :  { %v1187_v22 = vadd.f32 %v1186_v18, %v1185_v16  ;;  %v1188_v24 = vpop.f32.mrb[14].mxu1  ;;  %v1161_v25 = vpop.f32.mrb[15].mxu0 }
 0x16d   :  { %v1189_v26 = vpop.f32.mrb[15].mxu1  ;;  %v924_v27 = vadd.f32 %v1059_v12, %v913_v20  ;;  %v819_v28 = vadd.f32 %v1159_v21, %v770_v57  ;;  %v1162_v29 = vadd.f32 %v1161_v25, %v1160_v23  ;;  %vm927_vm0 = vcmp.ge.f32.partialorder %v923_v19, 0.0 }
 0x16e   :  { %v1190_v30 = vadd.f32 %v1189_v26, %v1188_v24  ;;  %v931_v31 = vmul.f32 0.2, %v923_v19 }
 0x16f   :  { %v868_v32 = vadd.f32 %v1187_v22, %v819_v28  ;;  %v822_v33 = vadd.f32 %v1162_v29, %v773_v59  ;;  %vm928_vm1 = vcmp.ge.f32.partialorder %v924_v27, 0.0  ;;  %v932_v34 = vmul.f32 0.2, %v924_v27 }
 0x170   :  { %v935_v37 = vsel %vm927_vm0, %v923_v19, %v931_v31 }
 0x171   :  { %v914_v35 = vmul.f32 %v1058_v9, %v868_v32  ;;  %v871_v36 = vadd.f32 %v1190_v30, %v822_v33  ;;  %v936_v38 = vsel %vm928_vm1, %v924_v27, %v932_v34 }
 0x172   :  { %v1071_v39 = vpack.c.bf16 %v936_v38, %v935_v37 }
 0x173   :  { %v925_v40 = vadd.f32 %v1059_v12, %v914_v35  ;;  %v915_v41 = vmul.f32 %v1058_v9, %v871_v36 }
 0x174   :  { %1072 = vst [vmem:[#allocation11] sm:$0xff] %v1071_v39  }
 0x175   :  { %v926_v42 = vadd.f32 %v1059_v12, %v915_v41  ;;  %v933_v43 = vmul.f32 0.2, %v925_v40  ;;  %vm929_vm2 = vcmp.ge.f32.partialorder %v925_v40, 0.0 }
 0x177   :  { %vm930_vm3 = vcmp.ge.f32.partialorder %v926_v42, 0.0  ;;  %v934_v44 = vmul.f32 0.2, %v926_v42  ;;  %v937_v45 = vsel %vm929_vm2, %v925_v40, %v933_v43 }
 0x179   :  { %v938_v46 = vsel %vm930_vm3, %v926_v42, %v934_v44 }
 0x17a   :  { %v1076_v47 = vpack.c.bf16 %v938_v46, %v937_v45 }
 0x17c   :  { %1078 = vst [vmem:[#allocation11 + $0x8] sm:$0xff] %v1076_v47  }
 0x17d   :  { %1363 = shalt.err (!%p1360_p8)
}
 0x17e   :  { %s1364_s19 = scalar_lea.hbm %s1486_s4, 256 }
 0x17f   :  { %p1365_p9 = scmp.ne.s32.totalorder %s1486_s4, %s1364_s19  ;;  %p1368_p10 = scmp.lt.u32.totalorder %s1364_s19, %s1486_s4 }
 0x181   :  { %p1370_p11 = pnand %p1368_p10, %p1365_p9 }
 0x183   :  { %1373 = shalt.err (!%p1370_p11)
}
 0x184   :  { %970 = dma.vmem_to_hbm [thread:$0]  %s965_s15, 256, %s1486_s4, [#allocation5], %s1383_s25, %s1383_s25, %s1384_s26  }
 0x185   :  { %1380 = dma.done.wait [#allocation5], 256  }
 0x186   :  { %1381 = vsyncadd [#allocation5], 4294967040 }
 0x187   :  { %974 = vsyncpa [#allocation4], 1 }
 0x188   :  { %975 = vsyncpa [#allocation7], 1 }
 0x189   :  { %976 = vsyncpa [#allocation10], 1 }
 0x18a   :  { %977 = vsyncpa [#allocation5], 1 }

// kernel: discriminator_forward.8
= control target key start
LH: loop header
LB: loop body
LE: loop exit
PB: predicated region body
PF: predicated region fallthrough
CT: control target
= control target key end

     0   :  { %9 = vsyncpa [#allocation4], 0  ;;  %s2554_s0 = inlined_call_operand.hbm [shape: bf16[8,2048], index: 0, kind: input, shape index: {}]   ;;  %s2555_s1 = inlined_call_operand.hbm [shape: bf16[2048,256], index: 1, kind: input, shape index: {}]   ;;  %s2556_s2 = inlined_call_operand.hbm [shape: f32[1,256], index: 2, kind: input, shape index: {}]   ;;  %s2557_s3 = inlined_call_operand.hbm [shape: f32[1,256], index: 3, kind: input, shape index: {}]   ;;  %s2558_s4 = inlined_call_operand.hbm [shape: bf16[8,256], index: 4, kind: output, shape index: {}]  }
   0x1   :  { %11 = vsyncpa [#allocation4 + $0x1], 0 }
   0x2   :  { %12 = vsyncpa [#allocation7], 0 }
   0x3   :  { %14 = vsyncpa [#allocation7 + $0x1], 0 }
   0x4   :  { %15 = vsyncpa [#allocation10], 0 }
   0x5   :  { %16 = vsyncpa [#allocation5], 0  ;;  %s2143_s15 = smov 0   ;;  %s2145_s16 = smov 0  }
   0x6   :  { %s2147_s17 = smov 0   ;;  %s2149_s18 = smov 0  }
   0x7   :  { %s2151_s19 = smov 0   ;;  %s2153_s20 = smov 0  }
   0x8 LB: > { %s2172_s21 = sadd.s32 4294967295, %s2109_s20   ;;  %p56_p0 = scmp.ne.s32.totalorder %s2093_s16, %s2089_s15  ;;  %s2109_s20 = sphi %s2153_s20, %s22_s20   ;;  %s2105_s19 = sphi %s2151_s19, %s2576_s19   ;;  %s2101_s18 = sphi %s2149_s18, %s2575_s18   ;;  %s2097_s17 = sphi %s2147_s17, %s2574_s17   ;;  %s2093_s16 = sphi %s2145_s16, %s2573_s16   ;;  %s2089_s15 = sphi %s2143_s15, %s2572_s15  }
   0x9   : > { %p2559_p1 = scmp.eq.s32.totalorder %s2172_s21, 0  ;;  %p1437_p2 = scmp.ge.s32.totalorder %s2109_s20, 1 }
   0xa   : > { %p161_p3 = scmp.lt.s32.totalorder %s2109_s20, 3  ;;  %s2111_s24 = smov [#allocation8]  }
   0xb   : > { %p2180_p4 = por %p2559_p1, %p56_p0  ;;  %s174_s25 = sshll.u32 %s2111_s24, 4  ;;  %s175_s25 = int_to_ptr.vmem [resolvable:$true] %s174_s25 }
   0xc   : > { %p2184_p5 = pnand %p1437_p2, %p161_p3  ;;  %s2112_s26 = smov [#allocation9]  }
   0xd   : > { %s2562_s22 = scalar_select %p2180_p4, 1, 0 }
   0xe   : > { %s2563_s23 = scalar_select %p2184_p5, 1, 0 }
   0xf   : > { %p1627_p6 = pneg %p2184_p5  ;;  %s185_s27 = sshll.u32 %s2112_s26, 4  ;;  %s2196_s27 = int_to_ptr.vmem [resolvable:$true] %s185_s27 }
  0x10   : > { %s1901_s5 = scalar_lea.hbm %s2556_s2, 32 }
  0x11   : > { %p2192_p7 = pnand %p1627_p6, %p2559_p1  ;;  %p1902_p8 = scmp.ne.s32.totalorder %s2556_s2, %s1901_s5 }
  0x12   : > { %p1908_p12 = scmp.lt.u32.totalorder %s1901_s5, %s2556_s2 }
  0x13   : > { %p1903_p9 = pneg %p2192_p7 }
  0x15   : > { %p1904_p10 = pnand %p1903_p9, %p1902_p8 }
  0x17   : > { %p1905_p11 = pneg %p1904_p10 }
  0x19   : > { %p1910_p13 = pnand %p1908_p12, %p1905_p11 }
  0x1b   : > { %1913 = shalt.err (!%p1910_p13)
}
  0x1c   : > { %s1914_s10 = scalar_lea.vmem %s175_s25, 32  ;;  %p1922_p6 = scmp.lt.s32.totalorder %s175_s25, %s175_s25 }
  0x1d   : > { %p1915_p0 = scmp.ne.s32.totalorder %s175_s25, %s1914_s10  ;;  %p1923_p1 = scmp.lt.s32.totalorder %s1914_s10, %s1914_s10 }
  0x1f   : > { %p1917_p2 = pnand %p1915_p0, %p1903_p9  ;;  %p1924_p4 = por %p1923_p1, %p1922_p6 }
  0x21   : > { %p1918_p3 = pneg %p1917_p2 }
  0x23   : > { %p1925_p5 = pnand %p1924_p4, %p1918_p3 }
  0x25   : > { %1928 = shalt.err (!%p1925_p5)
}
  0x26   : > { %1630 = dma.hbm_to_vmem [thread:$0]  (!%p2192_p7), %s2556_s2, 32, %s175_s25, [#allocation7]  }
  0x27   : > { %s1929_s15 = scalar_lea.hbm %s2557_s3, 32 }
  0x28   : > { %p1930_p8 = scmp.ne.s32.totalorder %s2557_s3, %s1929_s15  ;;  %p1936_p5 = scmp.lt.u32.totalorder %s1929_s15, %s2557_s3 }
  0x2a   : > { %p1932_p1 = pnand %p1930_p8, %p1903_p9 }
  0x2c   : > { %p1933_p4 = pneg %p1932_p1 }
  0x2e   : > { %p1938_p10 = pnand %p1936_p5, %p1933_p4 }
  0x30   : > { %1941 = shalt.err (!%p1938_p10)
}
  0x31   : > { %s1942_s25 = scalar_lea.vmem %s2196_s27, 32  ;;  %p1950_p0 = scmp.lt.s32.totalorder %s2196_s27, %s2196_s27 }
  0x32   : > { %p1943_p11 = scmp.ne.s32.totalorder %s2196_s27, %s1942_s25  ;;  %p1951_p2 = scmp.lt.s32.totalorder %s1942_s25, %s1942_s25 }
  0x34   : > { %p1945_p12 = pnand %p1943_p11, %p1903_p9  ;;  %p1952_p3 = por %p1951_p2, %p1950_p0 }
  0x36   : > { %p1946_p13 = pneg %p1945_p12 }
  0x38   : > { %p1953_p6 = pnand %p1952_p3, %p1946_p13 }
  0x3a   : > { %1956 = shalt.err (!%p1953_p6)
}
  0x3b   : > { %1633 = dma.hbm_to_vmem [thread:$0]  (!%p2192_p7), %s2557_s3, 32, %s2196_s27, [#allocation10]  }
  0x3c   : > { %s31_s7 = sadd.s32 1, %s2105_s19  ;;  %s43_s8 = sadd.s32 1, %s2097_s17 }
  0x3d   : > { %p32_p9 = scmp.ge.s32.totalorder %s31_s7, 2  ;;  %p50_p8 = scmp.ne.s32.totalorder %s2097_s17, %s2093_s16 }
  0x3e   : > { %p51_p1 = scmp.eq.s32.totalorder %s2109_s20, 0  ;;  %p1643_p4 = scmp.lt.s32.totalorder %s2109_s20, 2 }
  0x3f   : > { %s2578_s7 = smov (%p32_p9, %s31_s7), 0  ;;  %s2254_s28 = sand.u32 1, %s2097_s17  }
  0x40   : > { %p52_p5 = por %p51_p1, %p50_p8  ;;  %s39_s9 = ssub.s32 %s2105_s19, %s2578_s7 }
  0x41   : > { %p41_p10 = scmp.eq.s32.totalorder %s39_s9, 0  ;;  %s1441_s27 = sshll.u32 %s2254_s28, 5 }
  0x42   : > { %s1597_s10 = sshll.u32 %s2105_s19, 9  ;;  %s200_s15 = scalar_lea.vmem [#allocation3], %s1441_s27 }
  0x43   : > { %s2261_s11 = scalar_select %p41_p10, %s2097_s17, %s43_s8  }
  0x44   : > { %s2266_s14 = scalar_lea.hbm %s2554_s0, %s1597_s10  ;;  %s210_s24 = sshll.u32 %s200_s15, 4  ;;  %s2268_s24 = int_to_ptr.vmem [resolvable:$true] %s210_s24 }
  0x45   : > { %p2272_p7 = pnand %p1643_p4, %p52_p5  ;;  %s1444_s29 = sshll.u32 %s2254_s28, 10 }
  0x46   : > { %s1599_s30 = sshll.u32 %s2105_s19, 14  ;;  %s197_s25 = scalar_lea.sflag [#allocation4], %s2254_s28 }
  0x47   : > { %s1957_s5 = scalar_lea.hbm %s2266_s14, 512  ;;  %p1959_p12 = pneg %p2272_p7 }
  0x48   : > { %p1958_p11 = scmp.ne.s32.totalorder %s2266_s14, %s1957_s5  ;;  %s1962_s9 = scalar_lea.hbm %s2554_s0, 1024 }
  0x49   : > { %p1963_p2 = scmp.lt.u32.totalorder %s2266_s14, %s2554_s0  ;;  %p1964_p3 = scmp.lt.u32.totalorder %s1962_s9, %s1957_s5 }
  0x4a   : > { %p1960_p13 = pnand %p1959_p12, %p1958_p11  ;;  %p1966_p9 = scmp.lt.u32.totalorder %s1957_s5, %s2266_s14 }
  0x4b   : > { %p1965_p6 = por %p1964_p3, %p1963_p2 }
  0x4c   : > { %p1961_p0 = pneg %p1960_p13 }
  0x4d   : > { %p1967_p8 = por %p1966_p9, %p1965_p6 }
  0x4f   : > { %p1968_p1 = pnand %p1967_p8, %p1961_p0 }
  0x51   : > { %1971 = shalt.err (!%p1968_p1)
}
  0x52   : > { %s1972_s12 = scalar_lea.vmem %s2268_s24, 512  ;;  %s2113_s13 = smov [#allocation3]  }
  0x53   : > { %p1973_p4 = scmp.ne.s32.totalorder %s2268_s24, %s1972_s12  ;;  %s1977_s15 = sshll.u32 %s2113_s13, 4  ;;  %s1978_s15 = int_to_ptr.vmem [resolvable:$false] %s1977_s15 }
  0x54   : > { %s1979_s6 = scalar_lea.vmem %s1978_s15, 1024  ;;  %p1980_p11 = scmp.lt.s32.totalorder %s2268_s24, %s1978_s15 }
  0x55   : > { %p1975_p5 = pnand %p1973_p4, %p1959_p12  ;;  %p1981_p13 = scmp.lt.s32.totalorder %s1979_s6, %s1972_s12 }
  0x57   : > { %p1976_p10 = pneg %p1975_p5  ;;  %p1982_p2 = por %p1981_p13, %p1980_p11 }
  0x59   : > { %p1983_p3 = pnand %p1982_p2, %p1976_p10 }
  0x5b   : > { %1986 = shalt.err (!%p1983_p3)
}
  0x5c   : > { %1637 = dma.hbm_to_vmem [thread:$0]  (!%p2272_p7), %s2266_s14, 512, %s2268_s24, %s197_s25  }
  0x5d   : > { %s221_s5 = scalar_lea.vmem [#allocation6], %s1444_s29  ;;  %s217_s9 = sand.u32 1, %s2109_s20  }
  0x5e   : > { %s229_s8 = sshll.u32 %s221_s5, 4  ;;  %s2314_s12 = scalar_lea.hbm %s2555_s1, %s1599_s30  ;;  %s2307_s8 = int_to_ptr.vmem [resolvable:$true] %s229_s8 }
  0x5f   : > { %s2316_s13 = scalar_lea.sflag [#allocation7], %s217_s9  ;;  %s1987_s15 = scalar_lea.hbm %s2314_s12, 16384 }
  0x60   : > { %p1988_p0 = scmp.ne.s32.totalorder %s2314_s12, %s1987_s15  ;;  %s1992_s24 = scalar_lea.hbm %s2555_s1, 32768 }
  0x61   : > { %p1993_p8 = scmp.lt.u32.totalorder %s2314_s12, %s2555_s1  ;;  %p1994_p1 = scmp.lt.u32.totalorder %s1992_s24, %s1987_s15 }
  0x62   : > { %p1990_p6 = pnand %p1988_p0, %p1959_p12  ;;  %p1996_p5 = scmp.lt.u32.totalorder %s1987_s15, %s2314_s12 }
  0x63   : > { %p1995_p4 = por %p1994_p1, %p1993_p8 }
  0x64   : > { %p1991_p9 = pneg %p1990_p6 }
  0x65   : > { %p1997_p10 = por %p1996_p5, %p1995_p4 }
  0x67   : > { %p1998_p11 = pnand %p1997_p10, %p1991_p9 }
  0x69   : > { %2001 = shalt.err (!%p1998_p11)
}
  0x6a   : > { %s2002_s30 = scalar_lea.vmem %s2307_s8, 16384  ;;  %s2114_s6 = smov [#allocation6]  }
  0x6b   : > { %p2003_p13 = scmp.ne.s32.totalorder %s2307_s8, %s2002_s30  ;;  %s2007_s5 = sshll.u32 %s2114_s6, 4  ;;  %s2008_s5 = int_to_ptr.vmem [resolvable:$false] %s2007_s5 }
  0x6c   : > { %s2009_s9 = scalar_lea.vmem %s2008_s5, 32768  ;;  %p2010_p0 = scmp.lt.s32.totalorder %s2307_s8, %s2008_s5 }
  0x6d   : > { %p2005_p2 = pnand %p2003_p13, %p1959_p12  ;;  %p2011_p6 = scmp.lt.s32.totalorder %s2009_s9, %s2002_s30 }
  0x6f   : > { %p2006_p3 = pneg %p2005_p2  ;;  %p2012_p8 = por %p2011_p6, %p2010_p0 }
  0x71   : > { %p2013_p1 = pnand %p2012_p8, %p2006_p3 }
  0x73   : > { %2016 = shalt.err (!%p2013_p1)
}
  0x74   : > { %s2115_s27 = smov 128   ;;  %s2116_s10 = smov 8  }
  0x75   : > { %1640 = dma.hbm_to_vmem [thread:$0]  (!%p2272_p7), %s2314_s12, 16384, %s2307_s8, %s2316_s13, %s2115_s27, %s2115_s27, %s2116_s10  }
  0x76   : > { %p2566_p12 = scmp.ne.s32.totalorder %s2563_s23, 0 }
  0x77   : > { %s243_s15 = sand.u32 (!%p2566_p12), 1, %s2093_s16   ;;  %p2567_p9 = scmp.ne.s32.totalorder (!%p2566_p12), %s2562_s22, 0 }
  0x78   : > { %241 = sbr.rel (%p2566_p12) target bundleno = 538 (0x21a), region = 36  ;;  %s1449_s28 = sshll.u32 (!%p2566_p12), %s243_s15, 5 }
  0x79   : > { %s244_s14 = scalar_lea.sflag (!%p2566_p12), [#allocation4], %s243_s15  ;;  %s2345_s24 = scalar_lea.vmem (!%p2566_p12), [#allocation3], %s1449_s28 }
  0x7f   : > { %2068 = dma.done.wait (%p2567_p9), %s244_s14, 512  }
  0x80   : > { %2070 = vsyncadd (%p2567_p9), %s244_s14, 4294966784  ;;  %s252_s29 = sand.u32 1, %s2172_s21   ;;  %s1450_s26 = sshll.u32 %s243_s15, 10 }
  0x81   : > { %s253_s8 = scalar_lea.sflag [#allocation7], %s252_s29  ;;  %s2352_s12 = scalar_lea.vmem [#allocation6], %s1450_s26 }
  0x82   : > { %2072 = dma.done.wait (%p2567_p9), %s253_s8, 16384  }
  0x83   : > { %2074 = vsyncadd (%p2567_p9), %s253_s8, 4294950912  ;;  %p2568_p7 = scmp.eq.s32.totalorder %s2172_s21, 0 }
  0x85   : > { %2076 = dma.done.wait (%p2568_p7), [#allocation7], 32   ;;  %p2569_p4 = pmov %p2568_p7 }
  0x87   : > { %2078 = vsyncadd (%p2569_p4), [#allocation7], 4294967264  ;;  %p2570_p5 = pmov %p2569_p4 }
  0x88   : > { %p2571_p10 = pmov %p2569_p4 }
  0x89   : > { %2080 = dma.done.wait (%p2570_p5), [#allocation10], 32  }
  0x8a   : > { %2082 = vsyncadd (%p2571_p10), [#allocation10], 4294967264  ;;  %v1701_v0 = vld [vmem:[%s2352_s12 + $0x4] ss:$8 sps:$4 sm:$0xff]   ;;  %v1705_v2 = vld [vmem:[%s2352_s12] ss:$8 sps:$4 sm:$0xff]  }
  0x8b   : > { %v1703_v1 = vld [vmem:[%s2352_s12 + $0x204] ss:$8 sps:$4 sm:$0xff]   ;;  %1091 = vmatprep.subr.bf16.mxu1 %v1701_v0  ;;  %v1706_v3 = vld [vmem:[%s2352_s12 + $0x200] ss:$8 sps:$4 sm:$0xff]   ;;  %v1707_v4 = vld [vmem:[%s2352_s12 + $0x14] ss:$8 sps:$4 sm:$0xff]  }
  0x8c   : > { %1173 = vmatprep.subr.bf16.mxu0 %v1703_v1  ;;  %1092 = vmatpush1.bf16.msra.mxu1 %v1705_v2  ;;  %v1709_v5 = vld [vmem:[%s2352_s12 + $0x214] ss:$8 sps:$4 sm:$0xff]   ;;  %v1711_v6 = vld [vmem:[%s2352_s12 + $0x10] ss:$8 sps:$4 sm:$0xff]   ;;  %v1713_v8 = vld [vmem:[%s2352_s12 + $0x24] ss:$8 sps:$4 sm:$0xff]  }
  0x8d   : > { %1174 = vmatpush1.bf16.msra.mxu0 %v1706_v3  ;;  %1093 = vmatprep.subr.bf16.mxu1 %v1707_v4  ;;  %v1712_v7 = vld [vmem:[%s2352_s12 + $0x210] ss:$8 sps:$4 sm:$0xff]   ;;  %v1715_v9 = vld [vmem:[%s2352_s12 + $0x224] ss:$8 sps:$4 sm:$0xff]   ;;  %v1717_v10 = vld [vmem:[%s2352_s12 + $0x20] ss:$8 sps:$4 sm:$0xff]  }
  0x8e   : > { %1175 = vmatprep.subr.bf16.mxu0 %v1709_v5  ;;  %v1718_v11 = vld [vmem:[%s2352_s12 + $0x220] ss:$8 sps:$4 sm:$0xff]   ;;  %v1719_v12 = vld [vmem:[%s2352_s12 + $0x34] ss:$8 sps:$4 sm:$0xff]   ;;  %v1723_v14 = vld [vmem:[%s2352_s12 + $0x30] ss:$8 sps:$4 sm:$0xff]  }
  0x8f   : > { %v1721_v13 = vld [vmem:[%s2352_s12 + $0x234] ss:$8 sps:$4 sm:$0xff]   ;;  %v1724_v15 = vld [vmem:[%s2352_s12 + $0x230] ss:$8 sps:$4 sm:$0xff]   ;;  %v1725_v16 = vld [vmem:[%s2352_s12 + $0x44] ss:$8 sps:$4 sm:$0xff]  }
  0x90   : > { %1094 = vmatpush1.bf16.msra.mxu1 %v1711_v6  ;;  %v1727_v17 = vld [vmem:[%s2352_s12 + $0x244] ss:$8 sps:$4 sm:$0xff]   ;;  %v1729_v18 = vld [vmem:[%s2352_s12 + $0x40] ss:$8 sps:$4 sm:$0xff]   ;;  %v1731_v20 = vld [vmem:[%s2352_s12 + $0x54] ss:$8 sps:$4 sm:$0xff]  }
  0x91   : > { %1176 = vmatpush1.bf16.msra.mxu0 %v1712_v7  ;;  %1095 = vmatprep.subr.bf16.mxu1 %v1713_v8  ;;  %v1730_v19 = vld [vmem:[%s2352_s12 + $0x240] ss:$8 sps:$4 sm:$0xff]   ;;  %v1733_v21 = vld [vmem:[%s2352_s12 + $0x254] ss:$8 sps:$4 sm:$0xff]   ;;  %v1735_v22 = vld [vmem:[%s2352_s12 + $0x50] ss:$8 sps:$4 sm:$0xff]  }
  0x92   : > { %1177 = vmatprep.subr.bf16.mxu0 %v1715_v9  ;;  %v1736_v23 = vld [vmem:[%s2352_s12 + $0x250] ss:$8 sps:$4 sm:$0xff]   ;;  %v1737_v24 = vld [vmem:[%s2352_s12 + $0x64] ss:$8 sps:$4 sm:$0xff]   ;;  %v1741_v26 = vld [vmem:[%s2352_s12 + $0x60] ss:$8 sps:$4 sm:$0xff]  }
  0x93   : > { %v1739_v25 = vld [vmem:[%s2352_s12 + $0x264] ss:$8 sps:$4 sm:$0xff]   ;;  %v1742_v27 = vld [vmem:[%s2352_s12 + $0x260] ss:$8 sps:$4 sm:$0xff]   ;;  %v1743_v28 = vld [vmem:[%s2352_s12 + $0x74] ss:$8 sps:$4 sm:$0xff]  }
  0x94   : > { %1096 = vmatpush1.bf16.msra.mxu1 %v1717_v10  ;;  %v1745_v29 = vld [vmem:[%s2352_s12 + $0x274] ss:$8 sps:$4 sm:$0xff]   ;;  %v1747_v30 = vld [vmem:[%s2352_s12 + $0x70] ss:$8 sps:$4 sm:$0xff]   ;;  %v1749_v32 = vld [vmem:[%s2352_s12 + $0x84] ss:$8 sps:$4 sm:$0xff]  }
  0x95   : > { %1178 = vmatpush1.bf16.msra.mxu0 %v1718_v11  ;;  %1097 = vmatprep.subr.bf16.mxu1 %v1719_v12  ;;  %v1748_v31 = vld [vmem:[%s2352_s12 + $0x270] ss:$8 sps:$4 sm:$0xff]   ;;  %v1751_v33 = vld [vmem:[%s2352_s12 + $0x284] ss:$8 sps:$4 sm:$0xff]   ;;  %v1753_v34 = vld [vmem:[%s2352_s12 + $0x80] ss:$8 sps:$4 sm:$0xff]  }
  0x96   : > { %1179 = vmatprep.subr.bf16.mxu0 %v1721_v13  ;;  %v1754_v35 = vld [vmem:[%s2352_s12 + $0x280] ss:$8 sps:$4 sm:$0xff]   ;;  %v1755_v36 = vld [vmem:[%s2352_s12 + $0x94] ss:$8 sps:$4 sm:$0xff]   ;;  %v1759_v38 = vld [vmem:[%s2352_s12 + $0x90] ss:$8 sps:$4 sm:$0xff]  }
  0x97   : > { %v1757_v37 = vld [vmem:[%s2352_s12 + $0x294] ss:$8 sps:$4 sm:$0xff]   ;;  %v1760_v39 = vld [vmem:[%s2352_s12 + $0x290] ss:$8 sps:$4 sm:$0xff]   ;;  %v1761_v40 = vld [vmem:[%s2352_s12 + $0xa4] ss:$8 sps:$4 sm:$0xff]  }
  0x98   : > { %1098 = vmatpush1.bf16.msra.mxu1 %v1723_v14  ;;  %v1763_v41 = vld [vmem:[%s2352_s12 + $0x2a4] ss:$8 sps:$4 sm:$0xff]   ;;  %v1765_v42 = vld [vmem:[%s2352_s12 + $0xa0] ss:$8 sps:$4 sm:$0xff]   ;;  %v1767_v44 = vld [vmem:[%s2352_s12 + $0xb4] ss:$8 sps:$4 sm:$0xff]  }
  0x99   : > { %1180 = vmatpush1.bf16.msra.mxu0 %v1724_v15  ;;  %1099 = vmatprep.subr.bf16.mxu1 %v1725_v16  ;;  %v1766_v43 = vld [vmem:[%s2352_s12 + $0x2a0] ss:$8 sps:$4 sm:$0xff]   ;;  %v1769_v45 = vld [vmem:[%s2352_s12 + $0x2b4] ss:$8 sps:$4 sm:$0xff]   ;;  %v1771_v47 = vld [vmem:[%s2352_s12 + $0xb0] ss:$8 sps:$4 sm:$0xff]  }
  0x9a   : > { %1181 = vmatprep.subr.bf16.mxu0 %v1727_v17  ;;  %v291_v46 = vld [vmem:[%s2345_s24] sm:$0xff]  ;;  %v1772_v49 = vld [vmem:[%s2352_s12 + $0x2b0] ss:$8 sps:$4 sm:$0xff]   ;;  %v1779_v56 = vld [vmem:[%s2352_s12 + $0xd4] ss:$8 sps:$4 sm:$0xff]   ;;  %p1589_p11 = scmp.ne.s32.totalorder %s2101_s18, 0 }
  0x9b   : > { %v1454_v48 = vcombine.high %v291_v46, %v291_v46  ;;  %v293_v50 = vld [vmem:[%s2345_s24 + $0x10] sm:$0xff]  ;;  %v1773_v51 = vld [vmem:[%s2352_s12 + $0xc4] ss:$8 sps:$4 sm:$0xff]   ;;  %v1777_v54 = vld [vmem:[%s2352_s12 + $0xc0] ss:$8 sps:$4 sm:$0xff]   ;;  %v1453_v6 = vcombine.low %v291_v46, %v291_v46 }
  0x9c   : > { %1100 = vmatpush1.bf16.msra.mxu1 %v1729_v18  ;;  %v1775_v52 = vld [vmem:[%s2352_s12 + $0x2c4] ss:$8 sps:$4 sm:$0xff]   ;;  %v1458_v53 = vcombine.high %v293_v50, %v293_v50  ;;  %v1778_v55 = vld [vmem:[%s2352_s12 + $0x2c0] ss:$8 sps:$4 sm:$0xff]   ;;  %v1781_v57 = vld [vmem:[%s2352_s12 + $0x2d4] ss:$8 sps:$4 sm:$0xff]   ;;  %v1457_v7 = vcombine.low %v293_v50, %v293_v50 }
  0x9d   : > { %1182 = vmatpush1.bf16.msra.mxu0 %v1730_v19  ;;  %1101 = vmatprep.subr.bf16.mxu1 %v1731_v20  ;;  %v1783_v58 = vld [vmem:[%s2352_s12 + $0xd0] ss:$8 sps:$4 sm:$0xff]   ;;  %v1785_v60 = vld [vmem:[%s2352_s12 + $0xe4] ss:$8 sps:$4 sm:$0xff]   ;;  %v1789_v62 = vld [vmem:[%s2352_s12 + $0xe0] ss:$8 sps:$4 sm:$0xff]  }
  0x9e   : > { %1183 = vmatprep.subr.bf16.mxu0 %v1733_v21  ;;  %1123 = vmatprep.mubr.bf16.mxu1 %v1454_v48  ;;  %v1784_v59 = vld [vmem:[%s2352_s12 + $0x2d0] ss:$8 sps:$4 sm:$0xff]   ;;  %v1787_v61 = vld [vmem:[%s2352_s12 + $0x2e4] ss:$8 sps:$4 sm:$0xff]   ;;  %v1790_v63 = vld [vmem:[%s2352_s12 + $0x2e0] ss:$8 sps:$4 sm:$0xff]  }
  0x9f   : > { %1205 = vmatprep.mubr.bf16.mxu0 %v1458_v53  ;;  %v1791_v0 = vld [vmem:[%s2352_s12 + $0xf4] ss:$8 sps:$4 sm:$0xff]   ;;  %v1795_v2 = vld [vmem:[%s2352_s12 + $0xf0] ss:$8 sps:$4 sm:$0xff]   ;;  %v1801_v4 = vld [vmem:[%s2352_s12 + $0x104] ss:$8 sps:$4 sm:$0xff]  }
  0xa0   : > { %1102 = vmatpush1.bf16.msra.mxu1 %v1735_v22  ;;  %v1793_v1 = vld [vmem:[%s2352_s12 + $0x2f4] ss:$8 sps:$4 sm:$0xff]   ;;  %v1796_v3 = vld [vmem:[%s2352_s12 + $0x2f0] ss:$8 sps:$4 sm:$0xff]   ;;  %v1806_v5 = vld [vmem:[%s2352_s12 + $0x304] ss:$8 sps:$4 sm:$0xff]  }
  0xa1   : > { %1184 = vmatpush1.bf16.msra.mxu0 %v1736_v23  ;;  %1103 = vmatprep.subr.bf16.mxu1 %v1737_v24  ;;  %v1799_v8 = vld [vmem:[%s2352_s12 + $0x100] ss:$8 sps:$4 sm:$0xff]   ;;  %v1809_v10 = vld [vmem:[%s2352_s12 + $0x114] ss:$8 sps:$4 sm:$0xff]   ;;  %v1807_v12 = vld [vmem:[%s2352_s12 + $0x110] ss:$8 sps:$4 sm:$0xff]  }
  0xa2   : > { %1185 = vmatprep.subr.bf16.mxu0 %v1739_v25  ;;  %v1804_v9 = vld [vmem:[%s2352_s12 + $0x300] ss:$8 sps:$4 sm:$0xff]   ;;  %v1812_v11 = vld [vmem:[%s2352_s12 + $0x314] ss:$8 sps:$4 sm:$0xff]   ;;  %v1810_v13 = vld [vmem:[%s2352_s12 + $0x310] ss:$8 sps:$4 sm:$0xff]  }
  0xa3   : > { %v1815_v14 = vld [vmem:[%s2352_s12 + $0x124] ss:$8 sps:$4 sm:$0xff]   ;;  %v1813_v16 = vld [vmem:[%s2352_s12 + $0x120] ss:$8 sps:$4 sm:$0xff]   ;;  %v1821_v18 = vld [vmem:[%s2352_s12 + $0x134] ss:$8 sps:$4 sm:$0xff]  }
  0xa4   : > { %1104 = vmatpush1.bf16.msra.mxu1 %v1741_v26  ;;  %v1818_v15 = vld [vmem:[%s2352_s12 + $0x324] ss:$8 sps:$4 sm:$0xff]   ;;  %v1816_v17 = vld [vmem:[%s2352_s12 + $0x320] ss:$8 sps:$4 sm:$0xff]   ;;  %v1824_v19 = vld [vmem:[%s2352_s12 + $0x334] ss:$8 sps:$4 sm:$0xff]  }
  0xa5   : > { %1186 = vmatpush1.bf16.msra.mxu0 %v1742_v27  ;;  %1105 = vmatprep.subr.bf16.mxu1 %v1743_v28  ;;  %v1819_v20 = vld [vmem:[%s2352_s12 + $0x130] ss:$8 sps:$4 sm:$0xff]   ;;  %v1827_v22 = vld [vmem:[%s2352_s12 + $0x144] ss:$8 sps:$4 sm:$0xff]   ;;  %v1825_v24 = vld [vmem:[%s2352_s12 + $0x140] ss:$8 sps:$4 sm:$0xff]  }
  0xa6   : > { %1187 = vmatprep.subr.bf16.mxu0 %v1745_v29  ;;  %v1822_v21 = vld [vmem:[%s2352_s12 + $0x330] ss:$8 sps:$4 sm:$0xff]   ;;  %v1830_v23 = vld [vmem:[%s2352_s12 + $0x344] ss:$8 sps:$4 sm:$0xff]   ;;  %v1828_v25 = vld [vmem:[%s2352_s12 + $0x340] ss:$8 sps:$4 sm:$0xff]  }
  0xa7   : > { %v1833_v26 = vld [vmem:[%s2352_s12 + $0x154] ss:$8 sps:$4 sm:$0xff]   ;;  %v1831_v28 = vld [vmem:[%s2352_s12 + $0x150] ss:$8 sps:$4 sm:$0xff]   ;;  %v1863_v50 = vld [vmem:[%s2352_s12 + $0x1a4] ss:$8 sps:$4 sm:$0xff]  }
  0xa8   : > { %1106 = vmatpush1.bf16.msra.mxu1 %v1747_v30  ;;  %v1836_v27 = vld [vmem:[%s2352_s12 + $0x354] ss:$8 sps:$4 sm:$0xff]   ;;  %v1834_v29 = vld [vmem:[%s2352_s12 + $0x350] ss:$8 sps:$4 sm:$0xff]   ;;  %v1839_v30 = vld [vmem:[%s2352_s12 + $0x164] ss:$8 sps:$4 sm:$0xff]  }
  0xa9   : > { %1188 = vmatpush1.bf16.msra.mxu0 %v1748_v31  ;;  %1107 = vmatprep.subr.bf16.mxu1 %v1749_v32  ;;  %v1842_v31 = vld [vmem:[%s2352_s12 + $0x364] ss:$8 sps:$4 sm:$0xff]   ;;  %v1857_v46 = vld [vmem:[%s2352_s12 + $0x194] ss:$8 sps:$4 sm:$0xff]   ;;  %v1855_v48 = vld [vmem:[%s2352_s12 + $0x190] ss:$8 sps:$4 sm:$0xff]  }
  0xaa   : > { %1189 = vmatprep.subr.bf16.mxu0 %v1751_v33  ;;  %v2459_v32 = vld [vmem:[%s2345_s24 + $0x8] sm:$0xff]  ;;  %v2462_v33 = vld [vmem:[%s2345_s24 + $0x18] sm:$0xff] }
  0xab   : > { %v1864_v53 = vld [vmem:[%s2352_s12 + $0x3a0] ss:$8 sps:$4 sm:$0xff]  }
  0xac   : > { %1108 = vmatpush1.bf16.msra.mxu1 %v1753_v34  ;;  %v1456_v34 = vcombine.high %v2459_v32, %v2459_v32 }
  0xad   : > { %1190 = vmatpush1.bf16.msra.mxu0 %v1754_v35  ;;  %1109 = vmatprep.subr.bf16.mxu1 %v1755_v36  ;;  %v1460_v35 = vcombine.high %v2462_v33, %v2462_v33  ;;  %v1837_v36 = vld [vmem:[%s2352_s12 + $0x160] ss:$8 sps:$4 sm:$0xff]  }
  0xae   : > { %1191 = vmatprep.subr.bf16.mxu0 %v1757_v37  ;;  %v1840_v37 = vld [vmem:[%s2352_s12 + $0x360] ss:$8 sps:$4 sm:$0xff]  }
  0xb0   : > { %1110 = vmatpush1.bf16.msra.mxu1 %v1759_v38  ;;  %v1845_v38 = vld [vmem:[%s2352_s12 + $0x174] ss:$8 sps:$4 sm:$0xff]  }
  0xb1   : > { %1192 = vmatpush1.bf16.msra.mxu0 %v1760_v39  ;;  %1111 = vmatprep.subr.bf16.mxu1 %v1761_v40  ;;  %v1848_v39 = vld [vmem:[%s2352_s12 + $0x374] ss:$8 sps:$4 sm:$0xff]   ;;  %v1843_v40 = vld [vmem:[%s2352_s12 + $0x170] ss:$8 sps:$4 sm:$0xff]  }
  0xb2   : > { %1193 = vmatprep.subr.bf16.mxu0 %v1763_v41  ;;  %v1846_v41 = vld [vmem:[%s2352_s12 + $0x370] ss:$8 sps:$4 sm:$0xff]  }
  0xb4   : > { %1112 = vmatpush1.bf16.msra.mxu1 %v1765_v42  ;;  %v1851_v42 = vld [vmem:[%s2352_s12 + $0x184] ss:$8 sps:$4 sm:$0xff]  }
  0xb5   : > { %1194 = vmatpush1.bf16.msra.mxu0 %v1766_v43  ;;  %1113 = vmatprep.subr.bf16.mxu1 %v1767_v44  ;;  %v1854_v43 = vld [vmem:[%s2352_s12 + $0x384] ss:$8 sps:$4 sm:$0xff]   ;;  %v1849_v44 = vld [vmem:[%s2352_s12 + $0x180] ss:$8 sps:$4 sm:$0xff]  }
  0xb6   : > { %1195 = vmatprep.subr.bf16.mxu0 %v1769_v45  ;;  %v1852_v45 = vld [vmem:[%s2352_s12 + $0x380] ss:$8 sps:$4 sm:$0xff]  }
  0xb8   : > { %1114 = vmatpush1.bf16.msra.mxu1 %v1771_v47  ;;  %v1860_v47 = vld [vmem:[%s2352_s12 + $0x394] ss:$8 sps:$4 sm:$0xff]  }
  0xb9   : > { %1196 = vmatpush1.bf16.msra.mxu0 %v1772_v49  ;;  %1115 = vmatprep.subr.bf16.mxu1 %v1773_v51  ;;  %v1858_v49 = vld [vmem:[%s2352_s12 + $0x390] ss:$8 sps:$4 sm:$0xff]   ;;  %v1866_v51 = vld [vmem:[%s2352_s12 + $0x3a4] ss:$8 sps:$4 sm:$0xff]  }
  0xba   : > { %1197 = vmatprep.subr.bf16.mxu0 %v1775_v52  ;;  %v1861_v52 = vld [vmem:[%s2352_s12 + $0x1a0] ss:$8 sps:$4 sm:$0xff]  }
  0xbc   : > { %1116 = vmatpush1.bf16.msra.mxu1 %v1777_v54  ;;  %v1869_v54 = vld [vmem:[%s2352_s12 + $0x1b4] ss:$8 sps:$4 sm:$0xff]  }
  0xbd   : > { %1198 = vmatpush1.bf16.msra.mxu0 %v1778_v55  ;;  %1117 = vmatprep.subr.bf16.mxu1 %v1779_v56  ;;  %v1872_v55 = vld [vmem:[%s2352_s12 + $0x3b4] ss:$8 sps:$4 sm:$0xff]   ;;  %v1867_v56 = vld [vmem:[%s2352_s12 + $0x1b0] ss:$8 sps:$4 sm:$0xff]  }
  0xbe   : > { %1199 = vmatprep.subr.bf16.mxu0 %v1781_v57  ;;  %v1870_v57 = vld [vmem:[%s2352_s12 + $0x3b0] ss:$8 sps:$4 sm:$0xff]  }
  0xc0   : > { %1118 = vmatpush1.bf16.msra.mxu1 %v1783_v58  ;;  %v1875_v58 = vld [vmem:[%s2352_s12 + $0x1c4] ss:$8 sps:$4 sm:$0xff]  }
  0xc1   : > { %1200 = vmatpush1.bf16.msra.mxu0 %v1784_v59  ;;  %1119 = vmatprep.subr.bf16.mxu1 %v1785_v60  ;;  %v1878_v59 = vld [vmem:[%s2352_s12 + $0x3c4] ss:$8 sps:$4 sm:$0xff]   ;;  %v1873_v60 = vld [vmem:[%s2352_s12 + $0x1c0] ss:$8 sps:$4 sm:$0xff]  }
  0xc2   : > { %1201 = vmatprep.subr.bf16.mxu0 %v1787_v61  ;;  %v1876_v61 = vld [vmem:[%s2352_s12 + $0x3c0] ss:$8 sps:$4 sm:$0xff]  }
  0xc4   : > { %1120 = vmatpush1.bf16.msra.mxu1 %v1789_v62  ;;  %v1881_v62 = vld [vmem:[%s2352_s12 + $0x1d4] ss:$8 sps:$4 sm:$0xff]  }
  0xc5   : > { %1202 = vmatpush1.bf16.msra.mxu0 %v1790_v63  ;;  %1121 = vmatprep.subr.bf16.mxu1 %v1791_v0  ;;  %v1884_v63 = vld [vmem:[%s2352_s12 + $0x3d4] ss:$8 sps:$4 sm:$0xff]   ;;  %v1879_v0 = vld [vmem:[%s2352_s12 + $0x1d0] ss:$8 sps:$4 sm:$0xff]  }
  0xc6   : > { %1203 = vmatprep.subr.bf16.mxu0 %v1793_v1  ;;  %v1882_v1 = vld [vmem:[%s2352_s12 + $0x3d0] ss:$8 sps:$4 sm:$0xff]  }
  0xc8   : > { %1122 = vmatpush1.bf16.msra.mxu1 %v1795_v2  ;;  %v1887_v2 = vld [vmem:[%s2352_s12 + $0x1e4] ss:$8 sps:$4 sm:$0xff]  }
  0xc9   : > { %1204 = vmatpush1.bf16.msra.mxu0 %v1796_v3  ;;  %1132 = vmatprep.subr.bf16.mxu1 %v1801_v4  ;;  %v1890_v3 = vld [vmem:[%s2352_s12 + $0x3e4] ss:$8 sps:$4 sm:$0xff]   ;;  %v1885_v4 = vld [vmem:[%s2352_s12 + $0x1e0] ss:$8 sps:$4 sm:$0xff]  }
  0xca   : > { %1214 = vmatprep.subr.bf16.mxu0 %v1806_v5  ;;  %v1888_v5 = vld [vmem:[%s2352_s12 + $0x3e0] ss:$8 sps:$4 sm:$0xff]  }
  0xcb   : > { %1124 = vmatmul.mubr.bf16.vlgmr.msra.gmra.mrb[0].mxu1 %v1453_v6  ;;  %v1893_v6 = vld [vmem:[%s2352_s12 + $0x1f4] ss:$8 sps:$4 sm:$0xff]  }
  0xcc   : > { %1206 = vmatmul.mubr.bf16.vlgmr.msra.gmra.mrb[0].mxu0 %v1457_v7  ;;  %1133 = vmatpush1.bf16.msra.mxu1 %v1799_v8  ;;  %v1896_v7 = vld [vmem:[%s2352_s12 + $0x3f4] ss:$8 sps:$4 sm:$0xff]   ;;  %v1891_v8 = vld [vmem:[%s2352_s12 + $0x1f0] ss:$8 sps:$4 sm:$0xff]  }
  0xcd   : > { %1215 = vmatpush1.bf16.msra.mxu0 %v1804_v9  ;;  %1134 = vmatprep.subr.bf16.mxu1 %v1809_v10  ;;  %v1894_v9 = vld [vmem:[%s2352_s12 + $0x3f0] ss:$8 sps:$4 sm:$0xff]   ;;  %v1455_v10 = vcombine.low %v2459_v32, %v2459_v32 }
  0xce   : > { %1216 = vmatprep.subr.bf16.mxu0 %v1812_v11  ;;  %1164 = vmatprep.mubr.bf16.mxu1 %v1456_v34  ;;  %v1459_v11 = vcombine.low %v2462_v33, %v2462_v33 }
  0xcf   : > { %1246 = vmatprep.mubr.bf16.mxu0 %v1460_v35 }
  0xd0   : > { %1135 = vmatpush1.bf16.msra.mxu1 %v1807_v12 }
  0xd1   : > { %1217 = vmatpush1.bf16.msra.mxu0 %v1810_v13  ;;  %1136 = vmatprep.subr.bf16.mxu1 %v1815_v14 }
  0xd2   : > { %1218 = vmatprep.subr.bf16.mxu0 %v1818_v15 }
  0xd4   : > { %1137 = vmatpush1.bf16.msra.mxu1 %v1813_v16 }
  0xd5   : > { %1219 = vmatpush1.bf16.msra.mxu0 %v1816_v17  ;;  %1138 = vmatprep.subr.bf16.mxu1 %v1821_v18 }
  0xd6   : > { %1220 = vmatprep.subr.bf16.mxu0 %v1824_v19 }
  0xd8   : > { %1139 = vmatpush1.bf16.msra.mxu1 %v1819_v20 }
  0xd9   : > { %1221 = vmatpush1.bf16.msra.mxu0 %v1822_v21  ;;  %1140 = vmatprep.subr.bf16.mxu1 %v1827_v22 }
  0xda   : > { %1222 = vmatprep.subr.bf16.mxu0 %v1830_v23 }
  0xdc   : > { %1141 = vmatpush1.bf16.msra.mxu1 %v1825_v24 }
  0xdd   : > { %1223 = vmatpush1.bf16.msra.mxu0 %v1828_v25  ;;  %1142 = vmatprep.subr.bf16.mxu1 %v1833_v26 }
  0xde   : > { %1224 = vmatprep.subr.bf16.mxu0 %v1836_v27 }
  0xe0   : > { %1143 = vmatpush1.bf16.msra.mxu1 %v1831_v28 }
  0xe1   : > { %1225 = vmatpush1.bf16.msra.mxu0 %v1834_v29  ;;  %1144 = vmatprep.subr.bf16.mxu1 %v1839_v30 }
  0xe2   : > { %1226 = vmatprep.subr.bf16.mxu0 %v1842_v31 }
  0xe4   : > { %1145 = vmatpush1.bf16.msra.mxu1 %v1837_v36 }
  0xe5   : > { %1227 = vmatpush1.bf16.msra.mxu0 %v1840_v37  ;;  %1146 = vmatprep.subr.bf16.mxu1 %v1845_v38 }
  0xe6   : > { %1228 = vmatprep.subr.bf16.mxu0 %v1848_v39 }
  0xe8   : > { %1147 = vmatpush1.bf16.msra.mxu1 %v1843_v40 }
  0xe9   : > { %1229 = vmatpush1.bf16.msra.mxu0 %v1846_v41  ;;  %1148 = vmatprep.subr.bf16.mxu1 %v1851_v42 }
  0xea   : > { %1230 = vmatprep.subr.bf16.mxu0 %v1854_v43 }
  0xec   : > { %1149 = vmatpush1.bf16.msra.mxu1 %v1849_v44 }
  0xed   : > { %1231 = vmatpush1.bf16.msra.mxu0 %v1852_v45  ;;  %1150 = vmatprep.subr.bf16.mxu1 %v1857_v46 }
  0xee   : > { %1232 = vmatprep.subr.bf16.mxu0 %v1860_v47 }
  0xf0   : > { %1151 = vmatpush1.bf16.msra.mxu1 %v1855_v48 }
  0xf1   : > { %1233 = vmatpush1.bf16.msra.mxu0 %v1858_v49  ;;  %1152 = vmatprep.subr.bf16.mxu1 %v1863_v50 }
  0xf2   : > { %1234 = vmatprep.subr.bf16.mxu0 %v1866_v51 }
  0xf4   : > { %1153 = vmatpush1.bf16.msra.mxu1 %v1861_v52 }
  0xf5   : > { %1235 = vmatpush1.bf16.msra.mxu0 %v1864_v53  ;;  %1154 = vmatprep.subr.bf16.mxu1 %v1869_v54 }
  0xf6   : > { %1236 = vmatprep.subr.bf16.mxu0 %v1872_v55 }
  0xf8   : > { %1155 = vmatpush1.bf16.msra.mxu1 %v1867_v56 }
  0xf9   : > { %1237 = vmatpush1.bf16.msra.mxu0 %v1870_v57  ;;  %1156 = vmatprep.subr.bf16.mxu1 %v1875_v58 }
  0xfa   : > { %1238 = vmatprep.subr.bf16.mxu0 %v1878_v59 }
  0xfc   : > { %1157 = vmatpush1.bf16.msra.mxu1 %v1873_v60 }
  0xfd   : > { %1239 = vmatpush1.bf16.msra.mxu0 %v1876_v61  ;;  %1158 = vmatprep.subr.bf16.mxu1 %v1881_v62 }
  0xfe   : > { %1240 = vmatprep.subr.bf16.mxu0 %v1884_v63 }
 0x100   : > { %1159 = vmatpush1.bf16.msra.mxu1 %v1879_v0 }
 0x101   : > { %1241 = vmatpush1.bf16.msra.mxu0 %v1882_v1  ;;  %1160 = vmatprep.subr.bf16.mxu1 %v1887_v2 }
 0x102   : > { %1242 = vmatprep.subr.bf16.mxu0 %v1890_v3 }
 0x104   : > { %1161 = vmatpush1.bf16.msra.mxu1 %v1885_v4 }
 0x105   : > { %1243 = vmatpush1.bf16.msra.mxu0 %v1888_v5  ;;  %1162 = vmatprep.subr.bf16.mxu1 %v1893_v6 }
 0x106   : > { %1244 = vmatprep.subr.bf16.mxu0 %v1896_v7 }
 0x108   : > { %1163 = vmatpush1.bf16.msra.mxu1 %v1891_v8 }
 0x109   : > { %1245 = vmatpush1.bf16.msra.mxu0 %v1894_v9 }
 0x10b   : > { %1165 = vmatmul.mubr.bf16.vlgmr.msra.gmra.mrb[0].mxu1 %v1455_v10 }
 0x10c   : > { %1247 = vmatmul.mubr.bf16.vlgmr.msra.gmra.mrb[0].mxu0 %v1459_v11 }
 0x1dc   : > { %1258 = sbr.rel (%p1589_p11) target bundleno = 484 (0x1e4), region = 56 }
 0x1de   : > { %v1166_v12 = vpop.f32.mrb[0].mxu1 }
 0x1df   : > { %v1248_v13 = vpop.f32.mrb[0].mxu0  ;;  %v1168_v15 = vpop.f32.mrb[1].mxu1 }
 0x1e0   : > { %v1601_v14 = vadd.f32 %v1248_v13, %v1166_v12  ;;  %v1250_v16 = vpop.f32.mrb[1].mxu0  ;;  %v1170_v18 = vpop.f32.mrb[2].mxu1 }
 0x1e1   : > { %v1602_v17 = vadd.f32 %v1250_v16, %v1168_v15  ;;  %v1252_v19 = vpop.f32.mrb[2].mxu0  ;;  %v1171_v20 = vpop.f32.mrb[3].mxu1 }
 0x1e2   : > { %v1253_v21 = vpop.f32.mrb[3].mxu0  ;;  %1259 = vst [vmem:[#allocation2] sm:$0xff] (!%p1589_p11), %v1601_v14 }
 0x1e3   : > { %1260 = vst [vmem:[#allocation2 + $0x8] sm:$0xff] %v1602_v17 }
 0x1e4 PF: > { %p1590_p13 = scmp.le.s32.totalorder %s2101_s18, 0 }
 0x1e6   : > { %1264 = sbr.rel (%p1590_p13) target bundleno = 494 (0x1ee), region = 60 }
 0x1ea   : > { %v1265_v22 = vld [vmem:[#allocation2] sm:$0xff] (!%p1590_p13)  ;;  %v1266_v23 = vld [vmem:[#allocation2 + $0x8] sm:$0xff] (!%p1590_p13) }
 0x1eb   : > { %v1267_v24 = vadd.f32 (!%p1590_p13), %v1601_v14, %v1265_v22  ;;  %v1268_v25 = vadd.f32 (!%p1590_p13), %v1602_v17, %v1266_v23 }
 0x1ed   : > { %1269 = vst [vmem:[#allocation2] sm:$0xff] %v1267_v24  ;;  %1270 = vst [vmem:[#allocation2 + $0x8] sm:$0xff] %v1268_v25 }
 0x1ee PF: > { %p1591_p2 = scmp.ne.s32.totalorder %s2101_s18, 1 }
 0x1ef   : > { %v1279_v26 = vlaneseq (!%p1591_p2)  ;;  %v1277_v28 = vld [vmem:[#allocation8] sm:$0x3] (!%p1591_p2)  ;;  %v1291_v29 = vld [vmem:[#allocation9] sm:$0x3] (!%p1591_p2) }
 0x1f0   : > { %1274 = sbr.rel (%p1591_p2) target bundleno = 513 (0x201), region = 64 }
 0x1f1   : > { %v1280_v27 = vshrl.u32 (!%p1591_p2), %v1279_v26, 7 }
 0x1f3   : > { %v1281_v30 = vsub.s32 (!%p1591_p2), 0, %v1280_v27  ;;  %v1285_v31 = vsub.s32 (!%p1591_p2), 1, %v1280_v27 }
 0x1f4   : > { %v1275_v32 = vld [vmem:[#allocation2] sm:$0xff] (!%p1591_p2)  ;;  %v1276_v33 = vld [vmem:[#allocation2 + $0x8] sm:$0xff] (!%p1591_p2) }
 0x1f5   : > { %v1282_v34 = vrot.slane (!%p1591_p2), %v1277_v28, %v1281_v30  ;;  %v1286_v35 = vrot.slane (!%p1591_p2), %v1277_v28, %v1285_v31  ;;  %v1296_v36 = vrot.slane (!%p1591_p2), %v1291_v29, %v1281_v30  ;;  %v1300_v37 = vrot.slane (!%p1591_p2), %v1291_v29, %v1285_v31 }
 0x1f7   : > { %v1289_v38 = vmul.f32 %v1282_v34, %v1275_v32  ;;  %v1290_v39 = vmul.f32 %v1286_v35, %v1276_v33 }
 0x1f9   : > { %v1303_v40 = vadd.f32 %v1296_v36, %v1289_v38  ;;  %v1304_v41 = vadd.f32 %v1300_v37, %v1290_v39 }
 0x1fb   : > { %vm1305_vm0 = vcmp.ge.f32.partialorder %v1303_v40, 0.0  ;;  %vm1306_vm1 = vcmp.ge.f32.partialorder %v1304_v41, 0.0  ;;  %v1307_v42 = vmul.f32 0.2, %v1303_v40  ;;  %v1308_v43 = vmul.f32 0.2, %v1304_v41 }
 0x1fd   : > { %v1309_v44 = vsel %vm1305_vm0, %v1303_v40, %v1307_v42  ;;  %v1310_v45 = vsel %vm1306_vm1, %v1304_v41, %v1308_v43 }
 0x1fe   : > { %v1600_v46 = vpack.c.bf16 %v1310_v45, %v1309_v44 }
 0x200   : > { %1319 = vst [vmem:[#allocation11] sm:$0xff] %v1600_v46 }
 0x201 PF: > { %p1646_p3 = scmp.eq.s32.totalorder %s2172_s21, 1  ;;  %s2117_s18 = smov [#allocation11]  }
 0x202   : > { %s1330_s22 = sshll.u32 %s2117_s18, 4  ;;  %s1331_s22 = int_to_ptr.vmem [resolvable:$true] %s1330_s22 }
 0x203   : > { %s2017_s23 = scalar_lea.vmem %s1331_s22, 128  ;;  %p2024_p1 = scmp.lt.s32.totalorder %s1331_s22, %s1331_s22 }
 0x204   : > { %p2018_p0 = scmp.ne.s32.totalorder %s1331_s22, %s2017_s23  ;;  %p2025_p12 = scmp.lt.s32.totalorder %s2017_s23, %s2017_s23 }
 0x206   : > { %p2019_p6 = pnand %p2018_p0, %p1646_p3  ;;  %p2026_p9 = por %p2025_p12, %p2024_p1 }
 0x208   : > { %p2020_p8 = pneg %p2019_p6 }
 0x20a   : > { %p2027_p7 = pnand %p2026_p9, %p2020_p8 }
 0x20c   : > { %2030 = shalt.err (!%p2027_p7)
}
 0x20d   : > { %s2031_s30 = scalar_lea.hbm %s2558_s4, 128 }
 0x20e   : > { %p2032_p4 = scmp.ne.s32.totalorder %s2558_s4, %s2031_s30  ;;  %p2037_p11 = scmp.lt.u32.totalorder %s2031_s30, %s2558_s4 }
 0x210   : > { %p2033_p5 = pnand %p2032_p4, %p1646_p3 }
 0x212   : > { %p2034_p10 = pneg %p2033_p5 }
 0x214   : > { %p2039_p13 = pnand %p2037_p11, %p2034_p10 }
 0x216   : > { %2042 = shalt.err (!%p2039_p13)
}
 0x217   : > { %1624 = dma.vmem_to_hbm [thread:$0]  (%p1646_p3), %s1331_s22, 128, %s2558_s4, [#allocation5]  }
 0x218   : > { %2084 = dma.done.wait (%p1646_p3), [#allocation5], 128  }
 0x219   : > { %2086 = vsyncadd (%p1646_p3), [#allocation5], 4294967168 }
 0x21a PF: > { %s22_s20 = sadd.s32 1, %s2109_s20   ;;  %s2572_s15 = smov %s2093_s16 }
 0x21b   : > { %p19_p2 = scmp.ge.s32.totalorder %s22_s20, 4   ;;  %s2573_s16 = smov %s2097_s17 }
 0x21c   : > { %s2574_s17 = smov %s2261_s11  ;;  %s2575_s18 = smov %s2105_s19 }
 0x21d   : > { %s2576_s19 = smov %s2578_s7  ;;  %21 = sbr.rel (!%p19_p2) target bundleno = 8 (0x8), region = 107 }
 0x224   :  { %1343 = vsyncpa [#allocation4], 1 }
 0x225   :  { %1345 = vsyncpa [#allocation4 + $0x1], 1 }
 0x226   :  { %1346 = vsyncpa [#allocation7], 1 }
 0x227   :  { %1348 = vsyncpa [#allocation7 + $0x1], 1 }
 0x228   :  { %1349 = vsyncpa [#allocation10], 1 }
 0x229   :  { %1350 = vsyncpa [#allocation5], 1 }
 0x22a   :  { %1352 = vsyncpa [#allocation5 + $0x1], 1 }

// kernel: discriminator_forward.11
= control target key start
LH: loop header
LB: loop body
LE: loop exit
PB: predicated region body
PF: predicated region fallthrough
CT: control target
= control target key end

     0   :  { %9 = vsyncpa [#allocation4], 0  ;;  %s2576_s0 = inlined_call_operand.hbm [shape: bf16[8,4608], index: 0, kind: input, shape index: {}]   ;;  %s2577_s1 = inlined_call_operand.hbm [shape: bf16[4608,128], index: 1, kind: input, shape index: {}]   ;;  %s2578_s2 = inlined_call_operand.hbm [shape: f32[1,128], index: 2, kind: input, shape index: {}]   ;;  %s2579_s3 = inlined_call_operand.hbm [shape: f32[1,128], index: 3, kind: input, shape index: {}]   ;;  %s2580_s4 = inlined_call_operand.hbm [shape: f32[8,128], index: 4, kind: output, shape index: {}]  }
   0x1   :  { %11 = vsyncpa [#allocation4 + $0x1], 0 }
   0x2   :  { %12 = vsyncpa [#allocation7], 0 }
   0x3   :  { %14 = vsyncpa [#allocation7 + $0x1], 0 }
   0x4   :  { %15 = vsyncpa [#allocation10], 0 }
   0x5   :  { %16 = vsyncpa [#allocation5], 0  ;;  %s2210_s15 = smov 0   ;;  %s2212_s16 = smov 0  }
   0x6   :  { %s2214_s17 = smov 0   ;;  %s2216_s18 = smov 0  }
   0x7   :  { %s2218_s19 = smov 0   ;;  %s2220_s20 = smov 0  }
   0x8 LB: > { %s2239_s21 = sadd.s32 4294967295, %s2176_s20   ;;  %p56_p0 = scmp.ne.s32.totalorder %s2160_s16, %s2156_s15  ;;  %s2176_s20 = sphi %s2220_s20, %s22_s20   ;;  %s2172_s19 = sphi %s2218_s19, %s2598_s19   ;;  %s2168_s18 = sphi %s2216_s18, %s2597_s18   ;;  %s2164_s17 = sphi %s2214_s17, %s2596_s17   ;;  %s2160_s16 = sphi %s2212_s16, %s2595_s16   ;;  %s2156_s15 = sphi %s2210_s15, %s2594_s15  }
   0x9   : > { %p2581_p1 = scmp.eq.s32.totalorder %s2239_s21, 0  ;;  %p1502_p2 = scmp.ge.s32.totalorder %s2176_s20, 1 }
   0xa   : > { %p161_p3 = scmp.lt.s32.totalorder %s2176_s20, 4  ;;  %s2178_s24 = smov [#allocation8]  }
   0xb   : > { %p2247_p4 = por %p2581_p1, %p56_p0  ;;  %s174_s25 = sshll.u32 %s2178_s24, 4  ;;  %s175_s25 = int_to_ptr.vmem [resolvable:$true] %s174_s25 }
   0xc   : > { %p2251_p5 = pnand %p1502_p2, %p161_p3  ;;  %s2179_s26 = smov [#allocation9]  }
   0xd   : > { %s2584_s22 = scalar_select %p2247_p4, 1, 0 }
   0xe   : > { %s2585_s23 = scalar_select %p2251_p5, 1, 0 }
   0xf   : > { %p1782_p6 = pneg %p2251_p5  ;;  %s185_s27 = sshll.u32 %s2179_s26, 4  ;;  %s2263_s27 = int_to_ptr.vmem [resolvable:$true] %s185_s27 }
  0x10   : > { %s1968_s5 = scalar_lea.hbm %s2578_s2, 16 }
  0x11   : > { %p2259_p7 = pnand %p1782_p6, %p2581_p1  ;;  %p1969_p8 = scmp.ne.s32.totalorder %s2578_s2, %s1968_s5 }
  0x12   : > { %p1975_p12 = scmp.lt.u32.totalorder %s1968_s5, %s2578_s2 }
  0x13   : > { %p1970_p9 = pneg %p2259_p7 }
  0x15   : > { %p1971_p10 = pnand %p1970_p9, %p1969_p8 }
  0x17   : > { %p1972_p11 = pneg %p1971_p10 }
  0x19   : > { %p1977_p13 = pnand %p1975_p12, %p1972_p11 }
  0x1b   : > { %1980 = shalt.err (!%p1977_p13)
}
  0x1c   : > { %s1981_s10 = scalar_lea.vmem %s175_s25, 16  ;;  %s1988_s11 = scalar_lea.vmem %s175_s25, 32 }
  0x1d   : > { %p1982_p0 = scmp.ne.s32.totalorder %s175_s25, %s1981_s10  ;;  %p1989_p6 = scmp.lt.s32.totalorder %s175_s25, %s175_s25 }
  0x1e   : > { %p1990_p1 = scmp.lt.s32.totalorder %s1988_s11, %s1981_s10 }
  0x1f   : > { %p1984_p2 = pnand %p1982_p0, %p1970_p9 }
  0x20   : > { %p1991_p4 = por %p1990_p1, %p1989_p6 }
  0x21   : > { %p1985_p3 = pneg %p1984_p2 }
  0x23   : > { %p1992_p5 = pnand %p1991_p4, %p1985_p3 }
  0x25   : > { %1995 = shalt.err (!%p1992_p5)
}
  0x26   : > { %1785 = dma.hbm_to_vmem [thread:$0]  (!%p2259_p7), %s2578_s2, 16, %s175_s25, [#allocation7]  }
  0x27   : > { %s1996_s24 = scalar_lea.hbm %s2579_s3, 16 }
  0x28   : > { %p1997_p8 = scmp.ne.s32.totalorder %s2579_s3, %s1996_s24  ;;  %p2003_p5 = scmp.lt.u32.totalorder %s1996_s24, %s2579_s3 }
  0x2a   : > { %p1999_p1 = pnand %p1997_p8, %p1970_p9 }
  0x2c   : > { %p2000_p4 = pneg %p1999_p1 }
  0x2e   : > { %p2005_p10 = pnand %p2003_p5, %p2000_p4 }
  0x30   : > { %2008 = shalt.err (!%p2005_p10)
}
  0x31   : > { %s2009_s25 = scalar_lea.vmem %s2263_s27, 16  ;;  %s2016_s6 = scalar_lea.vmem %s2263_s27, 32 }
  0x32   : > { %p2010_p11 = scmp.ne.s32.totalorder %s2263_s27, %s2009_s25  ;;  %p2017_p0 = scmp.lt.s32.totalorder %s2263_s27, %s2263_s27 }
  0x33   : > { %p2018_p2 = scmp.lt.s32.totalorder %s2016_s6, %s2009_s25 }
  0x34   : > { %p2012_p12 = pnand %p2010_p11, %p1970_p9 }
  0x35   : > { %p2019_p3 = por %p2018_p2, %p2017_p0 }
  0x36   : > { %p2013_p13 = pneg %p2012_p12 }
  0x38   : > { %p2020_p6 = pnand %p2019_p3, %p2013_p13 }
  0x3a   : > { %2023 = shalt.err (!%p2020_p6)
}
  0x3b   : > { %1788 = dma.hbm_to_vmem [thread:$0]  (!%p2259_p7), %s2579_s3, 16, %s2263_s27, [#allocation10]  }
  0x3c   : > { %s31_s9 = sadd.s32 1, %s2172_s19  ;;  %s43_s10 = sadd.s32 1, %s2164_s17 }
  0x3d   : > { %p32_p9 = scmp.ge.s32.totalorder %s31_s9, 3  ;;  %p50_p8 = scmp.ne.s32.totalorder %s2164_s17, %s2160_s16 }
  0x3e   : > { %p51_p1 = scmp.eq.s32.totalorder %s2176_s20, 0  ;;  %p1798_p4 = scmp.lt.s32.totalorder %s2176_s20, 3 }
  0x3f   : > { %s2600_s9 = smov (%p32_p9, %s31_s9), 0  ;;  %s2322_s28 = sand.u32 1, %s2164_s17  }
  0x40   : > { %p52_p5 = por %p51_p1, %p50_p8  ;;  %s39_s11 = ssub.s32 %s2172_s19, %s2600_s9 }
  0x41   : > { %p41_p10 = scmp.eq.s32.totalorder %s39_s11, 0  ;;  %s1762_s12 = smul.u32 48, %s2322_s28 }
  0x42   : > { %s1628_s13 = smul.u32 768, %s2172_s19  ;;  %p2328_p7 = pnand %p1798_p4, %p52_p5 }
  0x43   : > { %s2333_s14 = scalar_select %p41_p10, %s2164_s17, %s43_s10  }
  0x44   : > { %s2338_s26 = scalar_lea.hbm %s2576_s0, %s1628_s13  ;;  %s200_s29 = scalar_lea.vmem [#allocation3], %s1762_s12 }
  0x45   : > { %s210_s30 = sshll.u32 %s200_s29, 4  ;;  %s1763_s5 = smul.u32 768, %s2322_s28  ;;  %s2340_s30 = int_to_ptr.vmem [resolvable:$true] %s210_s30 }
  0x46   : > { %s197_s25 = scalar_lea.sflag [#allocation4], %s2322_s28  ;;  %s2024_s6 = scalar_lea.hbm %s2338_s26, 768 }
  0x47   : > { %p2025_p11 = scmp.ne.s32.totalorder %s2338_s26, %s2024_s6  ;;  %p2026_p12 = pneg %p2328_p7 }
  0x48   : > { %s2029_s10 = scalar_lea.hbm %s2576_s0, 2304  ;;  %p2030_p2 = scmp.lt.u32.totalorder %s2338_s26, %s2576_s0 }
  0x49   : > { %p2027_p13 = pnand %p2026_p12, %p2025_p11  ;;  %p2031_p3 = scmp.lt.u32.totalorder %s2029_s10, %s2024_s6 }
  0x4a   : > { %p2033_p9 = scmp.lt.u32.totalorder %s2024_s6, %s2338_s26 }
  0x4b   : > { %p2028_p0 = pneg %p2027_p13  ;;  %p2032_p6 = por %p2031_p3, %p2030_p2 }
  0x4d   : > { %p2034_p8 = por %p2033_p9, %p2032_p6 }
  0x4f   : > { %p2035_p1 = pnand %p2034_p8, %p2028_p0 }
  0x51   : > { %2038 = shalt.err (!%p2035_p1)
}
  0x52   : > { %s2039_s12 = scalar_lea.vmem %s2340_s30, 768  ;;  %s2180_s15 = smov [#allocation3]  }
  0x53   : > { %p2040_p4 = scmp.ne.s32.totalorder %s2340_s30, %s2039_s12  ;;  %s2044_s24 = sshll.u32 %s2180_s15, 4  ;;  %s2045_s24 = int_to_ptr.vmem [resolvable:$false] %s2044_s24 }
  0x54   : > { %s2046_s29 = scalar_lea.vmem %s2045_s24, 1536  ;;  %p2047_p11 = scmp.lt.s32.totalorder %s2340_s30, %s2045_s24 }
  0x55   : > { %p2042_p5 = pnand %p2040_p4, %p2026_p12  ;;  %p2048_p13 = scmp.lt.s32.totalorder %s2046_s29, %s2039_s12 }
  0x57   : > { %p2043_p10 = pneg %p2042_p5  ;;  %p2049_p2 = por %p2048_p13, %p2047_p11 }
  0x59   : > { %p2050_p3 = pnand %p2049_p2, %p2043_p10 }
  0x5b   : > { %2053 = shalt.err (!%p2050_p3)
}
  0x5c   : > { %1792 = dma.hbm_to_vmem [thread:$0]  (!%p2328_p7), %s2338_s26, 768, %s2340_s30, %s197_s25  }
  0x5d   : > { %s1629_s6 = smul.u32 12288, %s2172_s19  ;;  %s221_s7 = scalar_lea.vmem [#allocation6], %s1763_s5 }
  0x5e   : > { %s228_s8 = sshll.u32 %s221_s7, 4  ;;  %s217_s10 = sand.u32 1, %s2176_s20   ;;  %s2373_s8 = int_to_ptr.vmem [resolvable:$true] %s228_s8 }
  0x5f   : > { %s2378_s12 = scalar_lea.hbm %s2577_s1, %s1629_s6  ;;  %s2380_s15 = scalar_lea.sflag [#allocation7], %s217_s10 }
  0x60   : > { %s2054_s24 = scalar_lea.hbm %s2378_s12, 12288  ;;  %s2059_s30 = scalar_lea.hbm %s2577_s1, 36864 }
  0x61   : > { %p2055_p0 = scmp.ne.s32.totalorder %s2378_s12, %s2054_s24  ;;  %p2060_p8 = scmp.lt.u32.totalorder %s2378_s12, %s2577_s1 }
  0x62   : > { %p2061_p1 = scmp.lt.u32.totalorder %s2059_s30, %s2054_s24  ;;  %p2063_p5 = scmp.lt.u32.totalorder %s2054_s24, %s2378_s12 }
  0x63   : > { %p2057_p6 = pnand %p2055_p0, %p2026_p12 }
  0x64   : > { %p2062_p4 = por %p2061_p1, %p2060_p8 }
  0x65   : > { %p2058_p9 = pneg %p2057_p6 }
  0x66   : > { %p2064_p10 = por %p2063_p5, %p2062_p4 }
  0x68   : > { %p2065_p11 = pnand %p2064_p10, %p2058_p9 }
  0x6a   : > { %2068 = shalt.err (!%p2065_p11)
}
  0x6b   : > { %s2069_s29 = scalar_lea.vmem %s2373_s8, 12288  ;;  %s2181_s6 = smov [#allocation6]  }
  0x6c   : > { %p2070_p13 = scmp.ne.s32.totalorder %s2373_s8, %s2069_s29  ;;  %s2074_s7 = sshll.u32 %s2181_s6, 4  ;;  %s2075_s7 = int_to_ptr.vmem [resolvable:$false] %s2074_s7 }
  0x6d   : > { %s2076_s10 = scalar_lea.vmem %s2075_s7, 24576  ;;  %p2077_p0 = scmp.lt.s32.totalorder %s2373_s8, %s2075_s7 }
  0x6e   : > { %p2072_p2 = pnand %p2070_p13, %p2026_p12  ;;  %p2078_p6 = scmp.lt.s32.totalorder %s2076_s10, %s2069_s29 }
  0x70   : > { %p2073_p3 = pneg %p2072_p2  ;;  %p2079_p8 = por %p2078_p6, %p2077_p0 }
  0x72   : > { %p2080_p1 = pnand %p2079_p8, %p2073_p3 }
  0x74   : > { %2083 = shalt.err (!%p2080_p1)
}
  0x75   : > { %s2182_s11 = smov 64   ;;  %s2183_s13 = smov 4  }
  0x76   : > { %1795 = dma.hbm_to_vmem [thread:$0]  (!%p2328_p7), %s2378_s12, 12288, %s2373_s8, %s2380_s15, %s2182_s11, %s2182_s11, %s2183_s13  }
  0x77   : > { %p2588_p12 = scmp.ne.s32.totalorder %s2585_s23, 0 }
  0x78   : > { %s242_s24 = sand.u32 (!%p2588_p12), 1, %s2160_s16   ;;  %p2589_p9 = scmp.ne.s32.totalorder (!%p2588_p12), %s2584_s22, 0 }
  0x79   : > { %240 = sbr.rel (%p2588_p12) target bundleno = 533 (0x215), region = 36  ;;  %s243_s26 = scalar_lea.sflag (!%p2588_p12), [#allocation4], %s242_s24 }
  0x7a   : > { %s1764_s28 = smul.u32 (!%p2588_p12), 48, %s242_s24 }
  0x7c   : > { %s2409_s30 = scalar_lea.vmem (!%p2588_p12), [#allocation3], %s1764_s28 }
  0x80   : > { %2135 = dma.done.wait (%p2589_p9), %s243_s26, 768  }
  0x81   : > { %2137 = vsyncadd (%p2589_p9), %s243_s26, 4294966528  ;;  %s251_s5 = sand.u32 1, %s2239_s21   ;;  %s1765_s27 = smul.u32 768, %s242_s24 }
  0x82   : > { %s252_s8 = scalar_lea.sflag [#allocation7], %s251_s5 }
  0x83   : > { %s2416_s12 = scalar_lea.vmem [#allocation6], %s1765_s27 }
  0x84   : > { %2139 = dma.done.wait (%p2589_p9), %s252_s8, 12288  }
  0x85   : > { %2141 = vsyncadd (%p2589_p9), %s252_s8, 4294955008  ;;  %p2590_p7 = scmp.eq.s32.totalorder %s2239_s21, 0 }
  0x87   : > { %2143 = dma.done.wait (%p2590_p7), [#allocation7], 16   ;;  %p2591_p4 = pmov %p2590_p7 }
  0x89   : > { %2145 = vsyncadd (%p2591_p4), [#allocation7], 4294967280  ;;  %p2592_p5 = pmov %p2591_p4 }
  0x8a   : > { %p2593_p10 = pmov %p2591_p4 }
  0x8b   : > { %2147 = dma.done.wait (%p2592_p5), [#allocation10], 16  }
  0x8c   : > { %2149 = vsyncadd (%p2593_p10), [#allocation10], 4294967280  ;;  %v1856_v0 = vld [vmem:[%s2416_s12 + $0x40] sm:$0xff]   ;;  %v1860_v4 = vld [vmem:[%s2416_s12 + $0x48] sm:$0xff]   ;;  %p1619_p11 = scmp.ne.s32.totalorder %s2168_s18, 0 }
  0x8d   : > { %v1857_v1 = vld [vmem:[%s2416_s12 + $0xc0] sm:$0xff]   ;;  %1630 = vmatprep.subr.bf16.mxu0 %v1856_v0  ;;  %v1861_v5 = vld [vmem:[%s2416_s12 + $0xc8] sm:$0xff]   ;;  %v1864_v8 = vld [vmem:[%s2416_s12 + $0x50] sm:$0xff]  }
  0x8e   : > { %v1858_v2 = vld [vmem:[%s2416_s12] sm:$0xff]   ;;  %1652 = vmatprep.subr.bf16.mxu1 %v1857_v1  ;;  %v1862_v6 = vld [vmem:[%s2416_s12 + $0x8] sm:$0xff]   ;;  %v1865_v9 = vld [vmem:[%s2416_s12 + $0xd0] sm:$0xff]  }
  0x8f   : > { %v1859_v3 = vld [vmem:[%s2416_s12 + $0x80] sm:$0xff]   ;;  %1631 = vmatpush3.bf16.msra.mxu0 %v1858_v2  ;;  %v1863_v7 = vld [vmem:[%s2416_s12 + $0x88] sm:$0xff]   ;;  %v1866_v10 = vld [vmem:[%s2416_s12 + $0x10] sm:$0xff]  }
  0x90   : > { %1653 = vmatpush3.bf16.msra.mxu1 %v1859_v3  ;;  %1632 = vmatprep.subr.bf16.mxu0 %v1860_v4  ;;  %v1867_v11 = vld [vmem:[%s2416_s12 + $0x90] sm:$0xff]   ;;  %v1868_v12 = vld [vmem:[%s2416_s12 + $0x58] sm:$0xff]   ;;  %v1872_v16 = vld [vmem:[%s2416_s12 + $0x60] sm:$0xff]  }
  0x91   : > { %1654 = vmatprep.subr.bf16.mxu1 %v1861_v5  ;;  %v1869_v13 = vld [vmem:[%s2416_s12 + $0xd8] sm:$0xff]   ;;  %v1873_v17 = vld [vmem:[%s2416_s12 + $0xe0] sm:$0xff]   ;;  %v1876_v20 = vld [vmem:[%s2416_s12 + $0x68] sm:$0xff]  }
  0x92   : > { %v1870_v14 = vld [vmem:[%s2416_s12 + $0x18] sm:$0xff]   ;;  %v1874_v18 = vld [vmem:[%s2416_s12 + $0x20] sm:$0xff]   ;;  %v1877_v21 = vld [vmem:[%s2416_s12 + $0xe8] sm:$0xff]  }
  0x93   : > { %1633 = vmatpush3.bf16.msra.mxu0 %v1862_v6  ;;  %v1871_v15 = vld [vmem:[%s2416_s12 + $0x98] sm:$0xff]   ;;  %v1875_v19 = vld [vmem:[%s2416_s12 + $0xa0] sm:$0xff]   ;;  %v1878_v22 = vld [vmem:[%s2416_s12 + $0x28] sm:$0xff]  }
  0x94   : > { %1655 = vmatpush3.bf16.msra.mxu1 %v1863_v7  ;;  %1634 = vmatprep.subr.bf16.mxu0 %v1864_v8  ;;  %v1879_v23 = vld [vmem:[%s2416_s12 + $0xa8] sm:$0xff]   ;;  %v1880_v24 = vld [vmem:[%s2416_s12 + $0x70] sm:$0xff]   ;;  %v1884_v28 = vld [vmem:[%s2416_s12 + $0x78] sm:$0xff]  }
  0x95   : > { %1656 = vmatprep.subr.bf16.mxu1 %v1865_v9  ;;  %v1881_v25 = vld [vmem:[%s2416_s12 + $0xf0] sm:$0xff]   ;;  %v1885_v29 = vld [vmem:[%s2416_s12 + $0xf8] sm:$0xff]   ;;  %v1892_v38 = vld [vmem:[%s2416_s12 + $0x140] sm:$0xff]  }
  0x96   : > { %v1882_v26 = vld [vmem:[%s2416_s12 + $0x30] sm:$0xff]   ;;  %v1886_v30 = vld [vmem:[%s2416_s12 + $0x38] sm:$0xff]   ;;  %v1893_v39 = vld [vmem:[%s2416_s12 + $0x1c0] sm:$0xff]  }
  0x97   : > { %1635 = vmatpush3.bf16.msra.mxu0 %v1866_v10  ;;  %v1883_v27 = vld [vmem:[%s2416_s12 + $0xb0] sm:$0xff]   ;;  %v1887_v31 = vld [vmem:[%s2416_s12 + $0xb8] sm:$0xff]   ;;  %v1894_v40 = vld [vmem:[%s2416_s12 + $0x100] sm:$0xff]  }
  0x98   : > { %1657 = vmatpush3.bf16.msra.mxu1 %v1867_v11  ;;  %1636 = vmatprep.subr.bf16.mxu0 %v1868_v12  ;;  %v291_v32 = vld [vmem:[%s2409_s30] sm:$0xff]  ;;  %v292_v33 = vld [vmem:[%s2409_s30 + $0x8] sm:$0xff]  ;;  %v293_v6 = vld [vmem:[%s2409_s30 + $0x10] sm:$0xff] }
  0x99   : > { %1658 = vmatprep.subr.bf16.mxu1 %v1869_v13  ;;  %v1511_v34 = vcombine.low %v291_v32, %v291_v32  ;;  %v1512_v35 = vcombine.high %v291_v32, %v291_v32  ;;  %v1513_v36 = vcombine.low %v292_v33, %v292_v33  ;;  %v1514_v37 = vcombine.high %v292_v33, %v292_v33  ;;  %v1895_v41 = vld [vmem:[%s2416_s12 + $0x180] sm:$0xff]   ;;  %v1896_v42 = vld [vmem:[%s2416_s12 + $0x148] sm:$0xff]   ;;  %v1900_v46 = vld [vmem:[%s2416_s12 + $0x150] sm:$0xff]  }
  0x9a   : > { %v1897_v43 = vld [vmem:[%s2416_s12 + $0x1c8] sm:$0xff]   ;;  %v1901_v47 = vld [vmem:[%s2416_s12 + $0x1d0] sm:$0xff]   ;;  %v1904_v50 = vld [vmem:[%s2416_s12 + $0x158] sm:$0xff]   ;;  %v1515_v7 = vcombine.low %v293_v6, %v293_v6  ;;  %v1516_v8 = vcombine.high %v293_v6, %v293_v6 }
  0x9b   : > { %1637 = vmatpush3.bf16.msra.mxu0 %v1870_v14  ;;  %1139 = vmatprep.mubr.bf16.mxu0 %v1512_v35  ;;  %v1898_v44 = vld [vmem:[%s2416_s12 + $0x108] sm:$0xff]   ;;  %v1902_v48 = vld [vmem:[%s2416_s12 + $0x110] sm:$0xff]   ;;  %v1905_v51 = vld [vmem:[%s2416_s12 + $0x1d8] sm:$0xff]  }
  0x9c   : > { %1659 = vmatpush3.bf16.msra.mxu1 %v1871_v15  ;;  %1638 = vmatprep.subr.bf16.mxu0 %v1872_v16  ;;  %v1899_v45 = vld [vmem:[%s2416_s12 + $0x188] sm:$0xff]   ;;  %v1903_v49 = vld [vmem:[%s2416_s12 + $0x190] sm:$0xff]   ;;  %v1906_v52 = vld [vmem:[%s2416_s12 + $0x118] sm:$0xff]  }
  0x9d   : > { %1660 = vmatprep.subr.bf16.mxu1 %v1873_v17  ;;  %1179 = vmatprep.mubr.bf16.mxu1 %v1514_v37  ;;  %v1907_v53 = vld [vmem:[%s2416_s12 + $0x198] sm:$0xff]   ;;  %v1908_v54 = vld [vmem:[%s2416_s12 + $0x160] sm:$0xff]   ;;  %v1912_v58 = vld [vmem:[%s2416_s12 + $0x168] sm:$0xff]  }
  0x9e   : > { %v1909_v55 = vld [vmem:[%s2416_s12 + $0x1e0] sm:$0xff]   ;;  %v1913_v59 = vld [vmem:[%s2416_s12 + $0x1e8] sm:$0xff]   ;;  %v1916_v62 = vld [vmem:[%s2416_s12 + $0x170] sm:$0xff]  }
  0x9f   : > { %1639 = vmatpush3.bf16.msra.mxu0 %v1874_v18  ;;  %v1910_v56 = vld [vmem:[%s2416_s12 + $0x120] sm:$0xff]   ;;  %v1914_v60 = vld [vmem:[%s2416_s12 + $0x128] sm:$0xff]   ;;  %v1917_v63 = vld [vmem:[%s2416_s12 + $0x1f0] sm:$0xff]  }
  0xa0   : > { %1661 = vmatpush3.bf16.msra.mxu1 %v1875_v19  ;;  %1640 = vmatprep.subr.bf16.mxu0 %v1876_v20  ;;  %v1911_v57 = vld [vmem:[%s2416_s12 + $0x1a0] sm:$0xff]   ;;  %v1915_v61 = vld [vmem:[%s2416_s12 + $0x1a8] sm:$0xff]   ;;  %v1918_v0 = vld [vmem:[%s2416_s12 + $0x130] sm:$0xff]  }
  0xa1   : > { %1662 = vmatprep.subr.bf16.mxu1 %v1877_v21  ;;  %v1919_v1 = vld [vmem:[%s2416_s12 + $0x1b0] sm:$0xff]   ;;  %v1920_v2 = vld [vmem:[%s2416_s12 + $0x178] sm:$0xff]   ;;  %v1928_v12 = vld [vmem:[%s2416_s12 + $0x240] sm:$0xff]  }
  0xa2   : > { %v1921_v3 = vld [vmem:[%s2416_s12 + $0x1f8] sm:$0xff]   ;;  %v1929_v13 = vld [vmem:[%s2416_s12 + $0x2c0] sm:$0xff]   ;;  %v1932_v16 = vld [vmem:[%s2416_s12 + $0x248] sm:$0xff]  }
  0xa3   : > { %1641 = vmatpush3.bf16.msra.mxu0 %v1878_v22  ;;  %v1922_v4 = vld [vmem:[%s2416_s12 + $0x138] sm:$0xff]   ;;  %v1930_v14 = vld [vmem:[%s2416_s12 + $0x200] sm:$0xff]   ;;  %v1933_v17 = vld [vmem:[%s2416_s12 + $0x2c8] sm:$0xff]  }
  0xa4   : > { %1663 = vmatpush3.bf16.msra.mxu1 %v1879_v23  ;;  %1642 = vmatprep.subr.bf16.mxu0 %v1880_v24  ;;  %v1923_v5 = vld [vmem:[%s2416_s12 + $0x1b8] sm:$0xff]   ;;  %v1931_v15 = vld [vmem:[%s2416_s12 + $0x280] sm:$0xff]   ;;  %v1934_v18 = vld [vmem:[%s2416_s12 + $0x208] sm:$0xff]  }
  0xa5   : > { %1664 = vmatprep.subr.bf16.mxu1 %v1881_v25  ;;  %v294_v9 = vld [vmem:[%s2409_s30 + $0x18] sm:$0xff]  ;;  %v1936_v20 = vld [vmem:[%s2416_s12 + $0x250] sm:$0xff]  }
  0xa6   : > { %v1517_v10 = vcombine.low %v294_v9, %v294_v9  ;;  %v1518_v11 = vcombine.high %v294_v9, %v294_v9  ;;  %v1935_v19 = vld [vmem:[%s2416_s12 + $0x288] sm:$0xff]   ;;  %v1937_v21 = vld [vmem:[%s2416_s12 + $0x2d0] sm:$0xff]   ;;  %v1940_v24 = vld [vmem:[%s2416_s12 + $0x258] sm:$0xff]  }
  0xa7   : > { %1643 = vmatpush3.bf16.msra.mxu0 %v1882_v26  ;;  %v1938_v22 = vld [vmem:[%s2416_s12 + $0x210] sm:$0xff]   ;;  %v1941_v25 = vld [vmem:[%s2416_s12 + $0x2d8] sm:$0xff]   ;;  %v1948_v32 = vld [vmem:[%s2416_s12 + $0x268] sm:$0xff]  }
  0xa8   : > { %1665 = vmatpush3.bf16.msra.mxu1 %v1883_v27  ;;  %1644 = vmatprep.subr.bf16.mxu0 %v1884_v28  ;;  %v1939_v23 = vld [vmem:[%s2416_s12 + $0x290] sm:$0xff]   ;;  %v1942_v26 = vld [vmem:[%s2416_s12 + $0x218] sm:$0xff]   ;;  %v1944_v28 = vld [vmem:[%s2416_s12 + $0x260] sm:$0xff]  }
  0xa9   : > { %1666 = vmatprep.subr.bf16.mxu1 %v1885_v29  ;;  %v1943_v27 = vld [vmem:[%s2416_s12 + $0x298] sm:$0xff]   ;;  %v1945_v29 = vld [vmem:[%s2416_s12 + $0x2e0] sm:$0xff]   ;;  %v1949_v33 = vld [vmem:[%s2416_s12 + $0x2e8] sm:$0xff]  }
  0xaa   : > { %v1951_v35 = vld [vmem:[%s2416_s12 + $0x2a8] sm:$0xff]   ;;  %v1953_v37 = vld [vmem:[%s2416_s12 + $0x2f0] sm:$0xff]  }
  0xab   : > { %1645 = vmatpush3.bf16.msra.mxu0 %v1886_v30  ;;  %v1946_v30 = vld [vmem:[%s2416_s12 + $0x220] sm:$0xff]  }
  0xac   : > { %1667 = vmatpush3.bf16.msra.mxu1 %v1887_v31  ;;  %1674 = vmatprep.subr.bf16.mxu0 %v1892_v38  ;;  %v1947_v31 = vld [vmem:[%s2416_s12 + $0x2a0] sm:$0xff]   ;;  %v1954_v38 = vld [vmem:[%s2416_s12 + $0x230] sm:$0xff]  }
  0xad   : > { %1696 = vmatprep.subr.bf16.mxu1 %v1893_v39  ;;  %v1955_v39 = vld [vmem:[%s2416_s12 + $0x2b0] sm:$0xff]  }
  0xae   : > { %1140 = vmatmul.mubr.bf16.vlgmr.msra.gmra.mrb[0].mxu0 %v1511_v34  ;;  %v1950_v34 = vld [vmem:[%s2416_s12 + $0x228] sm:$0xff]  }
  0xaf   : > { %1180 = vmatmul.mubr.bf16.vlgmr.msra.gmra.mrb[0].mxu1 %v1513_v36  ;;  %1675 = vmatpush3.bf16.msra.mxu0 %v1894_v40  ;;  %v1952_v36 = vld [vmem:[%s2416_s12 + $0x270] sm:$0xff]   ;;  %v1956_v40 = vld [vmem:[%s2416_s12 + $0x278] sm:$0xff]  }
  0xb0   : > { %1697 = vmatpush3.bf16.msra.mxu1 %v1895_v41  ;;  %1676 = vmatprep.subr.bf16.mxu0 %v1896_v42  ;;  %v1957_v41 = vld [vmem:[%s2416_s12 + $0x2f8] sm:$0xff]  }
  0xb1   : > { %1698 = vmatprep.subr.bf16.mxu1 %v1897_v43  ;;  %1219 = vmatprep.mubr.bf16.mxu0 %v1516_v8  ;;  %v1958_v42 = vld [vmem:[%s2416_s12 + $0x238] sm:$0xff]  }
  0xb2   : > { %1259 = vmatprep.mubr.bf16.mxu1 %v1518_v11  ;;  %v1959_v43 = vld [vmem:[%s2416_s12 + $0x2b8] sm:$0xff]  }
  0xb3   : > { %1677 = vmatpush3.bf16.msra.mxu0 %v1898_v44  ;;  %v295_v44 = vld [vmem:[%s2409_s30 + $0x20] sm:$0xff] }
  0xb4   : > { %1699 = vmatpush3.bf16.msra.mxu1 %v1899_v45  ;;  %1678 = vmatprep.subr.bf16.mxu0 %v1900_v46  ;;  %v296_v45 = vld [vmem:[%s2409_s30 + $0x28] sm:$0xff]  ;;  %v1519_v46 = vcombine.low %v295_v44, %v295_v44 }
  0xb5   : > { %1700 = vmatprep.subr.bf16.mxu1 %v1901_v47  ;;  %v1520_v47 = vcombine.high %v295_v44, %v295_v44 }
  0xb7   : > { %1679 = vmatpush3.bf16.msra.mxu0 %v1902_v48  ;;  %v1521_v48 = vcombine.low %v296_v45, %v296_v45 }
  0xb8   : > { %1701 = vmatpush3.bf16.msra.mxu1 %v1903_v49  ;;  %1680 = vmatprep.subr.bf16.mxu0 %v1904_v50  ;;  %v1522_v49 = vcombine.high %v296_v45, %v296_v45 }
  0xb9   : > { %1702 = vmatprep.subr.bf16.mxu1 %v1905_v51 }
  0xbb   : > { %1681 = vmatpush3.bf16.msra.mxu0 %v1906_v52 }
  0xbc   : > { %1703 = vmatpush3.bf16.msra.mxu1 %v1907_v53  ;;  %1682 = vmatprep.subr.bf16.mxu0 %v1908_v54 }
  0xbd   : > { %1704 = vmatprep.subr.bf16.mxu1 %v1909_v55 }
  0xbf   : > { %1683 = vmatpush3.bf16.msra.mxu0 %v1910_v56 }
  0xc0   : > { %1705 = vmatpush3.bf16.msra.mxu1 %v1911_v57  ;;  %1684 = vmatprep.subr.bf16.mxu0 %v1912_v58 }
  0xc1   : > { %1706 = vmatprep.subr.bf16.mxu1 %v1913_v59 }
  0xc3   : > { %1685 = vmatpush3.bf16.msra.mxu0 %v1914_v60 }
  0xc4   : > { %1707 = vmatpush3.bf16.msra.mxu1 %v1915_v61  ;;  %1686 = vmatprep.subr.bf16.mxu0 %v1916_v62 }
  0xc5   : > { %1708 = vmatprep.subr.bf16.mxu1 %v1917_v63 }
  0xc7   : > { %1687 = vmatpush3.bf16.msra.mxu0 %v1918_v0 }
  0xc8   : > { %1709 = vmatpush3.bf16.msra.mxu1 %v1919_v1  ;;  %1688 = vmatprep.subr.bf16.mxu0 %v1920_v2 }
  0xc9   : > { %1710 = vmatprep.subr.bf16.mxu1 %v1921_v3 }
  0xcb   : > { %1689 = vmatpush3.bf16.msra.mxu0 %v1922_v4 }
  0xcc   : > { %1711 = vmatpush3.bf16.msra.mxu1 %v1923_v5  ;;  %1718 = vmatprep.subr.bf16.mxu0 %v1928_v12 }
  0xcd   : > { %1740 = vmatprep.subr.bf16.mxu1 %v1929_v13 }
  0xce   : > { %1220 = vmatmul.mubr.bf16.vlgmr.msra.gmra.mrb[4].mxu0 %v1515_v7 }
  0xcf   : > { %1260 = vmatmul.mubr.bf16.vlgmr.msra.gmra.mrb[4].mxu1 %v1517_v10  ;;  %1719 = vmatpush3.bf16.msra.mxu0 %v1930_v14 }
  0xd0   : > { %1741 = vmatpush3.bf16.msra.mxu1 %v1931_v15  ;;  %1720 = vmatprep.subr.bf16.mxu0 %v1932_v16 }
  0xd1   : > { %1742 = vmatprep.subr.bf16.mxu1 %v1933_v17  ;;  %1299 = vmatprep.mubr.bf16.mxu0 %v1520_v47 }
  0xd2   : > { %1339 = vmatprep.mubr.bf16.mxu1 %v1522_v49 }
  0xd3   : > { %1721 = vmatpush3.bf16.msra.mxu0 %v1934_v18 }
  0xd4   : > { %1743 = vmatpush3.bf16.msra.mxu1 %v1935_v19  ;;  %1722 = vmatprep.subr.bf16.mxu0 %v1936_v20 }
  0xd5   : > { %1744 = vmatprep.subr.bf16.mxu1 %v1937_v21 }
  0xd7   : > { %1723 = vmatpush3.bf16.msra.mxu0 %v1938_v22 }
  0xd8   : > { %1745 = vmatpush3.bf16.msra.mxu1 %v1939_v23  ;;  %1724 = vmatprep.subr.bf16.mxu0 %v1940_v24 }
  0xd9   : > { %1746 = vmatprep.subr.bf16.mxu1 %v1941_v25 }
  0xdb   : > { %1725 = vmatpush3.bf16.msra.mxu0 %v1942_v26 }
  0xdc   : > { %1747 = vmatpush3.bf16.msra.mxu1 %v1943_v27  ;;  %1726 = vmatprep.subr.bf16.mxu0 %v1944_v28 }
  0xdd   : > { %1748 = vmatprep.subr.bf16.mxu1 %v1945_v29 }
  0xdf   : > { %1727 = vmatpush3.bf16.msra.mxu0 %v1946_v30 }
  0xe0   : > { %1749 = vmatpush3.bf16.msra.mxu1 %v1947_v31  ;;  %1728 = vmatprep.subr.bf16.mxu0 %v1948_v32 }
  0xe1   : > { %1750 = vmatprep.subr.bf16.mxu1 %v1949_v33 }
  0xe3   : > { %1729 = vmatpush3.bf16.msra.mxu0 %v1950_v34 }
  0xe4   : > { %1751 = vmatpush3.bf16.msra.mxu1 %v1951_v35  ;;  %1730 = vmatprep.subr.bf16.mxu0 %v1952_v36 }
  0xe5   : > { %1752 = vmatprep.subr.bf16.mxu1 %v1953_v37 }
  0xe7   : > { %1731 = vmatpush3.bf16.msra.mxu0 %v1954_v38 }
  0xe8   : > { %1753 = vmatpush3.bf16.msra.mxu1 %v1955_v39  ;;  %1732 = vmatprep.subr.bf16.mxu0 %v1956_v40 }
  0xe9   : > { %1754 = vmatprep.subr.bf16.mxu1 %v1957_v41 }
  0xeb   : > { %1733 = vmatpush3.bf16.msra.mxu0 %v1958_v42 }
  0xec   : > { %1755 = vmatpush3.bf16.msra.mxu1 %v1959_v43 }
  0xee   : > { %1300 = vmatmul.mubr.bf16.vlgmr.msra.gmra.mrb[8].mxu0 %v1519_v46 }
  0xef   : > { %1340 = vmatmul.mubr.bf16.vlgmr.msra.gmra.mrb[8].mxu1 %v1521_v48 }
 0x181   : > { %v1646_v50 = vpop.f32.mrb[0].mxu0 }
 0x182   : > { %v1668_v51 = vpop.f32.mrb[0].mxu1  ;;  %v1647_v52 = vpop.f32.mrb[1].mxu0 }
 0x183   : > { %v1669_v53 = vpop.f32.mrb[1].mxu1  ;;  %v1648_v54 = vadd.f32 %v1647_v52, %v1646_v50  ;;  %v1649_v56 = vpop.f32.mrb[2].mxu0 }
 0x184   : > { %v1670_v55 = vadd.f32 %v1669_v53, %v1668_v51  ;;  %v1671_v57 = vpop.f32.mrb[2].mxu1  ;;  %v1650_v58 = vpop.f32.mrb[3].mxu0 }
 0x185   : > { %v1672_v59 = vpop.f32.mrb[3].mxu1 }
 0x186   : > { %v1182_v60 = vadd.f32 %v1670_v55, %v1648_v54 }
 0x1a1   : > { %v1690_v61 = vpop.f32.mrb[4].mxu0 }
 0x1a2   : > { %v1712_v62 = vpop.f32.mrb[4].mxu1  ;;  %v1691_v63 = vpop.f32.mrb[5].mxu0 }
 0x1a3   : > { %v1713_v0 = vpop.f32.mrb[5].mxu1  ;;  %v1692_v1 = vadd.f32 %v1691_v63, %v1690_v61  ;;  %v1693_v3 = vpop.f32.mrb[6].mxu0 }
 0x1a4   : > { %v1714_v2 = vadd.f32 %v1713_v0, %v1712_v62  ;;  %v1715_v4 = vpop.f32.mrb[6].mxu1  ;;  %v1694_v5 = vpop.f32.mrb[7].mxu0 }
 0x1a5   : > { %v1716_v6 = vpop.f32.mrb[7].mxu1  ;;  %v1222_v7 = vadd.f32 %v1692_v1, %v1182_v60 }
 0x1a7   : > { %v1262_v8 = vadd.f32 %v1714_v2, %v1222_v7 }
 0x1c1   : > { %v1734_v9 = vpop.f32.mrb[8].mxu0  ;;  %1350 = sbr.rel (%p1619_p11) target bundleno = 458 (0x1ca), region = 56 }
 0x1c2   : > { %v1756_v10 = vpop.f32.mrb[8].mxu1  ;;  %v1735_v11 = vpop.f32.mrb[9].mxu0 }
 0x1c3   : > { %v1736_v12 = vadd.f32 %v1735_v11, %v1734_v9  ;;  %v1757_v13 = vpop.f32.mrb[9].mxu1  ;;  %v1737_v14 = vpop.f32.mrb[10].mxu0 }
 0x1c4   : > { %v1758_v15 = vadd.f32 %v1757_v13, %v1756_v10  ;;  %v1759_v16 = vpop.f32.mrb[10].mxu1  ;;  %v1738_v17 = vpop.f32.mrb[11].mxu0 }
 0x1c5   : > { %v1302_v18 = vadd.f32 %v1736_v12, %v1262_v8  ;;  %v1760_v19 = vpop.f32.mrb[11].mxu1 }
 0x1c7   : > { %v1342_v20 = vadd.f32 %v1758_v15, %v1302_v18 }
 0x1c9   : > { %1351 = vst [vmem:[#allocation2] sm:$0xff] %v1342_v20 }
 0x1ca PF: > { %p1620_p13 = scmp.le.s32.totalorder %s2168_s18, 0 }
 0x1cc   : > { %1355 = sbr.rel (%p1620_p13) target bundleno = 468 (0x1d4), region = 60 }
 0x1d0   : > { %v1356_v21 = vld [vmem:[#allocation2] sm:$0xff] (!%p1620_p13) }
 0x1d1   : > { %v1357_v22 = vadd.f32 (!%p1620_p13), %v1356_v21, %v1342_v20 }
 0x1d3   : > { %1358 = vst [vmem:[#allocation2] sm:$0xff] %v1357_v22 }
 0x1d4 PF: > { %p1621_p2 = scmp.ne.s32.totalorder %s2168_s18, 2 }
 0x1d5   : > { %v1622_v24 = vld [vmem:[#allocation8] ss:$0 sm:$0xff] (!%p1621_p2)  ;;  %v1623_v25 = vld [vmem:[#allocation9] ss:$0 sm:$0xff] (!%p1621_p2) }
 0x1d6   : > { %1362 = sbr.rel (%p1621_p2) target bundleno = 508 (0x1fc), region = 64 }
 0x1da   : > { %v1363_v23 = vld [vmem:[#allocation2] sm:$0xff] (!%p1621_p2) }
 0x1db   : > { %v1371_v26 = vmul.f32 (!%p1621_p2), %v1622_v24, %v1363_v23 }
 0x1dd   : > { %v1379_v27 = vadd.f32 %v1623_v25, %v1371_v26 }
 0x1df   : > { %v1380_v28 = vsub.f32 0.0, %v1379_v27 }
 0x1e1   : > { %v1381_v29 = vmul.f32 1.442695, %v1380_v28 }
 0x1e3   : > { %1964 = vpow2.f32 %v1381_v29 }
 0x1ed   : > { %v1965_v30 = vpop.eup %1964 }
 0x1ee   : > { %v1383_v31 = vadd.f32 1.0, %v1965_v30 }
 0x1f0   : > { %1966 = vrcp.f32 %v1383_v31 }
 0x1fa   : > { %v1967_v32 = vpop.eup %1966 }
 0x1fb   : > { %1385 = vst [vmem:[#allocation11] sm:$0xff] %v1967_v32 }
 0x1fc PF: > { %p1801_p3 = scmp.eq.s32.totalorder %s2239_s21, 2  ;;  %s2184_s22 = smov [#allocation11]  }
 0x1fd   : > { %s1395_s18 = sshll.u32 %s2184_s22, 4  ;;  %s1396_s18 = int_to_ptr.vmem [resolvable:$true] %s1395_s18 }
 0x1fe   : > { %s2084_s23 = scalar_lea.vmem %s1396_s18, 128  ;;  %p2091_p1 = scmp.lt.s32.totalorder %s1396_s18, %s1396_s18 }
 0x1ff   : > { %p2085_p0 = scmp.ne.s32.totalorder %s1396_s18, %s2084_s23  ;;  %p2092_p12 = scmp.lt.s32.totalorder %s2084_s23, %s2084_s23 }
 0x201   : > { %p2086_p6 = pnand %p2085_p0, %p1801_p3  ;;  %p2093_p9 = por %p2092_p12, %p2091_p1 }
 0x203   : > { %p2087_p8 = pneg %p2086_p6 }
 0x205   : > { %p2094_p7 = pnand %p2093_p9, %p2087_p8 }
 0x207   : > { %2097 = shalt.err (!%p2094_p7)
}
 0x208   : > { %s2098_s29 = scalar_lea.hbm %s2580_s4, 128 }
 0x209   : > { %p2099_p4 = scmp.ne.s32.totalorder %s2580_s4, %s2098_s29  ;;  %p2104_p11 = scmp.lt.u32.totalorder %s2098_s29, %s2580_s4 }
 0x20b   : > { %p2100_p5 = pnand %p2099_p4, %p1801_p3 }
 0x20d   : > { %p2101_p10 = pneg %p2100_p5 }
 0x20f   : > { %p2106_p13 = pnand %p2104_p11, %p2101_p10 }
 0x211   : > { %2109 = shalt.err (!%p2106_p13)
}
 0x212   : > { %1779 = dma.vmem_to_hbm [thread:$0]  (%p1801_p3), %s1396_s18, 128, %s2580_s4, [#allocation5]  }
 0x213   : > { %2151 = dma.done.wait (%p1801_p3), [#allocation5], 128  }
 0x214   : > { %2153 = vsyncadd (%p1801_p3), [#allocation5], 4294967168 }
 0x215 PF: > { %s22_s20 = sadd.s32 1, %s2176_s20   ;;  %s2594_s15 = smov %s2160_s16 }
 0x216   : > { %p19_p2 = scmp.ge.s32.totalorder %s22_s20, 5   ;;  %s2595_s16 = smov %s2164_s17 }
 0x217   : > { %s2596_s17 = smov %s2333_s14  ;;  %s2597_s18 = smov %s2172_s19 }
 0x218   : > { %s2598_s19 = smov %s2600_s9  ;;  %21 = sbr.rel (!%p19_p2) target bundleno = 8 (0x8), region = 107 }
 0x21f   :  { %1408 = vsyncpa [#allocation4], 1 }
 0x220   :  { %1410 = vsyncpa [#allocation4 + $0x1], 1 }
 0x221   :  { %1411 = vsyncpa [#allocation7], 1 }
 0x222   :  { %1413 = vsyncpa [#allocation7 + $0x1], 1 }
 0x223   :  { %1414 = vsyncpa [#allocation10], 1 }
 0x224   :  { %1415 = vsyncpa [#allocation5], 1 }
 0x225   :  { %1417 = vsyncpa [#allocation5 + $0x1], 1 }

// kernel: discriminator_forward.10
= control target key start
LH: loop header
LB: loop body
LE: loop exit
PB: predicated region body
PF: predicated region fallthrough
CT: control target
= control target key end

     0   :  { %9 = vsyncpa [#allocation4], 0  ;;  %s5434_s0 = inlined_call_operand.hbm [shape: bf16[8,4608], index: 0, kind: input, shape index: {}]   ;;  %s5435_s1 = inlined_call_operand.hbm [shape: bf16[4608,512], index: 1, kind: input, shape index: {}]   ;;  %s5436_s2 = inlined_call_operand.hbm [shape: f32[1,512], index: 2, kind: input, shape index: {}]   ;;  %s5437_s3 = inlined_call_operand.hbm [shape: f32[1,512], index: 3, kind: input, shape index: {}]   ;;  %s5438_s4 = inlined_call_operand.hbm [shape: bf16[8,512], index: 4, kind: output, shape index: {}]  }
   0x1   :  { %11 = vsyncpa [#allocation4 + $0x1], 0 }
   0x2   :  { %12 = vsyncpa [#allocation7], 0 }
   0x3   :  { %14 = vsyncpa [#allocation7 + $0x1], 0 }
   0x4   :  { %15 = vsyncpa [#allocation10], 0 }
   0x5   :  { %16 = vsyncpa [#allocation5], 0  ;;  %s4751_s15 = smov 0   ;;  %s4753_s16 = smov 0  }
   0x6   :  { %s4755_s17 = smov 0   ;;  %s4757_s18 = smov 0  }
   0x7   :  { %s4759_s19 = smov 0   ;;  %s4761_s20 = smov 0  }
   0x8 LB: > { %s4780_s21 = sadd.s32 4294967295, %s4717_s20   ;;  %p56_p0 = scmp.ne.s32.totalorder %s4701_s16, %s4697_s15  ;;  %s4717_s20 = sphi %s4761_s20, %s22_s20   ;;  %s4713_s19 = sphi %s4759_s19, %s5456_s19   ;;  %s4709_s18 = sphi %s4757_s18, %s5455_s18   ;;  %s4705_s17 = sphi %s4755_s17, %s5454_s17   ;;  %s4701_s16 = sphi %s4753_s16, %s5453_s16   ;;  %s4697_s15 = sphi %s4751_s15, %s5452_s15  }
   0x9   : > { %p5439_p1 = scmp.eq.s32.totalorder %s4780_s21, 0  ;;  %p3366_p2 = scmp.ge.s32.totalorder %s4717_s20, 1 }
   0xa   : > { %p161_p3 = scmp.lt.s32.totalorder %s4717_s20, 4  ;;  %s4719_s24 = smov [#allocation8]  }
   0xb   : > { %p4788_p4 = por %p5439_p1, %p56_p0  ;;  %s174_s25 = sshll.u32 %s4719_s24, 4  ;;  %s175_s25 = int_to_ptr.vmem [resolvable:$true] %s174_s25 }
   0xc   : > { %p4792_p5 = pnand %p3366_p2, %p161_p3  ;;  %s4720_s26 = smov [#allocation9]  }
   0xd   : > { %s5442_s22 = scalar_select %p4788_p4, 1, 0 }
   0xe   : > { %s5443_s23 = scalar_select %p4792_p5, 1, 0 }
   0xf   : > { %p3847_p6 = pneg %p4792_p5  ;;  %s185_s27 = sshll.u32 %s4720_s26, 4  ;;  %s4804_s27 = int_to_ptr.vmem [resolvable:$true] %s185_s27 }
  0x10   : > { %s4509_s5 = scalar_lea.hbm %s5436_s2, 64 }
  0x11   : > { %p4800_p7 = pnand %p3847_p6, %p5439_p1  ;;  %p4510_p8 = scmp.ne.s32.totalorder %s5436_s2, %s4509_s5 }
  0x12   : > { %p4516_p12 = scmp.lt.u32.totalorder %s4509_s5, %s5436_s2 }
  0x13   : > { %p4511_p9 = pneg %p4800_p7 }
  0x15   : > { %p4512_p10 = pnand %p4511_p9, %p4510_p8 }
  0x17   : > { %p4513_p11 = pneg %p4512_p10 }
  0x19   : > { %p4518_p13 = pnand %p4516_p12, %p4513_p11 }
  0x1b   : > { %4521 = shalt.err (!%p4518_p13)
}
  0x1c   : > { %s4522_s10 = scalar_lea.vmem %s175_s25, 64  ;;  %p4530_p6 = scmp.lt.s32.totalorder %s175_s25, %s175_s25 }
  0x1d   : > { %p4523_p0 = scmp.ne.s32.totalorder %s175_s25, %s4522_s10  ;;  %p4531_p1 = scmp.lt.s32.totalorder %s4522_s10, %s4522_s10 }
  0x1f   : > { %p4525_p2 = pnand %p4523_p0, %p4511_p9  ;;  %p4532_p4 = por %p4531_p1, %p4530_p6 }
  0x21   : > { %p4526_p3 = pneg %p4525_p2 }
  0x23   : > { %p4533_p5 = pnand %p4532_p4, %p4526_p3 }
  0x25   : > { %4536 = shalt.err (!%p4533_p5)
}
  0x26   : > { %3850 = dma.hbm_to_vmem [thread:$0]  (!%p4800_p7), %s5436_s2, 64, %s175_s25, [#allocation7]  }
  0x27   : > { %s4537_s15 = scalar_lea.hbm %s5437_s3, 64 }
  0x28   : > { %p4538_p8 = scmp.ne.s32.totalorder %s5437_s3, %s4537_s15  ;;  %p4544_p5 = scmp.lt.u32.totalorder %s4537_s15, %s5437_s3 }
  0x2a   : > { %p4540_p1 = pnand %p4538_p8, %p4511_p9 }
  0x2c   : > { %p4541_p4 = pneg %p4540_p1 }
  0x2e   : > { %p4546_p10 = pnand %p4544_p5, %p4541_p4 }
  0x30   : > { %4549 = shalt.err (!%p4546_p10)
}
  0x31   : > { %s4550_s25 = scalar_lea.vmem %s4804_s27, 64  ;;  %p4558_p0 = scmp.lt.s32.totalorder %s4804_s27, %s4804_s27 }
  0x32   : > { %p4551_p11 = scmp.ne.s32.totalorder %s4804_s27, %s4550_s25  ;;  %p4559_p2 = scmp.lt.s32.totalorder %s4550_s25, %s4550_s25 }
  0x34   : > { %p4553_p12 = pnand %p4551_p11, %p4511_p9  ;;  %p4560_p3 = por %p4559_p2, %p4558_p0 }
  0x36   : > { %p4554_p13 = pneg %p4553_p12 }
  0x38   : > { %p4561_p6 = pnand %p4560_p3, %p4554_p13 }
  0x3a   : > { %4564 = shalt.err (!%p4561_p6)
}
  0x3b   : > { %3853 = dma.hbm_to_vmem [thread:$0]  (!%p4800_p7), %s5437_s3, 64, %s4804_s27, [#allocation10]  }
  0x3c   : > { %s31_s7 = sadd.s32 1, %s4713_s19  ;;  %s43_s8 = sadd.s32 1, %s4705_s17 }
  0x3d   : > { %p32_p9 = scmp.ge.s32.totalorder %s31_s7, 3  ;;  %p50_p8 = scmp.ne.s32.totalorder %s4705_s17, %s4701_s16 }
  0x3e   : > { %p51_p1 = scmp.eq.s32.totalorder %s4717_s20, 0  ;;  %p3863_p4 = scmp.lt.s32.totalorder %s4717_s20, 3 }
  0x3f   : > { %s5458_s7 = smov (%p32_p9, %s31_s7), 0  ;;  %s4862_s28 = sand.u32 1, %s4705_s17  }
  0x40   : > { %p52_p5 = por %p51_p1, %p50_p8  ;;  %s39_s9 = ssub.s32 %s4713_s19, %s5458_s7 }
  0x41   : > { %p41_p10 = scmp.eq.s32.totalorder %s39_s9, 0  ;;  %s3827_s10 = smul.u32 48, %s4862_s28 }
  0x42   : > { %s3781_s11 = smul.u32 768, %s4713_s19  ;;  %p4868_p7 = pnand %p3863_p4, %p52_p5 }
  0x43   : > { %s4873_s12 = scalar_select %p41_p10, %s4705_s17, %s43_s8  }
  0x44   : > { %s4878_s15 = scalar_lea.hbm %s5434_s0, %s3781_s11  ;;  %s200_s24 = scalar_lea.vmem [#allocation3], %s3827_s10 }
  0x45   : > { %s210_s26 = sshll.u32 %s200_s24, 4  ;;  %s3828_s29 = smul.u32 3072, %s4862_s28  ;;  %s4880_s26 = int_to_ptr.vmem [resolvable:$true] %s210_s26 }
  0x46   : > { %s197_s30 = scalar_lea.sflag [#allocation4], %s4862_s28  ;;  %s4565_s25 = scalar_lea.hbm %s4878_s15, 768 }
  0x47   : > { %p4566_p11 = scmp.ne.s32.totalorder %s4878_s15, %s4565_s25  ;;  %p4567_p12 = pneg %p4868_p7 }
  0x48   : > { %s4570_s8 = scalar_lea.hbm %s5434_s0, 2304  ;;  %p4571_p2 = scmp.lt.u32.totalorder %s4878_s15, %s5434_s0 }
  0x49   : > { %p4568_p13 = pnand %p4567_p12, %p4566_p11  ;;  %p4572_p3 = scmp.lt.u32.totalorder %s4570_s8, %s4565_s25 }
  0x4a   : > { %p4574_p9 = scmp.lt.u32.totalorder %s4565_s25, %s4878_s15 }
  0x4b   : > { %p4569_p0 = pneg %p4568_p13  ;;  %p4573_p6 = por %p4572_p3, %p4571_p2 }
  0x4d   : > { %p4575_p8 = por %p4574_p9, %p4573_p6 }
  0x4f   : > { %p4576_p1 = pnand %p4575_p8, %p4569_p0 }
  0x51   : > { %4579 = shalt.err (!%p4576_p1)
}
  0x52   : > { %s4580_s10 = scalar_lea.vmem %s4880_s26, 768  ;;  %s4721_s13 = smov [#allocation3]  }
  0x53   : > { %p4581_p4 = scmp.ne.s32.totalorder %s4880_s26, %s4580_s10  ;;  %s4585_s14 = sshll.u32 %s4721_s13, 4  ;;  %s4586_s14 = int_to_ptr.vmem [resolvable:$false] %s4585_s14 }
  0x54   : > { %s4587_s24 = scalar_lea.vmem %s4586_s14, 1536  ;;  %p4588_p11 = scmp.lt.s32.totalorder %s4880_s26, %s4586_s14 }
  0x55   : > { %p4583_p5 = pnand %p4581_p4, %p4567_p12  ;;  %p4589_p13 = scmp.lt.s32.totalorder %s4587_s24, %s4580_s10 }
  0x57   : > { %p4584_p10 = pneg %p4583_p5  ;;  %p4590_p2 = por %p4589_p13, %p4588_p11 }
  0x59   : > { %p4591_p3 = pnand %p4590_p2, %p4584_p10 }
  0x5b   : > { %4594 = shalt.err (!%p4591_p3)
}
  0x5c   : > { %3857 = dma.hbm_to_vmem [thread:$0]  (!%p4868_p7), %s4878_s15, 768, %s4880_s26, %s197_s30  }
  0x5d   : > { %s3786_s25 = smul.u32 49152, %s4713_s19  ;;  %s221_s5 = scalar_lea.vmem [#allocation6], %s3828_s29 }
  0x5e   : > { %s229_s6 = sshll.u32 %s221_s5, 4  ;;  %s217_s8 = sand.u32 1, %s4717_s20   ;;  %s4913_s6 = int_to_ptr.vmem [resolvable:$true] %s229_s6 }
  0x5f   : > { %s4918_s10 = scalar_lea.hbm %s5435_s1, %s3786_s25  ;;  %s4920_s13 = scalar_lea.sflag [#allocation7], %s217_s8 }
  0x60   : > { %s4595_s14 = scalar_lea.hbm %s4918_s10, 49152  ;;  %s4600_s26 = scalar_lea.hbm %s5435_s1, 147456 }
  0x61   : > { %p4596_p0 = scmp.ne.s32.totalorder %s4918_s10, %s4595_s14  ;;  %p4601_p8 = scmp.lt.u32.totalorder %s4918_s10, %s5435_s1 }
  0x62   : > { %p4602_p1 = scmp.lt.u32.totalorder %s4600_s26, %s4595_s14  ;;  %p4604_p5 = scmp.lt.u32.totalorder %s4595_s14, %s4918_s10 }
  0x63   : > { %p4598_p6 = pnand %p4596_p0, %p4567_p12 }
  0x64   : > { %p4603_p4 = por %p4602_p1, %p4601_p8 }
  0x65   : > { %p4599_p9 = pneg %p4598_p6 }
  0x66   : > { %p4605_p10 = por %p4604_p5, %p4603_p4 }
  0x68   : > { %p4606_p11 = pnand %p4605_p10, %p4599_p9 }
  0x6a   : > { %4609 = shalt.err (!%p4606_p11)
}
  0x6b   : > { %s4610_s24 = scalar_lea.vmem %s4913_s6, 49152  ;;  %s4722_s25 = smov [#allocation6]  }
  0x6c   : > { %p4611_p13 = scmp.ne.s32.totalorder %s4913_s6, %s4610_s24  ;;  %s4615_s5 = sshll.u32 %s4722_s25, 4  ;;  %s4616_s5 = int_to_ptr.vmem [resolvable:$false] %s4615_s5 }
  0x6d   : > { %s4617_s8 = scalar_lea.vmem %s4616_s5, 98304  ;;  %p4618_p0 = scmp.lt.s32.totalorder %s4913_s6, %s4616_s5 }
  0x6e   : > { %p4613_p2 = pnand %p4611_p13, %p4567_p12  ;;  %p4619_p6 = scmp.lt.s32.totalorder %s4617_s8, %s4610_s24 }
  0x70   : > { %p4614_p3 = pneg %p4613_p2  ;;  %p4620_p8 = por %p4619_p6, %p4618_p0 }
  0x72   : > { %p4621_p1 = pnand %p4620_p8, %p4614_p3 }
  0x74   : > { %4624 = shalt.err (!%p4621_p1)
}
  0x75   : > { %s4723_s9 = smov 256   ;;  %s4724_s11 = smov 16  }
  0x76   : > { %3860 = dma.hbm_to_vmem [thread:$0]  (!%p4868_p7), %s4918_s10, 49152, %s4913_s6, %s4920_s13, %s4723_s9, %s4723_s9, %s4724_s11  }
  0x77   : > { %p5446_p12 = scmp.ne.s32.totalorder %s5443_s23, 0 }
  0x78   : > { %s243_s14 = sand.u32 (!%p5446_p12), 1, %s4701_s16   ;;  %p5447_p9 = scmp.ne.s32.totalorder (!%p5446_p12), %s5442_s22, 0 }
  0x79   : > { %241 = sbr.rel (%p5446_p12) target bundleno = 794 (0x31a), region = 36  ;;  %s244_s15 = scalar_lea.sflag (!%p5446_p12), [#allocation4], %s243_s14 }
  0x7a   : > { %s3829_s28 = smul.u32 (!%p5446_p12), 48, %s243_s14 }
  0x7c   : > { %s4949_s26 = scalar_lea.vmem (!%p5446_p12), [#allocation3], %s3829_s28 }
  0x80   : > { %4676 = dma.done.wait (%p5447_p9), %s244_s15, 768  }
  0x81   : > { %4678 = vsyncadd (%p5447_p9), %s244_s15, 4294966528  ;;  %s252_s29 = sand.u32 1, %s4780_s21   ;;  %s3830_s27 = smul.u32 3072, %s243_s14 }
  0x82   : > { %s253_s6 = scalar_lea.sflag [#allocation7], %s252_s29 }
  0x83   : > { %s4956_s10 = scalar_lea.vmem [#allocation6], %s3830_s27 }
  0x84   : > { %4680 = dma.done.wait (%p5447_p9), %s253_s6, 49152  }
  0x85   : > { %4682 = vsyncadd (%p5447_p9), %s253_s6, 4294918144  ;;  %p5448_p7 = scmp.eq.s32.totalorder %s4780_s21, 0 }
  0x87   : > { %4684 = dma.done.wait (%p5448_p7), [#allocation7], 64   ;;  %p5449_p4 = pmov %p5448_p7 }
  0x89   : > { %4686 = vsyncadd (%p5449_p4), [#allocation7], 4294967232  ;;  %p5450_p5 = pmov %p5449_p4 }
  0x8a   : > { %p5451_p10 = pmov %p5449_p4 }
  0x8b   : > { %4688 = dma.done.wait (%p5450_p5), [#allocation10], 64  }
  0x8c   : > { %4690 = vsyncadd (%p5451_p10), [#allocation10], 4294967232  ;;  %v3921_v0 = vld [vmem:[%s4956_s10 + $0x4] ss:$16 sps:$4 sm:$0xff]   ;;  %v3923_v1 = vld [vmem:[%s4956_s10 + $0xc] ss:$16 sps:$4 sm:$0xff]  }
  0x8d   : > { %2643 = vmatprep.subr.bf16.mxu0 %v3921_v0  ;;  %v3925_v2 = vld [vmem:[%s4956_s10] ss:$16 sps:$4 sm:$0xff]   ;;  %v3926_v3 = vld [vmem:[%s4956_s10 + $0x8] ss:$16 sps:$4 sm:$0xff]   ;;  %2889 = vmatprep.subr.bf16.mxu1 %v3923_v1  ;;  %v3927_v4 = vld [vmem:[%s4956_s10 + $0x24] ss:$16 sps:$4 sm:$0xff]  }
  0x8e   : > { %2644 = vmatpush1.bf16.msra.mxu0 %v3925_v2  ;;  %2890 = vmatpush1.bf16.msra.mxu1 %v3926_v3  ;;  %v3929_v5 = vld [vmem:[%s4956_s10 + $0x2c] ss:$16 sps:$4 sm:$0xff]   ;;  %v3931_v6 = vld [vmem:[%s4956_s10 + $0x20] ss:$16 sps:$4 sm:$0xff]   ;;  %v3932_v7 = vld [vmem:[%s4956_s10 + $0x28] ss:$16 sps:$4 sm:$0xff]  }
  0x8f   : > { %2645 = vmatprep.subr.bf16.mxu0 %v3927_v4  ;;  %2891 = vmatprep.subr.bf16.mxu1 %v3929_v5  ;;  %v3933_v8 = vld [vmem:[%s4956_s10 + $0x44] ss:$16 sps:$4 sm:$0xff]   ;;  %v3935_v9 = vld [vmem:[%s4956_s10 + $0x4c] ss:$16 sps:$4 sm:$0xff]   ;;  %v3937_v10 = vld [vmem:[%s4956_s10 + $0x40] ss:$16 sps:$4 sm:$0xff]  }
  0x90   : > { %v3938_v11 = vld [vmem:[%s4956_s10 + $0x48] ss:$16 sps:$4 sm:$0xff]   ;;  %v3939_v12 = vld [vmem:[%s4956_s10 + $0x64] ss:$16 sps:$4 sm:$0xff]   ;;  %v3941_v13 = vld [vmem:[%s4956_s10 + $0x6c] ss:$16 sps:$4 sm:$0xff]  }
  0x91   : > { %v3943_v14 = vld [vmem:[%s4956_s10 + $0x60] ss:$16 sps:$4 sm:$0xff]   ;;  %v3944_v15 = vld [vmem:[%s4956_s10 + $0x68] ss:$16 sps:$4 sm:$0xff]   ;;  %v3945_v16 = vld [vmem:[%s4956_s10 + $0x84] ss:$16 sps:$4 sm:$0xff]  }
  0x92   : > { %2646 = vmatpush1.bf16.msra.mxu0 %v3931_v6  ;;  %2892 = vmatpush1.bf16.msra.mxu1 %v3932_v7  ;;  %v3947_v17 = vld [vmem:[%s4956_s10 + $0x8c] ss:$16 sps:$4 sm:$0xff]   ;;  %v3949_v18 = vld [vmem:[%s4956_s10 + $0x80] ss:$16 sps:$4 sm:$0xff]   ;;  %v3950_v19 = vld [vmem:[%s4956_s10 + $0x88] ss:$16 sps:$4 sm:$0xff]  }
  0x93   : > { %2647 = vmatprep.subr.bf16.mxu0 %v3933_v8  ;;  %2893 = vmatprep.subr.bf16.mxu1 %v3935_v9  ;;  %v3951_v20 = vld [vmem:[%s4956_s10 + $0xa4] ss:$16 sps:$4 sm:$0xff]   ;;  %v3953_v21 = vld [vmem:[%s4956_s10 + $0xac] ss:$16 sps:$4 sm:$0xff]   ;;  %v3955_v22 = vld [vmem:[%s4956_s10 + $0xa0] ss:$16 sps:$4 sm:$0xff]  }
  0x94   : > { %v3956_v23 = vld [vmem:[%s4956_s10 + $0xa8] ss:$16 sps:$4 sm:$0xff]   ;;  %v3957_v24 = vld [vmem:[%s4956_s10 + $0xc4] ss:$16 sps:$4 sm:$0xff]   ;;  %v3959_v25 = vld [vmem:[%s4956_s10 + $0xcc] ss:$16 sps:$4 sm:$0xff]  }
  0x95   : > { %v3961_v26 = vld [vmem:[%s4956_s10 + $0xc0] ss:$16 sps:$4 sm:$0xff]   ;;  %v3962_v27 = vld [vmem:[%s4956_s10 + $0xc8] ss:$16 sps:$4 sm:$0xff]   ;;  %v3963_v28 = vld [vmem:[%s4956_s10 + $0xe4] ss:$16 sps:$4 sm:$0xff]  }
  0x96   : > { %2648 = vmatpush1.bf16.msra.mxu0 %v3937_v10  ;;  %2894 = vmatpush1.bf16.msra.mxu1 %v3938_v11  ;;  %v3965_v29 = vld [vmem:[%s4956_s10 + $0xec] ss:$16 sps:$4 sm:$0xff]   ;;  %v3967_v30 = vld [vmem:[%s4956_s10 + $0xe0] ss:$16 sps:$4 sm:$0xff]   ;;  %v3968_v31 = vld [vmem:[%s4956_s10 + $0xe8] ss:$16 sps:$4 sm:$0xff]  }
  0x97   : > { %2649 = vmatprep.subr.bf16.mxu0 %v3939_v12  ;;  %2895 = vmatprep.subr.bf16.mxu1 %v3941_v13  ;;  %v3969_v32 = vld [vmem:[%s4956_s10 + $0x104] ss:$16 sps:$4 sm:$0xff]   ;;  %v3971_v33 = vld [vmem:[%s4956_s10 + $0x10c] ss:$16 sps:$4 sm:$0xff]   ;;  %v3973_v34 = vld [vmem:[%s4956_s10 + $0x100] ss:$16 sps:$4 sm:$0xff]  }
  0x98   : > { %v3974_v35 = vld [vmem:[%s4956_s10 + $0x108] ss:$16 sps:$4 sm:$0xff]   ;;  %v3975_v36 = vld [vmem:[%s4956_s10 + $0x124] ss:$16 sps:$4 sm:$0xff]   ;;  %v3977_v37 = vld [vmem:[%s4956_s10 + $0x12c] ss:$16 sps:$4 sm:$0xff]  }
  0x99   : > { %v3979_v38 = vld [vmem:[%s4956_s10 + $0x120] ss:$16 sps:$4 sm:$0xff]   ;;  %v3980_v39 = vld [vmem:[%s4956_s10 + $0x128] ss:$16 sps:$4 sm:$0xff]   ;;  %v3981_v40 = vld [vmem:[%s4956_s10 + $0x144] ss:$16 sps:$4 sm:$0xff]  }
  0x9a   : > { %2650 = vmatpush1.bf16.msra.mxu0 %v3943_v14  ;;  %2896 = vmatpush1.bf16.msra.mxu1 %v3944_v15  ;;  %v3983_v41 = vld [vmem:[%s4956_s10 + $0x14c] ss:$16 sps:$4 sm:$0xff]   ;;  %v3985_v42 = vld [vmem:[%s4956_s10 + $0x140] ss:$16 sps:$4 sm:$0xff]   ;;  %v3986_v43 = vld [vmem:[%s4956_s10 + $0x148] ss:$16 sps:$4 sm:$0xff]  }
  0x9b   : > { %2651 = vmatprep.subr.bf16.mxu0 %v3945_v16  ;;  %2897 = vmatprep.subr.bf16.mxu1 %v3947_v17  ;;  %v3987_v44 = vld [vmem:[%s4956_s10 + $0x164] ss:$16 sps:$4 sm:$0xff]   ;;  %v3989_v45 = vld [vmem:[%s4956_s10 + $0x16c] ss:$16 sps:$4 sm:$0xff]   ;;  %v3991_v47 = vld [vmem:[%s4956_s10 + $0x160] ss:$16 sps:$4 sm:$0xff]  }
  0x9c   : > { %v291_v46 = vld [vmem:[%s4949_s26] sm:$0xff]  ;;  %v3992_v49 = vld [vmem:[%s4956_s10 + $0x168] ss:$16 sps:$4 sm:$0xff]   ;;  %v3995_v51 = vld [vmem:[%s4956_s10 + $0x18c] ss:$16 sps:$4 sm:$0xff]   ;;  %p3772_p11 = scmp.ne.s32.totalorder %s4709_s18, 0 }
  0x9d   : > { %v3377_v48 = vcombine.high %v291_v46, %v291_v46  ;;  %v3993_v50 = vld [vmem:[%s4956_s10 + $0x184] ss:$16 sps:$4 sm:$0xff]   ;;  %v3997_v52 = vld [vmem:[%s4956_s10 + $0x180] ss:$16 sps:$4 sm:$0xff]   ;;  %v3998_v53 = vld [vmem:[%s4956_s10 + $0x188] ss:$16 sps:$4 sm:$0xff]   ;;  %v3376_v4 = vcombine.low %v291_v46, %v291_v46 }
  0x9e   : > { %2652 = vmatpush1.bf16.msra.mxu0 %v3949_v18  ;;  %2898 = vmatpush1.bf16.msra.mxu1 %v3950_v19  ;;  %v3999_v54 = vld [vmem:[%s4956_s10 + $0x1a4] ss:$16 sps:$4 sm:$0xff]   ;;  %v4001_v55 = vld [vmem:[%s4956_s10 + $0x1ac] ss:$16 sps:$4 sm:$0xff]   ;;  %v4003_v56 = vld [vmem:[%s4956_s10 + $0x1a0] ss:$16 sps:$4 sm:$0xff]  }
  0x9f   : > { %2653 = vmatprep.subr.bf16.mxu0 %v3951_v20  ;;  %2899 = vmatprep.subr.bf16.mxu1 %v3953_v21  ;;  %v4004_v57 = vld [vmem:[%s4956_s10 + $0x1a8] ss:$16 sps:$4 sm:$0xff]   ;;  %v4005_v58 = vld [vmem:[%s4956_s10 + $0x1c4] ss:$16 sps:$4 sm:$0xff]   ;;  %v4007_v59 = vld [vmem:[%s4956_s10 + $0x1cc] ss:$16 sps:$4 sm:$0xff]  }
  0xa0   : > { %2675 = vmatprep.mubr.bf16.mxu0 %v3377_v48  ;;  %2921 = vmatprep.mubr.bf16.mxu1 %v3377_v48  ;;  %v4009_v60 = vld [vmem:[%s4956_s10 + $0x1c0] ss:$16 sps:$4 sm:$0xff]   ;;  %v4010_v61 = vld [vmem:[%s4956_s10 + $0x1c8] ss:$16 sps:$4 sm:$0xff]   ;;  %v4011_v62 = vld [vmem:[%s4956_s10 + $0x1e4] ss:$16 sps:$4 sm:$0xff]  }
  0xa1   : > { %v4013_v63 = vld [vmem:[%s4956_s10 + $0x1ec] ss:$16 sps:$4 sm:$0xff]   ;;  %v4015_v0 = vld [vmem:[%s4956_s10 + $0x1e0] ss:$16 sps:$4 sm:$0xff]   ;;  %v4016_v1 = vld [vmem:[%s4956_s10 + $0x1e8] ss:$16 sps:$4 sm:$0xff]  }
  0xa2   : > { %2654 = vmatpush1.bf16.msra.mxu0 %v3955_v22  ;;  %2900 = vmatpush1.bf16.msra.mxu1 %v3956_v23  ;;  %v4021_v2 = vld [vmem:[%s4956_s10 + $0x204] ss:$16 sps:$4 sm:$0xff]   ;;  %v4024_v3 = vld [vmem:[%s4956_s10 + $0x20c] ss:$16 sps:$4 sm:$0xff]   ;;  %v4019_v5 = vld [vmem:[%s4956_s10 + $0x200] ss:$16 sps:$4 sm:$0xff]  }
  0xa3   : > { %2655 = vmatprep.subr.bf16.mxu0 %v3957_v24  ;;  %2901 = vmatprep.subr.bf16.mxu1 %v3959_v25  ;;  %v4022_v6 = vld [vmem:[%s4956_s10 + $0x208] ss:$16 sps:$4 sm:$0xff]   ;;  %v4027_v7 = vld [vmem:[%s4956_s10 + $0x224] ss:$16 sps:$4 sm:$0xff]   ;;  %v4030_v8 = vld [vmem:[%s4956_s10 + $0x22c] ss:$16 sps:$4 sm:$0xff]  }
  0xa4   : > { %v4025_v9 = vld [vmem:[%s4956_s10 + $0x220] ss:$16 sps:$4 sm:$0xff]   ;;  %v4028_v10 = vld [vmem:[%s4956_s10 + $0x228] ss:$16 sps:$4 sm:$0xff]   ;;  %v4033_v11 = vld [vmem:[%s4956_s10 + $0x244] ss:$16 sps:$4 sm:$0xff]  }
  0xa5   : > { %v4036_v12 = vld [vmem:[%s4956_s10 + $0x24c] ss:$16 sps:$4 sm:$0xff]   ;;  %v4031_v13 = vld [vmem:[%s4956_s10 + $0x240] ss:$16 sps:$4 sm:$0xff]   ;;  %v4034_v14 = vld [vmem:[%s4956_s10 + $0x248] ss:$16 sps:$4 sm:$0xff]  }
  0xa6   : > { %2656 = vmatpush1.bf16.msra.mxu0 %v3961_v26  ;;  %2902 = vmatpush1.bf16.msra.mxu1 %v3962_v27  ;;  %v4039_v15 = vld [vmem:[%s4956_s10 + $0x264] ss:$16 sps:$4 sm:$0xff]   ;;  %v4042_v16 = vld [vmem:[%s4956_s10 + $0x26c] ss:$16 sps:$4 sm:$0xff]   ;;  %v4037_v17 = vld [vmem:[%s4956_s10 + $0x260] ss:$16 sps:$4 sm:$0xff]  }
  0xa7   : > { %2657 = vmatprep.subr.bf16.mxu0 %v3963_v28  ;;  %2903 = vmatprep.subr.bf16.mxu1 %v3965_v29  ;;  %v4040_v18 = vld [vmem:[%s4956_s10 + $0x268] ss:$16 sps:$4 sm:$0xff]   ;;  %v4045_v19 = vld [vmem:[%s4956_s10 + $0x284] ss:$16 sps:$4 sm:$0xff]   ;;  %v4048_v20 = vld [vmem:[%s4956_s10 + $0x28c] ss:$16 sps:$4 sm:$0xff]  }
  0xa8   : > { %v4043_v21 = vld [vmem:[%s4956_s10 + $0x280] ss:$16 sps:$4 sm:$0xff]   ;;  %v4046_v22 = vld [vmem:[%s4956_s10 + $0x288] ss:$16 sps:$4 sm:$0xff]   ;;  %v4051_v23 = vld [vmem:[%s4956_s10 + $0x2a4] ss:$16 sps:$4 sm:$0xff]  }
  0xa9   : > { %v4054_v24 = vld [vmem:[%s4956_s10 + $0x2ac] ss:$16 sps:$4 sm:$0xff]   ;;  %v4049_v25 = vld [vmem:[%s4956_s10 + $0x2a0] ss:$16 sps:$4 sm:$0xff]   ;;  %v4052_v26 = vld [vmem:[%s4956_s10 + $0x2a8] ss:$16 sps:$4 sm:$0xff]  }
  0xaa   : > { %2658 = vmatpush1.bf16.msra.mxu0 %v3967_v30  ;;  %2904 = vmatpush1.bf16.msra.mxu1 %v3968_v31  ;;  %v4057_v27 = vld [vmem:[%s4956_s10 + $0x2c4] ss:$16 sps:$4 sm:$0xff]   ;;  %v4060_v28 = vld [vmem:[%s4956_s10 + $0x2cc] ss:$16 sps:$4 sm:$0xff]   ;;  %v4055_v31 = vld [vmem:[%s4956_s10 + $0x2c0] ss:$16 sps:$4 sm:$0xff]  }
  0xab   : > { %2659 = vmatprep.subr.bf16.mxu0 %v3969_v32  ;;  %2905 = vmatprep.subr.bf16.mxu1 %v3971_v33  ;;  %v5062_v29 = vld [vmem:[%s4949_s26 + $0x8] sm:$0xff]  ;;  %v4063_v33 = vld [vmem:[%s4956_s10 + $0x2e4] ss:$16 sps:$4 sm:$0xff]  }
  0xac   : > { %v3379_v30 = vcombine.high %v5062_v29, %v5062_v29  ;;  %v4058_v32 = vld [vmem:[%s4956_s10 + $0x2c8] ss:$16 sps:$4 sm:$0xff]   ;;  %v4084_v46 = vld [vmem:[%s4956_s10 + $0x34c] ss:$16 sps:$4 sm:$0xff]  }
  0xad   : > { %v4082_v48 = vld [vmem:[%s4956_s10 + $0x348] ss:$16 sps:$4 sm:$0xff]  }
  0xae   : > { %2660 = vmatpush1.bf16.msra.mxu0 %v3973_v34  ;;  %2906 = vmatpush1.bf16.msra.mxu1 %v3974_v35  ;;  %v4066_v34 = vld [vmem:[%s4956_s10 + $0x2ec] ss:$16 sps:$4 sm:$0xff]   ;;  %v4061_v35 = vld [vmem:[%s4956_s10 + $0x2e0] ss:$16 sps:$4 sm:$0xff]  }
  0xaf   : > { %2661 = vmatprep.subr.bf16.mxu0 %v3975_v36  ;;  %2907 = vmatprep.subr.bf16.mxu1 %v3977_v37  ;;  %v4064_v36 = vld [vmem:[%s4956_s10 + $0x2e8] ss:$16 sps:$4 sm:$0xff]   ;;  %v4069_v37 = vld [vmem:[%s4956_s10 + $0x304] ss:$16 sps:$4 sm:$0xff]  }
  0xb2   : > { %2662 = vmatpush1.bf16.msra.mxu0 %v3979_v38  ;;  %2908 = vmatpush1.bf16.msra.mxu1 %v3980_v39  ;;  %v4072_v38 = vld [vmem:[%s4956_s10 + $0x30c] ss:$16 sps:$4 sm:$0xff]   ;;  %v4067_v39 = vld [vmem:[%s4956_s10 + $0x300] ss:$16 sps:$4 sm:$0xff]  }
  0xb3   : > { %2663 = vmatprep.subr.bf16.mxu0 %v3981_v40  ;;  %2909 = vmatprep.subr.bf16.mxu1 %v3983_v41  ;;  %v4070_v40 = vld [vmem:[%s4956_s10 + $0x308] ss:$16 sps:$4 sm:$0xff]   ;;  %v4075_v41 = vld [vmem:[%s4956_s10 + $0x324] ss:$16 sps:$4 sm:$0xff]  }
  0xb6   : > { %2664 = vmatpush1.bf16.msra.mxu0 %v3985_v42  ;;  %2910 = vmatpush1.bf16.msra.mxu1 %v3986_v43  ;;  %v4078_v42 = vld [vmem:[%s4956_s10 + $0x32c] ss:$16 sps:$4 sm:$0xff]   ;;  %v4073_v43 = vld [vmem:[%s4956_s10 + $0x320] ss:$16 sps:$4 sm:$0xff]  }
  0xb7   : > { %2665 = vmatprep.subr.bf16.mxu0 %v3987_v44  ;;  %2911 = vmatprep.subr.bf16.mxu1 %v3989_v45  ;;  %v4076_v44 = vld [vmem:[%s4956_s10 + $0x328] ss:$16 sps:$4 sm:$0xff]   ;;  %v4081_v45 = vld [vmem:[%s4956_s10 + $0x344] ss:$16 sps:$4 sm:$0xff]  }
  0xba   : > { %2666 = vmatpush1.bf16.msra.mxu0 %v3991_v47  ;;  %2912 = vmatpush1.bf16.msra.mxu1 %v3992_v49  ;;  %v4079_v47 = vld [vmem:[%s4956_s10 + $0x340] ss:$16 sps:$4 sm:$0xff]   ;;  %v4087_v49 = vld [vmem:[%s4956_s10 + $0x364] ss:$16 sps:$4 sm:$0xff]  }
  0xbb   : > { %2667 = vmatprep.subr.bf16.mxu0 %v3993_v50  ;;  %2913 = vmatprep.subr.bf16.mxu1 %v3995_v51  ;;  %v4090_v50 = vld [vmem:[%s4956_s10 + $0x36c] ss:$16 sps:$4 sm:$0xff]   ;;  %v4085_v51 = vld [vmem:[%s4956_s10 + $0x360] ss:$16 sps:$4 sm:$0xff]  }
  0xbe   : > { %2668 = vmatpush1.bf16.msra.mxu0 %v3997_v52  ;;  %2914 = vmatpush1.bf16.msra.mxu1 %v3998_v53  ;;  %v4088_v52 = vld [vmem:[%s4956_s10 + $0x368] ss:$16 sps:$4 sm:$0xff]   ;;  %v4093_v53 = vld [vmem:[%s4956_s10 + $0x384] ss:$16 sps:$4 sm:$0xff]  }
  0xbf   : > { %2669 = vmatprep.subr.bf16.mxu0 %v3999_v54  ;;  %2915 = vmatprep.subr.bf16.mxu1 %v4001_v55  ;;  %v4096_v54 = vld [vmem:[%s4956_s10 + $0x38c] ss:$16 sps:$4 sm:$0xff]   ;;  %v4091_v55 = vld [vmem:[%s4956_s10 + $0x380] ss:$16 sps:$4 sm:$0xff]  }
  0xc2   : > { %2670 = vmatpush1.bf16.msra.mxu0 %v4003_v56  ;;  %2916 = vmatpush1.bf16.msra.mxu1 %v4004_v57  ;;  %v4094_v56 = vld [vmem:[%s4956_s10 + $0x388] ss:$16 sps:$4 sm:$0xff]   ;;  %v4099_v57 = vld [vmem:[%s4956_s10 + $0x3a4] ss:$16 sps:$4 sm:$0xff]  }
  0xc3   : > { %2671 = vmatprep.subr.bf16.mxu0 %v4005_v58  ;;  %2917 = vmatprep.subr.bf16.mxu1 %v4007_v59  ;;  %v4102_v58 = vld [vmem:[%s4956_s10 + $0x3ac] ss:$16 sps:$4 sm:$0xff]   ;;  %v4097_v59 = vld [vmem:[%s4956_s10 + $0x3a0] ss:$16 sps:$4 sm:$0xff]  }
  0xc6   : > { %2672 = vmatpush1.bf16.msra.mxu0 %v4009_v60  ;;  %2918 = vmatpush1.bf16.msra.mxu1 %v4010_v61  ;;  %v4100_v60 = vld [vmem:[%s4956_s10 + $0x3a8] ss:$16 sps:$4 sm:$0xff]   ;;  %v4105_v61 = vld [vmem:[%s4956_s10 + $0x3c4] ss:$16 sps:$4 sm:$0xff]  }
  0xc7   : > { %2673 = vmatprep.subr.bf16.mxu0 %v4011_v62  ;;  %2919 = vmatprep.subr.bf16.mxu1 %v4013_v63  ;;  %v4108_v62 = vld [vmem:[%s4956_s10 + $0x3cc] ss:$16 sps:$4 sm:$0xff]   ;;  %v4103_v63 = vld [vmem:[%s4956_s10 + $0x3c0] ss:$16 sps:$4 sm:$0xff]  }
  0xca   : > { %2674 = vmatpush1.bf16.msra.mxu0 %v4015_v0  ;;  %2920 = vmatpush1.bf16.msra.mxu1 %v4016_v1  ;;  %v4106_v0 = vld [vmem:[%s4956_s10 + $0x3c8] ss:$16 sps:$4 sm:$0xff]   ;;  %v4111_v1 = vld [vmem:[%s4956_s10 + $0x3e4] ss:$16 sps:$4 sm:$0xff]  }
  0xcb   : > { %2684 = vmatprep.subr.bf16.mxu0 %v4021_v2  ;;  %2930 = vmatprep.subr.bf16.mxu1 %v4024_v3  ;;  %v4114_v2 = vld [vmem:[%s4956_s10 + $0x3ec] ss:$16 sps:$4 sm:$0xff]   ;;  %v4109_v3 = vld [vmem:[%s4956_s10 + $0x3e0] ss:$16 sps:$4 sm:$0xff]  }
  0xcd   : > { %2676 = vmatmul.mubr.bf16.vlgmr.msra.gmra.mrb[0].mxu0 %v3376_v4  ;;  %2922 = vmatmul.mubr.bf16.vlgmr.msra.gmra.mrb[0].mxu1 %v3376_v4  ;;  %v4112_v4 = vld [vmem:[%s4956_s10 + $0x3e8] ss:$16 sps:$4 sm:$0xff]  }
  0xce   : > { %2685 = vmatpush1.bf16.msra.mxu0 %v4019_v5  ;;  %2931 = vmatpush1.bf16.msra.mxu1 %v4022_v6  ;;  %v4119_v5 = vld [vmem:[%s4956_s10 + $0x404] ss:$16 sps:$4 sm:$0xff]   ;;  %v4122_v6 = vld [vmem:[%s4956_s10 + $0x40c] ss:$16 sps:$4 sm:$0xff]  }
  0xcf   : > { %2686 = vmatprep.subr.bf16.mxu0 %v4027_v7  ;;  %2932 = vmatprep.subr.bf16.mxu1 %v4030_v8  ;;  %v3378_v7 = vcombine.low %v5062_v29, %v5062_v29  ;;  %v4117_v8 = vld [vmem:[%s4956_s10 + $0x400] ss:$16 sps:$4 sm:$0xff]   ;;  %v4152_v29 = vld [vmem:[%s4956_s10 + $0x4ac] ss:$16 sps:$4 sm:$0xff]  }
  0xd0   : > { %2716 = vmatprep.mubr.bf16.mxu0 %v3379_v30  ;;  %2962 = vmatprep.mubr.bf16.mxu1 %v3379_v30  ;;  %v4147_v30 = vld [vmem:[%s4956_s10 + $0x4a0] ss:$16 sps:$4 sm:$0xff]  }
  0xd2   : > { %2687 = vmatpush1.bf16.msra.mxu0 %v4025_v9  ;;  %2933 = vmatpush1.bf16.msra.mxu1 %v4028_v10  ;;  %v4120_v9 = vld [vmem:[%s4956_s10 + $0x408] ss:$16 sps:$4 sm:$0xff]   ;;  %v4125_v10 = vld [vmem:[%s4956_s10 + $0x424] ss:$16 sps:$4 sm:$0xff]  }
  0xd3   : > { %2688 = vmatprep.subr.bf16.mxu0 %v4033_v11  ;;  %2934 = vmatprep.subr.bf16.mxu1 %v4036_v12  ;;  %v5112_v11 = vld [vmem:[%s4949_s26 + $0x10] sm:$0xff]  ;;  %v4128_v12 = vld [vmem:[%s4956_s10 + $0x42c] ss:$16 sps:$4 sm:$0xff]  }
  0xd6   : > { %2689 = vmatpush1.bf16.msra.mxu0 %v4031_v13  ;;  %2935 = vmatpush1.bf16.msra.mxu1 %v4034_v14  ;;  %v3381_v13 = vcombine.high %v5112_v11, %v5112_v11  ;;  %v4123_v14 = vld [vmem:[%s4956_s10 + $0x420] ss:$16 sps:$4 sm:$0xff]  }
  0xd7   : > { %2690 = vmatprep.subr.bf16.mxu0 %v4039_v15  ;;  %2936 = vmatprep.subr.bf16.mxu1 %v4042_v16  ;;  %v4126_v15 = vld [vmem:[%s4956_s10 + $0x428] ss:$16 sps:$4 sm:$0xff]   ;;  %v4131_v16 = vld [vmem:[%s4956_s10 + $0x444] ss:$16 sps:$4 sm:$0xff]  }
  0xda   : > { %2691 = vmatpush1.bf16.msra.mxu0 %v4037_v17  ;;  %2937 = vmatpush1.bf16.msra.mxu1 %v4040_v18  ;;  %v4134_v17 = vld [vmem:[%s4956_s10 + $0x44c] ss:$16 sps:$4 sm:$0xff]   ;;  %v4129_v18 = vld [vmem:[%s4956_s10 + $0x440] ss:$16 sps:$4 sm:$0xff]  }
  0xdb   : > { %2692 = vmatprep.subr.bf16.mxu0 %v4045_v19  ;;  %2938 = vmatprep.subr.bf16.mxu1 %v4048_v20  ;;  %v4132_v19 = vld [vmem:[%s4956_s10 + $0x448] ss:$16 sps:$4 sm:$0xff]   ;;  %v4137_v20 = vld [vmem:[%s4956_s10 + $0x464] ss:$16 sps:$4 sm:$0xff]  }
  0xde   : > { %2693 = vmatpush1.bf16.msra.mxu0 %v4043_v21  ;;  %2939 = vmatpush1.bf16.msra.mxu1 %v4046_v22  ;;  %v4140_v21 = vld [vmem:[%s4956_s10 + $0x46c] ss:$16 sps:$4 sm:$0xff]   ;;  %v4135_v22 = vld [vmem:[%s4956_s10 + $0x460] ss:$16 sps:$4 sm:$0xff]  }
  0xdf   : > { %2694 = vmatprep.subr.bf16.mxu0 %v4051_v23  ;;  %2940 = vmatprep.subr.bf16.mxu1 %v4054_v24  ;;  %v4138_v23 = vld [vmem:[%s4956_s10 + $0x468] ss:$16 sps:$4 sm:$0xff]   ;;  %v4143_v24 = vld [vmem:[%s4956_s10 + $0x484] ss:$16 sps:$4 sm:$0xff]  }
  0xe2   : > { %2695 = vmatpush1.bf16.msra.mxu0 %v4049_v25  ;;  %2941 = vmatpush1.bf16.msra.mxu1 %v4052_v26  ;;  %v4146_v25 = vld [vmem:[%s4956_s10 + $0x48c] ss:$16 sps:$4 sm:$0xff]   ;;  %v4141_v26 = vld [vmem:[%s4956_s10 + $0x480] ss:$16 sps:$4 sm:$0xff]  }
  0xe3   : > { %2696 = vmatprep.subr.bf16.mxu0 %v4057_v27  ;;  %2942 = vmatprep.subr.bf16.mxu1 %v4060_v28  ;;  %v4144_v27 = vld [vmem:[%s4956_s10 + $0x488] ss:$16 sps:$4 sm:$0xff]   ;;  %v4149_v28 = vld [vmem:[%s4956_s10 + $0x4a4] ss:$16 sps:$4 sm:$0xff]  }
  0xe6   : > { %2697 = vmatpush1.bf16.msra.mxu0 %v4055_v31  ;;  %2943 = vmatpush1.bf16.msra.mxu1 %v4058_v32  ;;  %v4150_v31 = vld [vmem:[%s4956_s10 + $0x4a8] ss:$16 sps:$4 sm:$0xff]   ;;  %v4155_v32 = vld [vmem:[%s4956_s10 + $0x4c4] ss:$16 sps:$4 sm:$0xff]  }
  0xe7   : > { %2698 = vmatprep.subr.bf16.mxu0 %v4063_v33  ;;  %2944 = vmatprep.subr.bf16.mxu1 %v4066_v34  ;;  %v4158_v33 = vld [vmem:[%s4956_s10 + $0x4cc] ss:$16 sps:$4 sm:$0xff]   ;;  %v4153_v34 = vld [vmem:[%s4956_s10 + $0x4c0] ss:$16 sps:$4 sm:$0xff]  }
  0xea   : > { %2699 = vmatpush1.bf16.msra.mxu0 %v4061_v35  ;;  %2945 = vmatpush1.bf16.msra.mxu1 %v4064_v36  ;;  %v4156_v35 = vld [vmem:[%s4956_s10 + $0x4c8] ss:$16 sps:$4 sm:$0xff]   ;;  %v4161_v36 = vld [vmem:[%s4956_s10 + $0x4e4] ss:$16 sps:$4 sm:$0xff]  }
  0xeb   : > { %2700 = vmatprep.subr.bf16.mxu0 %v4069_v37  ;;  %2946 = vmatprep.subr.bf16.mxu1 %v4072_v38  ;;  %v4164_v37 = vld [vmem:[%s4956_s10 + $0x4ec] ss:$16 sps:$4 sm:$0xff]   ;;  %v4159_v38 = vld [vmem:[%s4956_s10 + $0x4e0] ss:$16 sps:$4 sm:$0xff]  }
  0xee   : > { %2701 = vmatpush1.bf16.msra.mxu0 %v4067_v39  ;;  %2947 = vmatpush1.bf16.msra.mxu1 %v4070_v40  ;;  %v4162_v39 = vld [vmem:[%s4956_s10 + $0x4e8] ss:$16 sps:$4 sm:$0xff]   ;;  %v4167_v40 = vld [vmem:[%s4956_s10 + $0x504] ss:$16 sps:$4 sm:$0xff]  }
  0xef   : > { %2702 = vmatprep.subr.bf16.mxu0 %v4075_v41  ;;  %2948 = vmatprep.subr.bf16.mxu1 %v4078_v42  ;;  %v4170_v41 = vld [vmem:[%s4956_s10 + $0x50c] ss:$16 sps:$4 sm:$0xff]   ;;  %v4165_v42 = vld [vmem:[%s4956_s10 + $0x500] ss:$16 sps:$4 sm:$0xff]  }
  0xf2   : > { %2703 = vmatpush1.bf16.msra.mxu0 %v4073_v43  ;;  %2949 = vmatpush1.bf16.msra.mxu1 %v4076_v44  ;;  %v4168_v43 = vld [vmem:[%s4956_s10 + $0x508] ss:$16 sps:$4 sm:$0xff]   ;;  %v4173_v44 = vld [vmem:[%s4956_s10 + $0x524] ss:$16 sps:$4 sm:$0xff]  }
  0xf3   : > { %2704 = vmatprep.subr.bf16.mxu0 %v4081_v45  ;;  %2950 = vmatprep.subr.bf16.mxu1 %v4084_v46  ;;  %v4176_v45 = vld [vmem:[%s4956_s10 + $0x52c] ss:$16 sps:$4 sm:$0xff]   ;;  %v4171_v46 = vld [vmem:[%s4956_s10 + $0x520] ss:$16 sps:$4 sm:$0xff]  }
  0xf6   : > { %2705 = vmatpush1.bf16.msra.mxu0 %v4079_v47  ;;  %2951 = vmatpush1.bf16.msra.mxu1 %v4082_v48  ;;  %v4174_v47 = vld [vmem:[%s4956_s10 + $0x528] ss:$16 sps:$4 sm:$0xff]   ;;  %v4179_v48 = vld [vmem:[%s4956_s10 + $0x544] ss:$16 sps:$4 sm:$0xff]  }
  0xf7   : > { %2706 = vmatprep.subr.bf16.mxu0 %v4087_v49  ;;  %2952 = vmatprep.subr.bf16.mxu1 %v4090_v50  ;;  %v4182_v49 = vld [vmem:[%s4956_s10 + $0x54c] ss:$16 sps:$4 sm:$0xff]   ;;  %v4177_v50 = vld [vmem:[%s4956_s10 + $0x540] ss:$16 sps:$4 sm:$0xff]  }
  0xfa   : > { %2707 = vmatpush1.bf16.msra.mxu0 %v4085_v51  ;;  %2953 = vmatpush1.bf16.msra.mxu1 %v4088_v52  ;;  %v4180_v51 = vld [vmem:[%s4956_s10 + $0x548] ss:$16 sps:$4 sm:$0xff]   ;;  %v4185_v52 = vld [vmem:[%s4956_s10 + $0x564] ss:$16 sps:$4 sm:$0xff]  }
  0xfb   : > { %2708 = vmatprep.subr.bf16.mxu0 %v4093_v53  ;;  %2954 = vmatprep.subr.bf16.mxu1 %v4096_v54  ;;  %v4188_v53 = vld [vmem:[%s4956_s10 + $0x56c] ss:$16 sps:$4 sm:$0xff]   ;;  %v4183_v54 = vld [vmem:[%s4956_s10 + $0x560] ss:$16 sps:$4 sm:$0xff]  }
  0xfe   : > { %2709 = vmatpush1.bf16.msra.mxu0 %v4091_v55  ;;  %2955 = vmatpush1.bf16.msra.mxu1 %v4094_v56  ;;  %v4186_v55 = vld [vmem:[%s4956_s10 + $0x568] ss:$16 sps:$4 sm:$0xff]   ;;  %v4191_v56 = vld [vmem:[%s4956_s10 + $0x584] ss:$16 sps:$4 sm:$0xff]  }
  0xff   : > { %2710 = vmatprep.subr.bf16.mxu0 %v4099_v57  ;;  %2956 = vmatprep.subr.bf16.mxu1 %v4102_v58  ;;  %v4194_v57 = vld [vmem:[%s4956_s10 + $0x58c] ss:$16 sps:$4 sm:$0xff]   ;;  %v4189_v58 = vld [vmem:[%s4956_s10 + $0x580] ss:$16 sps:$4 sm:$0xff]  }
 0x102   : > { %2711 = vmatpush1.bf16.msra.mxu0 %v4097_v59  ;;  %2957 = vmatpush1.bf16.msra.mxu1 %v4100_v60  ;;  %v4192_v59 = vld [vmem:[%s4956_s10 + $0x588] ss:$16 sps:$4 sm:$0xff]   ;;  %v4197_v60 = vld [vmem:[%s4956_s10 + $0x5a4] ss:$16 sps:$4 sm:$0xff]  }
 0x103   : > { %2712 = vmatprep.subr.bf16.mxu0 %v4105_v61  ;;  %2958 = vmatprep.subr.bf16.mxu1 %v4108_v62  ;;  %v4200_v61 = vld [vmem:[%s4956_s10 + $0x5ac] ss:$16 sps:$4 sm:$0xff]   ;;  %v4195_v62 = vld [vmem:[%s4956_s10 + $0x5a0] ss:$16 sps:$4 sm:$0xff]  }
 0x106   : > { %2713 = vmatpush1.bf16.msra.mxu0 %v4103_v63  ;;  %2959 = vmatpush1.bf16.msra.mxu1 %v4106_v0  ;;  %v4198_v63 = vld [vmem:[%s4956_s10 + $0x5a8] ss:$16 sps:$4 sm:$0xff]   ;;  %v4203_v0 = vld [vmem:[%s4956_s10 + $0x5c4] ss:$16 sps:$4 sm:$0xff]  }
 0x107   : > { %2714 = vmatprep.subr.bf16.mxu0 %v4111_v1  ;;  %2960 = vmatprep.subr.bf16.mxu1 %v4114_v2  ;;  %v4206_v1 = vld [vmem:[%s4956_s10 + $0x5cc] ss:$16 sps:$4 sm:$0xff]   ;;  %v4201_v2 = vld [vmem:[%s4956_s10 + $0x5c0] ss:$16 sps:$4 sm:$0xff]  }
 0x10a   : > { %2715 = vmatpush1.bf16.msra.mxu0 %v4109_v3  ;;  %2961 = vmatpush1.bf16.msra.mxu1 %v4112_v4  ;;  %v4204_v3 = vld [vmem:[%s4956_s10 + $0x5c8] ss:$16 sps:$4 sm:$0xff]   ;;  %v4209_v4 = vld [vmem:[%s4956_s10 + $0x5e4] ss:$16 sps:$4 sm:$0xff]  }
 0x10b   : > { %2725 = vmatprep.subr.bf16.mxu0 %v4119_v5  ;;  %2971 = vmatprep.subr.bf16.mxu1 %v4122_v6  ;;  %v4212_v5 = vld [vmem:[%s4956_s10 + $0x5ec] ss:$16 sps:$4 sm:$0xff]   ;;  %v4207_v6 = vld [vmem:[%s4956_s10 + $0x5e0] ss:$16 sps:$4 sm:$0xff]  }
 0x10d   : > { %2717 = vmatmul.mubr.bf16.vlgmr.msra.gmra.mrb[0].mxu0 %v3378_v7  ;;  %2963 = vmatmul.mubr.bf16.vlgmr.msra.gmra.mrb[0].mxu1 %v3378_v7  ;;  %v4210_v7 = vld [vmem:[%s4956_s10 + $0x5e8] ss:$16 sps:$4 sm:$0xff]  }
 0x10e   : > { %2726 = vmatpush1.bf16.msra.mxu0 %v4117_v8  ;;  %2972 = vmatpush1.bf16.msra.mxu1 %v4120_v9  ;;  %v4217_v8 = vld [vmem:[%s4956_s10 + $0x604] ss:$16 sps:$4 sm:$0xff]   ;;  %v4220_v9 = vld [vmem:[%s4956_s10 + $0x60c] ss:$16 sps:$4 sm:$0xff]  }
 0x10f   : > { %2727 = vmatprep.subr.bf16.mxu0 %v4125_v10  ;;  %2973 = vmatprep.subr.bf16.mxu1 %v4128_v12  ;;  %v4215_v10 = vld [vmem:[%s4956_s10 + $0x600] ss:$16 sps:$4 sm:$0xff]   ;;  %v3380_v12 = vcombine.low %v5112_v11, %v5112_v11 }
 0x110   : > { %2757 = vmatprep.mubr.bf16.mxu0 %v3381_v13  ;;  %3003 = vmatprep.mubr.bf16.mxu1 %v3381_v13  ;;  %v4218_v13 = vld [vmem:[%s4956_s10 + $0x608] ss:$16 sps:$4 sm:$0xff]   ;;  %v4221_v11 = vld [vmem:[%s4956_s10 + $0x620] ss:$16 sps:$4 sm:$0xff]  }
 0x112   : > { %2728 = vmatpush1.bf16.msra.mxu0 %v4123_v14  ;;  %2974 = vmatpush1.bf16.msra.mxu1 %v4126_v15  ;;  %v5182_v14 = vld [vmem:[%s4949_s26 + $0x18] sm:$0xff]  ;;  %v4223_v15 = vld [vmem:[%s4956_s10 + $0x624] ss:$16 sps:$4 sm:$0xff]  }
 0x113   : > { %2729 = vmatprep.subr.bf16.mxu0 %v4131_v16  ;;  %2975 = vmatprep.subr.bf16.mxu1 %v4134_v17  ;;  %v4226_v16 = vld [vmem:[%s4956_s10 + $0x62c] ss:$16 sps:$4 sm:$0xff]   ;;  %v3383_v17 = vcombine.high %v5182_v14, %v5182_v14 }
 0x116   : > { %2730 = vmatpush1.bf16.msra.mxu0 %v4129_v18  ;;  %2976 = vmatpush1.bf16.msra.mxu1 %v4132_v19  ;;  %v4224_v18 = vld [vmem:[%s4956_s10 + $0x628] ss:$16 sps:$4 sm:$0xff]   ;;  %v4229_v19 = vld [vmem:[%s4956_s10 + $0x644] ss:$16 sps:$4 sm:$0xff]  }
 0x117   : > { %2731 = vmatprep.subr.bf16.mxu0 %v4137_v20  ;;  %2977 = vmatprep.subr.bf16.mxu1 %v4140_v21  ;;  %v4232_v20 = vld [vmem:[%s4956_s10 + $0x64c] ss:$16 sps:$4 sm:$0xff]   ;;  %v4227_v21 = vld [vmem:[%s4956_s10 + $0x640] ss:$16 sps:$4 sm:$0xff]  }
 0x11a   : > { %2732 = vmatpush1.bf16.msra.mxu0 %v4135_v22  ;;  %2978 = vmatpush1.bf16.msra.mxu1 %v4138_v23  ;;  %v4230_v22 = vld [vmem:[%s4956_s10 + $0x648] ss:$16 sps:$4 sm:$0xff]   ;;  %v4235_v23 = vld [vmem:[%s4956_s10 + $0x664] ss:$16 sps:$4 sm:$0xff]  }
 0x11b   : > { %2733 = vmatprep.subr.bf16.mxu0 %v4143_v24  ;;  %2979 = vmatprep.subr.bf16.mxu1 %v4146_v25  ;;  %v4238_v24 = vld [vmem:[%s4956_s10 + $0x66c] ss:$16 sps:$4 sm:$0xff]   ;;  %v4233_v25 = vld [vmem:[%s4956_s10 + $0x660] ss:$16 sps:$4 sm:$0xff]  }
 0x11e   : > { %2734 = vmatpush1.bf16.msra.mxu0 %v4141_v26  ;;  %2980 = vmatpush1.bf16.msra.mxu1 %v4144_v27  ;;  %v4236_v26 = vld [vmem:[%s4956_s10 + $0x668] ss:$16 sps:$4 sm:$0xff]   ;;  %v4241_v27 = vld [vmem:[%s4956_s10 + $0x684] ss:$16 sps:$4 sm:$0xff]  }
 0x11f   : > { %2735 = vmatprep.subr.bf16.mxu0 %v4149_v28  ;;  %2981 = vmatprep.subr.bf16.mxu1 %v4152_v29  ;;  %v4244_v28 = vld [vmem:[%s4956_s10 + $0x68c] ss:$16 sps:$4 sm:$0xff]   ;;  %v4239_v29 = vld [vmem:[%s4956_s10 + $0x680] ss:$16 sps:$4 sm:$0xff]  }
 0x122   : > { %2736 = vmatpush1.bf16.msra.mxu0 %v4147_v30  ;;  %2982 = vmatpush1.bf16.msra.mxu1 %v4150_v31  ;;  %v4242_v30 = vld [vmem:[%s4956_s10 + $0x688] ss:$16 sps:$4 sm:$0xff]   ;;  %v4247_v31 = vld [vmem:[%s4956_s10 + $0x6a4] ss:$16 sps:$4 sm:$0xff]  }
 0x123   : > { %2737 = vmatprep.subr.bf16.mxu0 %v4155_v32  ;;  %2983 = vmatprep.subr.bf16.mxu1 %v4158_v33  ;;  %v4250_v32 = vld [vmem:[%s4956_s10 + $0x6ac] ss:$16 sps:$4 sm:$0xff]   ;;  %v4245_v33 = vld [vmem:[%s4956_s10 + $0x6a0] ss:$16 sps:$4 sm:$0xff]  }
 0x126   : > { %2738 = vmatpush1.bf16.msra.mxu0 %v4153_v34  ;;  %2984 = vmatpush1.bf16.msra.mxu1 %v4156_v35  ;;  %v4248_v34 = vld [vmem:[%s4956_s10 + $0x6a8] ss:$16 sps:$4 sm:$0xff]   ;;  %v4253_v35 = vld [vmem:[%s4956_s10 + $0x6c4] ss:$16 sps:$4 sm:$0xff]  }
 0x127   : > { %2739 = vmatprep.subr.bf16.mxu0 %v4161_v36  ;;  %2985 = vmatprep.subr.bf16.mxu1 %v4164_v37  ;;  %v4256_v36 = vld [vmem:[%s4956_s10 + $0x6cc] ss:$16 sps:$4 sm:$0xff]   ;;  %v4251_v37 = vld [vmem:[%s4956_s10 + $0x6c0] ss:$16 sps:$4 sm:$0xff]  }
 0x12a   : > { %2740 = vmatpush1.bf16.msra.mxu0 %v4159_v38  ;;  %2986 = vmatpush1.bf16.msra.mxu1 %v4162_v39  ;;  %v4254_v38 = vld [vmem:[%s4956_s10 + $0x6c8] ss:$16 sps:$4 sm:$0xff]   ;;  %v4259_v39 = vld [vmem:[%s4956_s10 + $0x6e4] ss:$16 sps:$4 sm:$0xff]  }
 0x12b   : > { %2741 = vmatprep.subr.bf16.mxu0 %v4167_v40  ;;  %2987 = vmatprep.subr.bf16.mxu1 %v4170_v41  ;;  %v4262_v40 = vld [vmem:[%s4956_s10 + $0x6ec] ss:$16 sps:$4 sm:$0xff]   ;;  %v4257_v41 = vld [vmem:[%s4956_s10 + $0x6e0] ss:$16 sps:$4 sm:$0xff]  }
 0x12e   : > { %2742 = vmatpush1.bf16.msra.mxu0 %v4165_v42  ;;  %2988 = vmatpush1.bf16.msra.mxu1 %v4168_v43  ;;  %v4260_v42 = vld [vmem:[%s4956_s10 + $0x6e8] ss:$16 sps:$4 sm:$0xff]   ;;  %v4265_v43 = vld [vmem:[%s4956_s10 + $0x704] ss:$16 sps:$4 sm:$0xff]  }
 0x12f   : > { %2743 = vmatprep.subr.bf16.mxu0 %v4173_v44  ;;  %2989 = vmatprep.subr.bf16.mxu1 %v4176_v45  ;;  %v4268_v44 = vld [vmem:[%s4956_s10 + $0x70c] ss:$16 sps:$4 sm:$0xff]   ;;  %v4263_v45 = vld [vmem:[%s4956_s10 + $0x700] ss:$16 sps:$4 sm:$0xff]  }
 0x132   : > { %2744 = vmatpush1.bf16.msra.mxu0 %v4171_v46  ;;  %2990 = vmatpush1.bf16.msra.mxu1 %v4174_v47  ;;  %v4266_v46 = vld [vmem:[%s4956_s10 + $0x708] ss:$16 sps:$4 sm:$0xff]   ;;  %v4271_v47 = vld [vmem:[%s4956_s10 + $0x724] ss:$16 sps:$4 sm:$0xff]  }
 0x133   : > { %2745 = vmatprep.subr.bf16.mxu0 %v4179_v48  ;;  %2991 = vmatprep.subr.bf16.mxu1 %v4182_v49  ;;  %v4274_v48 = vld [vmem:[%s4956_s10 + $0x72c] ss:$16 sps:$4 sm:$0xff]   ;;  %v4269_v49 = vld [vmem:[%s4956_s10 + $0x720] ss:$16 sps:$4 sm:$0xff]  }
 0x136   : > { %2746 = vmatpush1.bf16.msra.mxu0 %v4177_v50  ;;  %2992 = vmatpush1.bf16.msra.mxu1 %v4180_v51  ;;  %v4272_v50 = vld [vmem:[%s4956_s10 + $0x728] ss:$16 sps:$4 sm:$0xff]   ;;  %v4277_v51 = vld [vmem:[%s4956_s10 + $0x744] ss:$16 sps:$4 sm:$0xff]  }
 0x137   : > { %2747 = vmatprep.subr.bf16.mxu0 %v4185_v52  ;;  %2993 = vmatprep.subr.bf16.mxu1 %v4188_v53  ;;  %v4280_v52 = vld [vmem:[%s4956_s10 + $0x74c] ss:$16 sps:$4 sm:$0xff]   ;;  %v4275_v53 = vld [vmem:[%s4956_s10 + $0x740] ss:$16 sps:$4 sm:$0xff]  }
 0x13a   : > { %2748 = vmatpush1.bf16.msra.mxu0 %v4183_v54  ;;  %2994 = vmatpush1.bf16.msra.mxu1 %v4186_v55  ;;  %v4278_v54 = vld [vmem:[%s4956_s10 + $0x748] ss:$16 sps:$4 sm:$0xff]   ;;  %v4283_v55 = vld [vmem:[%s4956_s10 + $0x764] ss:$16 sps:$4 sm:$0xff]  }
 0x13b   : > { %2749 = vmatprep.subr.bf16.mxu0 %v4191_v56  ;;  %2995 = vmatprep.subr.bf16.mxu1 %v4194_v57  ;;  %v4286_v56 = vld [vmem:[%s4956_s10 + $0x76c] ss:$16 sps:$4 sm:$0xff]   ;;  %v4281_v57 = vld [vmem:[%s4956_s10 + $0x760] ss:$16 sps:$4 sm:$0xff]  }
 0x13e   : > { %2750 = vmatpush1.bf16.msra.mxu0 %v4189_v58  ;;  %2996 = vmatpush1.bf16.msra.mxu1 %v4192_v59  ;;  %v4284_v58 = vld [vmem:[%s4956_s10 + $0x768] ss:$16 sps:$4 sm:$0xff]   ;;  %v4289_v59 = vld [vmem:[%s4956_s10 + $0x784] ss:$16 sps:$4 sm:$0xff]  }
 0x13f   : > { %2751 = vmatprep.subr.bf16.mxu0 %v4197_v60  ;;  %2997 = vmatprep.subr.bf16.mxu1 %v4200_v61  ;;  %v4292_v60 = vld [vmem:[%s4956_s10 + $0x78c] ss:$16 sps:$4 sm:$0xff]   ;;  %v4287_v61 = vld [vmem:[%s4956_s10 + $0x780] ss:$16 sps:$4 sm:$0xff]  }
 0x142   : > { %2752 = vmatpush1.bf16.msra.mxu0 %v4195_v62  ;;  %2998 = vmatpush1.bf16.msra.mxu1 %v4198_v63  ;;  %v4290_v62 = vld [vmem:[%s4956_s10 + $0x788] ss:$16 sps:$4 sm:$0xff]   ;;  %v4295_v63 = vld [vmem:[%s4956_s10 + $0x7a4] ss:$16 sps:$4 sm:$0xff]  }
 0x143   : > { %2753 = vmatprep.subr.bf16.mxu0 %v4203_v0  ;;  %2999 = vmatprep.subr.bf16.mxu1 %v4206_v1  ;;  %v4298_v0 = vld [vmem:[%s4956_s10 + $0x7ac] ss:$16 sps:$4 sm:$0xff]   ;;  %v4293_v1 = vld [vmem:[%s4956_s10 + $0x7a0] ss:$16 sps:$4 sm:$0xff]  }
 0x146   : > { %2754 = vmatpush1.bf16.msra.mxu0 %v4201_v2  ;;  %3000 = vmatpush1.bf16.msra.mxu1 %v4204_v3  ;;  %v4296_v2 = vld [vmem:[%s4956_s10 + $0x7a8] ss:$16 sps:$4 sm:$0xff]   ;;  %v4301_v3 = vld [vmem:[%s4956_s10 + $0x7c4] ss:$16 sps:$4 sm:$0xff]  }
 0x147   : > { %2755 = vmatprep.subr.bf16.mxu0 %v4209_v4  ;;  %3001 = vmatprep.subr.bf16.mxu1 %v4212_v5  ;;  %v4304_v4 = vld [vmem:[%s4956_s10 + $0x7cc] ss:$16 sps:$4 sm:$0xff]   ;;  %v4299_v5 = vld [vmem:[%s4956_s10 + $0x7c0] ss:$16 sps:$4 sm:$0xff]  }
 0x14a   : > { %2756 = vmatpush1.bf16.msra.mxu0 %v4207_v6  ;;  %3002 = vmatpush1.bf16.msra.mxu1 %v4210_v7  ;;  %v4302_v6 = vld [vmem:[%s4956_s10 + $0x7c8] ss:$16 sps:$4 sm:$0xff]   ;;  %v4307_v7 = vld [vmem:[%s4956_s10 + $0x7e4] ss:$16 sps:$4 sm:$0xff]  }
 0x14b   : > { %2766 = vmatprep.subr.bf16.mxu0 %v4217_v8  ;;  %3012 = vmatprep.subr.bf16.mxu1 %v4220_v9  ;;  %v4310_v8 = vld [vmem:[%s4956_s10 + $0x7ec] ss:$16 sps:$4 sm:$0xff]   ;;  %v4305_v9 = vld [vmem:[%s4956_s10 + $0x7e0] ss:$16 sps:$4 sm:$0xff]  }
 0x14d   : > { %2758 = vmatmul.mubr.bf16.vlgmr.msra.gmra.mrb[0].mxu0 %v3380_v12  ;;  %3004 = vmatmul.mubr.bf16.vlgmr.msra.gmra.mrb[0].mxu1 %v3380_v12  ;;  %v4315_v12 = vld [vmem:[%s4956_s10 + $0x804] ss:$16 sps:$4 sm:$0xff]  }
 0x14e   : > { %2767 = vmatpush1.bf16.msra.mxu0 %v4215_v10  ;;  %3013 = vmatpush1.bf16.msra.mxu1 %v4218_v13  ;;  %v4308_v10 = vld [vmem:[%s4956_s10 + $0x7e8] ss:$16 sps:$4 sm:$0xff]   ;;  %v4318_v13 = vld [vmem:[%s4956_s10 + $0x80c] ss:$16 sps:$4 sm:$0xff]  }
 0x14f   : > { %2768 = vmatprep.subr.bf16.mxu0 %v4223_v15  ;;  %3014 = vmatprep.subr.bf16.mxu1 %v4226_v16  ;;  %v4313_v15 = vld [vmem:[%s4956_s10 + $0x800] ss:$16 sps:$4 sm:$0xff]   ;;  %v3382_v16 = vcombine.low %v5182_v14, %v5182_v14 }
 0x150   : > { %2798 = vmatprep.mubr.bf16.mxu0 %v3383_v17  ;;  %3044 = vmatprep.mubr.bf16.mxu1 %v3383_v17  ;;  %v5252_v17 = vld [vmem:[%s4949_s26 + $0x20] sm:$0xff] }
 0x151   : > { %v4319_v14 = vld [vmem:[%s4956_s10 + $0x820] ss:$16 sps:$4 sm:$0xff]  }
 0x152   : > { %2769 = vmatpush1.bf16.msra.mxu0 %v4221_v11  ;;  %3015 = vmatpush1.bf16.msra.mxu1 %v4224_v18  ;;  %v4316_v11 = vld [vmem:[%s4956_s10 + $0x808] ss:$16 sps:$4 sm:$0xff]   ;;  %v4321_v18 = vld [vmem:[%s4956_s10 + $0x824] ss:$16 sps:$4 sm:$0xff]  }
 0x153   : > { %2770 = vmatprep.subr.bf16.mxu0 %v4229_v19  ;;  %3016 = vmatprep.subr.bf16.mxu1 %v4232_v20  ;;  %v4324_v19 = vld [vmem:[%s4956_s10 + $0x82c] ss:$16 sps:$4 sm:$0xff]   ;;  %v3385_v20 = vcombine.high %v5252_v17, %v5252_v17 }
 0x156   : > { %2771 = vmatpush1.bf16.msra.mxu0 %v4227_v21  ;;  %3017 = vmatpush1.bf16.msra.mxu1 %v4230_v22  ;;  %v4322_v21 = vld [vmem:[%s4956_s10 + $0x828] ss:$16 sps:$4 sm:$0xff]   ;;  %v4327_v22 = vld [vmem:[%s4956_s10 + $0x844] ss:$16 sps:$4 sm:$0xff]  }
 0x157   : > { %2772 = vmatprep.subr.bf16.mxu0 %v4235_v23  ;;  %3018 = vmatprep.subr.bf16.mxu1 %v4238_v24  ;;  %v4330_v23 = vld [vmem:[%s4956_s10 + $0x84c] ss:$16 sps:$4 sm:$0xff]   ;;  %v4325_v24 = vld [vmem:[%s4956_s10 + $0x840] ss:$16 sps:$4 sm:$0xff]  }
 0x15a   : > { %2773 = vmatpush1.bf16.msra.mxu0 %v4233_v25  ;;  %3019 = vmatpush1.bf16.msra.mxu1 %v4236_v26  ;;  %v4328_v25 = vld [vmem:[%s4956_s10 + $0x848] ss:$16 sps:$4 sm:$0xff]   ;;  %v4333_v26 = vld [vmem:[%s4956_s10 + $0x864] ss:$16 sps:$4 sm:$0xff]  }
 0x15b   : > { %2774 = vmatprep.subr.bf16.mxu0 %v4241_v27  ;;  %3020 = vmatprep.subr.bf16.mxu1 %v4244_v28  ;;  %v4336_v27 = vld [vmem:[%s4956_s10 + $0x86c] ss:$16 sps:$4 sm:$0xff]   ;;  %v4331_v28 = vld [vmem:[%s4956_s10 + $0x860] ss:$16 sps:$4 sm:$0xff]  }
 0x15e   : > { %2775 = vmatpush1.bf16.msra.mxu0 %v4239_v29  ;;  %3021 = vmatpush1.bf16.msra.mxu1 %v4242_v30  ;;  %v4334_v29 = vld [vmem:[%s4956_s10 + $0x868] ss:$16 sps:$4 sm:$0xff]   ;;  %v4339_v30 = vld [vmem:[%s4956_s10 + $0x884] ss:$16 sps:$4 sm:$0xff]  }
 0x15f   : > { %2776 = vmatprep.subr.bf16.mxu0 %v4247_v31  ;;  %3022 = vmatprep.subr.bf16.mxu1 %v4250_v32  ;;  %v4342_v31 = vld [vmem:[%s4956_s10 + $0x88c] ss:$16 sps:$4 sm:$0xff]   ;;  %v4337_v32 = vld [vmem:[%s4956_s10 + $0x880] ss:$16 sps:$4 sm:$0xff]  }
 0x162   : > { %2777 = vmatpush1.bf16.msra.mxu0 %v4245_v33  ;;  %3023 = vmatpush1.bf16.msra.mxu1 %v4248_v34  ;;  %v4340_v33 = vld [vmem:[%s4956_s10 + $0x888] ss:$16 sps:$4 sm:$0xff]   ;;  %v4345_v34 = vld [vmem:[%s4956_s10 + $0x8a4] ss:$16 sps:$4 sm:$0xff]  }
 0x163   : > { %2778 = vmatprep.subr.bf16.mxu0 %v4253_v35  ;;  %3024 = vmatprep.subr.bf16.mxu1 %v4256_v36  ;;  %v4348_v35 = vld [vmem:[%s4956_s10 + $0x8ac] ss:$16 sps:$4 sm:$0xff]   ;;  %v4343_v36 = vld [vmem:[%s4956_s10 + $0x8a0] ss:$16 sps:$4 sm:$0xff]  }
 0x166   : > { %2779 = vmatpush1.bf16.msra.mxu0 %v4251_v37  ;;  %3025 = vmatpush1.bf16.msra.mxu1 %v4254_v38  ;;  %v4346_v37 = vld [vmem:[%s4956_s10 + $0x8a8] ss:$16 sps:$4 sm:$0xff]   ;;  %v4351_v38 = vld [vmem:[%s4956_s10 + $0x8c4] ss:$16 sps:$4 sm:$0xff]  }
 0x167   : > { %2780 = vmatprep.subr.bf16.mxu0 %v4259_v39  ;;  %3026 = vmatprep.subr.bf16.mxu1 %v4262_v40  ;;  %v4354_v39 = vld [vmem:[%s4956_s10 + $0x8cc] ss:$16 sps:$4 sm:$0xff]   ;;  %v4349_v40 = vld [vmem:[%s4956_s10 + $0x8c0] ss:$16 sps:$4 sm:$0xff]  }
 0x16a   : > { %2781 = vmatpush1.bf16.msra.mxu0 %v4257_v41  ;;  %3027 = vmatpush1.bf16.msra.mxu1 %v4260_v42  ;;  %v4352_v41 = vld [vmem:[%s4956_s10 + $0x8c8] ss:$16 sps:$4 sm:$0xff]   ;;  %v4357_v42 = vld [vmem:[%s4956_s10 + $0x8e4] ss:$16 sps:$4 sm:$0xff]  }
 0x16b   : > { %2782 = vmatprep.subr.bf16.mxu0 %v4265_v43  ;;  %3028 = vmatprep.subr.bf16.mxu1 %v4268_v44  ;;  %v4360_v43 = vld [vmem:[%s4956_s10 + $0x8ec] ss:$16 sps:$4 sm:$0xff]   ;;  %v4355_v44 = vld [vmem:[%s4956_s10 + $0x8e0] ss:$16 sps:$4 sm:$0xff]  }
 0x16e   : > { %2783 = vmatpush1.bf16.msra.mxu0 %v4263_v45  ;;  %3029 = vmatpush1.bf16.msra.mxu1 %v4266_v46  ;;  %v4358_v45 = vld [vmem:[%s4956_s10 + $0x8e8] ss:$16 sps:$4 sm:$0xff]   ;;  %v4363_v46 = vld [vmem:[%s4956_s10 + $0x904] ss:$16 sps:$4 sm:$0xff]  }
 0x16f   : > { %2784 = vmatprep.subr.bf16.mxu0 %v4271_v47  ;;  %3030 = vmatprep.subr.bf16.mxu1 %v4274_v48  ;;  %v4366_v47 = vld [vmem:[%s4956_s10 + $0x90c] ss:$16 sps:$4 sm:$0xff]   ;;  %v4361_v48 = vld [vmem:[%s4956_s10 + $0x900] ss:$16 sps:$4 sm:$0xff]  }
 0x172   : > { %2785 = vmatpush1.bf16.msra.mxu0 %v4269_v49  ;;  %3031 = vmatpush1.bf16.msra.mxu1 %v4272_v50  ;;  %v4364_v49 = vld [vmem:[%s4956_s10 + $0x908] ss:$16 sps:$4 sm:$0xff]   ;;  %v4369_v50 = vld [vmem:[%s4956_s10 + $0x924] ss:$16 sps:$4 sm:$0xff]  }
 0x173   : > { %2786 = vmatprep.subr.bf16.mxu0 %v4277_v51  ;;  %3032 = vmatprep.subr.bf16.mxu1 %v4280_v52  ;;  %v4372_v51 = vld [vmem:[%s4956_s10 + $0x92c] ss:$16 sps:$4 sm:$0xff]   ;;  %v4367_v52 = vld [vmem:[%s4956_s10 + $0x920] ss:$16 sps:$4 sm:$0xff]  }
 0x176   : > { %2787 = vmatpush1.bf16.msra.mxu0 %v4275_v53  ;;  %3033 = vmatpush1.bf16.msra.mxu1 %v4278_v54  ;;  %v4370_v53 = vld [vmem:[%s4956_s10 + $0x928] ss:$16 sps:$4 sm:$0xff]   ;;  %v4375_v54 = vld [vmem:[%s4956_s10 + $0x944] ss:$16 sps:$4 sm:$0xff]  }
 0x177   : > { %2788 = vmatprep.subr.bf16.mxu0 %v4283_v55  ;;  %3034 = vmatprep.subr.bf16.mxu1 %v4286_v56  ;;  %v4378_v55 = vld [vmem:[%s4956_s10 + $0x94c] ss:$16 sps:$4 sm:$0xff]   ;;  %v4373_v56 = vld [vmem:[%s4956_s10 + $0x940] ss:$16 sps:$4 sm:$0xff]  }
 0x17a   : > { %2789 = vmatpush1.bf16.msra.mxu0 %v4281_v57  ;;  %3035 = vmatpush1.bf16.msra.mxu1 %v4284_v58  ;;  %v4376_v57 = vld [vmem:[%s4956_s10 + $0x948] ss:$16 sps:$4 sm:$0xff]   ;;  %v4381_v58 = vld [vmem:[%s4956_s10 + $0x964] ss:$16 sps:$4 sm:$0xff]  }
 0x17b   : > { %2790 = vmatprep.subr.bf16.mxu0 %v4289_v59  ;;  %3036 = vmatprep.subr.bf16.mxu1 %v4292_v60  ;;  %v4384_v59 = vld [vmem:[%s4956_s10 + $0x96c] ss:$16 sps:$4 sm:$0xff]   ;;  %v4379_v60 = vld [vmem:[%s4956_s10 + $0x960] ss:$16 sps:$4 sm:$0xff]  }
 0x17e   : > { %2791 = vmatpush1.bf16.msra.mxu0 %v4287_v61  ;;  %3037 = vmatpush1.bf16.msra.mxu1 %v4290_v62  ;;  %v4382_v61 = vld [vmem:[%s4956_s10 + $0x968] ss:$16 sps:$4 sm:$0xff]   ;;  %v4387_v62 = vld [vmem:[%s4956_s10 + $0x984] ss:$16 sps:$4 sm:$0xff]  }
 0x17f   : > { %2792 = vmatprep.subr.bf16.mxu0 %v4295_v63  ;;  %3038 = vmatprep.subr.bf16.mxu1 %v4298_v0  ;;  %v4390_v63 = vld [vmem:[%s4956_s10 + $0x98c] ss:$16 sps:$4 sm:$0xff]   ;;  %v4385_v0 = vld [vmem:[%s4956_s10 + $0x980] ss:$16 sps:$4 sm:$0xff]  }
 0x182   : > { %2793 = vmatpush1.bf16.msra.mxu0 %v4293_v1  ;;  %3039 = vmatpush1.bf16.msra.mxu1 %v4296_v2  ;;  %v4388_v1 = vld [vmem:[%s4956_s10 + $0x988] ss:$16 sps:$4 sm:$0xff]   ;;  %v4393_v2 = vld [vmem:[%s4956_s10 + $0x9a4] ss:$16 sps:$4 sm:$0xff]  }
 0x183   : > { %2794 = vmatprep.subr.bf16.mxu0 %v4301_v3  ;;  %3040 = vmatprep.subr.bf16.mxu1 %v4304_v4  ;;  %v4396_v3 = vld [vmem:[%s4956_s10 + $0x9ac] ss:$16 sps:$4 sm:$0xff]   ;;  %v4391_v4 = vld [vmem:[%s4956_s10 + $0x9a0] ss:$16 sps:$4 sm:$0xff]  }
 0x186   : > { %2795 = vmatpush1.bf16.msra.mxu0 %v4299_v5  ;;  %3041 = vmatpush1.bf16.msra.mxu1 %v4302_v6  ;;  %v4394_v5 = vld [vmem:[%s4956_s10 + $0x9a8] ss:$16 sps:$4 sm:$0xff]   ;;  %v4399_v6 = vld [vmem:[%s4956_s10 + $0x9c4] ss:$16 sps:$4 sm:$0xff]  }
 0x187   : > { %2796 = vmatprep.subr.bf16.mxu0 %v4307_v7  ;;  %3042 = vmatprep.subr.bf16.mxu1 %v4310_v8  ;;  %v4402_v7 = vld [vmem:[%s4956_s10 + $0x9cc] ss:$16 sps:$4 sm:$0xff]   ;;  %v4397_v8 = vld [vmem:[%s4956_s10 + $0x9c0] ss:$16 sps:$4 sm:$0xff]  }
 0x18a   : > { %2797 = vmatpush1.bf16.msra.mxu0 %v4305_v9  ;;  %3043 = vmatpush1.bf16.msra.mxu1 %v4308_v10  ;;  %v4400_v9 = vld [vmem:[%s4956_s10 + $0x9c8] ss:$16 sps:$4 sm:$0xff]   ;;  %v4405_v10 = vld [vmem:[%s4956_s10 + $0x9e4] ss:$16 sps:$4 sm:$0xff]  }
 0x18b   : > { %2807 = vmatprep.subr.bf16.mxu0 %v4315_v12  ;;  %3053 = vmatprep.subr.bf16.mxu1 %v4318_v13  ;;  %v4408_v12 = vld [vmem:[%s4956_s10 + $0x9ec] ss:$16 sps:$4 sm:$0xff]   ;;  %v4403_v13 = vld [vmem:[%s4956_s10 + $0x9e0] ss:$16 sps:$4 sm:$0xff]  }
 0x18d   : > { %2799 = vmatmul.mubr.bf16.vlgmr.msra.gmra.mrb[0].mxu0 %v3382_v16  ;;  %3045 = vmatmul.mubr.bf16.vlgmr.msra.gmra.mrb[0].mxu1 %v3382_v16  ;;  %v4413_v16 = vld [vmem:[%s4956_s10 + $0xa04] ss:$16 sps:$4 sm:$0xff]  }
 0x18e   : > { %2808 = vmatpush1.bf16.msra.mxu0 %v4313_v15  ;;  %3054 = vmatpush1.bf16.msra.mxu1 %v4316_v11  ;;  %v4406_v15 = vld [vmem:[%s4956_s10 + $0x9e8] ss:$16 sps:$4 sm:$0xff]   ;;  %v4416_v11 = vld [vmem:[%s4956_s10 + $0xa0c] ss:$16 sps:$4 sm:$0xff]  }
 0x18f   : > { %2809 = vmatprep.subr.bf16.mxu0 %v4321_v18  ;;  %3055 = vmatprep.subr.bf16.mxu1 %v4324_v19  ;;  %v3384_v18 = vcombine.low %v5252_v17, %v5252_v17  ;;  %v5322_v19 = vld [vmem:[%s4949_s26 + $0x28] sm:$0xff]  ;;  %v4417_v17 = vld [vmem:[%s4956_s10 + $0xa20] ss:$16 sps:$4 sm:$0xff]  }
 0x190   : > { %2839 = vmatprep.mubr.bf16.mxu0 %v3385_v20  ;;  %3085 = vmatprep.mubr.bf16.mxu1 %v3385_v20  ;;  %v4411_v20 = vld [vmem:[%s4956_s10 + $0xa00] ss:$16 sps:$4 sm:$0xff]  }
 0x192   : > { %2810 = vmatpush1.bf16.msra.mxu0 %v4319_v14  ;;  %3056 = vmatpush1.bf16.msra.mxu1 %v4322_v21  ;;  %v4414_v14 = vld [vmem:[%s4956_s10 + $0xa08] ss:$16 sps:$4 sm:$0xff]   ;;  %v4419_v21 = vld [vmem:[%s4956_s10 + $0xa24] ss:$16 sps:$4 sm:$0xff]  }
 0x193   : > { %2811 = vmatprep.subr.bf16.mxu0 %v4327_v22  ;;  %3057 = vmatprep.subr.bf16.mxu1 %v4330_v23  ;;  %v4422_v22 = vld [vmem:[%s4956_s10 + $0xa2c] ss:$16 sps:$4 sm:$0xff]   ;;  %v3387_v23 = vcombine.high %v5322_v19, %v5322_v19 }
 0x196   : > { %2812 = vmatpush1.bf16.msra.mxu0 %v4325_v24  ;;  %3058 = vmatpush1.bf16.msra.mxu1 %v4328_v25  ;;  %v4420_v24 = vld [vmem:[%s4956_s10 + $0xa28] ss:$16 sps:$4 sm:$0xff]   ;;  %v4425_v25 = vld [vmem:[%s4956_s10 + $0xa44] ss:$16 sps:$4 sm:$0xff]  }
 0x197   : > { %2813 = vmatprep.subr.bf16.mxu0 %v4333_v26  ;;  %3059 = vmatprep.subr.bf16.mxu1 %v4336_v27  ;;  %v4428_v26 = vld [vmem:[%s4956_s10 + $0xa4c] ss:$16 sps:$4 sm:$0xff]   ;;  %v4423_v27 = vld [vmem:[%s4956_s10 + $0xa40] ss:$16 sps:$4 sm:$0xff]  }
 0x19a   : > { %2814 = vmatpush1.bf16.msra.mxu0 %v4331_v28  ;;  %3060 = vmatpush1.bf16.msra.mxu1 %v4334_v29  ;;  %v4426_v28 = vld [vmem:[%s4956_s10 + $0xa48] ss:$16 sps:$4 sm:$0xff]   ;;  %v4431_v29 = vld [vmem:[%s4956_s10 + $0xa64] ss:$16 sps:$4 sm:$0xff]  }
 0x19b   : > { %2815 = vmatprep.subr.bf16.mxu0 %v4339_v30  ;;  %3061 = vmatprep.subr.bf16.mxu1 %v4342_v31  ;;  %v4434_v30 = vld [vmem:[%s4956_s10 + $0xa6c] ss:$16 sps:$4 sm:$0xff]   ;;  %v4429_v31 = vld [vmem:[%s4956_s10 + $0xa60] ss:$16 sps:$4 sm:$0xff]  }
 0x19e   : > { %2816 = vmatpush1.bf16.msra.mxu0 %v4337_v32  ;;  %3062 = vmatpush1.bf16.msra.mxu1 %v4340_v33  ;;  %v4432_v32 = vld [vmem:[%s4956_s10 + $0xa68] ss:$16 sps:$4 sm:$0xff]   ;;  %v4437_v33 = vld [vmem:[%s4956_s10 + $0xa84] ss:$16 sps:$4 sm:$0xff]  }
 0x19f   : > { %2817 = vmatprep.subr.bf16.mxu0 %v4345_v34  ;;  %3063 = vmatprep.subr.bf16.mxu1 %v4348_v35  ;;  %v4440_v34 = vld [vmem:[%s4956_s10 + $0xa8c] ss:$16 sps:$4 sm:$0xff]   ;;  %v4435_v35 = vld [vmem:[%s4956_s10 + $0xa80] ss:$16 sps:$4 sm:$0xff]  }
 0x1a2   : > { %2818 = vmatpush1.bf16.msra.mxu0 %v4343_v36  ;;  %3064 = vmatpush1.bf16.msra.mxu1 %v4346_v37  ;;  %v4438_v36 = vld [vmem:[%s4956_s10 + $0xa88] ss:$16 sps:$4 sm:$0xff]   ;;  %v4443_v37 = vld [vmem:[%s4956_s10 + $0xaa4] ss:$16 sps:$4 sm:$0xff]  }
 0x1a3   : > { %2819 = vmatprep.subr.bf16.mxu0 %v4351_v38  ;;  %3065 = vmatprep.subr.bf16.mxu1 %v4354_v39  ;;  %v4446_v38 = vld [vmem:[%s4956_s10 + $0xaac] ss:$16 sps:$4 sm:$0xff]   ;;  %v4441_v39 = vld [vmem:[%s4956_s10 + $0xaa0] ss:$16 sps:$4 sm:$0xff]  }
 0x1a6   : > { %2820 = vmatpush1.bf16.msra.mxu0 %v4349_v40  ;;  %3066 = vmatpush1.bf16.msra.mxu1 %v4352_v41  ;;  %v4444_v40 = vld [vmem:[%s4956_s10 + $0xaa8] ss:$16 sps:$4 sm:$0xff]   ;;  %v4449_v41 = vld [vmem:[%s4956_s10 + $0xac4] ss:$16 sps:$4 sm:$0xff]  }
 0x1a7   : > { %2821 = vmatprep.subr.bf16.mxu0 %v4357_v42  ;;  %3067 = vmatprep.subr.bf16.mxu1 %v4360_v43  ;;  %v4452_v42 = vld [vmem:[%s4956_s10 + $0xacc] ss:$16 sps:$4 sm:$0xff]   ;;  %v4447_v43 = vld [vmem:[%s4956_s10 + $0xac0] ss:$16 sps:$4 sm:$0xff]  }
 0x1aa   : > { %2822 = vmatpush1.bf16.msra.mxu0 %v4355_v44  ;;  %3068 = vmatpush1.bf16.msra.mxu1 %v4358_v45  ;;  %v4450_v44 = vld [vmem:[%s4956_s10 + $0xac8] ss:$16 sps:$4 sm:$0xff]   ;;  %v4455_v45 = vld [vmem:[%s4956_s10 + $0xae4] ss:$16 sps:$4 sm:$0xff]  }
 0x1ab   : > { %2823 = vmatprep.subr.bf16.mxu0 %v4363_v46  ;;  %3069 = vmatprep.subr.bf16.mxu1 %v4366_v47  ;;  %v4458_v46 = vld [vmem:[%s4956_s10 + $0xaec] ss:$16 sps:$4 sm:$0xff]   ;;  %v4453_v47 = vld [vmem:[%s4956_s10 + $0xae0] ss:$16 sps:$4 sm:$0xff]  }
 0x1ae   : > { %2824 = vmatpush1.bf16.msra.mxu0 %v4361_v48  ;;  %3070 = vmatpush1.bf16.msra.mxu1 %v4364_v49  ;;  %v4456_v48 = vld [vmem:[%s4956_s10 + $0xae8] ss:$16 sps:$4 sm:$0xff]   ;;  %v4461_v49 = vld [vmem:[%s4956_s10 + $0xb04] ss:$16 sps:$4 sm:$0xff]  }
 0x1af   : > { %2825 = vmatprep.subr.bf16.mxu0 %v4369_v50  ;;  %3071 = vmatprep.subr.bf16.mxu1 %v4372_v51  ;;  %v4464_v50 = vld [vmem:[%s4956_s10 + $0xb0c] ss:$16 sps:$4 sm:$0xff]   ;;  %v4459_v51 = vld [vmem:[%s4956_s10 + $0xb00] ss:$16 sps:$4 sm:$0xff]  }
 0x1b2   : > { %2826 = vmatpush1.bf16.msra.mxu0 %v4367_v52  ;;  %3072 = vmatpush1.bf16.msra.mxu1 %v4370_v53  ;;  %v4462_v52 = vld [vmem:[%s4956_s10 + $0xb08] ss:$16 sps:$4 sm:$0xff]   ;;  %v4467_v53 = vld [vmem:[%s4956_s10 + $0xb24] ss:$16 sps:$4 sm:$0xff]  }
 0x1b3   : > { %2827 = vmatprep.subr.bf16.mxu0 %v4375_v54  ;;  %3073 = vmatprep.subr.bf16.mxu1 %v4378_v55  ;;  %v4470_v54 = vld [vmem:[%s4956_s10 + $0xb2c] ss:$16 sps:$4 sm:$0xff]   ;;  %v4465_v55 = vld [vmem:[%s4956_s10 + $0xb20] ss:$16 sps:$4 sm:$0xff]  }
 0x1b6   : > { %2828 = vmatpush1.bf16.msra.mxu0 %v4373_v56  ;;  %3074 = vmatpush1.bf16.msra.mxu1 %v4376_v57  ;;  %v4468_v56 = vld [vmem:[%s4956_s10 + $0xb28] ss:$16 sps:$4 sm:$0xff]   ;;  %v4473_v57 = vld [vmem:[%s4956_s10 + $0xb44] ss:$16 sps:$4 sm:$0xff]  }
 0x1b7   : > { %2829 = vmatprep.subr.bf16.mxu0 %v4381_v58  ;;  %3075 = vmatprep.subr.bf16.mxu1 %v4384_v59  ;;  %v4476_v58 = vld [vmem:[%s4956_s10 + $0xb4c] ss:$16 sps:$4 sm:$0xff]   ;;  %v4471_v59 = vld [vmem:[%s4956_s10 + $0xb40] ss:$16 sps:$4 sm:$0xff]  }
 0x1ba   : > { %2830 = vmatpush1.bf16.msra.mxu0 %v4379_v60  ;;  %3076 = vmatpush1.bf16.msra.mxu1 %v4382_v61  ;;  %v4474_v60 = vld [vmem:[%s4956_s10 + $0xb48] ss:$16 sps:$4 sm:$0xff]   ;;  %v4479_v61 = vld [vmem:[%s4956_s10 + $0xb64] ss:$16 sps:$4 sm:$0xff]  }
 0x1bb   : > { %2831 = vmatprep.subr.bf16.mxu0 %v4387_v62  ;;  %3077 = vmatprep.subr.bf16.mxu1 %v4390_v63  ;;  %v4482_v62 = vld [vmem:[%s4956_s10 + $0xb6c] ss:$16 sps:$4 sm:$0xff]   ;;  %v4477_v63 = vld [vmem:[%s4956_s10 + $0xb60] ss:$16 sps:$4 sm:$0xff]  }
 0x1be   : > { %2832 = vmatpush1.bf16.msra.mxu0 %v4385_v0  ;;  %3078 = vmatpush1.bf16.msra.mxu1 %v4388_v1  ;;  %v4480_v0 = vld [vmem:[%s4956_s10 + $0xb68] ss:$16 sps:$4 sm:$0xff]   ;;  %v4485_v1 = vld [vmem:[%s4956_s10 + $0xb84] ss:$16 sps:$4 sm:$0xff]  }
 0x1bf   : > { %2833 = vmatprep.subr.bf16.mxu0 %v4393_v2  ;;  %3079 = vmatprep.subr.bf16.mxu1 %v4396_v3  ;;  %v4488_v2 = vld [vmem:[%s4956_s10 + $0xb8c] ss:$16 sps:$4 sm:$0xff]   ;;  %v4483_v3 = vld [vmem:[%s4956_s10 + $0xb80] ss:$16 sps:$4 sm:$0xff]  }
 0x1c2   : > { %2834 = vmatpush1.bf16.msra.mxu0 %v4391_v4  ;;  %3080 = vmatpush1.bf16.msra.mxu1 %v4394_v5  ;;  %v4486_v4 = vld [vmem:[%s4956_s10 + $0xb88] ss:$16 sps:$4 sm:$0xff]   ;;  %v4491_v5 = vld [vmem:[%s4956_s10 + $0xba4] ss:$16 sps:$4 sm:$0xff]  }
 0x1c3   : > { %2835 = vmatprep.subr.bf16.mxu0 %v4399_v6  ;;  %3081 = vmatprep.subr.bf16.mxu1 %v4402_v7  ;;  %v4494_v6 = vld [vmem:[%s4956_s10 + $0xbac] ss:$16 sps:$4 sm:$0xff]   ;;  %v4489_v7 = vld [vmem:[%s4956_s10 + $0xba0] ss:$16 sps:$4 sm:$0xff]  }
 0x1c6   : > { %2836 = vmatpush1.bf16.msra.mxu0 %v4397_v8  ;;  %3082 = vmatpush1.bf16.msra.mxu1 %v4400_v9  ;;  %v4492_v8 = vld [vmem:[%s4956_s10 + $0xba8] ss:$16 sps:$4 sm:$0xff]   ;;  %v4497_v9 = vld [vmem:[%s4956_s10 + $0xbc4] ss:$16 sps:$4 sm:$0xff]  }
 0x1c7   : > { %2837 = vmatprep.subr.bf16.mxu0 %v4405_v10  ;;  %3083 = vmatprep.subr.bf16.mxu1 %v4408_v12  ;;  %v4500_v10 = vld [vmem:[%s4956_s10 + $0xbcc] ss:$16 sps:$4 sm:$0xff]   ;;  %v4495_v12 = vld [vmem:[%s4956_s10 + $0xbc0] ss:$16 sps:$4 sm:$0xff]  }
 0x1ca   : > { %2838 = vmatpush1.bf16.msra.mxu0 %v4403_v13  ;;  %3084 = vmatpush1.bf16.msra.mxu1 %v4406_v15  ;;  %v4498_v13 = vld [vmem:[%s4956_s10 + $0xbc8] ss:$16 sps:$4 sm:$0xff]   ;;  %v4503_v15 = vld [vmem:[%s4956_s10 + $0xbe4] ss:$16 sps:$4 sm:$0xff]  }
 0x1cb   : > { %2848 = vmatprep.subr.bf16.mxu0 %v4413_v16  ;;  %3094 = vmatprep.subr.bf16.mxu1 %v4416_v11  ;;  %v4506_v16 = vld [vmem:[%s4956_s10 + $0xbec] ss:$16 sps:$4 sm:$0xff]   ;;  %v4501_v11 = vld [vmem:[%s4956_s10 + $0xbe0] ss:$16 sps:$4 sm:$0xff]  }
 0x1cd   : > { %2840 = vmatmul.mubr.bf16.vlgmr.msra.gmra.mrb[0].mxu0 %v3384_v18  ;;  %3086 = vmatmul.mubr.bf16.vlgmr.msra.gmra.mrb[0].mxu1 %v3384_v18  ;;  %v4504_v18 = vld [vmem:[%s4956_s10 + $0xbe8] ss:$16 sps:$4 sm:$0xff]  }
 0x1ce   : > { %2849 = vmatpush1.bf16.msra.mxu0 %v4411_v20  ;;  %3095 = vmatpush1.bf16.msra.mxu1 %v4414_v14  ;;  %v3386_v20 = vcombine.low %v5322_v19, %v5322_v19 }
 0x1cf   : > { %2850 = vmatprep.subr.bf16.mxu0 %v4419_v21  ;;  %3096 = vmatprep.subr.bf16.mxu1 %v4422_v22 }
 0x1d0   : > { %2880 = vmatprep.mubr.bf16.mxu0 %v3387_v23  ;;  %3126 = vmatprep.mubr.bf16.mxu1 %v3387_v23 }
 0x1d2   : > { %2851 = vmatpush1.bf16.msra.mxu0 %v4417_v17  ;;  %3097 = vmatpush1.bf16.msra.mxu1 %v4420_v24 }
 0x1d3   : > { %2852 = vmatprep.subr.bf16.mxu0 %v4425_v25  ;;  %3098 = vmatprep.subr.bf16.mxu1 %v4428_v26 }
 0x1d6   : > { %2853 = vmatpush1.bf16.msra.mxu0 %v4423_v27  ;;  %3099 = vmatpush1.bf16.msra.mxu1 %v4426_v28 }
 0x1d7   : > { %2854 = vmatprep.subr.bf16.mxu0 %v4431_v29  ;;  %3100 = vmatprep.subr.bf16.mxu1 %v4434_v30 }
 0x1da   : > { %2855 = vmatpush1.bf16.msra.mxu0 %v4429_v31  ;;  %3101 = vmatpush1.bf16.msra.mxu1 %v4432_v32 }
 0x1db   : > { %2856 = vmatprep.subr.bf16.mxu0 %v4437_v33  ;;  %3102 = vmatprep.subr.bf16.mxu1 %v4440_v34 }
 0x1de   : > { %2857 = vmatpush1.bf16.msra.mxu0 %v4435_v35  ;;  %3103 = vmatpush1.bf16.msra.mxu1 %v4438_v36 }
 0x1df   : > { %2858 = vmatprep.subr.bf16.mxu0 %v4443_v37  ;;  %3104 = vmatprep.subr.bf16.mxu1 %v4446_v38 }
 0x1e2   : > { %2859 = vmatpush1.bf16.msra.mxu0 %v4441_v39  ;;  %3105 = vmatpush1.bf16.msra.mxu1 %v4444_v40 }
 0x1e3   : > { %2860 = vmatprep.subr.bf16.mxu0 %v4449_v41  ;;  %3106 = vmatprep.subr.bf16.mxu1 %v4452_v42 }
 0x1e6   : > { %2861 = vmatpush1.bf16.msra.mxu0 %v4447_v43  ;;  %3107 = vmatpush1.bf16.msra.mxu1 %v4450_v44 }
 0x1e7   : > { %2862 = vmatprep.subr.bf16.mxu0 %v4455_v45  ;;  %3108 = vmatprep.subr.bf16.mxu1 %v4458_v46 }
 0x1ea   : > { %2863 = vmatpush1.bf16.msra.mxu0 %v4453_v47  ;;  %3109 = vmatpush1.bf16.msra.mxu1 %v4456_v48 }
 0x1eb   : > { %2864 = vmatprep.subr.bf16.mxu0 %v4461_v49  ;;  %3110 = vmatprep.subr.bf16.mxu1 %v4464_v50 }
 0x1ee   : > { %2865 = vmatpush1.bf16.msra.mxu0 %v4459_v51  ;;  %3111 = vmatpush1.bf16.msra.mxu1 %v4462_v52 }
 0x1ef   : > { %2866 = vmatprep.subr.bf16.mxu0 %v4467_v53  ;;  %3112 = vmatprep.subr.bf16.mxu1 %v4470_v54 }
 0x1f2   : > { %2867 = vmatpush1.bf16.msra.mxu0 %v4465_v55  ;;  %3113 = vmatpush1.bf16.msra.mxu1 %v4468_v56 }
 0x1f3   : > { %2868 = vmatprep.subr.bf16.mxu0 %v4473_v57  ;;  %3114 = vmatprep.subr.bf16.mxu1 %v4476_v58 }
 0x1f6   : > { %2869 = vmatpush1.bf16.msra.mxu0 %v4471_v59  ;;  %3115 = vmatpush1.bf16.msra.mxu1 %v4474_v60 }
 0x1f7   : > { %2870 = vmatprep.subr.bf16.mxu0 %v4479_v61  ;;  %3116 = vmatprep.subr.bf16.mxu1 %v4482_v62 }
 0x1fa   : > { %2871 = vmatpush1.bf16.msra.mxu0 %v4477_v63  ;;  %3117 = vmatpush1.bf16.msra.mxu1 %v4480_v0 }
 0x1fb   : > { %2872 = vmatprep.subr.bf16.mxu0 %v4485_v1  ;;  %3118 = vmatprep.subr.bf16.mxu1 %v4488_v2 }
 0x1fe   : > { %2873 = vmatpush1.bf16.msra.mxu0 %v4483_v3  ;;  %3119 = vmatpush1.bf16.msra.mxu1 %v4486_v4 }
 0x1ff   : > { %2874 = vmatprep.subr.bf16.mxu0 %v4491_v5  ;;  %3120 = vmatprep.subr.bf16.mxu1 %v4494_v6 }
 0x202   : > { %2875 = vmatpush1.bf16.msra.mxu0 %v4489_v7  ;;  %3121 = vmatpush1.bf16.msra.mxu1 %v4492_v8 }
 0x203   : > { %2876 = vmatprep.subr.bf16.mxu0 %v4497_v9  ;;  %3122 = vmatprep.subr.bf16.mxu1 %v4500_v10 }
 0x206   : > { %2877 = vmatpush1.bf16.msra.mxu0 %v4495_v12  ;;  %3123 = vmatpush1.bf16.msra.mxu1 %v4498_v13 }
 0x207   : > { %2878 = vmatprep.subr.bf16.mxu0 %v4503_v15  ;;  %3124 = vmatprep.subr.bf16.mxu1 %v4506_v16 }
 0x20a   : > { %2879 = vmatpush1.bf16.msra.mxu0 %v4501_v11  ;;  %3125 = vmatpush1.bf16.msra.mxu1 %v4504_v18 }
 0x20d   : > { %2881 = vmatmul.mubr.bf16.vlgmr.msra.gmra.mrb[0].mxu0 %v3386_v20  ;;  %3127 = vmatmul.mubr.bf16.vlgmr.msra.gmra.mrb[0].mxu1 %v3386_v20 }
 0x2dd   : > { %3138 = sbr.rel (%p3772_p11) target bundleno = 740 (0x2e4), region = 56 }
 0x2e0   : > { %v2882_v14 = vpop.f32.mrb[0].mxu0  ;;  %v3128_v21 = vpop.f32.mrb[0].mxu1 }
 0x2e1   : > { %v2884_v22 = vpop.f32.mrb[1].mxu0  ;;  %v3130_v23 = vpop.f32.mrb[1].mxu1  ;;  %3139 = vst [vmem:[#allocation2] sm:$0xff] (!%p3772_p11), %v2882_v14  ;;  %3141 = vst [vmem:[#allocation2 + $0x10] sm:$0xff] (!%p3772_p11), %v3128_v21 }
 0x2e2   : > { %v2886_v17 = vpop.f32.mrb[2].mxu0  ;;  %v3132_v24 = vpop.f32.mrb[2].mxu1  ;;  %3140 = vst [vmem:[#allocation2 + $0x8] sm:$0xff] (!%p3772_p11), %v2884_v22  ;;  %3142 = vst [vmem:[#allocation2 + $0x18] sm:$0xff] (!%p3772_p11), %v3130_v23 }
 0x2e3   : > { %v2887_v25 = vpop.f32.mrb[3].mxu0  ;;  %v3133_v26 = vpop.f32.mrb[3].mxu1 }
 0x2e4 PF: > { %p3773_p13 = scmp.le.s32.totalorder %s4709_s18, 0 }
 0x2e6   : > { %3146 = sbr.rel (%p3773_p13) target bundleno = 749 (0x2ed), region = 60 }
 0x2e8   : > { %v3147_v19 = vld [vmem:[#allocation2] sm:$0xff] (!%p3773_p13)  ;;  %v3149_v28 = vld [vmem:[#allocation2 + $0x10] sm:$0xff] (!%p3773_p13) }
 0x2e9   : > { %v3148_v27 = vld [vmem:[#allocation2 + $0x8] sm:$0xff] (!%p3773_p13)  ;;  %v3151_v29 = vadd.f32 (!%p3773_p13), %v3147_v19, %v2882_v14  ;;  %v3153_v31 = vadd.f32 (!%p3773_p13), %v3149_v28, %v3128_v21  ;;  %v3150_v32 = vld [vmem:[#allocation2 + $0x18] sm:$0xff] (!%p3773_p13) }
 0x2ea   : > { %v3152_v30 = vadd.f32 (!%p3773_p13), %v3148_v27, %v2884_v22  ;;  %v3154_v33 = vadd.f32 (!%p3773_p13), %v3150_v32, %v3130_v23 }
 0x2eb   : > { %3155 = vst [vmem:[#allocation2] sm:$0xff] (!%p3773_p13), %v3151_v29  ;;  %3157 = vst [vmem:[#allocation2 + $0x10] sm:$0xff] (!%p3773_p13), %v3153_v31 }
 0x2ec   : > { %3156 = vst [vmem:[#allocation2 + $0x8] sm:$0xff] (!%p3773_p13), %v3152_v30  ;;  %3158 = vst [vmem:[#allocation2 + $0x18] sm:$0xff] (!%p3773_p13), %v3154_v33 }
 0x2ed PF: > { %p3774_p2 = scmp.ne.s32.totalorder %s4709_s18, 2 }
 0x2ee   : > { %v3169_v34 = vlaneseq (!%p3774_p2)  ;;  %v3167_v36 = vld [vmem:[#allocation8] sm:$0xf] (!%p3774_p2)  ;;  %v3193_v37 = vld [vmem:[#allocation9] sm:$0xf] (!%p3774_p2) }
 0x2ef   : > { %3162 = sbr.rel (%p3774_p2) target bundleno = 769 (0x301), region = 64 }
 0x2f0   : > { %v3170_v35 = vshrl.u32 (!%p3774_p2), %v3169_v34, 7 }
 0x2f2   : > { %v3171_v38 = vsub.s32 (!%p3774_p2), 0, %v3170_v35  ;;  %v3175_v39 = vsub.s32 (!%p3774_p2), 1, %v3170_v35  ;;  %v3179_v40 = vsub.s32 (!%p3774_p2), 2, %v3170_v35  ;;  %v3183_v41 = vsub.s32 (!%p3774_p2), 3, %v3170_v35  ;;  %v3163_v42 = vld [vmem:[#allocation2] sm:$0xff] (!%p3774_p2)  ;;  %v3165_v48 = vld [vmem:[#allocation2 + $0x10] sm:$0xff] (!%p3774_p2) }
 0x2f3   : > { %v3164_v43 = vld [vmem:[#allocation2 + $0x8] sm:$0xff] (!%p3774_p2)  ;;  %v3166_v49 = vld [vmem:[#allocation2 + $0x18] sm:$0xff] (!%p3774_p2) }
 0x2f4   : > { %v3172_v44 = vrot.slane (!%p3774_p2), %v3167_v36, %v3171_v38  ;;  %v3176_v45 = vrot.slane (!%p3774_p2), %v3167_v36, %v3175_v39  ;;  %v3198_v46 = vrot.slane (!%p3774_p2), %v3193_v37, %v3171_v38  ;;  %v3202_v47 = vrot.slane (!%p3774_p2), %v3193_v37, %v3175_v39 }
 0x2f5   : > { %v3180_v50 = vrot.slane (!%p3774_p2), %v3167_v36, %v3179_v40  ;;  %v3184_v51 = vrot.slane (!%p3774_p2), %v3167_v36, %v3183_v41  ;;  %v3206_v52 = vrot.slane (!%p3774_p2), %v3193_v37, %v3179_v40  ;;  %v3210_v53 = vrot.slane (!%p3774_p2), %v3193_v37, %v3183_v41 }
 0x2f6   : > { %v3189_v54 = vmul.f32 %v3172_v44, %v3163_v42  ;;  %v3190_v55 = vmul.f32 %v3176_v45, %v3164_v43 }
 0x2f7   : > { %v3191_v56 = vmul.f32 %v3180_v50, %v3165_v48  ;;  %v3192_v57 = vmul.f32 %v3184_v51, %v3166_v49 }
 0x2f8   : > { %v3215_v58 = vadd.f32 %v3198_v46, %v3189_v54  ;;  %v3216_v59 = vadd.f32 %v3202_v47, %v3190_v55 }
 0x2f9   : > { %v3217_v60 = vadd.f32 %v3206_v52, %v3191_v56  ;;  %v3218_v61 = vadd.f32 %v3210_v53, %v3192_v57 }
 0x2fa   : > { %vm3219_vm0 = vcmp.ge.f32.partialorder %v3215_v58, 0.0  ;;  %vm3220_vm1 = vcmp.ge.f32.partialorder %v3216_v59, 0.0  ;;  %v3223_v62 = vmul.f32 0.2, %v3215_v58  ;;  %v3224_v63 = vmul.f32 0.2, %v3216_v59 }
 0x2fb   : > { %vm3221_vm2 = vcmp.ge.f32.partialorder %v3217_v60, 0.0  ;;  %vm3222_vm3 = vcmp.ge.f32.partialorder %v3218_v61, 0.0  ;;  %v3225_v0 = vmul.f32 0.2, %v3217_v60  ;;  %v3226_v1 = vmul.f32 0.2, %v3218_v61 }
 0x2fc   : > { %v3227_v2 = vsel %vm3219_vm0, %v3215_v58, %v3223_v62  ;;  %v3228_v3 = vsel %vm3220_vm1, %v3216_v59, %v3224_v63 }
 0x2fd   : > { %v3784_v4 = vpack.c.bf16 %v3228_v3, %v3227_v2  ;;  %v3229_v5 = vsel %vm3221_vm2, %v3217_v60, %v3225_v0  ;;  %v3230_v6 = vsel %vm3222_vm3, %v3218_v61, %v3226_v1 }
 0x2fe   : > { %v3785_v7 = vpack.c.bf16 %v3230_v6, %v3229_v5 }
 0x2ff   : > { %3247 = vst [vmem:[#allocation11] sm:$0xff] %v3784_v4 }
 0x300   : > { %3248 = vst [vmem:[#allocation11 + $0x8] sm:$0xff] %v3785_v7 }
 0x301 PF: > { %p3866_p3 = scmp.eq.s32.totalorder %s4780_s21, 2  ;;  %s4725_s18 = smov [#allocation11]  }
 0x302   : > { %s3259_s22 = sshll.u32 %s4725_s18, 4  ;;  %s3260_s22 = int_to_ptr.vmem [resolvable:$true] %s3259_s22 }
 0x303   : > { %s4625_s23 = scalar_lea.vmem %s3260_s22, 256  ;;  %p4632_p1 = scmp.lt.s32.totalorder %s3260_s22, %s3260_s22 }
 0x304   : > { %p4626_p0 = scmp.ne.s32.totalorder %s3260_s22, %s4625_s23  ;;  %p4633_p12 = scmp.lt.s32.totalorder %s4625_s23, %s4625_s23 }
 0x306   : > { %p4627_p6 = pnand %p4626_p0, %p3866_p3  ;;  %p4634_p9 = por %p4633_p12, %p4632_p1 }
 0x308   : > { %p4628_p8 = pneg %p4627_p6 }
 0x30a   : > { %p4635_p7 = pnand %p4634_p9, %p4628_p8 }
 0x30c   : > { %4638 = shalt.err (!%p4635_p7)
}
 0x30d   : > { %s4639_s24 = scalar_lea.hbm %s5438_s4, 256 }
 0x30e   : > { %p4640_p4 = scmp.ne.s32.totalorder %s5438_s4, %s4639_s24  ;;  %p4645_p11 = scmp.lt.u32.totalorder %s4639_s24, %s5438_s4 }
 0x310   : > { %p4641_p5 = pnand %p4640_p4, %p3866_p3 }
 0x312   : > { %p4642_p10 = pneg %p4641_p5 }
 0x314   : > { %p4647_p13 = pnand %p4645_p11, %p4642_p10 }
 0x316   : > { %4650 = shalt.err (!%p4647_p13)
}
 0x317   : > { %3844 = dma.vmem_to_hbm [thread:$0]  (%p3866_p3), %s3260_s22, 256, %s5438_s4, [#allocation5]  }
 0x318   : > { %4692 = dma.done.wait (%p3866_p3), [#allocation5], 256  }
 0x319   : > { %4694 = vsyncadd (%p3866_p3), [#allocation5], 4294967040 }
 0x31a PF: > { %s22_s20 = sadd.s32 1, %s4717_s20   ;;  %s5452_s15 = smov %s4701_s16 }
 0x31b   : > { %p19_p2 = scmp.ge.s32.totalorder %s22_s20, 5   ;;  %s5453_s16 = smov %s4705_s17 }
 0x31c   : > { %s5454_s17 = smov %s4873_s12  ;;  %s5455_s18 = smov %s4713_s19 }
 0x31d   : > { %s5456_s19 = smov %s5458_s7  ;;  %21 = sbr.rel (!%p19_p2) target bundleno = 8 (0x8), region = 107 }
 0x324   :  { %3272 = vsyncpa [#allocation4], 1 }
 0x325   :  { %3274 = vsyncpa [#allocation4 + $0x1], 1 }
 0x326   :  { %3275 = vsyncpa [#allocation7], 1 }
 0x327   :  { %3277 = vsyncpa [#allocation7 + $0x1], 1 }
 0x328   :  { %3278 = vsyncpa [#allocation10], 1 }
 0x329   :  { %3279 = vsyncpa [#allocation5], 1 }
 0x32a   :  { %3281 = vsyncpa [#allocation5 + $0x1], 1 }

// kernel: discriminator_forward.9
= control target key start
LH: loop header
LB: loop body
LE: loop exit
PB: predicated region body
PF: predicated region fallthrough
CT: control target
= control target key end

     0   :  { %9 = vsyncpa [#allocation4], 0  ;;  %s4405_s0 = inlined_call_operand.hbm [shape: bf16[8,2304], index: 0, kind: input, shape index: {}]   ;;  %s4406_s1 = inlined_call_operand.hbm [shape: bf16[2304,512], index: 1, kind: input, shape index: {}]   ;;  %s4407_s2 = inlined_call_operand.hbm [shape: f32[1,512], index: 2, kind: input, shape index: {}]   ;;  %s4408_s3 = inlined_call_operand.hbm [shape: f32[1,512], index: 3, kind: input, shape index: {}]   ;;  %s4409_s4 = inlined_call_operand.hbm [shape: bf16[8,512], index: 4, kind: output, shape index: {}]  }
   0x1   :  { %11 = vsyncpa [#allocation4 + $0x1], 0 }
   0x2   :  { %12 = vsyncpa [#allocation7], 0 }
   0x3   :  { %14 = vsyncpa [#allocation7 + $0x1], 0 }
   0x4   :  { %15 = vsyncpa [#allocation10], 0 }
   0x5   :  { %16 = vsyncpa [#allocation5], 0  ;;  %s3831_s15 = smov 0   ;;  %s3833_s16 = smov 0  }
   0x6   :  { %s3835_s17 = smov 0   ;;  %s3837_s18 = smov 0  }
   0x7   :  { %s3839_s19 = smov 0   ;;  %s3841_s20 = smov 0  }
   0x8 LB: > { %s3860_s21 = sadd.s32 4294967295, %s3796_s20   ;;  %p56_p0 = scmp.ne.s32.totalorder %s3780_s16, %s3776_s15  ;;  %s3796_s20 = sphi %s3841_s20, %s22_s20   ;;  %s3792_s19 = sphi %s3839_s19, %s4427_s19   ;;  %s3788_s18 = sphi %s3837_s18, %s4426_s18   ;;  %s3784_s17 = sphi %s3835_s17, %s4425_s17   ;;  %s3780_s16 = sphi %s3833_s16, %s4424_s16   ;;  %s3776_s15 = sphi %s3831_s15, %s4423_s15  }
   0x9   : > { %p4410_p1 = scmp.eq.s32.totalorder %s3860_s21, 0  ;;  %p2698_p2 = scmp.ge.s32.totalorder %s3796_s20, 1 }
   0xa   : > { %p161_p3 = scmp.lt.s32.totalorder %s3796_s20, 3  ;;  %s3798_s24 = smov [#allocation8]  }
   0xb   : > { %p3868_p4 = por %p4410_p1, %p56_p0  ;;  %s174_s25 = sshll.u32 %s3798_s24, 4  ;;  %s175_s25 = int_to_ptr.vmem [resolvable:$true] %s174_s25 }
   0xc   : > { %p3872_p5 = pnand %p2698_p2, %p161_p3  ;;  %s3799_s26 = smov [#allocation9]  }
   0xd   : > { %s4413_s22 = scalar_select %p3868_p4, 1, 0 }
   0xe   : > { %s4414_s23 = scalar_select %p3872_p5, 1, 0 }
   0xf   : > { %p3072_p6 = pneg %p3872_p5  ;;  %s185_s27 = sshll.u32 %s3799_s26, 4  ;;  %s3884_s27 = int_to_ptr.vmem [resolvable:$true] %s185_s27 }
  0x10   : > { %s3588_s5 = scalar_lea.hbm %s4407_s2, 64 }
  0x11   : > { %p3880_p7 = pnand %p3072_p6, %p4410_p1  ;;  %p3589_p8 = scmp.ne.s32.totalorder %s4407_s2, %s3588_s5 }
  0x12   : > { %p3595_p12 = scmp.lt.u32.totalorder %s3588_s5, %s4407_s2 }
  0x13   : > { %p3590_p9 = pneg %p3880_p7 }
  0x15   : > { %p3591_p10 = pnand %p3590_p9, %p3589_p8 }
  0x17   : > { %p3592_p11 = pneg %p3591_p10 }
  0x19   : > { %p3597_p13 = pnand %p3595_p12, %p3592_p11 }
  0x1b   : > { %3600 = shalt.err (!%p3597_p13)
}
  0x1c   : > { %s3601_s10 = scalar_lea.vmem %s175_s25, 64  ;;  %p3609_p6 = scmp.lt.s32.totalorder %s175_s25, %s175_s25 }
  0x1d   : > { %p3602_p0 = scmp.ne.s32.totalorder %s175_s25, %s3601_s10  ;;  %p3610_p1 = scmp.lt.s32.totalorder %s3601_s10, %s3601_s10 }
  0x1f   : > { %p3604_p2 = pnand %p3602_p0, %p3590_p9  ;;  %p3611_p4 = por %p3610_p1, %p3609_p6 }
  0x21   : > { %p3605_p3 = pneg %p3604_p2 }
  0x23   : > { %p3612_p5 = pnand %p3611_p4, %p3605_p3 }
  0x25   : > { %3615 = shalt.err (!%p3612_p5)
}
  0x26   : > { %3075 = dma.hbm_to_vmem [thread:$0]  (!%p3880_p7), %s4407_s2, 64, %s175_s25, [#allocation7]  }
  0x27   : > { %s3616_s15 = scalar_lea.hbm %s4408_s3, 64 }
  0x28   : > { %p3617_p8 = scmp.ne.s32.totalorder %s4408_s3, %s3616_s15  ;;  %p3623_p5 = scmp.lt.u32.totalorder %s3616_s15, %s4408_s3 }
  0x2a   : > { %p3619_p1 = pnand %p3617_p8, %p3590_p9 }
  0x2c   : > { %p3620_p4 = pneg %p3619_p1 }
  0x2e   : > { %p3625_p10 = pnand %p3623_p5, %p3620_p4 }
  0x30   : > { %3628 = shalt.err (!%p3625_p10)
}
  0x31   : > { %s3629_s25 = scalar_lea.vmem %s3884_s27, 64  ;;  %p3637_p0 = scmp.lt.s32.totalorder %s3884_s27, %s3884_s27 }
  0x32   : > { %p3630_p11 = scmp.ne.s32.totalorder %s3884_s27, %s3629_s25  ;;  %p3638_p2 = scmp.lt.s32.totalorder %s3629_s25, %s3629_s25 }
  0x34   : > { %p3632_p12 = pnand %p3630_p11, %p3590_p9  ;;  %p3639_p3 = por %p3638_p2, %p3637_p0 }
  0x36   : > { %p3633_p13 = pneg %p3632_p12 }
  0x38   : > { %p3640_p6 = pnand %p3639_p3, %p3633_p13 }
  0x3a   : > { %3643 = shalt.err (!%p3640_p6)
}
  0x3b   : > { %3078 = dma.hbm_to_vmem [thread:$0]  (!%p3880_p7), %s4408_s3, 64, %s3884_s27, [#allocation10]  }
  0x3c   : > { %s31_s7 = sadd.s32 1, %s3792_s19  ;;  %s43_s8 = sadd.s32 1, %s3784_s17 }
  0x3d   : > { %p32_p9 = scmp.ge.s32.totalorder %s31_s7, 2  ;;  %p50_p8 = scmp.ne.s32.totalorder %s3784_s17, %s3780_s16 }
  0x3e   : > { %p51_p1 = scmp.eq.s32.totalorder %s3796_s20, 0  ;;  %p3088_p4 = scmp.lt.s32.totalorder %s3796_s20, 2 }
  0x3f   : > { %s4429_s7 = smov (%p32_p9, %s31_s7), 0  ;;  %s3942_s28 = sand.u32 1, %s3784_s17  }
  0x40   : > { %p52_p5 = por %p51_p1, %p50_p8  ;;  %s39_s9 = ssub.s32 %s3792_s19, %s4429_s7 }
  0x41   : > { %p41_p10 = scmp.eq.s32.totalorder %s39_s9, 0  ;;  %s3052_s10 = smul.u32 36, %s3942_s28 }
  0x42   : > { %s3014_s11 = smul.u32 576, %s3792_s19  ;;  %p3948_p7 = pnand %p3088_p4, %p52_p5 }
  0x43   : > { %s3953_s12 = scalar_select %p41_p10, %s3784_s17, %s43_s8  }
  0x44   : > { %s3958_s15 = scalar_lea.hbm %s4405_s0, %s3014_s11  ;;  %s200_s24 = scalar_lea.vmem [#allocation3], %s3052_s10 }
  0x45   : > { %s210_s26 = sshll.u32 %s200_s24, 4  ;;  %s3053_s29 = smul.u32 2304, %s3942_s28  ;;  %s3960_s26 = int_to_ptr.vmem [resolvable:$true] %s210_s26 }
  0x46   : > { %s197_s30 = scalar_lea.sflag [#allocation4], %s3942_s28  ;;  %s3644_s25 = scalar_lea.hbm %s3958_s15, 576 }
  0x47   : > { %p3645_p11 = scmp.ne.s32.totalorder %s3958_s15, %s3644_s25  ;;  %p3646_p12 = pneg %p3948_p7 }
  0x48   : > { %s3649_s8 = scalar_lea.hbm %s4405_s0, 1152  ;;  %p3650_p2 = scmp.lt.u32.totalorder %s3958_s15, %s4405_s0 }
  0x49   : > { %p3647_p13 = pnand %p3646_p12, %p3645_p11  ;;  %p3651_p3 = scmp.lt.u32.totalorder %s3649_s8, %s3644_s25 }
  0x4a   : > { %p3653_p9 = scmp.lt.u32.totalorder %s3644_s25, %s3958_s15 }
  0x4b   : > { %p3648_p0 = pneg %p3647_p13  ;;  %p3652_p6 = por %p3651_p3, %p3650_p2 }
  0x4d   : > { %p3654_p8 = por %p3653_p9, %p3652_p6 }
  0x4f   : > { %p3655_p1 = pnand %p3654_p8, %p3648_p0 }
  0x51   : > { %3658 = shalt.err (!%p3655_p1)
}
  0x52   : > { %s3659_s10 = scalar_lea.vmem %s3960_s26, 576  ;;  %s3800_s13 = smov [#allocation3]  }
  0x53   : > { %p3660_p4 = scmp.ne.s32.totalorder %s3960_s26, %s3659_s10  ;;  %s3664_s14 = sshll.u32 %s3800_s13, 4  ;;  %s3665_s14 = int_to_ptr.vmem [resolvable:$false] %s3664_s14 }
  0x54   : > { %s3666_s24 = scalar_lea.vmem %s3665_s14, 1152  ;;  %p3667_p11 = scmp.lt.s32.totalorder %s3960_s26, %s3665_s14 }
  0x55   : > { %p3662_p5 = pnand %p3660_p4, %p3646_p12  ;;  %p3668_p13 = scmp.lt.s32.totalorder %s3666_s24, %s3659_s10 }
  0x57   : > { %p3663_p10 = pneg %p3662_p5  ;;  %p3669_p2 = por %p3668_p13, %p3667_p11 }
  0x59   : > { %p3670_p3 = pnand %p3669_p2, %p3663_p10 }
  0x5b   : > { %3673 = shalt.err (!%p3670_p3)
}
  0x5c   : > { %3082 = dma.hbm_to_vmem [thread:$0]  (!%p3948_p7), %s3958_s15, 576, %s3960_s26, %s197_s30  }
  0x5d   : > { %s3019_s25 = smul.u32 36864, %s3792_s19  ;;  %s221_s5 = scalar_lea.vmem [#allocation6], %s3053_s29 }
  0x5e   : > { %s229_s6 = sshll.u32 %s221_s5, 4  ;;  %s217_s8 = sand.u32 1, %s3796_s20   ;;  %s3993_s6 = int_to_ptr.vmem [resolvable:$true] %s229_s6 }
  0x5f   : > { %s3998_s10 = scalar_lea.hbm %s4406_s1, %s3019_s25  ;;  %s4000_s13 = scalar_lea.sflag [#allocation7], %s217_s8 }
  0x60   : > { %s3674_s14 = scalar_lea.hbm %s3998_s10, 36864  ;;  %s3679_s26 = scalar_lea.hbm %s4406_s1, 73728 }
  0x61   : > { %p3675_p0 = scmp.ne.s32.totalorder %s3998_s10, %s3674_s14  ;;  %p3680_p8 = scmp.lt.u32.totalorder %s3998_s10, %s4406_s1 }
  0x62   : > { %p3681_p1 = scmp.lt.u32.totalorder %s3679_s26, %s3674_s14  ;;  %p3683_p5 = scmp.lt.u32.totalorder %s3674_s14, %s3998_s10 }
  0x63   : > { %p3677_p6 = pnand %p3675_p0, %p3646_p12 }
  0x64   : > { %p3682_p4 = por %p3681_p1, %p3680_p8 }
  0x65   : > { %p3678_p9 = pneg %p3677_p6 }
  0x66   : > { %p3684_p10 = por %p3683_p5, %p3682_p4 }
  0x68   : > { %p3685_p11 = pnand %p3684_p10, %p3678_p9 }
  0x6a   : > { %3688 = shalt.err (!%p3685_p11)
}
  0x6b   : > { %s3689_s24 = scalar_lea.vmem %s3993_s6, 36864  ;;  %s3801_s25 = smov [#allocation6]  }
  0x6c   : > { %p3690_p13 = scmp.ne.s32.totalorder %s3993_s6, %s3689_s24  ;;  %s3694_s5 = sshll.u32 %s3801_s25, 4  ;;  %s3695_s5 = int_to_ptr.vmem [resolvable:$false] %s3694_s5 }
  0x6d   : > { %s3696_s8 = scalar_lea.vmem %s3695_s5, 73728  ;;  %p3697_p0 = scmp.lt.s32.totalorder %s3993_s6, %s3695_s5 }
  0x6e   : > { %p3692_p2 = pnand %p3690_p13, %p3646_p12  ;;  %p3698_p6 = scmp.lt.s32.totalorder %s3696_s8, %s3689_s24 }
  0x70   : > { %p3693_p3 = pneg %p3692_p2  ;;  %p3699_p8 = por %p3698_p6, %p3697_p0 }
  0x72   : > { %p3700_p1 = pnand %p3699_p8, %p3693_p3 }
  0x74   : > { %3703 = shalt.err (!%p3700_p1)
}
  0x75   : > { %s3802_s9 = smov 256   ;;  %s3803_s11 = smov 16  }
  0x76   : > { %3085 = dma.hbm_to_vmem [thread:$0]  (!%p3948_p7), %s3998_s10, 36864, %s3993_s6, %s4000_s13, %s3802_s9, %s3802_s9, %s3803_s11  }
  0x77   : > { %p4417_p12 = scmp.ne.s32.totalorder %s4414_s23, 0 }
  0x78   : > { %s243_s14 = sand.u32 (!%p4417_p12), 1, %s3780_s16   ;;  %p4418_p9 = scmp.ne.s32.totalorder (!%p4417_p12), %s4413_s22, 0 }
  0x79   : > { %241 = sbr.rel (%p4417_p12) target bundleno = 698 (0x2ba), region = 36  ;;  %s244_s15 = scalar_lea.sflag (!%p4417_p12), [#allocation4], %s243_s14 }
  0x7a   : > { %s3054_s28 = smul.u32 (!%p4417_p12), 36, %s243_s14 }
  0x7c   : > { %s4029_s26 = scalar_lea.vmem (!%p4417_p12), [#allocation3], %s3054_s28 }
  0x80   : > { %3755 = dma.done.wait (%p4418_p9), %s244_s15, 576  }
  0x81   : > { %3757 = vsyncadd (%p4418_p9), %s244_s15, 4294966720  ;;  %s252_s29 = sand.u32 1, %s3860_s21   ;;  %s3055_s27 = smul.u32 2304, %s243_s14 }
  0x82   : > { %s253_s6 = scalar_lea.sflag [#allocation7], %s252_s29 }
  0x83   : > { %s4036_s10 = scalar_lea.vmem [#allocation6], %s3055_s27 }
  0x84   : > { %3759 = dma.done.wait (%p4418_p9), %s253_s6, 36864  }
  0x85   : > { %3761 = vsyncadd (%p4418_p9), %s253_s6, 4294930432  ;;  %p4419_p7 = scmp.eq.s32.totalorder %s3860_s21, 0 }
  0x87   : > { %3763 = dma.done.wait (%p4419_p7), [#allocation7], 64   ;;  %p4420_p4 = pmov %p4419_p7 }
  0x89   : > { %3765 = vsyncadd (%p4420_p4), [#allocation7], 4294967232  ;;  %p4421_p5 = pmov %p4420_p4 }
  0x8a   : > { %p4422_p10 = pmov %p4420_p4 }
  0x8b   : > { %3767 = dma.done.wait (%p4421_p5), [#allocation10], 64  }
  0x8c   : > { %3769 = vsyncadd (%p4422_p10), [#allocation10], 4294967232  ;;  %v3147_v0 = vld [vmem:[%s4036_s10 + $0x4] ss:$16 sps:$4 sm:$0xff]   ;;  %v3149_v1 = vld [vmem:[%s4036_s10 + $0xc] ss:$16 sps:$4 sm:$0xff]  }
  0x8d   : > { %2057 = vmatprep.subr.bf16.mxu0 %v3147_v0  ;;  %v3151_v2 = vld [vmem:[%s4036_s10] ss:$16 sps:$4 sm:$0xff]   ;;  %v3152_v3 = vld [vmem:[%s4036_s10 + $0x8] ss:$16 sps:$4 sm:$0xff]   ;;  %2262 = vmatprep.subr.bf16.mxu1 %v3149_v1  ;;  %v3153_v4 = vld [vmem:[%s4036_s10 + $0x24] ss:$16 sps:$4 sm:$0xff]  }
  0x8e   : > { %2058 = vmatpush1.bf16.msra.mxu0 %v3151_v2  ;;  %2263 = vmatpush1.bf16.msra.mxu1 %v3152_v3  ;;  %v3155_v5 = vld [vmem:[%s4036_s10 + $0x2c] ss:$16 sps:$4 sm:$0xff]   ;;  %v3157_v6 = vld [vmem:[%s4036_s10 + $0x20] ss:$16 sps:$4 sm:$0xff]   ;;  %v3158_v7 = vld [vmem:[%s4036_s10 + $0x28] ss:$16 sps:$4 sm:$0xff]  }
  0x8f   : > { %2059 = vmatprep.subr.bf16.mxu0 %v3153_v4  ;;  %2264 = vmatprep.subr.bf16.mxu1 %v3155_v5  ;;  %v3159_v8 = vld [vmem:[%s4036_s10 + $0x44] ss:$16 sps:$4 sm:$0xff]   ;;  %v3161_v9 = vld [vmem:[%s4036_s10 + $0x4c] ss:$16 sps:$4 sm:$0xff]   ;;  %v3163_v10 = vld [vmem:[%s4036_s10 + $0x40] ss:$16 sps:$4 sm:$0xff]  }
  0x90   : > { %v3164_v11 = vld [vmem:[%s4036_s10 + $0x48] ss:$16 sps:$4 sm:$0xff]   ;;  %v3165_v12 = vld [vmem:[%s4036_s10 + $0x64] ss:$16 sps:$4 sm:$0xff]   ;;  %v3167_v13 = vld [vmem:[%s4036_s10 + $0x6c] ss:$16 sps:$4 sm:$0xff]  }
  0x91   : > { %v3169_v14 = vld [vmem:[%s4036_s10 + $0x60] ss:$16 sps:$4 sm:$0xff]   ;;  %v3170_v15 = vld [vmem:[%s4036_s10 + $0x68] ss:$16 sps:$4 sm:$0xff]   ;;  %v3171_v16 = vld [vmem:[%s4036_s10 + $0x84] ss:$16 sps:$4 sm:$0xff]  }
  0x92   : > { %2060 = vmatpush1.bf16.msra.mxu0 %v3157_v6  ;;  %2265 = vmatpush1.bf16.msra.mxu1 %v3158_v7  ;;  %v3173_v17 = vld [vmem:[%s4036_s10 + $0x8c] ss:$16 sps:$4 sm:$0xff]   ;;  %v3175_v18 = vld [vmem:[%s4036_s10 + $0x80] ss:$16 sps:$4 sm:$0xff]   ;;  %v3176_v19 = vld [vmem:[%s4036_s10 + $0x88] ss:$16 sps:$4 sm:$0xff]  }
  0x93   : > { %2061 = vmatprep.subr.bf16.mxu0 %v3159_v8  ;;  %2266 = vmatprep.subr.bf16.mxu1 %v3161_v9  ;;  %v3177_v20 = vld [vmem:[%s4036_s10 + $0xa4] ss:$16 sps:$4 sm:$0xff]   ;;  %v3179_v21 = vld [vmem:[%s4036_s10 + $0xac] ss:$16 sps:$4 sm:$0xff]   ;;  %v3181_v22 = vld [vmem:[%s4036_s10 + $0xa0] ss:$16 sps:$4 sm:$0xff]  }
  0x94   : > { %v3182_v23 = vld [vmem:[%s4036_s10 + $0xa8] ss:$16 sps:$4 sm:$0xff]   ;;  %v3183_v24 = vld [vmem:[%s4036_s10 + $0xc4] ss:$16 sps:$4 sm:$0xff]   ;;  %v3185_v25 = vld [vmem:[%s4036_s10 + $0xcc] ss:$16 sps:$4 sm:$0xff]  }
  0x95   : > { %v3187_v26 = vld [vmem:[%s4036_s10 + $0xc0] ss:$16 sps:$4 sm:$0xff]   ;;  %v3188_v27 = vld [vmem:[%s4036_s10 + $0xc8] ss:$16 sps:$4 sm:$0xff]   ;;  %v3189_v28 = vld [vmem:[%s4036_s10 + $0xe4] ss:$16 sps:$4 sm:$0xff]  }
  0x96   : > { %2062 = vmatpush1.bf16.msra.mxu0 %v3163_v10  ;;  %2267 = vmatpush1.bf16.msra.mxu1 %v3164_v11  ;;  %v3191_v29 = vld [vmem:[%s4036_s10 + $0xec] ss:$16 sps:$4 sm:$0xff]   ;;  %v3193_v30 = vld [vmem:[%s4036_s10 + $0xe0] ss:$16 sps:$4 sm:$0xff]   ;;  %v3194_v31 = vld [vmem:[%s4036_s10 + $0xe8] ss:$16 sps:$4 sm:$0xff]  }
  0x97   : > { %2063 = vmatprep.subr.bf16.mxu0 %v3165_v12  ;;  %2268 = vmatprep.subr.bf16.mxu1 %v3167_v13  ;;  %v3195_v32 = vld [vmem:[%s4036_s10 + $0x104] ss:$16 sps:$4 sm:$0xff]   ;;  %v3197_v33 = vld [vmem:[%s4036_s10 + $0x10c] ss:$16 sps:$4 sm:$0xff]   ;;  %v3199_v34 = vld [vmem:[%s4036_s10 + $0x100] ss:$16 sps:$4 sm:$0xff]  }
  0x98   : > { %v3200_v35 = vld [vmem:[%s4036_s10 + $0x108] ss:$16 sps:$4 sm:$0xff]   ;;  %v3201_v36 = vld [vmem:[%s4036_s10 + $0x124] ss:$16 sps:$4 sm:$0xff]   ;;  %v3203_v37 = vld [vmem:[%s4036_s10 + $0x12c] ss:$16 sps:$4 sm:$0xff]  }
  0x99   : > { %v3205_v38 = vld [vmem:[%s4036_s10 + $0x120] ss:$16 sps:$4 sm:$0xff]   ;;  %v3206_v39 = vld [vmem:[%s4036_s10 + $0x128] ss:$16 sps:$4 sm:$0xff]   ;;  %v3207_v40 = vld [vmem:[%s4036_s10 + $0x144] ss:$16 sps:$4 sm:$0xff]  }
  0x9a   : > { %2064 = vmatpush1.bf16.msra.mxu0 %v3169_v14  ;;  %2269 = vmatpush1.bf16.msra.mxu1 %v3170_v15  ;;  %v3209_v41 = vld [vmem:[%s4036_s10 + $0x14c] ss:$16 sps:$4 sm:$0xff]   ;;  %v3211_v42 = vld [vmem:[%s4036_s10 + $0x140] ss:$16 sps:$4 sm:$0xff]   ;;  %v3212_v43 = vld [vmem:[%s4036_s10 + $0x148] ss:$16 sps:$4 sm:$0xff]  }
  0x9b   : > { %2065 = vmatprep.subr.bf16.mxu0 %v3171_v16  ;;  %2270 = vmatprep.subr.bf16.mxu1 %v3173_v17  ;;  %v3213_v44 = vld [vmem:[%s4036_s10 + $0x164] ss:$16 sps:$4 sm:$0xff]   ;;  %v3215_v45 = vld [vmem:[%s4036_s10 + $0x16c] ss:$16 sps:$4 sm:$0xff]   ;;  %v3217_v47 = vld [vmem:[%s4036_s10 + $0x160] ss:$16 sps:$4 sm:$0xff]  }
  0x9c   : > { %v292_v46 = vld [vmem:[%s4029_s26] sm:$0xff]  ;;  %v3219_v50 = vld [vmem:[%s4036_s10 + $0x184] ss:$16 sps:$4 sm:$0xff]   ;;  %p3005_p11 = scmp.ne.s32.totalorder %s3788_s18, 0 }
  0x9d   : > { %v2709_v48 = vcombine.high %v292_v46, %v292_v46  ;;  %v3218_v49 = vld [vmem:[%s4036_s10 + $0x168] ss:$16 sps:$4 sm:$0xff]   ;;  %v3221_v51 = vld [vmem:[%s4036_s10 + $0x18c] ss:$16 sps:$4 sm:$0xff]   ;;  %v3223_v52 = vld [vmem:[%s4036_s10 + $0x180] ss:$16 sps:$4 sm:$0xff]   ;;  %v2708_v4 = vcombine.low %v292_v46, %v292_v46 }
  0x9e   : > { %2066 = vmatpush1.bf16.msra.mxu0 %v3175_v18  ;;  %2271 = vmatpush1.bf16.msra.mxu1 %v3176_v19  ;;  %v3224_v53 = vld [vmem:[%s4036_s10 + $0x188] ss:$16 sps:$4 sm:$0xff]   ;;  %v3225_v54 = vld [vmem:[%s4036_s10 + $0x1a4] ss:$16 sps:$4 sm:$0xff]   ;;  %v3227_v55 = vld [vmem:[%s4036_s10 + $0x1ac] ss:$16 sps:$4 sm:$0xff]  }
  0x9f   : > { %2067 = vmatprep.subr.bf16.mxu0 %v3177_v20  ;;  %2272 = vmatprep.subr.bf16.mxu1 %v3179_v21  ;;  %v3229_v56 = vld [vmem:[%s4036_s10 + $0x1a0] ss:$16 sps:$4 sm:$0xff]   ;;  %v3230_v57 = vld [vmem:[%s4036_s10 + $0x1a8] ss:$16 sps:$4 sm:$0xff]   ;;  %v3231_v58 = vld [vmem:[%s4036_s10 + $0x1c4] ss:$16 sps:$4 sm:$0xff]  }
  0xa0   : > { %2089 = vmatprep.mubr.bf16.mxu0 %v2709_v48  ;;  %2294 = vmatprep.mubr.bf16.mxu1 %v2709_v48  ;;  %v3233_v59 = vld [vmem:[%s4036_s10 + $0x1cc] ss:$16 sps:$4 sm:$0xff]   ;;  %v3235_v60 = vld [vmem:[%s4036_s10 + $0x1c0] ss:$16 sps:$4 sm:$0xff]   ;;  %v3236_v61 = vld [vmem:[%s4036_s10 + $0x1c8] ss:$16 sps:$4 sm:$0xff]  }
  0xa1   : > { %v3237_v62 = vld [vmem:[%s4036_s10 + $0x1e4] ss:$16 sps:$4 sm:$0xff]   ;;  %v3239_v63 = vld [vmem:[%s4036_s10 + $0x1ec] ss:$16 sps:$4 sm:$0xff]   ;;  %v3241_v0 = vld [vmem:[%s4036_s10 + $0x1e0] ss:$16 sps:$4 sm:$0xff]  }
  0xa2   : > { %2068 = vmatpush1.bf16.msra.mxu0 %v3181_v22  ;;  %2273 = vmatpush1.bf16.msra.mxu1 %v3182_v23  ;;  %v3242_v1 = vld [vmem:[%s4036_s10 + $0x1e8] ss:$16 sps:$4 sm:$0xff]   ;;  %v3247_v2 = vld [vmem:[%s4036_s10 + $0x204] ss:$16 sps:$4 sm:$0xff]   ;;  %v3250_v3 = vld [vmem:[%s4036_s10 + $0x20c] ss:$16 sps:$4 sm:$0xff]  }
  0xa3   : > { %2069 = vmatprep.subr.bf16.mxu0 %v3183_v24  ;;  %2274 = vmatprep.subr.bf16.mxu1 %v3185_v25  ;;  %v3245_v5 = vld [vmem:[%s4036_s10 + $0x200] ss:$16 sps:$4 sm:$0xff]   ;;  %v3248_v6 = vld [vmem:[%s4036_s10 + $0x208] ss:$16 sps:$4 sm:$0xff]   ;;  %v3253_v7 = vld [vmem:[%s4036_s10 + $0x224] ss:$16 sps:$4 sm:$0xff]  }
  0xa4   : > { %v3256_v8 = vld [vmem:[%s4036_s10 + $0x22c] ss:$16 sps:$4 sm:$0xff]   ;;  %v3251_v9 = vld [vmem:[%s4036_s10 + $0x220] ss:$16 sps:$4 sm:$0xff]   ;;  %v3254_v10 = vld [vmem:[%s4036_s10 + $0x228] ss:$16 sps:$4 sm:$0xff]  }
  0xa5   : > { %v3259_v11 = vld [vmem:[%s4036_s10 + $0x244] ss:$16 sps:$4 sm:$0xff]   ;;  %v3262_v12 = vld [vmem:[%s4036_s10 + $0x24c] ss:$16 sps:$4 sm:$0xff]   ;;  %v3257_v13 = vld [vmem:[%s4036_s10 + $0x240] ss:$16 sps:$4 sm:$0xff]  }
  0xa6   : > { %2070 = vmatpush1.bf16.msra.mxu0 %v3187_v26  ;;  %2275 = vmatpush1.bf16.msra.mxu1 %v3188_v27  ;;  %v3260_v14 = vld [vmem:[%s4036_s10 + $0x248] ss:$16 sps:$4 sm:$0xff]   ;;  %v3265_v15 = vld [vmem:[%s4036_s10 + $0x264] ss:$16 sps:$4 sm:$0xff]   ;;  %v3268_v16 = vld [vmem:[%s4036_s10 + $0x26c] ss:$16 sps:$4 sm:$0xff]  }
  0xa7   : > { %2071 = vmatprep.subr.bf16.mxu0 %v3189_v28  ;;  %2276 = vmatprep.subr.bf16.mxu1 %v3191_v29  ;;  %v3263_v17 = vld [vmem:[%s4036_s10 + $0x260] ss:$16 sps:$4 sm:$0xff]   ;;  %v3266_v18 = vld [vmem:[%s4036_s10 + $0x268] ss:$16 sps:$4 sm:$0xff]   ;;  %v3271_v19 = vld [vmem:[%s4036_s10 + $0x284] ss:$16 sps:$4 sm:$0xff]  }
  0xa8   : > { %v3274_v20 = vld [vmem:[%s4036_s10 + $0x28c] ss:$16 sps:$4 sm:$0xff]   ;;  %v3269_v21 = vld [vmem:[%s4036_s10 + $0x280] ss:$16 sps:$4 sm:$0xff]   ;;  %v3272_v22 = vld [vmem:[%s4036_s10 + $0x288] ss:$16 sps:$4 sm:$0xff]  }
  0xa9   : > { %v3277_v23 = vld [vmem:[%s4036_s10 + $0x2a4] ss:$16 sps:$4 sm:$0xff]   ;;  %v3280_v24 = vld [vmem:[%s4036_s10 + $0x2ac] ss:$16 sps:$4 sm:$0xff]   ;;  %v3275_v25 = vld [vmem:[%s4036_s10 + $0x2a0] ss:$16 sps:$4 sm:$0xff]  }
  0xaa   : > { %2072 = vmatpush1.bf16.msra.mxu0 %v3193_v30  ;;  %2277 = vmatpush1.bf16.msra.mxu1 %v3194_v31  ;;  %v3278_v26 = vld [vmem:[%s4036_s10 + $0x2a8] ss:$16 sps:$4 sm:$0xff]   ;;  %v3283_v27 = vld [vmem:[%s4036_s10 + $0x2c4] ss:$16 sps:$4 sm:$0xff]   ;;  %v3286_v28 = vld [vmem:[%s4036_s10 + $0x2cc] ss:$16 sps:$4 sm:$0xff]  }
  0xab   : > { %2073 = vmatprep.subr.bf16.mxu0 %v3195_v32  ;;  %2278 = vmatprep.subr.bf16.mxu1 %v3197_v33  ;;  %v4142_v29 = vld [vmem:[%s4029_s26 + $0x8] sm:$0xff]  ;;  %v3310_v46 = vld [vmem:[%s4036_s10 + $0x34c] ss:$16 sps:$4 sm:$0xff]  }
  0xac   : > { %v2711_v30 = vcombine.high %v4142_v29, %v4142_v29  ;;  %v3281_v31 = vld [vmem:[%s4036_s10 + $0x2c0] ss:$16 sps:$4 sm:$0xff]   ;;  %v3284_v32 = vld [vmem:[%s4036_s10 + $0x2c8] ss:$16 sps:$4 sm:$0xff]   ;;  %v3289_v33 = vld [vmem:[%s4036_s10 + $0x2e4] ss:$16 sps:$4 sm:$0xff]  }
  0xad   : > { %v3308_v48 = vld [vmem:[%s4036_s10 + $0x348] ss:$16 sps:$4 sm:$0xff]  }
  0xae   : > { %2074 = vmatpush1.bf16.msra.mxu0 %v3199_v34  ;;  %2279 = vmatpush1.bf16.msra.mxu1 %v3200_v35  ;;  %v3292_v34 = vld [vmem:[%s4036_s10 + $0x2ec] ss:$16 sps:$4 sm:$0xff]   ;;  %v3287_v35 = vld [vmem:[%s4036_s10 + $0x2e0] ss:$16 sps:$4 sm:$0xff]  }
  0xaf   : > { %2075 = vmatprep.subr.bf16.mxu0 %v3201_v36  ;;  %2280 = vmatprep.subr.bf16.mxu1 %v3203_v37  ;;  %v3290_v36 = vld [vmem:[%s4036_s10 + $0x2e8] ss:$16 sps:$4 sm:$0xff]   ;;  %v3295_v37 = vld [vmem:[%s4036_s10 + $0x304] ss:$16 sps:$4 sm:$0xff]  }
  0xb2   : > { %2076 = vmatpush1.bf16.msra.mxu0 %v3205_v38  ;;  %2281 = vmatpush1.bf16.msra.mxu1 %v3206_v39  ;;  %v3298_v38 = vld [vmem:[%s4036_s10 + $0x30c] ss:$16 sps:$4 sm:$0xff]   ;;  %v3293_v39 = vld [vmem:[%s4036_s10 + $0x300] ss:$16 sps:$4 sm:$0xff]  }
  0xb3   : > { %2077 = vmatprep.subr.bf16.mxu0 %v3207_v40  ;;  %2282 = vmatprep.subr.bf16.mxu1 %v3209_v41  ;;  %v3296_v40 = vld [vmem:[%s4036_s10 + $0x308] ss:$16 sps:$4 sm:$0xff]   ;;  %v3301_v41 = vld [vmem:[%s4036_s10 + $0x324] ss:$16 sps:$4 sm:$0xff]  }
  0xb6   : > { %2078 = vmatpush1.bf16.msra.mxu0 %v3211_v42  ;;  %2283 = vmatpush1.bf16.msra.mxu1 %v3212_v43  ;;  %v3304_v42 = vld [vmem:[%s4036_s10 + $0x32c] ss:$16 sps:$4 sm:$0xff]   ;;  %v3299_v43 = vld [vmem:[%s4036_s10 + $0x320] ss:$16 sps:$4 sm:$0xff]  }
  0xb7   : > { %2079 = vmatprep.subr.bf16.mxu0 %v3213_v44  ;;  %2284 = vmatprep.subr.bf16.mxu1 %v3215_v45  ;;  %v3302_v44 = vld [vmem:[%s4036_s10 + $0x328] ss:$16 sps:$4 sm:$0xff]   ;;  %v3307_v45 = vld [vmem:[%s4036_s10 + $0x344] ss:$16 sps:$4 sm:$0xff]  }
  0xba   : > { %2080 = vmatpush1.bf16.msra.mxu0 %v3217_v47  ;;  %2285 = vmatpush1.bf16.msra.mxu1 %v3218_v49  ;;  %v3305_v47 = vld [vmem:[%s4036_s10 + $0x340] ss:$16 sps:$4 sm:$0xff]   ;;  %v3313_v49 = vld [vmem:[%s4036_s10 + $0x364] ss:$16 sps:$4 sm:$0xff]  }
  0xbb   : > { %2081 = vmatprep.subr.bf16.mxu0 %v3219_v50  ;;  %2286 = vmatprep.subr.bf16.mxu1 %v3221_v51  ;;  %v3316_v50 = vld [vmem:[%s4036_s10 + $0x36c] ss:$16 sps:$4 sm:$0xff]   ;;  %v3311_v51 = vld [vmem:[%s4036_s10 + $0x360] ss:$16 sps:$4 sm:$0xff]  }
  0xbe   : > { %2082 = vmatpush1.bf16.msra.mxu0 %v3223_v52  ;;  %2287 = vmatpush1.bf16.msra.mxu1 %v3224_v53  ;;  %v3314_v52 = vld [vmem:[%s4036_s10 + $0x368] ss:$16 sps:$4 sm:$0xff]   ;;  %v3319_v53 = vld [vmem:[%s4036_s10 + $0x384] ss:$16 sps:$4 sm:$0xff]  }
  0xbf   : > { %2083 = vmatprep.subr.bf16.mxu0 %v3225_v54  ;;  %2288 = vmatprep.subr.bf16.mxu1 %v3227_v55  ;;  %v3322_v54 = vld [vmem:[%s4036_s10 + $0x38c] ss:$16 sps:$4 sm:$0xff]   ;;  %v3317_v55 = vld [vmem:[%s4036_s10 + $0x380] ss:$16 sps:$4 sm:$0xff]  }
  0xc2   : > { %2084 = vmatpush1.bf16.msra.mxu0 %v3229_v56  ;;  %2289 = vmatpush1.bf16.msra.mxu1 %v3230_v57  ;;  %v3320_v56 = vld [vmem:[%s4036_s10 + $0x388] ss:$16 sps:$4 sm:$0xff]   ;;  %v3325_v57 = vld [vmem:[%s4036_s10 + $0x3a4] ss:$16 sps:$4 sm:$0xff]  }
  0xc3   : > { %2085 = vmatprep.subr.bf16.mxu0 %v3231_v58  ;;  %2290 = vmatprep.subr.bf16.mxu1 %v3233_v59  ;;  %v3328_v58 = vld [vmem:[%s4036_s10 + $0x3ac] ss:$16 sps:$4 sm:$0xff]   ;;  %v3323_v59 = vld [vmem:[%s4036_s10 + $0x3a0] ss:$16 sps:$4 sm:$0xff]  }
  0xc6   : > { %2086 = vmatpush1.bf16.msra.mxu0 %v3235_v60  ;;  %2291 = vmatpush1.bf16.msra.mxu1 %v3236_v61  ;;  %v3326_v60 = vld [vmem:[%s4036_s10 + $0x3a8] ss:$16 sps:$4 sm:$0xff]   ;;  %v3331_v61 = vld [vmem:[%s4036_s10 + $0x3c4] ss:$16 sps:$4 sm:$0xff]  }
  0xc7   : > { %2087 = vmatprep.subr.bf16.mxu0 %v3237_v62  ;;  %2292 = vmatprep.subr.bf16.mxu1 %v3239_v63  ;;  %v3334_v62 = vld [vmem:[%s4036_s10 + $0x3cc] ss:$16 sps:$4 sm:$0xff]   ;;  %v3329_v63 = vld [vmem:[%s4036_s10 + $0x3c0] ss:$16 sps:$4 sm:$0xff]  }
  0xca   : > { %2088 = vmatpush1.bf16.msra.mxu0 %v3241_v0  ;;  %2293 = vmatpush1.bf16.msra.mxu1 %v3242_v1  ;;  %v3332_v0 = vld [vmem:[%s4036_s10 + $0x3c8] ss:$16 sps:$4 sm:$0xff]   ;;  %v3337_v1 = vld [vmem:[%s4036_s10 + $0x3e4] ss:$16 sps:$4 sm:$0xff]  }
  0xcb   : > { %2098 = vmatprep.subr.bf16.mxu0 %v3247_v2  ;;  %2303 = vmatprep.subr.bf16.mxu1 %v3250_v3  ;;  %v3340_v2 = vld [vmem:[%s4036_s10 + $0x3ec] ss:$16 sps:$4 sm:$0xff]   ;;  %v3335_v3 = vld [vmem:[%s4036_s10 + $0x3e0] ss:$16 sps:$4 sm:$0xff]  }
  0xcd   : > { %2090 = vmatmul.mubr.bf16.vlgmr.msra.gmra.mrb[0].mxu0 %v2708_v4  ;;  %2295 = vmatmul.mubr.bf16.vlgmr.msra.gmra.mrb[0].mxu1 %v2708_v4  ;;  %v3338_v4 = vld [vmem:[%s4036_s10 + $0x3e8] ss:$16 sps:$4 sm:$0xff]  }
  0xce   : > { %2099 = vmatpush1.bf16.msra.mxu0 %v3245_v5  ;;  %2304 = vmatpush1.bf16.msra.mxu1 %v3248_v6  ;;  %v3345_v5 = vld [vmem:[%s4036_s10 + $0x404] ss:$16 sps:$4 sm:$0xff]   ;;  %v3348_v6 = vld [vmem:[%s4036_s10 + $0x40c] ss:$16 sps:$4 sm:$0xff]  }
  0xcf   : > { %2100 = vmatprep.subr.bf16.mxu0 %v3253_v7  ;;  %2305 = vmatprep.subr.bf16.mxu1 %v3256_v8  ;;  %v2710_v7 = vcombine.low %v4142_v29, %v4142_v29  ;;  %v3343_v8 = vld [vmem:[%s4036_s10 + $0x400] ss:$16 sps:$4 sm:$0xff]   ;;  %v3378_v29 = vld [vmem:[%s4036_s10 + $0x4ac] ss:$16 sps:$4 sm:$0xff]  }
  0xd0   : > { %2130 = vmatprep.mubr.bf16.mxu0 %v2711_v30  ;;  %2335 = vmatprep.mubr.bf16.mxu1 %v2711_v30  ;;  %v3373_v30 = vld [vmem:[%s4036_s10 + $0x4a0] ss:$16 sps:$4 sm:$0xff]  }
  0xd2   : > { %2101 = vmatpush1.bf16.msra.mxu0 %v3251_v9  ;;  %2306 = vmatpush1.bf16.msra.mxu1 %v3254_v10  ;;  %v3346_v9 = vld [vmem:[%s4036_s10 + $0x408] ss:$16 sps:$4 sm:$0xff]   ;;  %v3351_v10 = vld [vmem:[%s4036_s10 + $0x424] ss:$16 sps:$4 sm:$0xff]  }
  0xd3   : > { %2102 = vmatprep.subr.bf16.mxu0 %v3259_v11  ;;  %2307 = vmatprep.subr.bf16.mxu1 %v3262_v12  ;;  %v4192_v11 = vld [vmem:[%s4029_s26 + $0x10] sm:$0xff] }
  0xd4   : > { %v3354_v12 = vld [vmem:[%s4036_s10 + $0x42c] ss:$16 sps:$4 sm:$0xff]  }
  0xd6   : > { %2103 = vmatpush1.bf16.msra.mxu0 %v3257_v13  ;;  %2308 = vmatpush1.bf16.msra.mxu1 %v3260_v14  ;;  %v2713_v13 = vcombine.high %v4192_v11, %v4192_v11  ;;  %v3349_v14 = vld [vmem:[%s4036_s10 + $0x420] ss:$16 sps:$4 sm:$0xff]  }
  0xd7   : > { %2104 = vmatprep.subr.bf16.mxu0 %v3265_v15  ;;  %2309 = vmatprep.subr.bf16.mxu1 %v3268_v16  ;;  %v3352_v15 = vld [vmem:[%s4036_s10 + $0x428] ss:$16 sps:$4 sm:$0xff]   ;;  %v3357_v16 = vld [vmem:[%s4036_s10 + $0x444] ss:$16 sps:$4 sm:$0xff]  }
  0xda   : > { %2105 = vmatpush1.bf16.msra.mxu0 %v3263_v17  ;;  %2310 = vmatpush1.bf16.msra.mxu1 %v3266_v18  ;;  %v3360_v17 = vld [vmem:[%s4036_s10 + $0x44c] ss:$16 sps:$4 sm:$0xff]   ;;  %v3355_v18 = vld [vmem:[%s4036_s10 + $0x440] ss:$16 sps:$4 sm:$0xff]  }
  0xdb   : > { %2106 = vmatprep.subr.bf16.mxu0 %v3271_v19  ;;  %2311 = vmatprep.subr.bf16.mxu1 %v3274_v20  ;;  %v3358_v19 = vld [vmem:[%s4036_s10 + $0x448] ss:$16 sps:$4 sm:$0xff]   ;;  %v3363_v20 = vld [vmem:[%s4036_s10 + $0x464] ss:$16 sps:$4 sm:$0xff]  }
  0xde   : > { %2107 = vmatpush1.bf16.msra.mxu0 %v3269_v21  ;;  %2312 = vmatpush1.bf16.msra.mxu1 %v3272_v22  ;;  %v3366_v21 = vld [vmem:[%s4036_s10 + $0x46c] ss:$16 sps:$4 sm:$0xff]   ;;  %v3361_v22 = vld [vmem:[%s4036_s10 + $0x460] ss:$16 sps:$4 sm:$0xff]  }
  0xdf   : > { %2108 = vmatprep.subr.bf16.mxu0 %v3277_v23  ;;  %2313 = vmatprep.subr.bf16.mxu1 %v3280_v24  ;;  %v3364_v23 = vld [vmem:[%s4036_s10 + $0x468] ss:$16 sps:$4 sm:$0xff]   ;;  %v3369_v24 = vld [vmem:[%s4036_s10 + $0x484] ss:$16 sps:$4 sm:$0xff]  }
  0xe2   : > { %2109 = vmatpush1.bf16.msra.mxu0 %v3275_v25  ;;  %2314 = vmatpush1.bf16.msra.mxu1 %v3278_v26  ;;  %v3372_v25 = vld [vmem:[%s4036_s10 + $0x48c] ss:$16 sps:$4 sm:$0xff]   ;;  %v3367_v26 = vld [vmem:[%s4036_s10 + $0x480] ss:$16 sps:$4 sm:$0xff]  }
  0xe3   : > { %2110 = vmatprep.subr.bf16.mxu0 %v3283_v27  ;;  %2315 = vmatprep.subr.bf16.mxu1 %v3286_v28  ;;  %v3370_v27 = vld [vmem:[%s4036_s10 + $0x488] ss:$16 sps:$4 sm:$0xff]   ;;  %v3375_v28 = vld [vmem:[%s4036_s10 + $0x4a4] ss:$16 sps:$4 sm:$0xff]  }
  0xe6   : > { %2111 = vmatpush1.bf16.msra.mxu0 %v3281_v31  ;;  %2316 = vmatpush1.bf16.msra.mxu1 %v3284_v32  ;;  %v3376_v31 = vld [vmem:[%s4036_s10 + $0x4a8] ss:$16 sps:$4 sm:$0xff]   ;;  %v3381_v32 = vld [vmem:[%s4036_s10 + $0x4c4] ss:$16 sps:$4 sm:$0xff]  }
  0xe7   : > { %2112 = vmatprep.subr.bf16.mxu0 %v3289_v33  ;;  %2317 = vmatprep.subr.bf16.mxu1 %v3292_v34  ;;  %v3384_v33 = vld [vmem:[%s4036_s10 + $0x4cc] ss:$16 sps:$4 sm:$0xff]   ;;  %v3379_v34 = vld [vmem:[%s4036_s10 + $0x4c0] ss:$16 sps:$4 sm:$0xff]  }
  0xea   : > { %2113 = vmatpush1.bf16.msra.mxu0 %v3287_v35  ;;  %2318 = vmatpush1.bf16.msra.mxu1 %v3290_v36  ;;  %v3382_v35 = vld [vmem:[%s4036_s10 + $0x4c8] ss:$16 sps:$4 sm:$0xff]   ;;  %v3387_v36 = vld [vmem:[%s4036_s10 + $0x4e4] ss:$16 sps:$4 sm:$0xff]  }
  0xeb   : > { %2114 = vmatprep.subr.bf16.mxu0 %v3295_v37  ;;  %2319 = vmatprep.subr.bf16.mxu1 %v3298_v38  ;;  %v3390_v37 = vld [vmem:[%s4036_s10 + $0x4ec] ss:$16 sps:$4 sm:$0xff]   ;;  %v3385_v38 = vld [vmem:[%s4036_s10 + $0x4e0] ss:$16 sps:$4 sm:$0xff]  }
  0xee   : > { %2115 = vmatpush1.bf16.msra.mxu0 %v3293_v39  ;;  %2320 = vmatpush1.bf16.msra.mxu1 %v3296_v40  ;;  %v3388_v39 = vld [vmem:[%s4036_s10 + $0x4e8] ss:$16 sps:$4 sm:$0xff]   ;;  %v3393_v40 = vld [vmem:[%s4036_s10 + $0x504] ss:$16 sps:$4 sm:$0xff]  }
  0xef   : > { %2116 = vmatprep.subr.bf16.mxu0 %v3301_v41  ;;  %2321 = vmatprep.subr.bf16.mxu1 %v3304_v42  ;;  %v3396_v41 = vld [vmem:[%s4036_s10 + $0x50c] ss:$16 sps:$4 sm:$0xff]   ;;  %v3391_v42 = vld [vmem:[%s4036_s10 + $0x500] ss:$16 sps:$4 sm:$0xff]  }
  0xf2   : > { %2117 = vmatpush1.bf16.msra.mxu0 %v3299_v43  ;;  %2322 = vmatpush1.bf16.msra.mxu1 %v3302_v44  ;;  %v3394_v43 = vld [vmem:[%s4036_s10 + $0x508] ss:$16 sps:$4 sm:$0xff]   ;;  %v3399_v44 = vld [vmem:[%s4036_s10 + $0x524] ss:$16 sps:$4 sm:$0xff]  }
  0xf3   : > { %2118 = vmatprep.subr.bf16.mxu0 %v3307_v45  ;;  %2323 = vmatprep.subr.bf16.mxu1 %v3310_v46  ;;  %v3402_v45 = vld [vmem:[%s4036_s10 + $0x52c] ss:$16 sps:$4 sm:$0xff]   ;;  %v3397_v46 = vld [vmem:[%s4036_s10 + $0x520] ss:$16 sps:$4 sm:$0xff]  }
  0xf6   : > { %2119 = vmatpush1.bf16.msra.mxu0 %v3305_v47  ;;  %2324 = vmatpush1.bf16.msra.mxu1 %v3308_v48  ;;  %v3400_v47 = vld [vmem:[%s4036_s10 + $0x528] ss:$16 sps:$4 sm:$0xff]   ;;  %v3405_v48 = vld [vmem:[%s4036_s10 + $0x544] ss:$16 sps:$4 sm:$0xff]  }
  0xf7   : > { %2120 = vmatprep.subr.bf16.mxu0 %v3313_v49  ;;  %2325 = vmatprep.subr.bf16.mxu1 %v3316_v50  ;;  %v3408_v49 = vld [vmem:[%s4036_s10 + $0x54c] ss:$16 sps:$4 sm:$0xff]   ;;  %v3403_v50 = vld [vmem:[%s4036_s10 + $0x540] ss:$16 sps:$4 sm:$0xff]  }
  0xfa   : > { %2121 = vmatpush1.bf16.msra.mxu0 %v3311_v51  ;;  %2326 = vmatpush1.bf16.msra.mxu1 %v3314_v52  ;;  %v3406_v51 = vld [vmem:[%s4036_s10 + $0x548] ss:$16 sps:$4 sm:$0xff]   ;;  %v3411_v52 = vld [vmem:[%s4036_s10 + $0x564] ss:$16 sps:$4 sm:$0xff]  }
  0xfb   : > { %2122 = vmatprep.subr.bf16.mxu0 %v3319_v53  ;;  %2327 = vmatprep.subr.bf16.mxu1 %v3322_v54  ;;  %v3414_v53 = vld [vmem:[%s4036_s10 + $0x56c] ss:$16 sps:$4 sm:$0xff]   ;;  %v3409_v54 = vld [vmem:[%s4036_s10 + $0x560] ss:$16 sps:$4 sm:$0xff]  }
  0xfe   : > { %2123 = vmatpush1.bf16.msra.mxu0 %v3317_v55  ;;  %2328 = vmatpush1.bf16.msra.mxu1 %v3320_v56  ;;  %v3412_v55 = vld [vmem:[%s4036_s10 + $0x568] ss:$16 sps:$4 sm:$0xff]   ;;  %v3417_v56 = vld [vmem:[%s4036_s10 + $0x584] ss:$16 sps:$4 sm:$0xff]  }
  0xff   : > { %2124 = vmatprep.subr.bf16.mxu0 %v3325_v57  ;;  %2329 = vmatprep.subr.bf16.mxu1 %v3328_v58  ;;  %v3420_v57 = vld [vmem:[%s4036_s10 + $0x58c] ss:$16 sps:$4 sm:$0xff]   ;;  %v3415_v58 = vld [vmem:[%s4036_s10 + $0x580] ss:$16 sps:$4 sm:$0xff]  }
 0x102   : > { %2125 = vmatpush1.bf16.msra.mxu0 %v3323_v59  ;;  %2330 = vmatpush1.bf16.msra.mxu1 %v3326_v60  ;;  %v3418_v59 = vld [vmem:[%s4036_s10 + $0x588] ss:$16 sps:$4 sm:$0xff]   ;;  %v3423_v60 = vld [vmem:[%s4036_s10 + $0x5a4] ss:$16 sps:$4 sm:$0xff]  }
 0x103   : > { %2126 = vmatprep.subr.bf16.mxu0 %v3331_v61  ;;  %2331 = vmatprep.subr.bf16.mxu1 %v3334_v62  ;;  %v3426_v61 = vld [vmem:[%s4036_s10 + $0x5ac] ss:$16 sps:$4 sm:$0xff]   ;;  %v3421_v62 = vld [vmem:[%s4036_s10 + $0x5a0] ss:$16 sps:$4 sm:$0xff]  }
 0x106   : > { %2127 = vmatpush1.bf16.msra.mxu0 %v3329_v63  ;;  %2332 = vmatpush1.bf16.msra.mxu1 %v3332_v0  ;;  %v3424_v63 = vld [vmem:[%s4036_s10 + $0x5a8] ss:$16 sps:$4 sm:$0xff]   ;;  %v3429_v0 = vld [vmem:[%s4036_s10 + $0x5c4] ss:$16 sps:$4 sm:$0xff]  }
 0x107   : > { %2128 = vmatprep.subr.bf16.mxu0 %v3337_v1  ;;  %2333 = vmatprep.subr.bf16.mxu1 %v3340_v2  ;;  %v3432_v1 = vld [vmem:[%s4036_s10 + $0x5cc] ss:$16 sps:$4 sm:$0xff]   ;;  %v3427_v2 = vld [vmem:[%s4036_s10 + $0x5c0] ss:$16 sps:$4 sm:$0xff]  }
 0x10a   : > { %2129 = vmatpush1.bf16.msra.mxu0 %v3335_v3  ;;  %2334 = vmatpush1.bf16.msra.mxu1 %v3338_v4  ;;  %v3430_v3 = vld [vmem:[%s4036_s10 + $0x5c8] ss:$16 sps:$4 sm:$0xff]   ;;  %v3435_v4 = vld [vmem:[%s4036_s10 + $0x5e4] ss:$16 sps:$4 sm:$0xff]  }
 0x10b   : > { %2139 = vmatprep.subr.bf16.mxu0 %v3345_v5  ;;  %2344 = vmatprep.subr.bf16.mxu1 %v3348_v6  ;;  %v3438_v5 = vld [vmem:[%s4036_s10 + $0x5ec] ss:$16 sps:$4 sm:$0xff]   ;;  %v3433_v6 = vld [vmem:[%s4036_s10 + $0x5e0] ss:$16 sps:$4 sm:$0xff]  }
 0x10d   : > { %2131 = vmatmul.mubr.bf16.vlgmr.msra.gmra.mrb[0].mxu0 %v2710_v7  ;;  %2336 = vmatmul.mubr.bf16.vlgmr.msra.gmra.mrb[0].mxu1 %v2710_v7  ;;  %v3436_v7 = vld [vmem:[%s4036_s10 + $0x5e8] ss:$16 sps:$4 sm:$0xff]  }
 0x10e   : > { %2140 = vmatpush1.bf16.msra.mxu0 %v3343_v8  ;;  %2345 = vmatpush1.bf16.msra.mxu1 %v3346_v9  ;;  %v3443_v8 = vld [vmem:[%s4036_s10 + $0x604] ss:$16 sps:$4 sm:$0xff]   ;;  %v3446_v9 = vld [vmem:[%s4036_s10 + $0x60c] ss:$16 sps:$4 sm:$0xff]  }
 0x10f   : > { %2141 = vmatprep.subr.bf16.mxu0 %v3351_v10  ;;  %2346 = vmatprep.subr.bf16.mxu1 %v3354_v12  ;;  %v2712_v10 = vcombine.low %v4192_v11, %v4192_v11  ;;  %v3441_v12 = vld [vmem:[%s4036_s10 + $0x600] ss:$16 sps:$4 sm:$0xff]  }
 0x110   : > { %2171 = vmatprep.mubr.bf16.mxu0 %v2713_v13  ;;  %2376 = vmatprep.mubr.bf16.mxu1 %v2713_v13  ;;  %v4261_v13 = vld [vmem:[%s4029_s26 + $0x18] sm:$0xff] }
 0x111   : > { %v3447_v11 = vld [vmem:[%s4036_s10 + $0x620] ss:$16 sps:$4 sm:$0xff]  }
 0x112   : > { %2142 = vmatpush1.bf16.msra.mxu0 %v3349_v14  ;;  %2347 = vmatpush1.bf16.msra.mxu1 %v3352_v15  ;;  %v3444_v14 = vld [vmem:[%s4036_s10 + $0x608] ss:$16 sps:$4 sm:$0xff]   ;;  %v3449_v15 = vld [vmem:[%s4036_s10 + $0x624] ss:$16 sps:$4 sm:$0xff]  }
 0x113   : > { %2143 = vmatprep.subr.bf16.mxu0 %v3357_v16  ;;  %2348 = vmatprep.subr.bf16.mxu1 %v3360_v17  ;;  %v3452_v16 = vld [vmem:[%s4036_s10 + $0x62c] ss:$16 sps:$4 sm:$0xff]   ;;  %v2715_v17 = vcombine.high %v4261_v13, %v4261_v13 }
 0x116   : > { %2144 = vmatpush1.bf16.msra.mxu0 %v3355_v18  ;;  %2349 = vmatpush1.bf16.msra.mxu1 %v3358_v19  ;;  %v3450_v18 = vld [vmem:[%s4036_s10 + $0x628] ss:$16 sps:$4 sm:$0xff]   ;;  %v3455_v19 = vld [vmem:[%s4036_s10 + $0x644] ss:$16 sps:$4 sm:$0xff]  }
 0x117   : > { %2145 = vmatprep.subr.bf16.mxu0 %v3363_v20  ;;  %2350 = vmatprep.subr.bf16.mxu1 %v3366_v21  ;;  %v3458_v20 = vld [vmem:[%s4036_s10 + $0x64c] ss:$16 sps:$4 sm:$0xff]   ;;  %v3453_v21 = vld [vmem:[%s4036_s10 + $0x640] ss:$16 sps:$4 sm:$0xff]  }
 0x11a   : > { %2146 = vmatpush1.bf16.msra.mxu0 %v3361_v22  ;;  %2351 = vmatpush1.bf16.msra.mxu1 %v3364_v23  ;;  %v3456_v22 = vld [vmem:[%s4036_s10 + $0x648] ss:$16 sps:$4 sm:$0xff]   ;;  %v3461_v23 = vld [vmem:[%s4036_s10 + $0x664] ss:$16 sps:$4 sm:$0xff]  }
 0x11b   : > { %2147 = vmatprep.subr.bf16.mxu0 %v3369_v24  ;;  %2352 = vmatprep.subr.bf16.mxu1 %v3372_v25  ;;  %v3464_v24 = vld [vmem:[%s4036_s10 + $0x66c] ss:$16 sps:$4 sm:$0xff]   ;;  %v3459_v25 = vld [vmem:[%s4036_s10 + $0x660] ss:$16 sps:$4 sm:$0xff]  }
 0x11e   : > { %2148 = vmatpush1.bf16.msra.mxu0 %v3367_v26  ;;  %2353 = vmatpush1.bf16.msra.mxu1 %v3370_v27  ;;  %v3462_v26 = vld [vmem:[%s4036_s10 + $0x668] ss:$16 sps:$4 sm:$0xff]   ;;  %v3467_v27 = vld [vmem:[%s4036_s10 + $0x684] ss:$16 sps:$4 sm:$0xff]  }
 0x11f   : > { %2149 = vmatprep.subr.bf16.mxu0 %v3375_v28  ;;  %2354 = vmatprep.subr.bf16.mxu1 %v3378_v29  ;;  %v3470_v28 = vld [vmem:[%s4036_s10 + $0x68c] ss:$16 sps:$4 sm:$0xff]   ;;  %v3465_v29 = vld [vmem:[%s4036_s10 + $0x680] ss:$16 sps:$4 sm:$0xff]  }
 0x122   : > { %2150 = vmatpush1.bf16.msra.mxu0 %v3373_v30  ;;  %2355 = vmatpush1.bf16.msra.mxu1 %v3376_v31  ;;  %v3468_v30 = vld [vmem:[%s4036_s10 + $0x688] ss:$16 sps:$4 sm:$0xff]   ;;  %v3473_v31 = vld [vmem:[%s4036_s10 + $0x6a4] ss:$16 sps:$4 sm:$0xff]  }
 0x123   : > { %2151 = vmatprep.subr.bf16.mxu0 %v3381_v32  ;;  %2356 = vmatprep.subr.bf16.mxu1 %v3384_v33  ;;  %v3476_v32 = vld [vmem:[%s4036_s10 + $0x6ac] ss:$16 sps:$4 sm:$0xff]   ;;  %v3471_v33 = vld [vmem:[%s4036_s10 + $0x6a0] ss:$16 sps:$4 sm:$0xff]  }
 0x126   : > { %2152 = vmatpush1.bf16.msra.mxu0 %v3379_v34  ;;  %2357 = vmatpush1.bf16.msra.mxu1 %v3382_v35  ;;  %v3474_v34 = vld [vmem:[%s4036_s10 + $0x6a8] ss:$16 sps:$4 sm:$0xff]   ;;  %v3479_v35 = vld [vmem:[%s4036_s10 + $0x6c4] ss:$16 sps:$4 sm:$0xff]  }
 0x127   : > { %2153 = vmatprep.subr.bf16.mxu0 %v3387_v36  ;;  %2358 = vmatprep.subr.bf16.mxu1 %v3390_v37  ;;  %v3482_v36 = vld [vmem:[%s4036_s10 + $0x6cc] ss:$16 sps:$4 sm:$0xff]   ;;  %v3477_v37 = vld [vmem:[%s4036_s10 + $0x6c0] ss:$16 sps:$4 sm:$0xff]  }
 0x12a   : > { %2154 = vmatpush1.bf16.msra.mxu0 %v3385_v38  ;;  %2359 = vmatpush1.bf16.msra.mxu1 %v3388_v39  ;;  %v3480_v38 = vld [vmem:[%s4036_s10 + $0x6c8] ss:$16 sps:$4 sm:$0xff]   ;;  %v3485_v39 = vld [vmem:[%s4036_s10 + $0x6e4] ss:$16 sps:$4 sm:$0xff]  }
 0x12b   : > { %2155 = vmatprep.subr.bf16.mxu0 %v3393_v40  ;;  %2360 = vmatprep.subr.bf16.mxu1 %v3396_v41  ;;  %v3488_v40 = vld [vmem:[%s4036_s10 + $0x6ec] ss:$16 sps:$4 sm:$0xff]   ;;  %v3483_v41 = vld [vmem:[%s4036_s10 + $0x6e0] ss:$16 sps:$4 sm:$0xff]  }
 0x12e   : > { %2156 = vmatpush1.bf16.msra.mxu0 %v3391_v42  ;;  %2361 = vmatpush1.bf16.msra.mxu1 %v3394_v43  ;;  %v3486_v42 = vld [vmem:[%s4036_s10 + $0x6e8] ss:$16 sps:$4 sm:$0xff]   ;;  %v3491_v43 = vld [vmem:[%s4036_s10 + $0x704] ss:$16 sps:$4 sm:$0xff]  }
 0x12f   : > { %2157 = vmatprep.subr.bf16.mxu0 %v3399_v44  ;;  %2362 = vmatprep.subr.bf16.mxu1 %v3402_v45  ;;  %v3494_v44 = vld [vmem:[%s4036_s10 + $0x70c] ss:$16 sps:$4 sm:$0xff]   ;;  %v3489_v45 = vld [vmem:[%s4036_s10 + $0x700] ss:$16 sps:$4 sm:$0xff]  }
 0x132   : > { %2158 = vmatpush1.bf16.msra.mxu0 %v3397_v46  ;;  %2363 = vmatpush1.bf16.msra.mxu1 %v3400_v47  ;;  %v3492_v46 = vld [vmem:[%s4036_s10 + $0x708] ss:$16 sps:$4 sm:$0xff]   ;;  %v3497_v47 = vld [vmem:[%s4036_s10 + $0x724] ss:$16 sps:$4 sm:$0xff]  }
 0x133   : > { %2159 = vmatprep.subr.bf16.mxu0 %v3405_v48  ;;  %2364 = vmatprep.subr.bf16.mxu1 %v3408_v49  ;;  %v3500_v48 = vld [vmem:[%s4036_s10 + $0x72c] ss:$16 sps:$4 sm:$0xff]   ;;  %v3495_v49 = vld [vmem:[%s4036_s10 + $0x720] ss:$16 sps:$4 sm:$0xff]  }
 0x136   : > { %2160 = vmatpush1.bf16.msra.mxu0 %v3403_v50  ;;  %2365 = vmatpush1.bf16.msra.mxu1 %v3406_v51  ;;  %v3498_v50 = vld [vmem:[%s4036_s10 + $0x728] ss:$16 sps:$4 sm:$0xff]   ;;  %v3503_v51 = vld [vmem:[%s4036_s10 + $0x744] ss:$16 sps:$4 sm:$0xff]  }
 0x137   : > { %2161 = vmatprep.subr.bf16.mxu0 %v3411_v52  ;;  %2366 = vmatprep.subr.bf16.mxu1 %v3414_v53  ;;  %v3506_v52 = vld [vmem:[%s4036_s10 + $0x74c] ss:$16 sps:$4 sm:$0xff]   ;;  %v3501_v53 = vld [vmem:[%s4036_s10 + $0x740] ss:$16 sps:$4 sm:$0xff]  }
 0x13a   : > { %2162 = vmatpush1.bf16.msra.mxu0 %v3409_v54  ;;  %2367 = vmatpush1.bf16.msra.mxu1 %v3412_v55  ;;  %v3504_v54 = vld [vmem:[%s4036_s10 + $0x748] ss:$16 sps:$4 sm:$0xff]   ;;  %v3509_v55 = vld [vmem:[%s4036_s10 + $0x764] ss:$16 sps:$4 sm:$0xff]  }
 0x13b   : > { %2163 = vmatprep.subr.bf16.mxu0 %v3417_v56  ;;  %2368 = vmatprep.subr.bf16.mxu1 %v3420_v57  ;;  %v3512_v56 = vld [vmem:[%s4036_s10 + $0x76c] ss:$16 sps:$4 sm:$0xff]   ;;  %v3507_v57 = vld [vmem:[%s4036_s10 + $0x760] ss:$16 sps:$4 sm:$0xff]  }
 0x13e   : > { %2164 = vmatpush1.bf16.msra.mxu0 %v3415_v58  ;;  %2369 = vmatpush1.bf16.msra.mxu1 %v3418_v59  ;;  %v3510_v58 = vld [vmem:[%s4036_s10 + $0x768] ss:$16 sps:$4 sm:$0xff]   ;;  %v3515_v59 = vld [vmem:[%s4036_s10 + $0x784] ss:$16 sps:$4 sm:$0xff]  }
 0x13f   : > { %2165 = vmatprep.subr.bf16.mxu0 %v3423_v60  ;;  %2370 = vmatprep.subr.bf16.mxu1 %v3426_v61  ;;  %v3518_v60 = vld [vmem:[%s4036_s10 + $0x78c] ss:$16 sps:$4 sm:$0xff]   ;;  %v3513_v61 = vld [vmem:[%s4036_s10 + $0x780] ss:$16 sps:$4 sm:$0xff]  }
 0x142   : > { %2166 = vmatpush1.bf16.msra.mxu0 %v3421_v62  ;;  %2371 = vmatpush1.bf16.msra.mxu1 %v3424_v63  ;;  %v3516_v62 = vld [vmem:[%s4036_s10 + $0x788] ss:$16 sps:$4 sm:$0xff]   ;;  %v3521_v63 = vld [vmem:[%s4036_s10 + $0x7a4] ss:$16 sps:$4 sm:$0xff]  }
 0x143   : > { %2167 = vmatprep.subr.bf16.mxu0 %v3429_v0  ;;  %2372 = vmatprep.subr.bf16.mxu1 %v3432_v1  ;;  %v3524_v0 = vld [vmem:[%s4036_s10 + $0x7ac] ss:$16 sps:$4 sm:$0xff]   ;;  %v3519_v1 = vld [vmem:[%s4036_s10 + $0x7a0] ss:$16 sps:$4 sm:$0xff]  }
 0x146   : > { %2168 = vmatpush1.bf16.msra.mxu0 %v3427_v2  ;;  %2373 = vmatpush1.bf16.msra.mxu1 %v3430_v3  ;;  %v3522_v2 = vld [vmem:[%s4036_s10 + $0x7a8] ss:$16 sps:$4 sm:$0xff]   ;;  %v3527_v3 = vld [vmem:[%s4036_s10 + $0x7c4] ss:$16 sps:$4 sm:$0xff]  }
 0x147   : > { %2169 = vmatprep.subr.bf16.mxu0 %v3435_v4  ;;  %2374 = vmatprep.subr.bf16.mxu1 %v3438_v5  ;;  %v3530_v4 = vld [vmem:[%s4036_s10 + $0x7cc] ss:$16 sps:$4 sm:$0xff]   ;;  %v3525_v5 = vld [vmem:[%s4036_s10 + $0x7c0] ss:$16 sps:$4 sm:$0xff]  }
 0x14a   : > { %2170 = vmatpush1.bf16.msra.mxu0 %v3433_v6  ;;  %2375 = vmatpush1.bf16.msra.mxu1 %v3436_v7  ;;  %v3528_v6 = vld [vmem:[%s4036_s10 + $0x7c8] ss:$16 sps:$4 sm:$0xff]   ;;  %v3533_v7 = vld [vmem:[%s4036_s10 + $0x7e4] ss:$16 sps:$4 sm:$0xff]  }
 0x14b   : > { %2180 = vmatprep.subr.bf16.mxu0 %v3443_v8  ;;  %2385 = vmatprep.subr.bf16.mxu1 %v3446_v9  ;;  %v3536_v8 = vld [vmem:[%s4036_s10 + $0x7ec] ss:$16 sps:$4 sm:$0xff]   ;;  %v3531_v9 = vld [vmem:[%s4036_s10 + $0x7e0] ss:$16 sps:$4 sm:$0xff]  }
 0x14d   : > { %2172 = vmatmul.mubr.bf16.vlgmr.msra.gmra.mrb[0].mxu0 %v2712_v10  ;;  %2377 = vmatmul.mubr.bf16.vlgmr.msra.gmra.mrb[0].mxu1 %v2712_v10  ;;  %v3534_v10 = vld [vmem:[%s4036_s10 + $0x7e8] ss:$16 sps:$4 sm:$0xff]  }
 0x14e   : > { %2181 = vmatpush1.bf16.msra.mxu0 %v3441_v12  ;;  %2386 = vmatpush1.bf16.msra.mxu1 %v3444_v14  ;;  %v3541_v12 = vld [vmem:[%s4036_s10 + $0x804] ss:$16 sps:$4 sm:$0xff]   ;;  %v3544_v14 = vld [vmem:[%s4036_s10 + $0x80c] ss:$16 sps:$4 sm:$0xff]  }
 0x14f   : > { %2182 = vmatprep.subr.bf16.mxu0 %v3449_v15  ;;  %2387 = vmatprep.subr.bf16.mxu1 %v3452_v16  ;;  %v2714_v15 = vcombine.low %v4261_v13, %v4261_v13  ;;  %v3539_v16 = vld [vmem:[%s4036_s10 + $0x800] ss:$16 sps:$4 sm:$0xff]   ;;  %v3548_v13 = vld [vmem:[%s4036_s10 + $0x828] ss:$16 sps:$4 sm:$0xff]  }
 0x150   : > { %2212 = vmatprep.mubr.bf16.mxu0 %v2715_v17  ;;  %2417 = vmatprep.mubr.bf16.mxu1 %v2715_v17  ;;  %v3542_v17 = vld [vmem:[%s4036_s10 + $0x808] ss:$16 sps:$4 sm:$0xff]  }
 0x152   : > { %2183 = vmatpush1.bf16.msra.mxu0 %v3447_v11  ;;  %2388 = vmatpush1.bf16.msra.mxu1 %v3450_v18  ;;  %v3547_v11 = vld [vmem:[%s4036_s10 + $0x824] ss:$16 sps:$4 sm:$0xff]   ;;  %v3550_v18 = vld [vmem:[%s4036_s10 + $0x82c] ss:$16 sps:$4 sm:$0xff]  }
 0x153   : > { %2184 = vmatprep.subr.bf16.mxu0 %v3455_v19  ;;  %2389 = vmatprep.subr.bf16.mxu1 %v3458_v20  ;;  %v3545_v19 = vld [vmem:[%s4036_s10 + $0x820] ss:$16 sps:$4 sm:$0xff]   ;;  %v3553_v20 = vld [vmem:[%s4036_s10 + $0x844] ss:$16 sps:$4 sm:$0xff]  }
 0x156   : > { %2185 = vmatpush1.bf16.msra.mxu0 %v3453_v21  ;;  %2390 = vmatpush1.bf16.msra.mxu1 %v3456_v22  ;;  %v3556_v21 = vld [vmem:[%s4036_s10 + $0x84c] ss:$16 sps:$4 sm:$0xff]   ;;  %v3804_v22 = vmov 0  }
 0x157   : > { %2186 = vmatprep.subr.bf16.mxu0 %v3461_v23  ;;  %2391 = vmatprep.subr.bf16.mxu1 %v3464_v24  ;;  %v3551_v23 = vld [vmem:[%s4036_s10 + $0x840] ss:$16 sps:$4 sm:$0xff]   ;;  %v3554_v24 = vld [vmem:[%s4036_s10 + $0x848] ss:$16 sps:$4 sm:$0xff]  }
 0x15a   : > { %2187 = vmatpush1.bf16.msra.mxu0 %v3459_v25  ;;  %2392 = vmatpush1.bf16.msra.mxu1 %v3462_v26  ;;  %v3559_v25 = vld [vmem:[%s4036_s10 + $0x864] ss:$16 sps:$4 sm:$0xff]   ;;  %v3562_v26 = vld [vmem:[%s4036_s10 + $0x86c] ss:$16 sps:$4 sm:$0xff]  }
 0x15b   : > { %2188 = vmatprep.subr.bf16.mxu0 %v3467_v27  ;;  %2393 = vmatprep.subr.bf16.mxu1 %v3470_v28  ;;  %v3557_v27 = vld [vmem:[%s4036_s10 + $0x860] ss:$16 sps:$4 sm:$0xff]   ;;  %v3560_v28 = vld [vmem:[%s4036_s10 + $0x868] ss:$16 sps:$4 sm:$0xff]  }
 0x15e   : > { %2189 = vmatpush1.bf16.msra.mxu0 %v3465_v29  ;;  %2394 = vmatpush1.bf16.msra.mxu1 %v3468_v30  ;;  %v3565_v29 = vld [vmem:[%s4036_s10 + $0x884] ss:$16 sps:$4 sm:$0xff]   ;;  %v3568_v30 = vld [vmem:[%s4036_s10 + $0x88c] ss:$16 sps:$4 sm:$0xff]  }
 0x15f   : > { %2190 = vmatprep.subr.bf16.mxu0 %v3473_v31  ;;  %2395 = vmatprep.subr.bf16.mxu1 %v3476_v32  ;;  %v3563_v31 = vld [vmem:[%s4036_s10 + $0x880] ss:$16 sps:$4 sm:$0xff]   ;;  %v3566_v32 = vld [vmem:[%s4036_s10 + $0x888] ss:$16 sps:$4 sm:$0xff]  }
 0x162   : > { %2191 = vmatpush1.bf16.msra.mxu0 %v3471_v33  ;;  %2396 = vmatpush1.bf16.msra.mxu1 %v3474_v34  ;;  %v3571_v33 = vld [vmem:[%s4036_s10 + $0x8a4] ss:$16 sps:$4 sm:$0xff]   ;;  %v3574_v34 = vld [vmem:[%s4036_s10 + $0x8ac] ss:$16 sps:$4 sm:$0xff]  }
 0x163   : > { %2192 = vmatprep.subr.bf16.mxu0 %v3479_v35  ;;  %2397 = vmatprep.subr.bf16.mxu1 %v3482_v36  ;;  %v3569_v35 = vld [vmem:[%s4036_s10 + $0x8a0] ss:$16 sps:$4 sm:$0xff]   ;;  %v3572_v36 = vld [vmem:[%s4036_s10 + $0x8a8] ss:$16 sps:$4 sm:$0xff]  }
 0x166   : > { %2193 = vmatpush1.bf16.msra.mxu0 %v3477_v37  ;;  %2398 = vmatpush1.bf16.msra.mxu1 %v3480_v38  ;;  %v3577_v37 = vld [vmem:[%s4036_s10 + $0x8c4] ss:$16 sps:$4 sm:$0xff]   ;;  %v3580_v38 = vld [vmem:[%s4036_s10 + $0x8cc] ss:$16 sps:$4 sm:$0xff]  }
 0x167   : > { %2194 = vmatprep.subr.bf16.mxu0 %v3485_v39  ;;  %2399 = vmatprep.subr.bf16.mxu1 %v3488_v40  ;;  %v3575_v39 = vld [vmem:[%s4036_s10 + $0x8c0] ss:$16 sps:$4 sm:$0xff]   ;;  %v3578_v40 = vld [vmem:[%s4036_s10 + $0x8c8] ss:$16 sps:$4 sm:$0xff]  }
 0x16a   : > { %2195 = vmatpush1.bf16.msra.mxu0 %v3483_v41  ;;  %2400 = vmatpush1.bf16.msra.mxu1 %v3486_v42  ;;  %v3583_v41 = vld [vmem:[%s4036_s10 + $0x8e4] ss:$16 sps:$4 sm:$0xff]   ;;  %v3586_v42 = vld [vmem:[%s4036_s10 + $0x8ec] ss:$16 sps:$4 sm:$0xff]  }
 0x16b   : > { %2196 = vmatprep.subr.bf16.mxu0 %v3491_v43  ;;  %2401 = vmatprep.subr.bf16.mxu1 %v3494_v44  ;;  %v3581_v43 = vld [vmem:[%s4036_s10 + $0x8e0] ss:$16 sps:$4 sm:$0xff]   ;;  %v3584_v44 = vld [vmem:[%s4036_s10 + $0x8e8] ss:$16 sps:$4 sm:$0xff]  }
 0x16e   : > { %2197 = vmatpush1.bf16.msra.mxu0 %v3489_v45  ;;  %2402 = vmatpush1.bf16.msra.mxu1 %v3492_v46  ;;  %v3587_v45 = vld [vmem:[%s4029_s26 + $0x20] ss:$0 sps:$4 sm:$0xff]  }
 0x16f   : > { %2198 = vmatprep.subr.bf16.mxu0 %v3497_v47  ;;  %2403 = vmatprep.subr.bf16.mxu1 %v3500_v48 }
 0x172   : > { %2199 = vmatpush1.bf16.msra.mxu0 %v3495_v49  ;;  %2404 = vmatpush1.bf16.msra.mxu1 %v3498_v50 }
 0x173   : > { %2200 = vmatprep.subr.bf16.mxu0 %v3503_v51  ;;  %2405 = vmatprep.subr.bf16.mxu1 %v3506_v52 }
 0x176   : > { %2201 = vmatpush1.bf16.msra.mxu0 %v3501_v53  ;;  %2406 = vmatpush1.bf16.msra.mxu1 %v3504_v54 }
 0x177   : > { %2202 = vmatprep.subr.bf16.mxu0 %v3509_v55  ;;  %2407 = vmatprep.subr.bf16.mxu1 %v3512_v56 }
 0x17a   : > { %2203 = vmatpush1.bf16.msra.mxu0 %v3507_v57  ;;  %2408 = vmatpush1.bf16.msra.mxu1 %v3510_v58 }
 0x17b   : > { %2204 = vmatprep.subr.bf16.mxu0 %v3515_v59  ;;  %2409 = vmatprep.subr.bf16.mxu1 %v3518_v60 }
 0x17e   : > { %2205 = vmatpush1.bf16.msra.mxu0 %v3513_v61  ;;  %2410 = vmatpush1.bf16.msra.mxu1 %v3516_v62 }
 0x17f   : > { %2206 = vmatprep.subr.bf16.mxu0 %v3521_v63  ;;  %2411 = vmatprep.subr.bf16.mxu1 %v3524_v0 }
 0x182   : > { %2207 = vmatpush1.bf16.msra.mxu0 %v3519_v1  ;;  %2412 = vmatpush1.bf16.msra.mxu1 %v3522_v2 }
 0x183   : > { %2208 = vmatprep.subr.bf16.mxu0 %v3527_v3  ;;  %2413 = vmatprep.subr.bf16.mxu1 %v3530_v4 }
 0x186   : > { %2209 = vmatpush1.bf16.msra.mxu0 %v3525_v5  ;;  %2414 = vmatpush1.bf16.msra.mxu1 %v3528_v6 }
 0x187   : > { %2210 = vmatprep.subr.bf16.mxu0 %v3533_v7  ;;  %2415 = vmatprep.subr.bf16.mxu1 %v3536_v8 }
 0x18a   : > { %2211 = vmatpush1.bf16.msra.mxu0 %v3531_v9  ;;  %2416 = vmatpush1.bf16.msra.mxu1 %v3534_v10 }
 0x18b   : > { %2221 = vmatprep.subr.bf16.mxu0 %v3541_v12  ;;  %2426 = vmatprep.subr.bf16.mxu1 %v3544_v14 }
 0x18d   : > { %2213 = vmatmul.mubr.bf16.vlgmr.msra.gmra.mrb[0].mxu0 %v2714_v15  ;;  %2418 = vmatmul.mubr.bf16.vlgmr.msra.gmra.mrb[0].mxu1 %v2714_v15 }
 0x18e   : > { %2222 = vmatpush1.bf16.msra.mxu0 %v3539_v16  ;;  %2427 = vmatpush1.bf16.msra.mxu1 %v3542_v17 }
 0x18f   : > { %2223 = vmatprep.subr.bf16.mxu0 %v3547_v11  ;;  %2428 = vmatprep.subr.bf16.mxu1 %v3550_v18 }
 0x190   : > { %2253 = vmatprep.mubr.bf16.mxu0 %v3804_v22  ;;  %2458 = vmatprep.mubr.bf16.mxu1 %v3804_v22 }
 0x192   : > { %2224 = vmatpush1.bf16.msra.mxu0 %v3545_v19  ;;  %2429 = vmatpush1.bf16.msra.mxu1 %v3548_v13 }
 0x193   : > { %2225 = vmatprep.subr.bf16.mxu0 %v3553_v20  ;;  %2430 = vmatprep.subr.bf16.mxu1 %v3556_v21 }
 0x196   : > { %2226 = vmatpush1.bf16.msra.mxu0 %v3551_v23  ;;  %2431 = vmatpush1.bf16.msra.mxu1 %v3554_v24 }
 0x197   : > { %2227 = vmatprep.subr.bf16.mxu0 %v3559_v25  ;;  %2432 = vmatprep.subr.bf16.mxu1 %v3562_v26 }
 0x19a   : > { %2228 = vmatpush1.bf16.msra.mxu0 %v3557_v27  ;;  %2433 = vmatpush1.bf16.msra.mxu1 %v3560_v28 }
 0x19b   : > { %2229 = vmatprep.subr.bf16.mxu0 %v3565_v29  ;;  %2434 = vmatprep.subr.bf16.mxu1 %v3568_v30 }
 0x19e   : > { %2230 = vmatpush1.bf16.msra.mxu0 %v3563_v31  ;;  %2435 = vmatpush1.bf16.msra.mxu1 %v3566_v32 }
 0x19f   : > { %2231 = vmatprep.subr.bf16.mxu0 %v3571_v33  ;;  %2436 = vmatprep.subr.bf16.mxu1 %v3574_v34 }
 0x1a2   : > { %2232 = vmatpush1.bf16.msra.mxu0 %v3569_v35  ;;  %2437 = vmatpush1.bf16.msra.mxu1 %v3572_v36 }
 0x1a3   : > { %2233 = vmatprep.subr.bf16.mxu0 %v3577_v37  ;;  %2438 = vmatprep.subr.bf16.mxu1 %v3580_v38 }
 0x1a6   : > { %2234 = vmatpush1.bf16.msra.mxu0 %v3575_v39  ;;  %2439 = vmatpush1.bf16.msra.mxu1 %v3578_v40 }
 0x1a7   : > { %2235 = vmatprep.subr.bf16.mxu0 %v3583_v41  ;;  %2440 = vmatprep.subr.bf16.mxu1 %v3586_v42 }
 0x1aa   : > { %2236 = vmatpush1.bf16.msra.mxu0 %v3581_v43  ;;  %2441 = vmatpush1.bf16.msra.mxu1 %v3584_v44 }
 0x1ad   : > { %2254 = vmatmul.mubr.bf16.vlgmr.msra.gmra.mrb[0].mxu0 %v3587_v45  ;;  %2459 = vmatmul.mubr.bf16.vlgmr.msra.gmra.mrb[0].mxu1 %v3587_v45 }
 0x27d   : > { %2470 = sbr.rel (%p3005_p11) target bundleno = 644 (0x284), region = 56 }
 0x280   : > { %v2255_v46 = vpop.f32.mrb[0].mxu0  ;;  %v2460_v47 = vpop.f32.mrb[0].mxu1 }
 0x281   : > { %v2257_v48 = vpop.f32.mrb[1].mxu0  ;;  %v2462_v49 = vpop.f32.mrb[1].mxu1  ;;  %2471 = vst [vmem:[#allocation2] sm:$0xff] (!%p3005_p11), %v2255_v46  ;;  %2473 = vst [vmem:[#allocation2 + $0x10] sm:$0xff] (!%p3005_p11), %v2460_v47 }
 0x282   : > { %v2259_v50 = vpop.f32.mrb[2].mxu0  ;;  %v2464_v51 = vpop.f32.mrb[2].mxu1  ;;  %2472 = vst [vmem:[#allocation2 + $0x8] sm:$0xff] (!%p3005_p11), %v2257_v48  ;;  %2474 = vst [vmem:[#allocation2 + $0x18] sm:$0xff] (!%p3005_p11), %v2462_v49 }
 0x283   : > { %v2260_v52 = vpop.f32.mrb[3].mxu0  ;;  %v2465_v53 = vpop.f32.mrb[3].mxu1 }
 0x284 PF: > { %p3006_p13 = scmp.le.s32.totalorder %s3788_s18, 0 }
 0x286   : > { %2478 = sbr.rel (%p3006_p13) target bundleno = 653 (0x28d), region = 60 }
 0x288   : > { %v2479_v54 = vld [vmem:[#allocation2] sm:$0xff] (!%p3006_p13)  ;;  %v2481_v56 = vld [vmem:[#allocation2 + $0x10] sm:$0xff] (!%p3006_p13) }
 0x289   : > { %v2480_v55 = vld [vmem:[#allocation2 + $0x8] sm:$0xff] (!%p3006_p13)  ;;  %v2483_v57 = vadd.f32 (!%p3006_p13), %v2479_v54, %v2255_v46  ;;  %v2485_v59 = vadd.f32 (!%p3006_p13), %v2481_v56, %v2460_v47  ;;  %v2482_v60 = vld [vmem:[#allocation2 + $0x18] sm:$0xff] (!%p3006_p13) }
 0x28a   : > { %v2484_v58 = vadd.f32 (!%p3006_p13), %v2480_v55, %v2257_v48  ;;  %v2486_v61 = vadd.f32 (!%p3006_p13), %v2482_v60, %v2462_v49 }
 0x28b   : > { %2487 = vst [vmem:[#allocation2] sm:$0xff] (!%p3006_p13), %v2483_v57  ;;  %2489 = vst [vmem:[#allocation2 + $0x10] sm:$0xff] (!%p3006_p13), %v2485_v59 }
 0x28c   : > { %2488 = vst [vmem:[#allocation2 + $0x8] sm:$0xff] (!%p3006_p13), %v2484_v58  ;;  %2490 = vst [vmem:[#allocation2 + $0x18] sm:$0xff] (!%p3006_p13), %v2486_v61 }
 0x28d PF: > { %p3007_p2 = scmp.ne.s32.totalorder %s3788_s18, 1 }
 0x28e   : > { %v2501_v62 = vlaneseq (!%p3007_p2)  ;;  %v2499_v0 = vld [vmem:[#allocation8] sm:$0xf] (!%p3007_p2)  ;;  %v2525_v1 = vld [vmem:[#allocation9] sm:$0xf] (!%p3007_p2) }
 0x28f   : > { %2494 = sbr.rel (%p3007_p2) target bundleno = 673 (0x2a1), region = 64 }
 0x290   : > { %v2502_v63 = vshrl.u32 (!%p3007_p2), %v2501_v62, 7 }
 0x292   : > { %v2503_v2 = vsub.s32 (!%p3007_p2), 0, %v2502_v63  ;;  %v2507_v3 = vsub.s32 (!%p3007_p2), 1, %v2502_v63  ;;  %v2511_v4 = vsub.s32 (!%p3007_p2), 2, %v2502_v63  ;;  %v2515_v5 = vsub.s32 (!%p3007_p2), 3, %v2502_v63  ;;  %v2495_v6 = vld [vmem:[#allocation2] sm:$0xff] (!%p3007_p2)  ;;  %v2497_v14 = vld [vmem:[#allocation2 + $0x10] sm:$0xff] (!%p3007_p2) }
 0x293   : > { %v2496_v7 = vld [vmem:[#allocation2 + $0x8] sm:$0xff] (!%p3007_p2)  ;;  %v2498_v15 = vld [vmem:[#allocation2 + $0x18] sm:$0xff] (!%p3007_p2) }
 0x294   : > { %v2504_v8 = vrot.slane (!%p3007_p2), %v2499_v0, %v2503_v2  ;;  %v2508_v9 = vrot.slane (!%p3007_p2), %v2499_v0, %v2507_v3  ;;  %v2530_v10 = vrot.slane (!%p3007_p2), %v2525_v1, %v2503_v2  ;;  %v2534_v12 = vrot.slane (!%p3007_p2), %v2525_v1, %v2507_v3 }
 0x295   : > { %v2512_v16 = vrot.slane (!%p3007_p2), %v2499_v0, %v2511_v4  ;;  %v2516_v17 = vrot.slane (!%p3007_p2), %v2499_v0, %v2515_v5  ;;  %v2538_v11 = vrot.slane (!%p3007_p2), %v2525_v1, %v2511_v4  ;;  %v2542_v18 = vrot.slane (!%p3007_p2), %v2525_v1, %v2515_v5 }
 0x296   : > { %v2521_v19 = vmul.f32 %v2504_v8, %v2495_v6  ;;  %v2522_v13 = vmul.f32 %v2508_v9, %v2496_v7 }
 0x297   : > { %v2523_v20 = vmul.f32 %v2512_v16, %v2497_v14  ;;  %v2524_v21 = vmul.f32 %v2516_v17, %v2498_v15 }
 0x298   : > { %v2547_v22 = vadd.f32 %v2530_v10, %v2521_v19  ;;  %v2548_v23 = vadd.f32 %v2534_v12, %v2522_v13 }
 0x299   : > { %v2549_v24 = vadd.f32 %v2538_v11, %v2523_v20  ;;  %v2550_v25 = vadd.f32 %v2542_v18, %v2524_v21 }
 0x29a   : > { %vm2551_vm0 = vcmp.ge.f32.partialorder %v2547_v22, 0.0  ;;  %vm2552_vm1 = vcmp.ge.f32.partialorder %v2548_v23, 0.0  ;;  %v2555_v26 = vmul.f32 0.2, %v2547_v22  ;;  %v2556_v27 = vmul.f32 0.2, %v2548_v23 }
 0x29b   : > { %vm2553_vm2 = vcmp.ge.f32.partialorder %v2549_v24, 0.0  ;;  %vm2554_vm3 = vcmp.ge.f32.partialorder %v2550_v25, 0.0  ;;  %v2557_v28 = vmul.f32 0.2, %v2549_v24  ;;  %v2558_v29 = vmul.f32 0.2, %v2550_v25 }
 0x29c   : > { %v2559_v30 = vsel %vm2551_vm0, %v2547_v22, %v2555_v26  ;;  %v2560_v31 = vsel %vm2552_vm1, %v2548_v23, %v2556_v27 }
 0x29d   : > { %v3017_v32 = vpack.c.bf16 %v2560_v31, %v2559_v30  ;;  %v2561_v33 = vsel %vm2553_vm2, %v2549_v24, %v2557_v28  ;;  %v2562_v34 = vsel %vm2554_vm3, %v2550_v25, %v2558_v29 }
 0x29e   : > { %v3018_v35 = vpack.c.bf16 %v2562_v34, %v2561_v33 }
 0x29f   : > { %2579 = vst [vmem:[#allocation11] sm:$0xff] %v3017_v32 }
 0x2a0   : > { %2580 = vst [vmem:[#allocation11 + $0x8] sm:$0xff] %v3018_v35 }
 0x2a1 PF: > { %p3091_p3 = scmp.eq.s32.totalorder %s3860_s21, 1  ;;  %s3805_s18 = smov [#allocation11]  }
 0x2a2   : > { %s2591_s22 = sshll.u32 %s3805_s18, 4  ;;  %s2592_s22 = int_to_ptr.vmem [resolvable:$true] %s2591_s22 }
 0x2a3   : > { %s3704_s23 = scalar_lea.vmem %s2592_s22, 256  ;;  %p3711_p1 = scmp.lt.s32.totalorder %s2592_s22, %s2592_s22 }
 0x2a4   : > { %p3705_p0 = scmp.ne.s32.totalorder %s2592_s22, %s3704_s23  ;;  %p3712_p12 = scmp.lt.s32.totalorder %s3704_s23, %s3704_s23 }
 0x2a6   : > { %p3706_p6 = pnand %p3705_p0, %p3091_p3  ;;  %p3713_p9 = por %p3712_p12, %p3711_p1 }
 0x2a8   : > { %p3707_p8 = pneg %p3706_p6 }
 0x2aa   : > { %p3714_p7 = pnand %p3713_p9, %p3707_p8 }
 0x2ac   : > { %3717 = shalt.err (!%p3714_p7)
}
 0x2ad   : > { %s3718_s24 = scalar_lea.hbm %s4409_s4, 256 }
 0x2ae   : > { %p3719_p4 = scmp.ne.s32.totalorder %s4409_s4, %s3718_s24  ;;  %p3724_p11 = scmp.lt.u32.totalorder %s3718_s24, %s4409_s4 }
 0x2b0   : > { %p3720_p5 = pnand %p3719_p4, %p3091_p3 }
 0x2b2   : > { %p3721_p10 = pneg %p3720_p5 }
 0x2b4   : > { %p3726_p13 = pnand %p3724_p11, %p3721_p10 }
 0x2b6   : > { %3729 = shalt.err (!%p3726_p13)
}
 0x2b7   : > { %3069 = dma.vmem_to_hbm [thread:$0]  (%p3091_p3), %s2592_s22, 256, %s4409_s4, [#allocation5]  }
 0x2b8   : > { %3771 = dma.done.wait (%p3091_p3), [#allocation5], 256  }
 0x2b9   : > { %3773 = vsyncadd (%p3091_p3), [#allocation5], 4294967040 }
 0x2ba PF: > { %s22_s20 = sadd.s32 1, %s3796_s20   ;;  %s4423_s15 = smov %s3780_s16 }
 0x2bb   : > { %p19_p2 = scmp.ge.s32.totalorder %s22_s20, 4   ;;  %s4424_s16 = smov %s3784_s17 }
 0x2bc   : > { %s4425_s17 = smov %s3953_s12  ;;  %s4426_s18 = smov %s3792_s19 }
 0x2bd   : > { %s4427_s19 = smov %s4429_s7  ;;  %21 = sbr.rel (!%p19_p2) target bundleno = 8 (0x8), region = 107 }
 0x2c4   :  { %2604 = vsyncpa [#allocation4], 1 }
 0x2c5   :  { %2606 = vsyncpa [#allocation4 + $0x1], 1 }
 0x2c6   :  { %2607 = vsyncpa [#allocation7], 1 }
 0x2c7   :  { %2609 = vsyncpa [#allocation7 + $0x1], 1 }
 0x2c8   :  { %2610 = vsyncpa [#allocation10], 1 }
 0x2c9   :  { %2611 = vsyncpa [#allocation5], 1 }
 0x2ca   :  { %2613 = vsyncpa [#allocation5 + $0x1], 1 }

</bundles_post_ra>
